<compile_context>
chip_gen: v7x
topology: tpu7x:2x2x1
jax: 0.10.0
libtpu: 0.0.40
codegen_flags: <defaults>
</compile_context>

<pallas_src>
import jax
import jax.numpy as jnp
from jax.experimental import pallas as pl
from jax.experimental.pallas import tpu as pltpu


# ----------------------------- fused Pallas kernel -----------------------------

def _maxpool2x2(y, h, w, c):
    """y: (h*w, c) or (h, w, c) value with rows in row-major (h, w) order.
    Returns (h//2 * w//2, c). Uses only last-dim-preserving reshapes + axis maxes."""
    hp, wp = h // 2, w // 2
    y = y.reshape(h, w, c)
    if (h != 2 * hp) or (w != 2 * wp):      # floor-pool (torch MaxPool2d) for odd dims
        y = y[:2 * hp, :2 * wp, :]
    m = jnp.max(y.reshape(2 * hp * wp, 2, c), axis=1)   # pairwise max along W
    m = jnp.max(m.reshape(hp, 2, wp, c), axis=1)        # pairwise max along H
    return m.reshape(hp * wp, c)


def cnn_fused_kernel(x_ref, w1_ref, b1_ref, w2_ref, b2_ref, w3_ref, b3_ref,
                     wc_ref, bc_ref, o_ref,
                     pad1, pad2, pad3, im2, im3):
    H, W = x_ref.shape[1], x_ref.shape[2]
    C1 = w1_ref.shape[2]          # 16
    C2 = w2_ref.shape[1]          # 32
    C3 = w3_ref.shape[1]          # 64
    H2, W2 = H // 2, W // 2
    H4, W4 = H2 // 2, W2 // 2

    # ---------- conv1 (Cin=1) + ReLU: 9 VPU broadcast-FMAs over shifted views ----------
    pad1[...] = jnp.zeros(pad1.shape, pad1.dtype)
    pad1[1:H + 1, 1:W + 1, :] = x_ref[0]                 # zero-padded input (H+2, W+2, 1)
    acc1 = pad1[0:H, 0:W, :] * w1_ref[0]                 # tap (ky=0, kx=0); init, no zero-fill
    for t in range(1, 9):
        ky, kx = t // 3, t % 3
        acc1 = acc1 + pad1[ky:ky + H, kx:kx + W, :] * w1_ref[t]
    y1 = jnp.maximum(acc1 + b1_ref[...], 0.0)            # (H, W, C1)

    p1 = _maxpool2x2(y1, H, W, C1)                       # (H2*W2, C1)

    # ---------- conv2 + ReLU: in-kernel im2col, single MXU matmul with K = 9*C1 ----------
    pad2[...] = jnp.zeros(pad2.shape, pad2.dtype)
    pad2[1:H2 + 1, 1:W2 + 1, :] = p1.reshape(H2, W2, C1)
    for t in range(9):
        ky, kx = t // 3, t % 3
        im2[:, t * C1:(t + 1) * C1] = pad2[ky:ky + H2, kx:kx + W2, :].reshape(H2 * W2, C1)
    y2 = jnp.maximum(
        jnp.dot(im2[...], w2_ref[...], preferred_element_type=jnp.float32) + b2_ref[...],
        0.0)                                             # (H2*W2, C2)

    p2 = _maxpool2x2(y2, H2, W2, C2)                     # (H4*W4, C2)

    # ---------- conv3 + ReLU: in-kernel im2col, single MXU matmul with K = 9*C2 ----------
    pad3[...] = jnp.zeros(pad3.shape, pad3.dtype)
    pad3[1:H4 + 1, 1:W4 + 1, :] = p2.reshape(H4, W4, C2)
    for t in range(9):
        ky, kx = t // 3, t % 3
        im3[:, t * C2:(t + 1) * C2] = pad3[ky:ky + H4, kx:kx + W4, :].reshape(H4 * W4, C2)
    y3 = jnp.maximum(
        jnp.dot(im3[...], w3_ref[...], preferred_element_type=jnp.float32) + b3_ref[...],
        0.0)                                             # (H4*W4, C3)

    # ---------- global average pool + linear classifier ----------
    pooled = jnp.sum(y3, axis=0, keepdims=True) * (1.0 / float(H4 * W4))   # (1, C3)
    logits = jnp.dot(pooled, wc_ref[...], preferred_element_type=jnp.float32) + bc_ref[...]
    o_ref[0] = logits                                    # output block (1, 1, NC)


# ----------------------------- wrapper -----------------------------

def cnn_only_forward(x, params):
    """x: (B, n_mfcc, time_steps) float -> logits (B, num_classes). One fused pallas_call."""
    B, H, W = x.shape
    C1 = params["w1"].shape[-1]
    C2 = params["w2"].shape[-1]
    C3 = params["w3"].shape[-1]
    NC = params["wc"].shape[-1]
    H2, W2 = H // 2, W // 2
    H4, W4 = H2 // 2, W2 // 2
    f32 = jnp.float32

    x4 = x.astype(f32)[..., None]                        # NHWC with C=1 (== torch unsqueeze(1))
    args = (
        x4,
        params["w1"].reshape(9, 1, C1).astype(f32),      # tap-major conv1 weights
        params["b1"].reshape(1, C1).astype(f32),
        params["w2"].reshape(9 * C1, C2).astype(f32),    # im2col weight matrices (K = 9*Cin)
        params["b2"].reshape(1, C2).astype(f32),
        params["w3"].reshape(9 * C2, C3).astype(f32),
        params["b3"].reshape(1, C3).astype(f32),
        params["wc"].astype(f32),
        params["bc"].reshape(1, NC).astype(f32),
    )

    out = pl.pallas_call(
        cnn_fused_kernel,
        out_shape=jax.ShapeDtypeStruct((B, 1, NC), f32),
        grid=(B,),
        in_specs=[
            pl.BlockSpec((1, H, W, 1), lambda i: (i, 0, 0, 0)),
            pl.BlockSpec((9, 1, C1), lambda i: (0, 0, 0)),
            pl.BlockSpec((1, C1), lambda i: (0, 0)),
            pl.BlockSpec((9 * C1, C2), lambda i: (0, 0)),
            pl.BlockSpec((1, C2), lambda i: (0, 0)),
            pl.BlockSpec((9 * C2, C3), lambda i: (0, 0)),
            pl.BlockSpec((1, C3), lambda i: (0, 0)),
            pl.BlockSpec((C3, NC), lambda i: (0, 0)),
            pl.BlockSpec((1, NC), lambda i: (0, 0)),
        ],
        out_specs=pl.BlockSpec((1, 1, NC), lambda i: (i, 0, 0)),
        scratch_shapes=[
            pltpu.VMEM((H + 2, W + 2, 1), f32),          # padded raw input
            pltpu.VMEM((H2 + 2, W2 + 2, C1), f32),       # padded pool1 output
            pltpu.VMEM((H4 + 2, W4 + 2, C2), f32),       # padded pool2 output
            pltpu.VMEM((H2 * W2, 9 * C1), f32),          # conv2 im2col buffer
            pltpu.VMEM((H4 * W4, 9 * C2), f32),          # conv3 im2col buffer
        ],
        compiler_params=pltpu.CompilerParams(
            dimension_semantics=("parallel",)),          # batch -> both TCs on v7x
    )(*args)
    return out.reshape(B, NC)


# ----------------------------- reference (pure JAX) -----------------------------

def reference_forward(x, params):
    h = x.astype(jnp.float32)[..., None]

    def conv(h, w, b):
        y = jax.lax.conv_general_dilated(
            h, w, window_strides=(1, 1), padding="SAME",
            dimension_numbers=("NHWC", "HWIO", "NHWC"))
        return jax.nn.relu(y + b)

    def pool(h):
        return jax.lax.reduce_window(h, -jnp.inf, jax.lax.max,
                                     (1, 2, 2, 1), (1, 2, 2, 1), "VALID")

    h = pool(conv(h, params["w1"], params["b1"]))
    h = pool(conv(h, params["w2"], params["b2"]))
    h = conv(h, params["w3"], params["b3"])
    pooled = jnp.mean(h, axis=(1, 2))
    return pooled @ params["wc"] + params["bc"]


# ----------------------------- main -----------------------------

def init_params(key, num_classes=2):
    ks = jax.random.split(key, 8)
    s = 0.1
    return {
        "w1": s * jax.random.normal(ks[0], (3, 3, 1, 16), jnp.float32),
        "b1": s * jax.random.normal(ks[1], (16,), jnp.float32),
        "w2": s * jax.random.normal(ks[2], (3, 3, 16, 32), jnp.float32),
        "b2": s * jax.random.normal(ks[3], (32,), jnp.float32),
        "w3": s * jax.random.normal(ks[4], (3, 3, 32, 64), jnp.float32),
        "b3": s * jax.random.normal(ks[5], (64,), jnp.float32),
        "wc": s * jax.random.normal(ks[6], (64, num_classes), jnp.float32),
        "bc": s * jax.random.normal(ks[7], (num_classes,), jnp.float32),
    }


if __name__ == "__main__":
    key = jax.random.PRNGKey(0)
    k_x, k_p = jax.random.split(key)
    # small shapes: batch=2, n_mfcc=16, time_steps=16 (divisible by 4 for the two 2x2 pools)
    x = jax.random.normal(k_x, (2, 16, 16), jnp.float32)
    params = init_params(k_p, num_classes=2)

    out = jax.block_until_ready(cnn_only_forward(x, params))
    ref = jax.block_until_ready(reference_forward(x, params))

    assert out.shape == (2, 2), out.shape
    assert jnp.allclose(out, ref, rtol=1e-4, atol=1e-4), (out, ref)
    print("KERNEL_OK")
</pallas_src>

<mosaic_0001>
module attributes {stable_mosaic.version = 11 : i64} {
  func.func @cnn_fused_kernel(%arg0: i32, %arg1: memref<1x16x16x1xf32, #tpu.memory_space<vmem>>, %arg2: memref<9x1x16xf32, #tpu.memory_space<vmem>>, %arg3: memref<1x16xf32, #tpu.memory_space<vmem>>, %arg4: memref<144x32xf32, #tpu.memory_space<vmem>>, %arg5: memref<1x32xf32, #tpu.memory_space<vmem>>, %arg6: memref<288x64xf32, #tpu.memory_space<vmem>>, %arg7: memref<1x64xf32, #tpu.memory_space<vmem>>, %arg8: memref<64x2xf32, #tpu.memory_space<vmem>>, %arg9: memref<1x2xf32, #tpu.memory_space<vmem>>, %arg10: memref<1x1x2xf32, #tpu.memory_space<vmem>>, %arg11: memref<18x18x1xf32, #tpu.memory_space<vmem>>, %arg12: memref<10x10x16xf32, #tpu.memory_space<vmem>>, %arg13: memref<6x6x32xf32, #tpu.memory_space<vmem>>, %arg14: memref<64x144xf32, #tpu.memory_space<vmem>>, %arg15: memref<16x288xf32, #tpu.memory_space<vmem>>) attributes {dimension_semantics = [#tpu.dimension_semantics<parallel>], iteration_bounds = array<i64: 2>, scalar_prefetch = 0 : i64, scratch_operands = 5 : i64, tpu.core_type = #tpu.core_type<tc>, window_params = [{transform_indices = @transform_0, window_bounds = array<i64: 1, 16, 16, 1>}, {pipeline_mode = #tpu.pipeline_mode<synchronous>, transform_indices = @transform_1, window_bounds = array<i64: 9, 1, 16>}, {pipeline_mode = #tpu.pipeline_mode<synchronous>, transform_indices = @transform_2, window_bounds = array<i64: 1, 16>}, {pipeline_mode = #tpu.pipeline_mode<synchronous>, transform_indices = @transform_3, window_bounds = array<i64: 144, 32>}, {pipeline_mode = #tpu.pipeline_mode<synchronous>, transform_indices = @transform_4, window_bounds = array<i64: 1, 32>}, {pipeline_mode = #tpu.pipeline_mode<synchronous>, transform_indices = @transform_5, window_bounds = array<i64: 288, 64>}, {pipeline_mode = #tpu.pipeline_mode<synchronous>, transform_indices = @transform_6, window_bounds = array<i64: 1, 64>}, {pipeline_mode = #tpu.pipeline_mode<synchronous>, transform_indices = @transform_7, window_bounds = array<i64: 64, 2>}, {pipeline_mode = #tpu.pipeline_mode<synchronous>, transform_indices = @transform_8, window_bounds = array<i64: 1, 2>}, {transform_indices = @transform_9, window_bounds = array<i64: 1, 1, 2>}]} {
    %cst = arith.constant 0.000000e+00 : f32
    %0 = vector.broadcast %cst : f32 to vector<18x18x1xf32>
    %c0 = arith.constant 0 : index
    %c0_0 = arith.constant 0 : index
    %c0_1 = arith.constant 0 : index
    %1 = vector.load %arg11[%c0, %c0_0, %c0_1] : memref<18x18x1xf32, #tpu.memory_space<vmem>>, vector<18x18x1xf32>
    tpu.vector_store %arg11[%c0, %c0_0, %c0_1], %0 {strides = array<i32>} : memref<18x18x1xf32, #tpu.memory_space<vmem>>, vector<18x18x1xf32>,
    %c0_2 = arith.constant 0 : index
    %c0_3 = arith.constant 0 : index
    %c0_4 = arith.constant 0 : index
    %c0_5 = arith.constant 0 : index
    %2 = vector.load %arg1[%c0_2, %c0_3, %c0_4, %c0_5] : memref<1x16x16x1xf32, #tpu.memory_space<vmem>>, vector<1x16x16x1xf32>
    %3 = vector.shape_cast %2 : vector<1x16x16x1xf32> to vector<16x16x1xf32>
    %c1 = arith.constant 1 : index
    %c1_6 = arith.constant 1 : index
    %c0_7 = arith.constant 0 : index
    %4 = vector.load %arg11[%c1, %c1_6, %c0_7] : memref<18x18x1xf32, #tpu.memory_space<vmem>>, vector<16x16x1xf32>
    tpu.vector_store %arg11[%c1, %c1_6, %c0_7], %3 {strides = array<i32>} : memref<18x18x1xf32, #tpu.memory_space<vmem>>, vector<16x16x1xf32>,
    %c0_8 = arith.constant 0 : index
    %c0_9 = arith.constant 0 : index
    %c0_10 = arith.constant 0 : index
    %5 = vector.load %arg11[%c0_8, %c0_9, %c0_10] : memref<18x18x1xf32, #tpu.memory_space<vmem>>, vector<16x16x1xf32>
    %c0_11 = arith.constant 0 : index
    %c0_12 = arith.constant 0 : index
    %c0_13 = arith.constant 0 : index
    %6 = vector.load %arg2[%c0_11, %c0_12, %c0_13] : memref<9x1x16xf32, #tpu.memory_space<vmem>>, vector<1x1x16xf32>
    %7 = vector.shape_cast %6 : vector<1x1x16xf32> to vector<1x16xf32>
    %8 = vector.shape_cast %7 : vector<1x16xf32> to vector<1x1x16xf32>
    %9 = vector.broadcast %5 : vector<16x16x1xf32> to vector<16x16x16xf32>
    %10 = vector.broadcast %8 : vector<1x1x16xf32> to vector<16x16x16xf32>
    %11 = arith.mulf %9, %10 : vector<16x16x16xf32>
    %c0_14 = arith.constant 0 : index
    %c1_15 = arith.constant 1 : index
    %c0_16 = arith.constant 0 : index
    %12 = vector.load %arg11[%c0_14, %c1_15, %c0_16] : memref<18x18x1xf32, #tpu.memory_space<vmem>>, vector<16x16x1xf32>
    %c1_17 = arith.constant 1 : index
    %c0_18 = arith.constant 0 : index
    %c0_19 = arith.constant 0 : index
    %13 = vector.load %arg2[%c1_17, %c0_18, %c0_19] : memref<9x1x16xf32, #tpu.memory_space<vmem>>, vector<1x1x16xf32>
    %14 = vector.shape_cast %13 : vector<1x1x16xf32> to vector<1x16xf32>
    %15 = vector.shape_cast %14 : vector<1x16xf32> to vector<1x1x16xf32>
    %16 = vector.broadcast %12 : vector<16x16x1xf32> to vector<16x16x16xf32>
    %17 = vector.broadcast %15 : vector<1x1x16xf32> to vector<16x16x16xf32>
    %18 = arith.mulf %16, %17 : vector<16x16x16xf32>
    %19 = arith.addf %11, %18 : vector<16x16x16xf32>
    %c0_20 = arith.constant 0 : index
    %c2 = arith.constant 2 : index
    %c0_21 = arith.constant 0 : index
    %20 = vector.load %arg11[%c0_20, %c2, %c0_21] : memref<18x18x1xf32, #tpu.memory_space<vmem>>, vector<16x16x1xf32>
    %c2_22 = arith.constant 2 : index
    %c0_23 = arith.constant 0 : index
    %c0_24 = arith.constant 0 : index
    %21 = vector.load %arg2[%c2_22, %c0_23, %c0_24] : memref<9x1x16xf32, #tpu.memory_space<vmem>>, vector<1x1x16xf32>
    %22 = vector.shape_cast %21 : vector<1x1x16xf32> to vector<1x16xf32>
    %23 = vector.shape_cast %22 : vector<1x16xf32> to vector<1x1x16xf32>
    %24 = vector.broadcast %20 : vector<16x16x1xf32> to vector<16x16x16xf32>
    %25 = vector.broadcast %23 : vector<1x1x16xf32> to vector<16x16x16xf32>
    %26 = arith.mulf %24, %25 : vector<16x16x16xf32>
    %27 = arith.addf %19, %26 : vector<16x16x16xf32>
    %c1_25 = arith.constant 1 : index
    %c0_26 = arith.constant 0 : index
    %c0_27 = arith.constant 0 : index
    %28 = vector.load %arg11[%c1_25, %c0_26, %c0_27] : memref<18x18x1xf32, #tpu.memory_space<vmem>>, vector<16x16x1xf32>
    %c3 = arith.constant 3 : index
    %c0_28 = arith.constant 0 : index
    %c0_29 = arith.constant 0 : index
    %29 = vector.load %arg2[%c3, %c0_28, %c0_29] : memref<9x1x16xf32, #tpu.memory_space<vmem>>, vector<1x1x16xf32>
    %30 = vector.shape_cast %29 : vector<1x1x16xf32> to vector<1x16xf32>
    %31 = vector.shape_cast %30 : vector<1x16xf32> to vector<1x1x16xf32>
    %32 = vector.broadcast %28 : vector<16x16x1xf32> to vector<16x16x16xf32>
    %33 = vector.broadcast %31 : vector<1x1x16xf32> to vector<16x16x16xf32>
    %34 = arith.mulf %32, %33 : vector<16x16x16xf32>
    %35 = arith.addf %27, %34 : vector<16x16x16xf32>
    %c1_30 = arith.constant 1 : index
    %c1_31 = arith.constant 1 : index
    %c0_32 = arith.constant 0 : index
    %36 = vector.load %arg11[%c1_30, %c1_31, %c0_32] : memref<18x18x1xf32, #tpu.memory_space<vmem>>, vector<16x16x1xf32>
    %c4 = arith.constant 4 : index
    %c0_33 = arith.constant 0 : index
    %c0_34 = arith.constant 0 : index
    %37 = vector.load %arg2[%c4, %c0_33, %c0_34] : memref<9x1x16xf32, #tpu.memory_space<vmem>>, vector<1x1x16xf32>
    %38 = vector.shape_cast %37 : vector<1x1x16xf32> to vector<1x16xf32>
    %39 = vector.shape_cast %38 : vector<1x16xf32> to vector<1x1x16xf32>
    %40 = vector.broadcast %36 : vector<16x16x1xf32> to vector<16x16x16xf32>
    %41 = vector.broadcast %39 : vector<1x1x16xf32> to vector<16x16x16xf32>
    %42 = arith.mulf %40, %41 : vector<16x16x16xf32>
    %43 = arith.addf %35, %42 : vector<16x16x16xf32>
    %c1_35 = arith.constant 1 : index
    %c2_36 = arith.constant 2 : index
    %c0_37 = arith.constant 0 : index
    %44 = vector.load %arg11[%c1_35, %c2_36, %c0_37] : memref<18x18x1xf32, #tpu.memory_space<vmem>>, vector<16x16x1xf32>
    %c5 = arith.constant 5 : index
    %c0_38 = arith.constant 0 : index
    %c0_39 = arith.constant 0 : index
    %45 = vector.load %arg2[%c5, %c0_38, %c0_39] : memref<9x1x16xf32, #tpu.memory_space<vmem>>, vector<1x1x16xf32>
    %46 = vector.shape_cast %45 : vector<1x1x16xf32> to vector<1x16xf32>
    %47 = vector.shape_cast %46 : vector<1x16xf32> to vector<1x1x16xf32>
    %48 = vector.broadcast %44 : vector<16x16x1xf32> to vector<16x16x16xf32>
    %49 = vector.broadcast %47 : vector<1x1x16xf32> to vector<16x16x16xf32>
    %50 = arith.mulf %48, %49 : vector<16x16x16xf32>
    %51 = arith.addf %43, %50 : vector<16x16x16xf32>
    %c2_40 = arith.constant 2 : index
    %c0_41 = arith.constant 0 : index
    %c0_42 = arith.constant 0 : index
    %52 = vector.load %arg11[%c2_40, %c0_41, %c0_42] : memref<18x18x1xf32, #tpu.memory_space<vmem>>, vector<16x16x1xf32>
    %c6 = arith.constant 6 : index
    %c0_43 = arith.constant 0 : index
    %c0_44 = arith.constant 0 : index
    %53 = vector.load %arg2[%c6, %c0_43, %c0_44] : memref<9x1x16xf32, #tpu.memory_space<vmem>>, vector<1x1x16xf32>
    %54 = vector.shape_cast %53 : vector<1x1x16xf32> to vector<1x16xf32>
    %55 = vector.shape_cast %54 : vector<1x16xf32> to vector<1x1x16xf32>
    %56 = vector.broadcast %52 : vector<16x16x1xf32> to vector<16x16x16xf32>
    %57 = vector.broadcast %55 : vector<1x1x16xf32> to vector<16x16x16xf32>
    %58 = arith.mulf %56, %57 : vector<16x16x16xf32>
    %59 = arith.addf %51, %58 : vector<16x16x16xf32>
    %c2_45 = arith.constant 2 : index
    %c1_46 = arith.constant 1 : index
    %c0_47 = arith.constant 0 : index
    %60 = vector.load %arg11[%c2_45, %c1_46, %c0_47] : memref<18x18x1xf32, #tpu.memory_space<vmem>>, vector<16x16x1xf32>
    %c7 = arith.constant 7 : index
    %c0_48 = arith.constant 0 : index
    %c0_49 = arith.constant 0 : index
    %61 = vector.load %arg2[%c7, %c0_48, %c0_49] : memref<9x1x16xf32, #tpu.memory_space<vmem>>, vector<1x1x16xf32>
    %62 = vector.shape_cast %61 : vector<1x1x16xf32> to vector<1x16xf32>
    %63 = vector.shape_cast %62 : vector<1x16xf32> to vector<1x1x16xf32>
    %64 = vector.broadcast %60 : vector<16x16x1xf32> to vector<16x16x16xf32>
    %65 = vector.broadcast %63 : vector<1x1x16xf32> to vector<16x16x16xf32>
    %66 = arith.mulf %64, %65 : vector<16x16x16xf32>
    %67 = arith.addf %59, %66 : vector<16x16x16xf32>
    %c2_50 = arith.constant 2 : index
    %c2_51 = arith.constant 2 : index
    %c0_52 = arith.constant 0 : index
    %68 = vector.load %arg11[%c2_50, %c2_51, %c0_52] : memref<18x18x1xf32, #tpu.memory_space<vmem>>, vector<16x16x1xf32>
    %c8 = arith.constant 8 : index
    %c0_53 = arith.constant 0 : index
    %c0_54 = arith.constant 0 : index
    %69 = vector.load %arg2[%c8, %c0_53, %c0_54] : memref<9x1x16xf32, #tpu.memory_space<vmem>>, vector<1x1x16xf32>
    %70 = vector.shape_cast %69 : vector<1x1x16xf32> to vector<1x16xf32>
    %71 = vector.shape_cast %70 : vector<1x16xf32> to vector<1x1x16xf32>
    %72 = vector.broadcast %68 : vector<16x16x1xf32> to vector<16x16x16xf32>
    %73 = vector.broadcast %71 : vector<1x1x16xf32> to vector<16x16x16xf32>
    %74 = arith.mulf %72, %73 : vector<16x16x16xf32>
    %75 = arith.addf %67, %74 : vector<16x16x16xf32>
    %c0_55 = arith.constant 0 : index
    %c0_56 = arith.constant 0 : index
    %76 = vector.load %arg3[%c0_55, %c0_56] : memref<1x16xf32, #tpu.memory_space<vmem>>, vector<1x16xf32>
    %77 = vector.shape_cast %76 : vector<1x16xf32> to vector<1x1x16xf32>
    %78 = vector.broadcast %77 : vector<1x1x16xf32> to vector<16x16x16xf32>
    %79 = arith.addf %75, %78 : vector<16x16x16xf32>
    %cst_57 = arith.constant 0.000000e+00 : f32
    %80 = vector.broadcast %cst_57 : f32 to vector<16x16x16xf32>
    %81 = arith.maximumf %79, %80 : vector<16x16x16xf32>
    %82 = vector.shape_cast %81 : vector<16x16x16xf32> to vector<128x2x16xf32>
    %cst_58 = arith.constant dense<0xFF800000> : vector<128x16xf32>
    %83 = vector.multi_reduction <maximumf>, %82, %cst_58 [1] : vector<128x2x16xf32> to vector<128x16xf32>
    %84 = vector.shape_cast %83 : vector<128x16xf32> to vector<8x2x8x16xf32>
    %cst_59 = arith.constant dense<0xFF800000> : vector<8x8x16xf32>
    %85 = vector.multi_reduction <maximumf>, %84, %cst_59 [1] : vector<8x2x8x16xf32> to vector<8x8x16xf32>
    %86 = vector.shape_cast %85 : vector<8x8x16xf32> to vector<64x16xf32>
    %cst_60 = arith.constant 0.000000e+00 : f32
    %87 = vector.broadcast %cst_60 : f32 to vector<10x10x16xf32>
    %c0_61 = arith.constant 0 : index
    %c0_62 = arith.constant 0 : index
    %c0_63 = arith.constant 0 : index
    %88 = vector.load %arg12[%c0_61, %c0_62, %c0_63] : memref<10x10x16xf32, #tpu.memory_space<vmem>>, vector<10x10x16xf32>
    tpu.vector_store %arg12[%c0_61, %c0_62, %c0_63], %87 {strides = array<i32>} : memref<10x10x16xf32, #tpu.memory_space<vmem>>, vector<10x10x16xf32>,
    %89 = vector.shape_cast %86 : vector<64x16xf32> to vector<8x8x16xf32>
    %c1_64 = arith.constant 1 : index
    %c1_65 = arith.constant 1 : index
    %c0_66 = arith.constant 0 : index
    %90 = vector.load %arg12[%c1_64, %c1_65, %c0_66] : memref<10x10x16xf32, #tpu.memory_space<vmem>>, vector<8x8x16xf32>
    tpu.vector_store %arg12[%c1_64, %c1_65, %c0_66], %89 {strides = array<i32>} : memref<10x10x16xf32, #tpu.memory_space<vmem>>, vector<8x8x16xf32>,
    %c0_67 = arith.constant 0 : index
    %c0_68 = arith.constant 0 : index
    %c0_69 = arith.constant 0 : index
    %91 = vector.load %arg12[%c0_67, %c0_68, %c0_69] : memref<10x10x16xf32, #tpu.memory_space<vmem>>, vector<8x8x16xf32>
    %92 = vector.shape_cast %91 : vector<8x8x16xf32> to vector<64x16xf32>
    %c0_70 = arith.constant 0 : index
    %c0_71 = arith.constant 0 : index
    %93 = vector.load %arg14[%c0_70, %c0_71] : memref<64x144xf32, #tpu.memory_space<vmem>>, vector<64x16xf32>
    tpu.vector_store %arg14[%c0_70, %c0_71], %92 {strides = array<i32>} : memref<64x144xf32, #tpu.memory_space<vmem>>, vector<64x16xf32>,
    %c0_72 = arith.constant 0 : index
    %c1_73 = arith.constant 1 : index
    %c0_74 = arith.constant 0 : index
    %94 = vector.load %arg12[%c0_72, %c1_73, %c0_74] : memref<10x10x16xf32, #tpu.memory_space<vmem>>, vector<8x8x16xf32>
    %95 = vector.shape_cast %94 : vector<8x8x16xf32> to vector<64x16xf32>
    %c0_75 = arith.constant 0 : index
    %c16 = arith.constant 16 : index
    %96 = vector.load %arg14[%c0_75, %c16] : memref<64x144xf32, #tpu.memory_space<vmem>>, vector<64x16xf32>
    tpu.vector_store %arg14[%c0_75, %c16], %95 {strides = array<i32>} : memref<64x144xf32, #tpu.memory_space<vmem>>, vector<64x16xf32>,
    %c0_76 = arith.constant 0 : index
    %c2_77 = arith.constant 2 : index
    %c0_78 = arith.constant 0 : index
    %97 = vector.load %arg12[%c0_76, %c2_77, %c0_78] : memref<10x10x16xf32, #tpu.memory_space<vmem>>, vector<8x8x16xf32>
    %98 = vector.shape_cast %97 : vector<8x8x16xf32> to vector<64x16xf32>
    %c0_79 = arith.constant 0 : index
    %c32 = arith.constant 32 : index
    %99 = vector.load %arg14[%c0_79, %c32] : memref<64x144xf32, #tpu.memory_space<vmem>>, vector<64x16xf32>
    tpu.vector_store %arg14[%c0_79, %c32], %98 {strides = array<i32>} : memref<64x144xf32, #tpu.memory_space<vmem>>, vector<64x16xf32>,
    %c1_80 = arith.constant 1 : index
    %c0_81 = arith.constant 0 : index
    %c0_82 = arith.constant 0 : index
    %100 = vector.load %arg12[%c1_80, %c0_81, %c0_82] : memref<10x10x16xf32, #tpu.memory_space<vmem>>, vector<8x8x16xf32>
    %101 = vector.shape_cast %100 : vector<8x8x16xf32> to vector<64x16xf32>
    %c0_83 = arith.constant 0 : index
    %c48 = arith.constant 48 : index
    %102 = vector.load %arg14[%c0_83, %c48] : memref<64x144xf32, #tpu.memory_space<vmem>>, vector<64x16xf32>
    tpu.vector_store %arg14[%c0_83, %c48], %101 {strides = array<i32>} : memref<64x144xf32, #tpu.memory_space<vmem>>, vector<64x16xf32>,
    %c1_84 = arith.constant 1 : index
    %c1_85 = arith.constant 1 : index
    %c0_86 = arith.constant 0 : index
    %103 = vector.load %arg12[%c1_84, %c1_85, %c0_86] : memref<10x10x16xf32, #tpu.memory_space<vmem>>, vector<8x8x16xf32>
    %104 = vector.shape_cast %103 : vector<8x8x16xf32> to vector<64x16xf32>
    %c0_87 = arith.constant 0 : index
    %c64 = arith.constant 64 : index
    %105 = vector.load %arg14[%c0_87, %c64] : memref<64x144xf32, #tpu.memory_space<vmem>>, vector<64x16xf32>
    tpu.vector_store %arg14[%c0_87, %c64], %104 {strides = array<i32>} : memref<64x144xf32, #tpu.memory_space<vmem>>, vector<64x16xf32>,
    %c1_88 = arith.constant 1 : index
    %c2_89 = arith.constant 2 : index
    %c0_90 = arith.constant 0 : index
    %106 = vector.load %arg12[%c1_88, %c2_89, %c0_90] : memref<10x10x16xf32, #tpu.memory_space<vmem>>, vector<8x8x16xf32>
    %107 = vector.shape_cast %106 : vector<8x8x16xf32> to vector<64x16xf32>
    %c0_91 = arith.constant 0 : index
    %c80 = arith.constant 80 : index
    %108 = vector.load %arg14[%c0_91, %c80] : memref<64x144xf32, #tpu.memory_space<vmem>>, vector<64x16xf32>
    tpu.vector_store %arg14[%c0_91, %c80], %107 {strides = array<i32>} : memref<64x144xf32, #tpu.memory_space<vmem>>, vector<64x16xf32>,
    %c2_92 = arith.constant 2 : index
    %c0_93 = arith.constant 0 : index
    %c0_94 = arith.constant 0 : index
    %109 = vector.load %arg12[%c2_92, %c0_93, %c0_94] : memref<10x10x16xf32, #tpu.memory_space<vmem>>, vector<8x8x16xf32>
    %110 = vector.shape_cast %109 : vector<8x8x16xf32> to vector<64x16xf32>
    %c0_95 = arith.constant 0 : index
    %c96 = arith.constant 96 : index
    %111 = vector.load %arg14[%c0_95, %c96] : memref<64x144xf32, #tpu.memory_space<vmem>>, vector<64x16xf32>
    tpu.vector_store %arg14[%c0_95, %c96], %110 {strides = array<i32>} : memref<64x144xf32, #tpu.memory_space<vmem>>, vector<64x16xf32>,
    %c2_96 = arith.constant 2 : index
    %c1_97 = arith.constant 1 : index
    %c0_98 = arith.constant 0 : index
    %112 = vector.load %arg12[%c2_96, %c1_97, %c0_98] : memref<10x10x16xf32, #tpu.memory_space<vmem>>, vector<8x8x16xf32>
    %113 = vector.shape_cast %112 : vector<8x8x16xf32> to vector<64x16xf32>
    %c0_99 = arith.constant 0 : index
    %c112 = arith.constant 112 : index
    %114 = vector.load %arg14[%c0_99, %c112] : memref<64x144xf32, #tpu.memory_space<vmem>>, vector<64x16xf32>
    tpu.vector_store %arg14[%c0_99, %c112], %113 {strides = array<i32>} : memref<64x144xf32, #tpu.memory_space<vmem>>, vector<64x16xf32>,
    %c2_100 = arith.constant 2 : index
    %c2_101 = arith.constant 2 : index
    %c0_102 = arith.constant 0 : index
    %115 = vector.load %arg12[%c2_100, %c2_101, %c0_102] : memref<10x10x16xf32, #tpu.memory_space<vmem>>, vector<8x8x16xf32>
    %116 = vector.shape_cast %115 : vector<8x8x16xf32> to vector<64x16xf32>
    %c0_103 = arith.constant 0 : index
    %c128 = arith.constant 128 : index
    %117 = vector.load %arg14[%c0_103, %c128] : memref<64x144xf32, #tpu.memory_space<vmem>>, vector<64x16xf32>
    tpu.vector_store %arg14[%c0_103, %c128], %116 {strides = array<i32>} : memref<64x144xf32, #tpu.memory_space<vmem>>, vector<64x16xf32>,
    %c0_104 = arith.constant 0 : index
    %c0_105 = arith.constant 0 : index
    %118 = vector.load %arg14[%c0_104, %c0_105] : memref<64x144xf32, #tpu.memory_space<vmem>>, vector<64x144xf32>
    %c0_106 = arith.constant 0 : index
    %c0_107 = arith.constant 0 : index
    %119 = vector.load %arg4[%c0_106, %c0_107] : memref<144x32xf32, #tpu.memory_space<vmem>>, vector<144x32xf32>
    %cst_108 = arith.constant dense<0.000000e+00> : vector<64x32xf32>
    %120 = tpu.matmul %118, %119, %cst_108 {dimension_numbers = #tpu.dot_dimension_numbers<[1], [0], [0], [1], [0, 0, 1, 1], [], []>} : vector<64x144xf32>, vector<144x32xf32>, vector<64x32xf32> -> vector<64x32xf32>
    %c0_109 = arith.constant 0 : index
    %c0_110 = arith.constant 0 : index
    %121 = vector.load %arg5[%c0_109, %c0_110] : memref<1x32xf32, #tpu.memory_space<vmem>>, vector<1x32xf32>
    %122 = vector.broadcast %121 : vector<1x32xf32> to vector<64x32xf32>
    %123 = arith.addf %120, %122 : vector<64x32xf32>
    %cst_111 = arith.constant 0.000000e+00 : f32
    %124 = vector.broadcast %cst_111 : f32 to vector<64x32xf32>
    %125 = arith.maximumf %123, %124 : vector<64x32xf32>
    %126 = vector.shape_cast %125 : vector<64x32xf32> to vector<8x8x32xf32>
    %127 = vector.shape_cast %126 : vector<8x8x32xf32> to vector<32x2x32xf32>
    %cst_112 = arith.constant dense<0xFF800000> : vector<32x32xf32>
    %128 = vector.multi_reduction <maximumf>, %127, %cst_112 [1] : vector<32x2x32xf32> to vector<32x32xf32>
    %129 = vector.shape_cast %128 : vector<32x32xf32> to vector<4x2x4x32xf32>
    %cst_113 = arith.constant dense<0xFF800000> : vector<4x4x32xf32>
    %130 = vector.multi_reduction <maximumf>, %129, %cst_113 [1] : vector<4x2x4x32xf32> to vector<4x4x32xf32>
    %131 = vector.shape_cast %130 : vector<4x4x32xf32> to vector<16x32xf32>
    %cst_114 = arith.constant 0.000000e+00 : f32
    %132 = vector.broadcast %cst_114 : f32 to vector<6x6x32xf32>
    %c0_115 = arith.constant 0 : index
    %c0_116 = arith.constant 0 : index
    %c0_117 = arith.constant 0 : index
    %133 = vector.load %arg13[%c0_115, %c0_116, %c0_117] : memref<6x6x32xf32, #tpu.memory_space<vmem>>, vector<6x6x32xf32>
    tpu.vector_store %arg13[%c0_115, %c0_116, %c0_117], %132 {strides = array<i32>} : memref<6x6x32xf32, #tpu.memory_space<vmem>>, vector<6x6x32xf32>,
    %134 = vector.shape_cast %131 : vector<16x32xf32> to vector<4x4x32xf32>
    %c1_118 = arith.constant 1 : index
    %c1_119 = arith.constant 1 : index
    %c0_120 = arith.constant 0 : index
    %135 = vector.load %arg13[%c1_118, %c1_119, %c0_120] : memref<6x6x32xf32, #tpu.memory_space<vmem>>, vector<4x4x32xf32>
    tpu.vector_store %arg13[%c1_118, %c1_119, %c0_120], %134 {strides = array<i32>} : memref<6x6x32xf32, #tpu.memory_space<vmem>>, vector<4x4x32xf32>,
    %c0_121 = arith.constant 0 : index
    %c0_122 = arith.constant 0 : index
    %c0_123 = arith.constant 0 : index
    %136 = vector.load %arg13[%c0_121, %c0_122, %c0_123] : memref<6x6x32xf32, #tpu.memory_space<vmem>>, vector<4x4x32xf32>
    %137 = vector.shape_cast %136 : vector<4x4x32xf32> to vector<16x32xf32>
    %c0_124 = arith.constant 0 : index
    %c0_125 = arith.constant 0 : index
    %138 = vector.load %arg15[%c0_124, %c0_125] : memref<16x288xf32, #tpu.memory_space<vmem>>, vector<16x32xf32>
    tpu.vector_store %arg15[%c0_124, %c0_125], %137 {strides = array<i32>} : memref<16x288xf32, #tpu.memory_space<vmem>>, vector<16x32xf32>,
    %c0_126 = arith.constant 0 : index
    %c1_127 = arith.constant 1 : index
    %c0_128 = arith.constant 0 : index
    %139 = vector.load %arg13[%c0_126, %c1_127, %c0_128] : memref<6x6x32xf32, #tpu.memory_space<vmem>>, vector<4x4x32xf32>
    %140 = vector.shape_cast %139 : vector<4x4x32xf32> to vector<16x32xf32>
    %c0_129 = arith.constant 0 : index
    %c32_130 = arith.constant 32 : index
    %141 = vector.load %arg15[%c0_129, %c32_130] : memref<16x288xf32, #tpu.memory_space<vmem>>, vector<16x32xf32>
    tpu.vector_store %arg15[%c0_129, %c32_130], %140 {strides = array<i32>} : memref<16x288xf32, #tpu.memory_space<vmem>>, vector<16x32xf32>,
    %c0_131 = arith.constant 0 : index
    %c2_132 = arith.constant 2 : index
    %c0_133 = arith.constant 0 : index
    %142 = vector.load %arg13[%c0_131, %c2_132, %c0_133] : memref<6x6x32xf32, #tpu.memory_space<vmem>>, vector<4x4x32xf32>
    %143 = vector.shape_cast %142 : vector<4x4x32xf32> to vector<16x32xf32>
    %c0_134 = arith.constant 0 : index
    %c64_135 = arith.constant 64 : index
    %144 = vector.load %arg15[%c0_134, %c64_135] : memref<16x288xf32, #tpu.memory_space<vmem>>, vector<16x32xf32>
    tpu.vector_store %arg15[%c0_134, %c64_135], %143 {strides = array<i32>} : memref<16x288xf32, #tpu.memory_space<vmem>>, vector<16x32xf32>,
    %c1_136 = arith.constant 1 : index
    %c0_137 = arith.constant 0 : index
    %c0_138 = arith.constant 0 : index
    %145 = vector.load %arg13[%c1_136, %c0_137, %c0_138] : memref<6x6x32xf32, #tpu.memory_space<vmem>>, vector<4x4x32xf32>
    %146 = vector.shape_cast %145 : vector<4x4x32xf32> to vector<16x32xf32>
    %c0_139 = arith.constant 0 : index
    %c96_140 = arith.constant 96 : index
    %147 = vector.load %arg15[%c0_139, %c96_140] : memref<16x288xf32, #tpu.memory_space<vmem>>, vector<16x32xf32>
    tpu.vector_store %arg15[%c0_139, %c96_140], %146 {strides = array<i32>} : memref<16x288xf32, #tpu.memory_space<vmem>>, vector<16x32xf32>,
    %c1_141 = arith.constant 1 : index
    %c1_142 = arith.constant 1 : index
    %c0_143 = arith.constant 0 : index
    %148 = vector.load %arg13[%c1_141, %c1_142, %c0_143] : memref<6x6x32xf32, #tpu.memory_space<vmem>>, vector<4x4x32xf32>
    %149 = vector.shape_cast %148 : vector<4x4x32xf32> to vector<16x32xf32>
    %c0_144 = arith.constant 0 : index
    %c128_145 = arith.constant 128 : index
    %150 = vector.load %arg15[%c0_144, %c128_145] : memref<16x288xf32, #tpu.memory_space<vmem>>, vector<16x32xf32>
    tpu.vector_store %arg15[%c0_144, %c128_145], %149 {strides = array<i32>} : memref<16x288xf32, #tpu.memory_space<vmem>>, vector<16x32xf32>,
    %c1_146 = arith.constant 1 : index
    %c2_147 = arith.constant 2 : index
    %c0_148 = arith.constant 0 : index
    %151 = vector.load %arg13[%c1_146, %c2_147, %c0_148] : memref<6x6x32xf32, #tpu.memory_space<vmem>>, vector<4x4x32xf32>
    %152 = vector.shape_cast %151 : vector<4x4x32xf32> to vector<16x32xf32>
    %c0_149 = arith.constant 0 : index
    %c160 = arith.constant 160 : index
    %153 = vector.load %arg15[%c0_149, %c160] : memref<16x288xf32, #tpu.memory_space<vmem>>, vector<16x32xf32>
    tpu.vector_store %arg15[%c0_149, %c160], %152 {strides = array<i32>} : memref<16x288xf32, #tpu.memory_space<vmem>>, vector<16x32xf32>,
    %c2_150 = arith.constant 2 : index
    %c0_151 = arith.constant 0 : index
    %c0_152 = arith.constant 0 : index
    %154 = vector.load %arg13[%c2_150, %c0_151, %c0_152] : memref<6x6x32xf32, #tpu.memory_space<vmem>>, vector<4x4x32xf32>
    %155 = vector.shape_cast %154 : vector<4x4x32xf32> to vector<16x32xf32>
    %c0_153 = arith.constant 0 : index
    %c192 = arith.constant 192 : index
    %156 = vector.load %arg15[%c0_153, %c192] : memref<16x288xf32, #tpu.memory_space<vmem>>, vector<16x32xf32>
    tpu.vector_store %arg15[%c0_153, %c192], %155 {strides = array<i32>} : memref<16x288xf32, #tpu.memory_space<vmem>>, vector<16x32xf32>,
    %c2_154 = arith.constant 2 : index
    %c1_155 = arith.constant 1 : index
    %c0_156 = arith.constant 0 : index
    %157 = vector.load %arg13[%c2_154, %c1_155, %c0_156] : memref<6x6x32xf32, #tpu.memory_space<vmem>>, vector<4x4x32xf32>
    %158 = vector.shape_cast %157 : vector<4x4x32xf32> to vector<16x32xf32>
    %c0_157 = arith.constant 0 : index
    %c224 = arith.constant 224 : index
    %159 = vector.load %arg15[%c0_157, %c224] : memref<16x288xf32, #tpu.memory_space<vmem>>, vector<16x32xf32>
    tpu.vector_store %arg15[%c0_157, %c224], %158 {strides = array<i32>} : memref<16x288xf32, #tpu.memory_space<vmem>>, vector<16x32xf32>,
    %c2_158 = arith.constant 2 : index
    %c2_159 = arith.constant 2 : index
    %c0_160 = arith.constant 0 : index
    %160 = vector.load %arg13[%c2_158, %c2_159, %c0_160] : memref<6x6x32xf32, #tpu.memory_space<vmem>>, vector<4x4x32xf32>
    %161 = vector.shape_cast %160 : vector<4x4x32xf32> to vector<16x32xf32>
    %c0_161 = arith.constant 0 : index
    %c256 = arith.constant 256 : index
    %162 = vector.load %arg15[%c0_161, %c256] : memref<16x288xf32, #tpu.memory_space<vmem>>, vector<16x32xf32>
    tpu.vector_store %arg15[%c0_161, %c256], %161 {strides = array<i32>} : memref<16x288xf32, #tpu.memory_space<vmem>>, vector<16x32xf32>,
    %c0_162 = arith.constant 0 : index
    %c0_163 = arith.constant 0 : index
    %163 = vector.load %arg15[%c0_162, %c0_163] : memref<16x288xf32, #tpu.memory_space<vmem>>, vector<16x288xf32>
    %c0_164 = arith.constant 0 : index
    %c0_165 = arith.constant 0 : index
    %164 = vector.load %arg6[%c0_164, %c0_165] : memref<288x64xf32, #tpu.memory_space<vmem>>, vector<288x64xf32>
    %cst_166 = arith.constant dense<0.000000e+00> : vector<16x64xf32>
    %165 = tpu.matmul %163, %164, %cst_166 {dimension_numbers = #tpu.dot_dimension_numbers<[1], [0], [0], [1], [0, 0, 1, 1], [], []>} : vector<16x288xf32>, vector<288x64xf32>, vector<16x64xf32> -> vector<16x64xf32>
    %c0_167 = arith.constant 0 : index
    %c0_168 = arith.constant 0 : index
    %166 = vector.load %arg7[%c0_167, %c0_168] : memref<1x64xf32, #tpu.memory_space<vmem>>, vector<1x64xf32>
    %167 = vector.broadcast %166 : vector<1x64xf32> to vector<16x64xf32>
    %168 = arith.addf %165, %167 : vector<16x64xf32>
    %cst_169 = arith.constant 0.000000e+00 : f32
    %169 = vector.broadcast %cst_169 : f32 to vector<16x64xf32>
    %170 = arith.maximumf %168, %169 : vector<16x64xf32>
    %cst_170 = arith.constant dense<0.000000e+00> : vector<64xf32>
    %171 = vector.multi_reduction <add>, %170, %cst_170 [0] : vector<16x64xf32> to vector<64xf32>
    %172 = vector.shape_cast %171 : vector<64xf32> to vector<1x64xf32>
    %cst_171 = arith.constant 6.250000e-02 : f32
    %173 = vector.broadcast %cst_171 : f32 to vector<1x64xf32>
    %174 = arith.mulf %172, %173 : vector<1x64xf32>
    %c0_172 = arith.constant 0 : index
    %c0_173 = arith.constant 0 : index
    %175 = vector.load %arg8[%c0_172, %c0_173] : memref<64x2xf32, #tpu.memory_space<vmem>>, vector<64x2xf32>
    %cst_174 = arith.constant dense<0.000000e+00> : vector<1x2xf32>
    %176 = tpu.matmul %174, %175, %cst_174 {dimension_numbers = #tpu.dot_dimension_numbers<[1], [0], [0], [1], [0, 0, 1, 1], [], []>} : vector<1x64xf32>, vector<64x2xf32>, vector<1x2xf32> -> vector<1x2xf32>
    %c0_175 = arith.constant 0 : index
    %c0_176 = arith.constant 0 : index
    %177 = vector.load %arg9[%c0_175, %c0_176] : memref<1x2xf32, #tpu.memory_space<vmem>>, vector<1x2xf32>
    %178 = arith.addf %176, %177 : vector<1x2xf32>
    %c0_177 = arith.constant 0 : index
    %c0_178 = arith.constant 0 : index
    %c0_179 = arith.constant 0 : index
    %179 = vector.load %arg10[%c0_177, %c0_178, %c0_179] : memref<1x1x2xf32, #tpu.memory_space<vmem>>, vector<1x1x2xf32>
    %180 = vector.shape_cast %179 : vector<1x1x2xf32> to vector<1x2xf32>
    %181 = vector.shape_cast %178 : vector<1x2xf32> to vector<1x1x2xf32>
    tpu.vector_store %arg10[%c0_177, %c0_178, %c0_179], %181 {strides = array<i32>} : memref<1x1x2xf32, #tpu.memory_space<vmem>>, vector<1x1x2xf32>,
    return
  }
  func.func @transform_0(%arg0: i32) -> (i32, i32, i32, i32) {
    %c0_i32 = arith.constant 0 : i32
    %c0_i32_0 = arith.constant 0 : i32
    %c0_i32_1 = arith.constant 0 : i32
    %c0_i32_2 = arith.constant 0 : i32
    return %arg0, %c0_i32, %c0_i32_0, %c0_i32_1 : i32, i32, i32, i32
  }
  func.func @transform_1(%arg0: i32) -> (i32, i32, i32) {
    %c0_i32 = arith.constant 0 : i32
    %c0_i32_0 = arith.constant 0 : i32
    %c0_i32_1 = arith.constant 0 : i32
    %c0_i32_2 = arith.constant 0 : i32
    return %c0_i32, %c0_i32_0, %c0_i32_1 : i32, i32, i32
  }
  func.func @transform_2(%arg0: i32) -> (i32, i32) {
    %c0_i32 = arith.constant 0 : i32
    %c0_i32_0 = arith.constant 0 : i32
    %c0_i32_1 = arith.constant 0 : i32
    return %c0_i32, %c0_i32_0 : i32, i32
  }
  func.func @transform_3(%arg0: i32) -> (i32, i32) {
    %c0_i32 = arith.constant 0 : i32
    %c0_i32_0 = arith.constant 0 : i32
    %c0_i32_1 = arith.constant 0 : i32
    return %c0_i32, %c0_i32_0 : i32, i32
  }
  func.func @transform_4(%arg0: i32) -> (i32, i32) {
    %c0_i32 = arith.constant 0 : i32
    %c0_i32_0 = arith.constant 0 : i32
    %c0_i32_1 = arith.constant 0 : i32
    return %c0_i32, %c0_i32_0 : i32, i32
  }
  func.func @transform_5(%arg0: i32) -> (i32, i32) {
    %c0_i32 = arith.constant 0 : i32
    %c0_i32_0 = arith.constant 0 : i32
    %c0_i32_1 = arith.constant 0 : i32
    return %c0_i32, %c0_i32_0 : i32, i32
  }
  func.func @transform_6(%arg0: i32) -> (i32, i32) {
    %c0_i32 = arith.constant 0 : i32
    %c0_i32_0 = arith.constant 0 : i32
    %c0_i32_1 = arith.constant 0 : i32
    return %c0_i32, %c0_i32_0 : i32, i32
  }
  func.func @transform_7(%arg0: i32) -> (i32, i32) {
    %c0_i32 = arith.constant 0 : i32
    %c0_i32_0 = arith.constant 0 : i32
    %c0_i32_1 = arith.constant 0 : i32
    return %c0_i32, %c0_i32_0 : i32, i32
  }
  func.func @transform_8(%arg0: i32) -> (i32, i32) {
    %c0_i32 = arith.constant 0 : i32
    %c0_i32_0 = arith.constant 0 : i32
    %c0_i32_1 = arith.constant 0 : i32
    return %c0_i32, %c0_i32_0 : i32, i32
  }
  func.func @transform_9(%arg0: i32) -> (i32, i32, i32) {
    %c0_i32 = arith.constant 0 : i32
    %c0_i32_0 = arith.constant 0 : i32
    %c0_i32_1 = arith.constant 0 : i32
    return %arg0, %c0_i32, %c0_i32_0 : i32, i32, i32
  }
}

</mosaic_0001>

<bundles_post_ra>
// kernel: tpu_custom_call.1
= control target key start
LH: loop header
LB: loop body
LE: loop exit
PB: predicated region body
PF: predicated region fallthrough
CT: control target
= control target key end

     0   :  { %14 = vsyncpa [#allocation8], 0  ;;  %s10468_s0 = inlined_call_operand.vmem [shape: f32[2,16,16,1], index: 0, kind: input, shape index: {}]   ;;  %s10469_s1 = inlined_call_operand.vmem [shape: f32[9,1,16], index: 1, kind: input, shape index: {}]   ;;  %s10470_s2 = inlined_call_operand.vmem [shape: f32[1,16], index: 2, kind: input, shape index: {}]   ;;  %s10471_s3 = inlined_call_operand.vmem [shape: f32[144,32], index: 3, kind: input, shape index: {}]   ;;  %s10472_s4 = inlined_call_operand.vmem [shape: f32[1,32], index: 4, kind: input, shape index: {}]   ;;  %s10473_s5 = inlined_call_operand.vmem [shape: f32[288,64], index: 5, kind: input, shape index: {}]   ;;  %s10474_s6 = inlined_call_operand.vmem [shape: f32[1,64], index: 6, kind: input, shape index: {}]   ;;  %s10475_s7 = inlined_call_operand.vmem [shape: f32[64,2], index: 7, kind: input, shape index: {}]   ;;  %s10476_s8 = inlined_call_operand.vmem [shape: f32[1,2], index: 8, kind: input, shape index: {}]   ;;  %s10477_s9 = inlined_call_operand.hbm [shape: f32[2,1,2], index: 9, kind: output, shape index: {}]  }
   0x1   :  { %16 = vsyncpa [#allocation8 + $0x1], 0  ;;  %s6820_s30 = smov 0   ;;  %s6822_s10 = smov 0  }
   0x2   :  { %s6824_s11 = smov 0   ;;  %s6826_s12 = smov 0  }
   0x3 LB: > { %s6841_s13 = sadd.s32 4294967295, %s6755_s12   ;;  %s6397_s14 = sadd.s32 4294967294, %s6755_s12   ;;  %s6755_s12 = sphi %s6826_s12, %s10909_s12   ;;  %s6751_s11 = sphi %s6824_s11, %s10908_s11   ;;  %s6747_s10 = sphi %s6822_s10, %s10907_s10   ;;  %s6743_s30 = sphi %s6820_s30, %s10906_s30  }
   0x4   : > { %s6845_s15 = sadd.s32 1, %s6755_s12   ;;  %s223_s16 = sadd.s32 1, %s6751_s11 }
   0x5   : > { %s220_s17 = ssub.s32 %s6755_s12, %s6845_s15  ;;  %p233_p0 = scmp.ne.s32.totalorder %s6751_s11, %s6747_s10 }
   0x6   : > { %p221_p1 = scmp.eq.s32.totalorder %s220_s17, 0  ;;  %p234_p2 = scmp.eq.s32.totalorder %s6841_s13, 1 }
   0x7   : > { %p239_p3 = scmp.ne.s32.totalorder %s6747_s10, %s6743_s30  ;;  %p240_p4 = scmp.eq.s32.totalorder %s6397_s14, 1 }
   0x8   : > { %s6856_s18 = scalar_select %p221_p1, %s6751_s11, %s223_s16  }
   0x9   : > { %p6858_p5 = por %p234_p2, %p233_p0  ;;  %p6862_p6 = por %p240_p4, %p239_p3 }
   0xa   : > { %p6400_p7 = scmp.ge.s32.totalorder %s6755_s12, 1  ;;  %p290_p8 = scmp.lt.s32.totalorder %s6755_s12, 3 }
   0xc   : > { %p291_p9 = pnand %p6400_p7, %p290_p8 }
   0xe   : > { %294 = sbr.rel (%p291_p9) target bundleno = 1866 (0x74a), region = 56 }
  0x15   : > { %vm330_vm0 = vcmask 7168   ;;  %p325_p10 = scmp.lt.s32.totalorder %s6841_s13, 1  ;;  %vm333_vm1 = vcmask 1024   ;;  %v6757_v0 = vmov 0   ;;  %v10478_v1 = vmov 0.0   ;;  %s6761_s26 = smov 48  }
  0x16   : > { %6651 = vset.pattern.permute.xlu0 %v6757_v0  ;;  %331 = vst.msk [vmem:[#allocation2] sm:$0xff] %vm330_vm0, %v10478_v1  ;;  %332 = vst.msk [vmem:[#allocation2 + $0x8] sm:$0xff] %vm330_vm0, %v10478_v1  ;;  %6652 = vset.pattern.permute.xlu1 %v6757_v0  ;;  %vm3570_vm2 = vcmask 123904   ;;  %vm4467_vm3 = vcmask 130048   ;;  %vm4744_vm4 = vcmask 1041409   ;;  %vm4746_vm5 = vcmask 1042434  }
  0x17   : > { %335 = vst.msk [vmem:[#allocation2 + $0x18] sm:$0xff] %vm330_vm0, %v10478_v1  ;;  %336 = vst.msk [vmem:[#allocation2 + $0x20] sm:$0xff] %vm330_vm0, %v10478_v1  ;;  %s326_s21 = scalar_select %p325_p10, %s6841_s13, 1  ;;  %vm4748_vm6 = vcmask 1043459   ;;  %vm4750_vm7 = vcmask 1044484   ;;  %vm4752_vm8 = vcmask 1045509  }
  0x18   : > { %338 = vst.msk [vmem:[#allocation2 + $0x30] sm:$0xff] %vm330_vm0, %v10478_v1  ;;  %339 = vst.msk [vmem:[#allocation2 + $0x38] sm:$0xff] %vm330_vm0, %v10478_v1  ;;  %vm4754_vm9 = vcmask 1046534   ;;  %vm4756_vm10 = vcmask 1047559   ;;  %s10540_s16 = smov 32   ;;  %s6764_s23 = smov 80  }
  0x19   : > { %341 = vst.msk [vmem:[#allocation2 + $0x48] sm:$0xff] %vm330_vm0, %v10478_v1  ;;  %342 = vst.msk [vmem:[#allocation2 + $0x50] sm:$0xff] %vm330_vm0, %v10478_v1  ;;  %s6437_s22 = sshll.u32 %s326_s21, 8  ;;  %s10538_s24 = smov 96   ;;  %vm4880_vm11 = vcmask 261248   ;;  %vm4929_vm12 = vcmask 392448  }
  0x1a   : > { %344 = vst.msk [vmem:[#allocation2 + $0x60] sm:$0xff] %vm330_vm0, %v10478_v1  ;;  %345 = vst.msk [vmem:[#allocation2 + $0x68] sm:$0xff] %vm330_vm0, %v10478_v1  ;;  %s6983_s25 = scalar_lea.vmem %s10468_s0, %s6437_s22  ;;  %s10536_s22 = smov 64   ;;  %vm4978_vm13 = vcmask 523648   ;;  %vm5027_vm14 = vcmask 654848   ;;  %vm5076_vm15 = vcmask 786048  }
  0x1b   : > { %347 = vst.msk [vmem:[#allocation2 + $0x78] sm:$0xff] %vm330_vm0, %v10478_v1  ;;  %348 = vst.msk [vmem:[#allocation2 + $0x80] sm:$0xff] %vm330_vm0, %v10478_v1  ;;  %v386_v2 = vld [vmem:[%s6983_s25] sm:$0xff]  ;;  %v388_v3 = vld [vmem:[%s6983_s25 + $0x10] sm:$0xff]  ;;  %s6766_s27 = smov 112   ;;  %s10903_s21 = smov 96  }
  0x1c   : > { %350 = vst.msk [vmem:[#allocation2 + $0x90] sm:$0xff] %vm330_vm0, %v10478_v1  ;;  %351 = vst.msk [vmem:[#allocation2 + $0x98] sm:$0xff] %vm330_vm0, %v10478_v1  ;;  %v387_v4 = vld [vmem:[%s6983_s25 + $0x8] sm:$0xff]  ;;  %v390_v5 = vld [vmem:[%s6983_s25 + $0x20] sm:$0xff]  ;;  %s10904_s28 = smov 64   ;;  %s323_s14 = sand.u32 1, %s6747_s10  }
  0x1d   : > { %353 = vst.msk [vmem:[#allocation2 + $0xa8] sm:$0xff] %vm330_vm0, %v10478_v1  ;;  %354 = vst.msk [vmem:[#allocation2 + $0xb0] sm:$0xff] %vm330_vm0, %v10478_v1  ;;  %v389_v6 = vld [vmem:[%s6983_s25 + $0x18] sm:$0xff]  ;;  %v392_v7 = vld [vmem:[%s6983_s25 + $0x30] sm:$0xff] }
  0x1e   : > { %356 = vst.msk [vmem:[#allocation2 + $0xc0] sm:$0xff] %vm330_vm0, %v10478_v1  ;;  %357 = vst.msk [vmem:[#allocation2 + $0xc8] sm:$0xff] %vm330_vm0, %v10478_v1  ;;  %v451_v8 = vld [vmem:[#allocation2] sm:$0xff]  ;;  %v452_v9 = vld [vmem:[#allocation2 + $0x8] sm:$0xff] }
  0x1f   : > { %359 = vst.msk [vmem:[#allocation2 + $0xd8] sm:$0xff] %vm330_vm0, %v10478_v1  ;;  %360 = vst.msk [vmem:[#allocation2 + $0xe0] sm:$0xff] %vm330_vm0, %v10478_v1  ;;  %v391_v10 = vld [vmem:[%s6983_s25 + $0x28] sm:$0xff]  ;;  %486 = vperm.xlu0 %6651, %v451_v8   ;;  %v394_v11 = vld [vmem:[%s6983_s25 + $0x40] sm:$0xff] }
  0x20   : > { %362 = vst.msk [vmem:[#allocation2 + $0xf0] sm:$0xff] %vm330_vm0, %v10478_v1  ;;  %363 = vst.msk [vmem:[#allocation2 + $0xf8] sm:$0xff] %vm330_vm0, %v10478_v1  ;;  %v393_v12 = vld [vmem:[%s6983_s25 + $0x38] sm:$0xff]  ;;  %v396_v13 = vld [vmem:[%s6983_s25 + $0x50] sm:$0xff] }
  0x21   : > { %365 = vst.msk [vmem:[#allocation2 + $0x108] sm:$0xff] %vm330_vm0, %v10478_v1  ;;  %366 = vst.msk [vmem:[#allocation2 + $0x110] sm:$0xff] %vm330_vm0, %v10478_v1  ;;  %v395_v14 = vld [vmem:[%s6983_s25 + $0x48] sm:$0xff]  ;;  %v398_v15 = vld [vmem:[%s6983_s25 + $0x60] sm:$0xff] }
  0x22   : > { %368 = vst.msk [vmem:[#allocation2 + $0x120] sm:$0xff] %vm330_vm0, %v10478_v1  ;;  %369 = vst.msk [vmem:[#allocation2 + $0x128] sm:$0xff] %vm330_vm0, %v10478_v1  ;;  %v397_v16 = vld [vmem:[%s6983_s25 + $0x58] sm:$0xff]  ;;  %v400_v17 = vld [vmem:[%s6983_s25 + $0x70] sm:$0xff] }
  0x23   : > { %371 = vst.msk [vmem:[#allocation2 + $0x138] sm:$0xff] %vm330_vm0, %v10478_v1  ;;  %372 = vst.msk [vmem:[#allocation2 + $0x140] sm:$0xff] %vm330_vm0, %v10478_v1  ;;  %v399_v18 = vld [vmem:[%s6983_s25 + $0x68] sm:$0xff]  ;;  %v402_v19 = vld [vmem:[%s6983_s25 + $0x80] sm:$0xff]  ;;  %491 = vperm.xlu0 %6651, %v452_v9  }
  0x24   : > { %374 = vst.msk [vmem:[#allocation2 + $0x150] sm:$0xff] %vm330_vm0, %v10478_v1  ;;  %375 = vst.msk [vmem:[#allocation2 + $0x158] sm:$0xff] %vm330_vm0, %v10478_v1  ;;  %v401_v20 = vld [vmem:[%s6983_s25 + $0x78] sm:$0xff]  ;;  %v404_v21 = vld [vmem:[%s6983_s25 + $0x90] sm:$0xff] }
  0x25   : > { %377 = vst.msk [vmem:[#allocation2 + $0x168] sm:$0xff] %vm330_vm0, %v10478_v1  ;;  %378 = vst.msk [vmem:[#allocation2 + $0x170] sm:$0xff] %vm330_vm0, %v10478_v1  ;;  %v403_v22 = vld [vmem:[%s6983_s25 + $0x88] sm:$0xff]  ;;  %v406_v23 = vld [vmem:[%s6983_s25 + $0xa0] sm:$0xff] }
  0x26   : > { %380 = vst.msk [vmem:[#allocation2 + $0x180] sm:$0xff] %vm330_vm0, %v10478_v1  ;;  %381 = vst.msk [vmem:[#allocation2 + $0x188] sm:$0xff] %vm330_vm0, %v10478_v1  ;;  %v405_v24 = vld [vmem:[%s6983_s25 + $0x98] sm:$0xff]  ;;  %v408_v25 = vld [vmem:[%s6983_s25 + $0xb0] sm:$0xff] }
  0x27   : > { %383 = vst.msk [vmem:[#allocation2 + $0x198] sm:$0xff] %vm330_vm0, %v10478_v1  ;;  %384 = vst.msk [vmem:[#allocation2 + $0x1a0] sm:$0xff] %vm330_vm0, %v10478_v1  ;;  %v407_v29 = vld [vmem:[%s6983_s25 + $0xa8] sm:$0xff]  ;;  %v410_v30 = vld [vmem:[%s6983_s25 + $0xc0] sm:$0xff] }
  0x28   : > { %337 = vst.msk [vmem:[#allocation2 + $0x28] sm:$0x3] %vm333_vm1, %v10478_v1  ;;  %334 = vst.msk [vmem:[#allocation2 + $0x10] sm:$0x3] %vm333_vm1, %v10478_v1  ;;  %v409_v34 = vld [vmem:[%s6983_s25 + $0xb8] sm:$0xff]  ;;  %v412_v35 = vld [vmem:[%s6983_s25 + $0xd0] sm:$0xff] }
  0x29   : > { %340 = vst.msk [vmem:[#allocation2 + $0x40] sm:$0x3] %vm333_vm1, %v10478_v1  ;;  %343 = vst.msk [vmem:[#allocation2 + $0x58] sm:$0x3] %vm333_vm1, %v10478_v1  ;;  %v411_v36 = vld [vmem:[%s6983_s25 + $0xc8] sm:$0xff]  ;;  %v414_v37 = vld [vmem:[%s6983_s25 + $0xe0] sm:$0xff] }
  0x2a   : > { %346 = vst.msk [vmem:[#allocation2 + $0x70] sm:$0x3] %vm333_vm1, %v10478_v1  ;;  %349 = vst.msk [vmem:[#allocation2 + $0x88] sm:$0x3] %vm333_vm1, %v10478_v1  ;;  %v413_v38 = vld [vmem:[%s6983_s25 + $0xd8] sm:$0xff]  ;;  %v415_v40 = vld [vmem:[%s6983_s25 + $0xe8] sm:$0xff] }
  0x2b   : > { %352 = vst.msk [vmem:[#allocation2 + $0xa0] sm:$0x3] %vm333_vm1, %v10478_v1  ;;  %355 = vst.msk [vmem:[#allocation2 + $0xb8] sm:$0x3] %vm333_vm1, %v10478_v1  ;;  %v682_v63 = vld [vmem:[#allocation2 + $0x1] sm:$0xff] }
  0x2c   : > { %358 = vst.msk [vmem:[#allocation2 + $0xd0] sm:$0x3] %vm333_vm1, %v10478_v1  ;;  %361 = vst.msk [vmem:[#allocation2 + $0xe8] sm:$0x3] %vm333_vm1, %v10478_v1 }
  0x2d   : > { %364 = vst.msk [vmem:[#allocation2 + $0x100] sm:$0x3] %vm333_vm1, %v10478_v1  ;;  %367 = vst.msk [vmem:[#allocation2 + $0x118] sm:$0x3] %vm333_vm1, %v10478_v1 }
  0x2e   : > { %370 = vst.msk [vmem:[#allocation2 + $0x130] sm:$0x3] %vm333_vm1, %v10478_v1  ;;  %373 = vst.msk [vmem:[#allocation2 + $0x148] sm:$0x3] %vm333_vm1, %v10478_v1 }
  0x2f   : > { %376 = vst.msk [vmem:[#allocation2 + $0x160] sm:$0x3] %vm333_vm1, %v10478_v1  ;;  %379 = vst.msk [vmem:[#allocation2 + $0x178] sm:$0x3] %vm333_vm1, %v10478_v1 }
  0x30   : > { %382 = vst.msk [vmem:[#allocation2 + $0x190] sm:$0x3] %vm333_vm1, %v10478_v1  ;;  %385 = vst.msk [vmem:[#allocation2 + $0x1a8] sm:$0x3] %vm333_vm1, %v10478_v1  ;;  %vm5175_vm1 = vcmask 1048448  }
  0x31   : > { %419 = vst.msk [vmem:[#allocation2 + $0x19] sm:$0xff] %vm330_vm0, %v386_v2  ;;  %421 = vst.msk [vmem:[#allocation2 + $0x31] sm:$0xff] %vm330_vm0, %v388_v3  ;;  %v683_v3 = vld [vmem:[#allocation2 + $0x9] sm:$0xff] }
  0x32   : > { %420 = vst.msk [vmem:[#allocation2 + $0x21] sm:$0xff] %vm330_vm0, %v387_v4  ;;  %423 = vst.msk [vmem:[#allocation2 + $0x49] sm:$0xff] %vm330_vm0, %v390_v5 }
  0x33   : > { %422 = vst.msk [vmem:[#allocation2 + $0x39] sm:$0xff] %vm330_vm0, %v389_v6  ;;  %425 = vst.msk [vmem:[#allocation2 + $0x61] sm:$0xff] %vm330_vm0, %v392_v7 }
  0x34   : > { %424 = vst.msk [vmem:[#allocation2 + $0x51] sm:$0xff] %vm330_vm0, %v391_v10  ;;  %427 = vst.msk [vmem:[#allocation2 + $0x79] sm:$0xff] %vm330_vm0, %v394_v11 }
  0x35   : > { %426 = vst.msk [vmem:[#allocation2 + $0x69] sm:$0xff] %vm330_vm0, %v393_v12  ;;  %429 = vst.msk [vmem:[#allocation2 + $0x91] sm:$0xff] %vm330_vm0, %v396_v13 }
  0x36   : > { %428 = vst.msk [vmem:[#allocation2 + $0x81] sm:$0xff] %vm330_vm0, %v395_v14  ;;  %431 = vst.msk [vmem:[#allocation2 + $0xa9] sm:$0xff] %vm330_vm0, %v398_v15 }
  0x37   : > { %430 = vst.msk [vmem:[#allocation2 + $0x99] sm:$0xff] %vm330_vm0, %v397_v16  ;;  %433 = vst.msk [vmem:[#allocation2 + $0xc1] sm:$0xff] %vm330_vm0, %v400_v17 }
  0x38   : > { %432 = vst.msk [vmem:[#allocation2 + $0xb1] sm:$0xff] %vm330_vm0, %v399_v18  ;;  %435 = vst.msk [vmem:[#allocation2 + $0xd9] sm:$0xff] %vm330_vm0, %v402_v19  ;;  %v7026_v26 = vld [vmem:[#allocation2 + $0x18] sm:$0xff]  ;;  %v7028_v27 = vld [vmem:[#allocation2 + $0x30] sm:$0xff] }
  0x39   : > { %434 = vst.msk [vmem:[#allocation2 + $0xc9] sm:$0xff] %vm330_vm0, %v401_v20  ;;  %437 = vst.msk [vmem:[#allocation2 + $0xf1] sm:$0xff] %vm330_vm0, %v404_v21  ;;  %496 = vperm.xlu1 %6652, %v7026_v26   ;;  %v7034_v28 = vld [vmem:[#allocation2 + $0x20] sm:$0xff]  ;;  %506 = vperm.xlu0 %6651, %v7028_v27   ;;  %v7041_v31 = vld [vmem:[#allocation2 + $0x48] sm:$0xff] }
  0x3a   : > { %436 = vst.msk [vmem:[#allocation2 + $0xe1] sm:$0xff] %vm330_vm0, %v403_v22  ;;  %439 = vst.msk [vmem:[#allocation2 + $0x109] sm:$0xff] %vm330_vm0, %v406_v23  ;;  %v7044_v32 = vld [vmem:[#allocation2 + $0x38] sm:$0xff]  ;;  %v7047_v33 = vld [vmem:[#allocation2 + $0x60] sm:$0xff] }
  0x3b   : > { %438 = vst.msk [vmem:[#allocation2 + $0xf9] sm:$0xff] %vm330_vm0, %v405_v24  ;;  %441 = vst.msk [vmem:[#allocation2 + $0x121] sm:$0xff] %vm330_vm0, %v408_v25  ;;  %v7058_v39 = vld [vmem:[#allocation2 + $0x50] sm:$0xff]  ;;  %v7065_v41 = vld [vmem:[#allocation2 + $0x78] sm:$0xff] }
  0x3c   : > { %440 = vst.msk [vmem:[#allocation2 + $0x111] sm:$0xff] %vm330_vm0, %v407_v29  ;;  %443 = vst.msk [vmem:[#allocation2 + $0x139] sm:$0xff] %vm330_vm0, %v410_v30  ;;  %v7068_v42 = vld [vmem:[#allocation2 + $0x68] sm:$0xff]  ;;  %v7071_v43 = vld [vmem:[#allocation2 + $0x90] sm:$0xff] }
  0x3d   : > { %501 = vperm.xlu1 %6652, %v7034_v28   ;;  %516 = vperm.xlu0 %6651, %v7041_v31   ;;  %442 = vst.msk [vmem:[#allocation2 + $0x129] sm:$0xff] %vm330_vm0, %v409_v34  ;;  %445 = vst.msk [vmem:[#allocation2 + $0x151] sm:$0xff] %vm330_vm0, %v412_v35  ;;  %v7074_v44 = vld [vmem:[#allocation2 + $0x80] sm:$0xff]  ;;  %v7077_v45 = vld [vmem:[#allocation2 + $0xa8] sm:$0xff] }
  0x3e   : > { %444 = vst.msk [vmem:[#allocation2 + $0x141] sm:$0xff] %vm330_vm0, %v411_v36  ;;  %447 = vst.msk [vmem:[#allocation2 + $0x169] sm:$0xff] %vm330_vm0, %v414_v37  ;;  %v7080_v46 = vld [vmem:[#allocation2 + $0x98] sm:$0xff]  ;;  %v7083_v47 = vld [vmem:[#allocation2 + $0xc0] sm:$0xff] }
  0x3f   : > { %446 = vst.msk [vmem:[#allocation2 + $0x159] sm:$0xff] %vm330_vm0, %v413_v38  ;;  %448 = vst.msk [vmem:[#allocation2 + $0x171] sm:$0xff] %vm330_vm0, %v415_v40  ;;  %v7086_v48 = vld [vmem:[#allocation2 + $0xb0] sm:$0xff]  ;;  %v7089_v49 = vld [vmem:[#allocation2 + $0xd8] sm:$0xff] }
  0x40   : > { %v7092_v50 = vld [vmem:[#allocation2 + $0xc8] sm:$0xff]  ;;  %v7095_v51 = vld [vmem:[#allocation2 + $0xf0] sm:$0xff]  ;;  %v7099_v2 = vld [vmem:[#allocation2 + $0x19] sm:$0xff] }
  0x41   : > { %511 = vperm.xlu1 %6652, %v7044_v32   ;;  %526 = vperm.xlu0 %6651, %v7047_v33   ;;  %v470_v52 = vld [vmem:[#allocation2 + $0xe0] sm:$0xff]  ;;  %v473_v53 = vld [vmem:[#allocation2 + $0x108] sm:$0xff]  ;;  %v7102_v4 = vld [vmem:[#allocation2 + $0x31] sm:$0xff] }
  0x42   : > { %v472_v54 = vld [vmem:[#allocation2 + $0xf8] sm:$0xff]  ;;  %v475_v55 = vld [vmem:[#allocation2 + $0x120] sm:$0xff]  ;;  %v7107_v6 = vld [vmem:[#allocation2 + $0x49] sm:$0xff] }
  0x43   : > { %v474_v56 = vld [vmem:[#allocation2 + $0x110] sm:$0xff]  ;;  %v477_v57 = vld [vmem:[#allocation2 + $0x138] sm:$0xff]  ;;  %v7104_v5 = vld [vmem:[#allocation2 + $0x21] sm:$0xff] }
  0x44   : > { %v476_v58 = vld [vmem:[#allocation2 + $0x128] sm:$0xff]  ;;  %v479_v59 = vld [vmem:[#allocation2 + $0x150] sm:$0xff]  ;;  %v7110_v7 = vld [vmem:[#allocation2 + $0x39] sm:$0xff] }
  0x45   : > { %521 = vperm.xlu1 %6652, %v7058_v39   ;;  %536 = vperm.xlu0 %6651, %v7065_v41   ;;  %v478_v60 = vld [vmem:[#allocation2 + $0x140] sm:$0xff]  ;;  %v481_v61 = vld [vmem:[#allocation2 + $0x168] sm:$0xff]  ;;  %v7116_v9 = vld [vmem:[#allocation2 + $0x51] sm:$0xff] }
  0x46   : > { %v480_v62 = vld [vmem:[#allocation2 + $0x158] sm:$0xff]  ;;  %v482_v0 = vld [vmem:[#allocation2 + $0x170] sm:$0xff]  ;;  %v7113_v8 = vld [vmem:[#allocation2 + $0x61] sm:$0xff] }
  0x47   : > { %v7119_v10 = vld [vmem:[#allocation2 + $0x79] sm:$0xff]  ;;  %v7122_v11 = vld [vmem:[#allocation2 + $0x69] sm:$0xff]  ;;  %v7125_v12 = vld [vmem:[#allocation2 + $0x91] sm:$0xff] }
  0x48   : > { %v7128_v13 = vld [vmem:[#allocation2 + $0x81] sm:$0xff]  ;;  %v7131_v14 = vld [vmem:[#allocation2 + $0xa9] sm:$0xff]  ;;  %v7134_v15 = vld [vmem:[#allocation2 + $0x99] sm:$0xff] }
  0x49   : > { %531 = vperm.xlu1 %6652, %v7068_v42   ;;  %546 = vperm.xlu0 %6651, %v7071_v43   ;;  %v7137_v16 = vld [vmem:[#allocation2 + $0xc1] sm:$0xff]  ;;  %v7140_v17 = vld [vmem:[#allocation2 + $0xb1] sm:$0xff]  ;;  %v7143_v18 = vld [vmem:[#allocation2 + $0xd9] sm:$0xff] }
  0x4a   : > { %v7146_v19 = vld [vmem:[#allocation2 + $0xc9] sm:$0xff]  ;;  %v7149_v20 = vld [vmem:[#allocation2 + $0xf1] sm:$0xff]  ;;  %v701_v21 = vld [vmem:[#allocation2 + $0xe1] sm:$0xff] }
  0x4b   : > { %v704_v22 = vld [vmem:[#allocation2 + $0x109] sm:$0xff]  ;;  %v703_v23 = vld [vmem:[#allocation2 + $0xf9] sm:$0xff]  ;;  %v706_v24 = vld [vmem:[#allocation2 + $0x121] sm:$0xff] }
  0x4c   : > { %v705_v25 = vld [vmem:[#allocation2 + $0x111] sm:$0xff]  ;;  %v708_v29 = vld [vmem:[#allocation2 + $0x139] sm:$0xff]  ;;  %v707_v30 = vld [vmem:[#allocation2 + $0x129] sm:$0xff] }
  0x4d   : > { %541 = vperm.xlu1 %6652, %v7074_v44   ;;  %556 = vperm.xlu0 %6651, %v7077_v45   ;;  %v710_v34 = vld [vmem:[#allocation2 + $0x151] sm:$0xff]  ;;  %v709_v35 = vld [vmem:[#allocation2 + $0x141] sm:$0xff]  ;;  %v712_v36 = vld [vmem:[#allocation2 + $0x169] sm:$0xff] }
  0x4e   : > { %v711_v37 = vld [vmem:[#allocation2 + $0x159] sm:$0xff]  ;;  %v946_v38 = vld [vmem:[#allocation2 + $0x2] sm:$0xff] }
  0x51   : > { %551 = vperm.xlu1 %6652, %v7080_v46   ;;  %566 = vperm.xlu0 %6651, %v7083_v47  }
  0x55   : > { %561 = vperm.xlu1 %6652, %v7086_v48   ;;  %576 = vperm.xlu0 %6651, %v7089_v49  }
  0x59   : > { %571 = vperm.xlu1 %6652, %v7092_v50   ;;  %586 = vperm.xlu0 %6651, %v7095_v51  }
  0x5d   : > { %581 = vperm.xlu1 %6652, %v470_v52   ;;  %596 = vperm.xlu0 %6651, %v473_v53   ;;  %v713_v52 = vld [vmem:[#allocation2 + $0x171] sm:$0xff]  ;;  %v948_v53 = vld [vmem:[#allocation2 + $0x1a] sm:$0xff] }
  0x61   : > { %591 = vperm.xlu1 %6652, %v472_v54   ;;  %606 = vperm.xlu0 %6651, %v475_v55   ;;  %v947_v55 = vld [vmem:[#allocation2 + $0xa] sm:$0xff] }
  0x65   : > { %601 = vperm.xlu1 %6652, %v474_v56   ;;  %616 = vperm.xlu0 %6651, %v477_v57   ;;  %v7159_v57 = vld [vmem:[#allocation2 + $0x32] sm:$0xff] }
  0x69   : > { %611 = vperm.xlu1 %6652, %v476_v58   ;;  %626 = vperm.xlu0 %6651, %v479_v59   ;;  %v7163_v59 = vld [vmem:[#allocation2 + $0x22] sm:$0xff] }
  0x6d   : > { %621 = vperm.xlu1 %6652, %v478_v60   ;;  %636 = vperm.xlu0 %6651, %v481_v61   ;;  %v7168_v61 = vld [vmem:[#allocation2 + $0x4a] sm:$0xff] }
  0x71   : > { %631 = vperm.xlu1 %6652, %v480_v62   ;;  %718 = vperm.xlu0 %6651, %v682_v63   ;;  %v7173_v63 = vld [vmem:[#allocation2 + $0x3a] sm:$0xff] }
  0x75   : > { %641 = vperm.xlu1 %6652, %v482_v0   ;;  %728 = vperm.xlu0 %6651, %v7099_v2  }
  0x79   : > { %723 = vperm.xlu1 %6652, %v683_v3   ;;  %738 = vperm.xlu0 %6651, %v7102_v4   ;;  %v7178_v3 = vld [vmem:[#allocation2 + $0x62] sm:$0xff] }
  0x7d   : > { %733 = vperm.xlu1 %6652, %v7104_v5   ;;  %748 = vperm.xlu0 %6651, %v7107_v6  }
  0x81   : > { %743 = vperm.xlu1 %6652, %v7110_v7   ;;  %758 = vperm.xlu0 %6651, %v7113_v8  }
  0x85   : > { %753 = vperm.xlu1 %6652, %v7116_v9   ;;  %768 = vperm.xlu0 %6651, %v7119_v10  }
  0x89   : > { %763 = vperm.xlu1 %6652, %v7122_v11   ;;  %778 = vperm.xlu0 %6651, %v7125_v12  }
  0x8d   : > { %773 = vperm.xlu1 %6652, %v7128_v13   ;;  %788 = vperm.xlu0 %6651, %v7131_v14  }
  0x91   : > { %783 = vperm.xlu1 %6652, %v7134_v15   ;;  %798 = vperm.xlu0 %6651, %v7137_v16  }
  0x95   : > { %793 = vperm.xlu1 %6652, %v7140_v17   ;;  %808 = vperm.xlu0 %6651, %v7143_v18  }
  0x99   : > { %803 = vperm.xlu1 %6652, %v7146_v19   ;;  %818 = vperm.xlu0 %6651, %v7149_v20  }
  0x9d   : > { %813 = vperm.xlu1 %6652, %v701_v21   ;;  %828 = vperm.xlu0 %6651, %v704_v22   ;;  %v7183_v22 = vld [vmem:[#allocation2 + $0x52] sm:$0xff] }
  0x9e   : > { %v7153_v40 = vpop.permute.xlu0 %486 }
  0xa1   : > { %823 = vperm.xlu1 %6652, %v703_v23   ;;  %838 = vperm.xlu0 %6651, %v706_v24   ;;  %v7188_v24 = vld [vmem:[#allocation2 + $0x7a] sm:$0xff] }
  0xa2   : > { %v7155_v54 = vpop.permute.xlu0 %491 }
  0xa5   : > { %833 = vperm.xlu1 %6652, %v705_v25   ;;  %848 = vperm.xlu0 %6651, %v708_v29   ;;  %v7193_v29 = vld [vmem:[#allocation2 + $0x6a] sm:$0xff] }
  0xa9   : > { %843 = vperm.xlu1 %6652, %v707_v30   ;;  %858 = vperm.xlu0 %6651, %v710_v34  }
  0xad   : > { %853 = vperm.xlu1 %6652, %v709_v35   ;;  %868 = vperm.xlu0 %6651, %v712_v36   ;;  %v7201_v35 = vld [vmem:[#allocation2 + $0x82] sm:$0xff] }
  0xb1   : > { %863 = vperm.xlu1 %6652, %v711_v37   ;;  %982 = vperm.xlu0 %6651, %v946_v38  }
  0xb5   : > { %873 = vperm.xlu1 %6652, %v713_v52   ;;  %992 = vperm.xlu0 %6651, %v948_v53  }
  0xb8   : > { %v7157_v56 = vpop.permute.xlu1 %496  ;;  %v7161_v58 = vpop.permute.xlu0 %506 }
  0xb9   : > { %987 = vperm.xlu1 %6652, %v947_v55   ;;  %1002 = vperm.xlu0 %6651, %v7159_v57  }
  0xbc   : > { %v7166_v60 = vpop.permute.xlu1 %501  ;;  %v7171_v62 = vpop.permute.xlu0 %516 }
  0xbd   : > { %997 = vperm.xlu1 %6652, %v7163_v59   ;;  %1012 = vperm.xlu0 %6651, %v7168_v61  }
  0xc0   : > { %v7176_v0 = vpop.permute.xlu1 %511  ;;  %v7181_v21 = vpop.permute.xlu0 %526 }
  0xc1   : > { %1007 = vperm.xlu1 %6652, %v7173_v63   ;;  %1022 = vperm.xlu0 %6651, %v7178_v3  }
  0xc4   : > { %v7186_v23 = vpop.permute.xlu1 %521  ;;  %v7191_v25 = vpop.permute.xlu0 %536 }
  0xc5   : > { %1017 = vperm.xlu1 %6652, %v7183_v22   ;;  %1032 = vperm.xlu0 %6651, %v7188_v24  }
  0xc8   : > { %v7196_v30 = vpop.permute.xlu1 %531  ;;  %v7199_v34 = vpop.permute.xlu0 %546 }
  0xc9   : > { %1027 = vperm.xlu1 %6652, %v7193_v29   ;;  %1246 = vperm.xlu0 %6651, %v7026_v26  }
  0xcc   : > { %v7204_v36 = vpop.permute.xlu1 %541  ;;  %v7207_v37 = vpop.permute.xlu0 %556 }
  0xcd   : > { %1037 = vperm.xlu1 %6652, %v7201_v35   ;;  %1510 = vperm.xlu0 %6651, %v7099_v2  }
  0xd0   : > { %v7210_v38 = vpop.permute.xlu1 %551  ;;  %v7213_v52 = vpop.permute.xlu0 %566 }
  0xd1   : > { %10544 = vst [vmem:[#allocation10_spill] sm:$0xff] %v7210_v38  ;;  %1256 = vperm.xlu1 %6652, %v7028_v27   ;;  %10545 = vst [vmem:[#allocation11_spill] sm:$0xff] %v7213_v52  ;;  %1266 = vperm.xlu0 %6651, %v7041_v31  }
  0xd4   : > { %v7216_v55 = vpop.permute.xlu1 %561  ;;  %v7219_v26 = vpop.permute.xlu0 %576 }
  0xd5   : > { %10546 = vst [vmem:[#allocation12_spill] sm:$0xff] %v7216_v55  ;;  %1520 = vperm.xlu1 %6652, %v7102_v4   ;;  %1251 = vperm.xlu0 %6651, %v7034_v28  }
  0xd8   : > { %v7222_v1 = vpop.permute.xlu1 %571  ;;  %v7225_v2 = vpop.permute.xlu0 %586 }
  0xd9   : > { %10547 = vst [vmem:[#allocation13_spill] sm:$0xff] %v7222_v1  ;;  %1276 = vperm.xlu1 %6652, %v7047_v33   ;;  %1774 = vperm.xlu0 %6651, %v948_v53  }
  0xdc   : > { %v7227_v38 = vpop.permute.xlu1 %581  ;;  %v7230_v52 = vpop.permute.xlu0 %596 }
  0xdd   : > { %10548 = vst [vmem:[#allocation14_spill] sm:$0xff] %v7227_v38  ;;  %1261 = vperm.xlu1 %6652, %v7044_v32   ;;  %10549 = vst [vmem:[#allocation15_spill] sm:$0xff] %v7230_v52  ;;  %1530 = vperm.xlu0 %6651, %v7107_v6  }
  0xe0   : > { %v7233_v55 = vpop.permute.xlu1 %591  ;;  %v7236_v28 = vpop.permute.xlu0 %606 }
  0xe1   : > { %10550 = vst [vmem:[#allocation16_spill] sm:$0xff] %v7233_v55  ;;  %1784 = vperm.xlu1 %6652, %v7159_v57   ;;  %1515 = vperm.xlu0 %6651, %v7104_v5  }
  0xe4   : > { %v7239_v1 = vpop.permute.xlu1 %601  ;;  %v7242_v53 = vpop.permute.xlu0 %616 }
  0xe5   : > { %10551 = vst [vmem:[#allocation17_spill] sm:$0xff] %v7239_v1  ;;  %1540 = vperm.xlu1 %6652, %v7113_v8   ;;  %2039 = vperm.xlu0 %6651, %v7028_v27  }
  0xe8   : > { %v7245_v38 = vpop.permute.xlu1 %611  ;;  %v7248_v52 = vpop.permute.xlu0 %626 }
  0xe9   : > { %10552 = vst [vmem:[#allocation18_spill] sm:$0xff] %v7245_v38  ;;  %1525 = vperm.xlu1 %6652, %v7110_v7   ;;  %10553 = vst [vmem:[#allocation19_spill] sm:$0xff] %v7248_v52  ;;  %1271 = vperm.xlu0 %6651, %v7058_v39  }
  0xec   : > { %v7251_v55 = vpop.permute.xlu1 %621  ;;  %v7254_v5 = vpop.permute.xlu0 %636 }
  0xed   : > { %10554 = vst [vmem:[#allocation20_spill] sm:$0xff] %v7251_v55  ;;  %2049 = vperm.xlu1 %6652, %v7041_v31   ;;  %10555 = vst [vmem:[#allocation21_spill] sm:$0xff] %v7254_v5  ;;  %1286 = vperm.xlu0 %6651, %v7065_v41   ;;  %v7277_v55 = vld [vmem:[#allocation2 + $0x92] sm:$0xff] }
  0xf0   : > { %v7257_v1 = vpop.permute.xlu1 %631  ;;  %v7260_v27 = vpop.permute.xlu0 %718 }
  0xf1   : > { %10556 = vst [vmem:[#allocation22_spill] sm:$0xff] %v7257_v1  ;;  %1281 = vperm.xlu1 %6652, %v7068_v42   ;;  %1794 = vperm.xlu0 %6651, %v7168_v61  }
  0xf4   : > { %v7263_v38 = vpop.permute.xlu1 %641  ;;  %v7266_v52 = vpop.permute.xlu0 %728 }
  0xf5   : > { %10557 = vst [vmem:[#allocation23_spill] sm:$0xff] %v7263_v38  ;;  %1296 = vperm.xlu1 %6652, %v7071_v43   ;;  %10558 = vst [vmem:[#allocation24_spill] sm:$0xff] %v7266_v52  ;;  %1779 = vperm.xlu0 %6651, %v7163_v59  }
  0xf8   : > { %v7269_v31 = vpop.permute.xlu1 %723  ;;  %v7272_v5 = vpop.permute.xlu0 %738 }
  0xf9   : > { %10559 = vst [vmem:[#allocation25_spill] sm:$0xff] %v7269_v31  ;;  %1804 = vperm.xlu1 %6652, %v7178_v3   ;;  %2303 = vperm.xlu0 %6651, %v7102_v4   ;;  %v7288_v31 = vld [vmem:[#allocation2 + $0xaa] sm:$0xff] }
  0xfc   : > { %v7275_v1 = vpop.permute.xlu1 %733  ;;  %v7280_v38 = vpop.permute.xlu0 %748 }
  0xfd   : > { %10560 = vst [vmem:[#allocation26_spill] sm:$0xff] %v7275_v1  ;;  %1789 = vperm.xlu1 %6652, %v7173_v63   ;;  %10561 = vst [vmem:[#allocation27_spill] sm:$0xff] %v7280_v38  ;;  %1042 = vperm.xlu0 %6651, %v7277_v55  }
 0x100   : > { %v7283_v52 = vpop.permute.xlu1 %743  ;;  %v7286_v59 = vpop.permute.xlu0 %758 }
 0x101   : > { %10562 = vst [vmem:[#allocation28_spill] sm:$0xff] %v7283_v52  ;;  %2313 = vperm.xlu1 %6652, %v7107_v6   ;;  %10563 = vst [vmem:[#allocation29_spill] sm:$0xff] %v7286_v59  ;;  %1535 = vperm.xlu0 %6651, %v7116_v9  }
 0x104   : > { %v7291_v4 = vpop.permute.xlu1 %753  ;;  %v7294_v1 = vpop.permute.xlu0 %768 }
 0x105   : > { %10564 = vst [vmem:[#allocation30_spill] sm:$0xff] %v7291_v4  ;;  %1052 = vperm.xlu1 %6652, %v7288_v31   ;;  %10565 = vst [vmem:[#allocation31_spill] sm:$0xff] %v7294_v1  ;;  %1550 = vperm.xlu0 %6651, %v7119_v10  }
 0x108   : > { %v7297_v38 = vpop.permute.xlu1 %763  ;;  %v7300_v52 = vpop.permute.xlu0 %778 }
 0x109   : > { %10566 = vst [vmem:[#allocation32_spill] sm:$0xff] %v7297_v38  ;;  %1545 = vperm.xlu1 %6652, %v7122_v11   ;;  %2059 = vperm.xlu0 %6651, %v7047_v33   ;;  %v10568_v33 = vmov 0.0  }
 0x10a   : > { %4660 = vst.msk [vmem:[#allocation3] sm:$0xff] %vm4467_vm3, %v10568_v33  ;;  %4662 = vst.msk [vmem:[#allocation3 + $0x10] sm:$0xff] %vm4467_vm3, %v10568_v33 }
 0x10b   : > { %4661 = vst.msk [vmem:[#allocation3 + $0x8] sm:$0x3] %vm3570_vm2, %v10568_v33  ;;  %4663 = vst.msk [vmem:[#allocation3 + $0x18] sm:$0x3] %vm3570_vm2, %v10568_v33 }
 0x10c   : > { %v7303_v6 = vpop.permute.xlu1 %773  ;;  %v7306_v59 = vpop.permute.xlu0 %788  ;;  %4664 = vst.msk [vmem:[#allocation3 + $0x20] sm:$0xff] %vm4467_vm3, %v10568_v33  ;;  %4666 = vst.msk [vmem:[#allocation3 + $0x30] sm:$0xff] %vm4467_vm3, %v10568_v33 }
 0x10d   : > { %1560 = vperm.xlu1 %6652, %v7125_v12   ;;  %2044 = vperm.xlu0 %6651, %v7044_v32   ;;  %4665 = vst.msk [vmem:[#allocation3 + $0x28] sm:$0x3] %vm3570_vm2, %v10568_v33  ;;  %4667 = vst.msk [vmem:[#allocation3 + $0x38] sm:$0x3] %vm3570_vm2, %v10568_v33 }
 0x10e   : > { %4668 = vst.msk [vmem:[#allocation3 + $0x40] sm:$0xff] %vm4467_vm3, %v10568_v33  ;;  %4670 = vst.msk [vmem:[#allocation3 + $0x50] sm:$0xff] %vm4467_vm3, %v10568_v33 }
 0x10f   : > { %4669 = vst.msk [vmem:[#allocation3 + $0x48] sm:$0x3] %vm3570_vm2, %v10568_v33  ;;  %4671 = vst.msk [vmem:[#allocation3 + $0x58] sm:$0x3] %vm3570_vm2, %v10568_v33 }
 0x110   : > { %v7309_v4 = vpop.permute.xlu1 %783  ;;  %v7312_v1 = vpop.permute.xlu0 %798  ;;  %4672 = vst.msk [vmem:[#allocation3 + $0x60] sm:$0xff] %vm4467_vm3, %v10568_v33  ;;  %4674 = vst.msk [vmem:[#allocation3 + $0x70] sm:$0xff] %vm4467_vm3, %v10568_v33 }
 0x111   : > { %2069 = vperm.xlu1 %6652, %v7065_v41   ;;  %2567 = vperm.xlu0 %6651, %v7159_v57   ;;  %4673 = vst.msk [vmem:[#allocation3 + $0x68] sm:$0x3] %vm3570_vm2, %v10568_v33  ;;  %4675 = vst.msk [vmem:[#allocation3 + $0x78] sm:$0x3] %vm3570_vm2, %v10568_v33 }
 0x112   : > { %4676 = vst.msk [vmem:[#allocation3 + $0x80] sm:$0xff] %vm4467_vm3, %v10568_v33  ;;  %4678 = vst.msk [vmem:[#allocation3 + $0x90] sm:$0xff] %vm4467_vm3, %v10568_v33 }
 0x113   : > { %4677 = vst.msk [vmem:[#allocation3 + $0x88] sm:$0x3] %vm3570_vm2, %v10568_v33  ;;  %4679 = vst.msk [vmem:[#allocation3 + $0x98] sm:$0x3] %vm3570_vm2, %v10568_v33 }
 0x114   : > { %v7315_v38 = vpop.permute.xlu1 %793  ;;  %v7358_v32 = vpop.permute.xlu0 %808 }
 0x115   : > { %10567 = vst [vmem:[#allocation33_spill] sm:$0xff] %v7315_v38  ;;  %2054 = vperm.xlu1 %6652, %v7058_v39   ;;  %10569 = vst [vmem:[#allocation34_spill] sm:$0xff] %v7358_v32  ;;  %1291 = vperm.xlu0 %6651, %v7074_v44  }
 0x118   : > { %v7361_v39 = vpop.permute.xlu1 %803  ;;  %v7364_v41 = vpop.permute.xlu0 %818 }
 0x119   : > { %2577 = vperm.xlu1 %6652, %v7168_v61   ;;  %10570 = vst [vmem:[#allocation35_spill] sm:$0xff] %v7364_v41  ;;  %1306 = vperm.xlu0 %6651, %v7077_v45  }
 0x11c   : > { %v7367_v57 = vpop.permute.xlu1 %813  ;;  %v7370_v38 = vpop.permute.xlu0 %828 }
 0x11d   : > { %10571 = vst [vmem:[#allocation36_spill] sm:$0xff] %v7367_v57  ;;  %1301 = vperm.xlu1 %6652, %v7080_v46   ;;  %10572 = vst [vmem:[#allocation37_spill] sm:$0xff] %v7370_v38  ;;  %1799 = vperm.xlu0 %6651, %v7183_v22  }
 0x120   : > { %v7373_v33 = vpop.permute.xlu1 %823  ;;  %v7376_v32 = vpop.permute.xlu0 %838 }
 0x121   : > { %10573 = vst [vmem:[#allocation38_spill] sm:$0xff] %v7373_v33  ;;  %1316 = vperm.xlu1 %6652, %v7083_v47   ;;  %10574 = vst [vmem:[#allocation39_spill] sm:$0xff] %v7376_v32  ;;  %1814 = vperm.xlu0 %6651, %v7188_v24   ;;  %v7393_v32 = vld [vmem:[#allocation2 + $0x9a] sm:$0xff] }
 0x122   : > { %10580 = vst [vmem:[#allocation45_spill] sm:$0xff] %v7393_v32 }
 0x124   : > { %v7379_v61 = vpop.permute.xlu1 %833  ;;  %v7382_v41 = vpop.permute.xlu0 %848 }
 0x125   : > { %10575 = vst [vmem:[#allocation40_spill] sm:$0xff] %v7379_v61  ;;  %1809 = vperm.xlu1 %6652, %v7193_v29   ;;  %10576 = vst [vmem:[#allocation41_spill] sm:$0xff] %v7382_v41  ;;  %2323 = vperm.xlu0 %6651, %v7113_v8   ;;  %v7401_v8 = vld [vmem:[#allocation2 + $0xc2] sm:$0xff] }
 0x126   : > { %10583 = vst [vmem:[#allocation48_spill] sm:$0xff] %v7401_v8 }
 0x128   : > { %v7385_v46 = vpop.permute.xlu1 %843  ;;  %v7388_v38 = vpop.permute.xlu0 %858 }
 0x129   : > { %10577 = vst [vmem:[#allocation42_spill] sm:$0xff] %v7385_v46  ;;  %1824 = vperm.xlu1 %6652, %v7277_v55   ;;  %10578 = vst [vmem:[#allocation43_spill] sm:$0xff] %v7388_v38  ;;  %2308 = vperm.xlu0 %6651, %v7110_v7   ;;  %v7406_v38 = vld [vmem:[#allocation2 + $0xb2] sm:$0xff] }
 0x12c   : > { %v7391_v47 = vpop.permute.xlu1 %853  ;;  %v7396_v61 = vpop.permute.xlu0 %868 }
 0x12d   : > { %10579 = vst [vmem:[#allocation44_spill] sm:$0xff] %v7391_v47  ;;  %2333 = vperm.xlu1 %6652, %v7119_v10   ;;  %10581 = vst [vmem:[#allocation46_spill] sm:$0xff] %v7396_v61  ;;  %1047 = vperm.xlu0 %6651, %v7393_v32   ;;  %v7414_v61 = vld [vmem:[#allocation2 + $0xda] sm:$0xff] }
 0x130   : > { %v7399_v41 = vpop.permute.xlu1 %863  ;;  %v7404_v46 = vpop.permute.xlu0 %982 }
 0x131   : > { %10582 = vst [vmem:[#allocation47_spill] sm:$0xff] %v7399_v41  ;;  %2318 = vperm.xlu1 %6652, %v7116_v9   ;;  %1062 = vperm.xlu0 %6651, %v7401_v8  }
 0x134   : > { %v7409_v7 = vpop.permute.xlu1 %873  ;;  %v7412_v10 = vpop.permute.xlu0 %992 }
 0x135   : > { %10584 = vst [vmem:[#allocation49_spill] sm:$0xff] %v7409_v7  ;;  %1057 = vperm.xlu1 %6652, %v7406_v38   ;;  %1555 = vperm.xlu0 %6651, %v7128_v13  }
 0x138   : > { %v7417_v41 = vpop.permute.xlu1 %987  ;;  %v7420_v9 = vpop.permute.xlu0 %1002 }
 0x139   : > { %10585 = vst [vmem:[#allocation50_spill] sm:$0xff] %v7417_v41  ;;  %1072 = vperm.xlu1 %6652, %v7414_v61   ;;  %10586 = vst [vmem:[#allocation51_spill] sm:$0xff] %v7420_v9  ;;  %1570 = vperm.xlu0 %6651, %v7131_v14  }
 0x13c   : > { %v7423_v47 = vpop.permute.xlu1 %997  ;;  %v7426_v7 = vpop.permute.xlu0 %1012 }
 0x13d   : > { %10587 = vst [vmem:[#allocation52_spill] sm:$0xff] %v7423_v47  ;;  %1565 = vperm.xlu1 %6652, %v7134_v15   ;;  %10588 = vst [vmem:[#allocation53_spill] sm:$0xff] %v7426_v7  ;;  %2064 = vperm.xlu0 %6651, %v7068_v42  }
 0x140   : > { %v7429_v33 = vpop.permute.xlu1 %1007  ;;  %v7432_v57 = vpop.permute.xlu0 %1022 }
 0x141   : > { %10589 = vst [vmem:[#allocation54_spill] sm:$0xff] %v7429_v33  ;;  %1580 = vperm.xlu1 %6652, %v7137_v16   ;;  %10590 = vst [vmem:[#allocation55_spill] sm:$0xff] %v7432_v57  ;;  %2079 = vperm.xlu0 %6651, %v7071_v43  }
 0x144   : > { %v7435_v41 = vpop.permute.xlu1 %1017  ;;  %v7438_v9 = vpop.permute.xlu0 %1032 }
 0x145   : > { %10591 = vst [vmem:[#allocation56_spill] sm:$0xff] %v7435_v41  ;;  %2074 = vperm.xlu1 %6652, %v7074_v44   ;;  %10592 = vst [vmem:[#allocation57_spill] sm:$0xff] %v7438_v9  ;;  %2587 = vperm.xlu0 %6651, %v7178_v3  }
 0x148   : > { %v7441_v15 = vpop.permute.xlu1 %1027  ;;  %v7444_v42 = vpop.permute.xlu0 %1246 }
 0x149   : > { %10593 = vst [vmem:[#allocation58_spill] sm:$0xff] %v7441_v15  ;;  %2089 = vperm.xlu1 %6652, %v7077_v45   ;;  %2572 = vperm.xlu0 %6651, %v7173_v63  }
 0x14c   : > { %v7447_v16 = vpop.permute.xlu1 %1037  ;;  %v7450_v43 = vpop.permute.xlu0 %1510 }
 0x14d   : > { %10594 = vst [vmem:[#allocation59_spill] sm:$0xff] %v7447_v16  ;;  %2597 = vperm.xlu1 %6652, %v7188_v24   ;;  %1311 = vperm.xlu0 %6651, %v7086_v48  }
 0x150   : > { %v7453_v44 = vpop.permute.xlu1 %1256  ;;  %v7456_v3 = vpop.permute.xlu0 %1266 }
 0x151   : > { %2582 = vperm.xlu1 %6652, %v7183_v22   ;;  %10595 = vst [vmem:[#allocation60_spill] sm:$0xff] %v7456_v3  ;;  %1326 = vperm.xlu0 %6651, %v7089_v49   ;;  %v2015_v3 = vld [vmem:[#allocation2 + $0xc0] sm:$0xff] }
 0x154   : > { %v7459_v45 = vpop.permute.xlu1 %1520  ;;  %v7462_v63 = vpop.permute.xlu0 %1251 }
 0x155   : > { %1321 = vperm.xlu1 %6652, %v7092_v50   ;;  %10596 = vst [vmem:[#allocation61_spill] sm:$0xff] %v7462_v63  ;;  %1819 = vperm.xlu0 %6651, %v7201_v35  }
 0x158   : > { %v7465_v24 = vpop.permute.xlu1 %1276  ;;  %v7468_v48 = vpop.permute.xlu0 %1774 }
 0x159   : > { %10597 = vst [vmem:[#allocation62_spill] sm:$0xff] %v7465_v24  ;;  %1336 = vperm.xlu1 %6652, %v7095_v51   ;;  %1834 = vperm.xlu0 %6651, %v7288_v31   ;;  %v7485_v24 = vld [vmem:[#allocation2 + $0xca] sm:$0xff] }
 0x15c   : > { %v7471_v22 = vpop.permute.xlu1 %1261  ;;  %v7474_v49 = vpop.permute.xlu0 %1530 }
 0x15d   : > { %10598 = vst [vmem:[#allocation63_spill] sm:$0xff] %v7471_v22  ;;  %1829 = vperm.xlu1 %6652, %v7393_v32   ;;  %10599 = vst [vmem:[#allocation64_spill] sm:$0xff] %v7474_v49  ;;  %2328 = vperm.xlu0 %6651, %v7122_v11   ;;  %v7493_v11 = vld [vmem:[#allocation2 + $0xf2] sm:$0xff] }
 0x15e   : > { %10603 = vst [vmem:[#allocation68_spill] sm:$0xff] %v7493_v11  ;;  %v2012_v49 = vld [vmem:[#allocation2 + $0x98] sm:$0xff] }
 0x160   : > { %v7477_v50 = vpop.permute.xlu1 %1784  ;;  %v7480_v63 = vpop.permute.xlu0 %1515 }
 0x161   : > { %1844 = vperm.xlu1 %6652, %v7401_v8   ;;  %10600 = vst [vmem:[#allocation65_spill] sm:$0xff] %v7480_v63  ;;  %2343 = vperm.xlu0 %6651, %v7125_v12   ;;  %v7498_v63 = vld [vmem:[#allocation2 + $0xe2] sm:$0xff] }
 0x162   : > { %10605 = vst [vmem:[#allocation70_spill] sm:$0xff] %v7498_v63 }
 0x164   : > { %v7483_v51 = vpop.permute.xlu1 %1540  ;;  %v7488_v22 = vpop.permute.xlu0 %2039 }
 0x165   : > { %10601 = vst [vmem:[#allocation66_spill] sm:$0xff] %v7483_v51  ;;  %2338 = vperm.xlu1 %6652, %v7128_v13   ;;  %1067 = vperm.xlu0 %6651, %v7485_v24   ;;  %v7506_v51 = vld [vmem:[#allocation2 + $0x10a] sm:$0xff] }
 0x166   : > { %10607 = vst [vmem:[#allocation72_spill] sm:$0xff] %v7506_v51 }
 0x168   : > { %v7491_v32 = vpop.permute.xlu1 %1525  ;;  %v7496_v8 = vpop.permute.xlu0 %1271 }
 0x169   : > { %10602 = vst [vmem:[#allocation67_spill] sm:$0xff] %v7491_v32  ;;  %2353 = vperm.xlu1 %6652, %v7131_v14   ;;  %10604 = vst [vmem:[#allocation69_spill] sm:$0xff] %v7496_v8  ;;  %1082 = vperm.xlu0 %6651, %v7493_v11  }
 0x16c   : > { %v7501_v12 = vpop.permute.xlu1 %2049  ;;  %v7504_v13 = vpop.permute.xlu0 %1286 }
 0x16d   : > { %1077 = vperm.xlu1 %6652, %v7498_v63   ;;  %10606 = vst [vmem:[#allocation71_spill] sm:$0xff] %v7504_v13  ;;  %1575 = vperm.xlu0 %6651, %v7140_v17  }
 0x170   : > { %v7509_v32 = vpop.permute.xlu1 %1281  ;;  %v7512_v14 = vpop.permute.xlu0 %1794 }
 0x171   : > { %10608 = vst [vmem:[#allocation73_spill] sm:$0xff] %v7509_v32  ;;  %1092 = vperm.xlu1 %6652, %v7506_v51   ;;  %10609 = vst [vmem:[#allocation74_spill] sm:$0xff] %v7512_v14  ;;  %1590 = vperm.xlu0 %6651, %v7143_v18   ;;  %v2014_v51 = vld [vmem:[#allocation2 + $0xb0] sm:$0xff]  ;;  %v6403_v18 = vld [vmem:[%s10469_s1] ss:$0 sm:$0xff] }
 0x172   : > { %v7538_v14 = vmul.f32 %v6403_v18, %v7161_v58  ;;  %v7541_v32 = vmul.f32 %v6403_v18, %v7166_v60  ;;  %v7560_v58 = vmul.f32 %v6403_v18, %v7196_v30  ;;  %v7565_v60 = vld [vmem:[%s10469_s1 + $0x1] ss:$0 sm:$0xff]  ;;  %v7588_v15 = vmul.f32 %v6403_v18, %v7219_v26 }
 0x173   : > { %v10616_v30 = vld [vmem:[#allocation11_spill] sm:$0xff]  ;;  %v882_v26 = vmul.f32 %v7565_v60, %v7260_v27  ;;  %v7616_v33 = vmul.f32 %v6403_v18, %v7236_v28 }
 0x174   : > { %v7515_v8 = vpop.permute.xlu1 %1296  ;;  %v7518_v63 = vpop.permute.xlu0 %1779  ;;  %v10635_v28 = vld [vmem:[#allocation19_spill] sm:$0xff] }
 0x175   : > { %10610 = vst [vmem:[#allocation75_spill] sm:$0xff] %v7515_v8  ;;  %1585 = vperm.xlu1 %6652, %v7146_v19   ;;  %10611 = vst [vmem:[#allocation76_spill] sm:$0xff] %v7518_v63  ;;  %2084 = vperm.xlu0 %6651, %v2012_v49   ;;  %v650_v19 = vmul.f32 %v6403_v18, %v7153_v40  ;;  %v7532_v49 = vmul.f32 %v6403_v18, %v7155_v54 }
 0x176   : > { %v7551_v40 = vmul.f32 %v6403_v18, %v7181_v21  ;;  %v7554_v54 = vmul.f32 %v6403_v18, %v7186_v23  ;;  %v7573_v21 = vmul.f32 %v6403_v18, %v7204_v36  ;;  %v7576_v23 = vmul.f32 %v6403_v18, %v7207_v37  ;;  %v7596_v36 = vld [vmem:[%s10469_s1 + $0x2] ss:$0 sm:$0xff] }
 0x177   : > { %v7637_v47 = vmul.f32 %v6403_v18, %v10635_v28  ;;  %v886_v28 = vmul.f32 %v7565_v60, %v7272_v5  ;;  %v10648_v5 = vld [vmem:[#allocation26_spill] sm:$0xff] }
 0x178   : > { %v7520_v13 = vpop.permute.xlu1 %1804  ;;  %v7523_v17 = vpop.permute.xlu0 %2303 }
 0x179   : > { %10612 = vst [vmem:[#allocation77_spill] sm:$0xff] %v7520_v13  ;;  %1600 = vperm.xlu1 %6652, %v7149_v20   ;;  %2099 = vperm.xlu0 %6651, %v2015_v3   ;;  %v652_v13 = vmul.f32 %v6403_v18, %v7157_v56  ;;  %v2017_v20 = vld [vmem:[#allocation2 + $0xd8] sm:$0xff]  ;;  %v7544_v3 = vmul.f32 %v6403_v18, %v7171_v62  ;;  %10636 = vst [vmem:[#allocation19_spill] sm:$0xff] %v7637_v47 }
 0x17a   : > { %v7557_v56 = vmul.f32 %v6403_v18, %v7191_v25  ;;  %v10615_v25 = vld [vmem:[#allocation10_spill] sm:$0xff] }
 0x17c   : > { %v7528_v8 = vpop.permute.xlu1 %1789  ;;  %v7535_v63 = vpop.permute.xlu0 %1042 }
 0x17d   : > { %10613 = vst [vmem:[#allocation78_spill] sm:$0xff] %v7528_v8  ;;  %2094 = vperm.xlu1 %6652, %v2014_v51   ;;  %10614 = vst [vmem:[#allocation79_spill] sm:$0xff] %v7535_v63  ;;  %v7547_v51 = vmul.f32 %v6403_v18, %v7176_v0  ;;  %2592 = vperm.xlu0 %6651, %v7193_v29   ;;  %v7570_v0 = vmul.f32 %v6403_v18, %v7199_v34  ;;  %v10617_v8 = vld [vmem:[#allocation12_spill] sm:$0xff]  ;;  %v10618_v34 = vld [vmem:[#allocation13_spill] sm:$0xff] }
 0x17e   : > { %v7579_v29 = vmul.f32 %v6403_v18, %v10615_v25  ;;  %v7582_v63 = vmul.f32 %v6403_v18, %v10616_v30  ;;  %v7585_v16 = vmul.f32 %v6403_v18, %v10617_v8  ;;  %v7591_v9 = vmul.f32 %v6403_v18, %v10618_v34  ;;  %v10621_v25 = vld [vmem:[#allocation14_spill] sm:$0xff]  ;;  %v10623_v8 = vld [vmem:[#allocation15_spill] sm:$0xff]  ;;  %v10625_v34 = vld [vmem:[#allocation16_spill] sm:$0xff] }
 0x17f   : > { %v7604_v30 = vmul.f32 %v6403_v18, %v10621_v25  ;;  %v7607_v41 = vmul.f32 %v6403_v18, %v10623_v8  ;;  %v7613_v57 = vmul.f32 %v6403_v18, %v10625_v34  ;;  %10627 = vst [vmem:[#allocation15_spill] sm:$0xff] %v7616_v33  ;;  %v7622_v25 = vmul.f32 %v6403_v18, %v7242_v53  ;;  %v7627_v8 = vld [vmem:[%s10469_s1 + $0x3] ss:$0 sm:$0xff]  ;;  %v10633_v34 = vld [vmem:[#allocation18_spill] sm:$0xff] }
 0x180   : > { %v7567_v62 = vpop.permute.xlu1 %2313  ;;  %v7598_v37 = vpop.permute.xlu0 %1535  ;;  %v7634_v7 = vmul.f32 %v6403_v18, %v10633_v34  ;;  %v1146_v53 = vmul.f32 %v7596_v36, %v7404_v46 }
 0x181   : > { %2109 = vperm.xlu1 %6652, %v2017_v20   ;;  %10619 = vst [vmem:[#allocation10_spill] sm:$0xff] %v7598_v37  ;;  %v7601_v20 = vmul.f32 %v6403_v18, %v7225_v2  ;;  %10622 = vst [vmem:[#allocation12_spill] sm:$0xff] %v7604_v30  ;;  %2607 = vperm.xlu0 %6651, %v7277_v55   ;;  %v10628_v37 = vld [vmem:[#allocation17_spill] sm:$0xff]  ;;  %v7631_v55 = vld [vmem:[#allocation2 + $0xe0] sm:$0xff] }
 0x182   : > { %10624 = vst [vmem:[#allocation13_spill] sm:$0xff] %v7607_v41  ;;  %10626 = vst [vmem:[#allocation14_spill] sm:$0xff] %v7613_v57  ;;  %v7619_v2 = vmul.f32 %v6403_v18, %v10628_v37  ;;  %v10637_v37 = vld [vmem:[#allocation24_spill] sm:$0xff]  ;;  %v10642_v41 = vld [vmem:[#allocation25_spill] sm:$0xff] }
 0x183   : > { %10620 = vst [vmem:[#allocation11_spill] sm:$0xff] %v7601_v20  ;;  %10630 = vst [vmem:[#allocation17_spill] sm:$0xff] %v7622_v25  ;;  %v10638_v25 = vld [vmem:[#allocation20_spill] sm:$0xff]  ;;  %v883_v34 = vmul.f32 %v7565_v60, %v10642_v41  ;;  %v1410_v41 = vmul.f32 %v7627_v8, %v7444_v42 }
 0x184   : > { %10629 = vst [vmem:[#allocation16_spill] sm:$0xff] %v7619_v2  ;;  %v7629_v27 = vpop.permute.xlu1 %1052  ;;  %10632 = vst [vmem:[#allocation81_spill] sm:$0xff] %v7631_v55  ;;  %v884_v2 = vmul.f32 %v7565_v60, %v10637_v37  ;;  %v7645_v33 = vmul.f32 %v6403_v18, %v10638_v25  ;;  %v7657_v37 = vld [vmem:[%s10469_s1 + $0x4] ss:$0 sm:$0xff]  ;;  %v7659_v46 = vpop.permute.xlu0 %1550  ;;  %v914_v25 = vadd.f32 %v882_v26, %v650_v19 }
 0x185   : > { %10631 = vst [vmem:[#allocation80_spill] sm:$0xff] %v7629_v27  ;;  %10634 = vst [vmem:[#allocation18_spill] sm:$0xff] %v7634_v7  ;;  %2602 = vperm.xlu1 %6652, %v7201_v35   ;;  %v10640_v27 = vld [vmem:[#allocation21_spill] sm:$0xff]  ;;  %v10644_v35 = vld [vmem:[#allocation22_spill] sm:$0xff]  ;;  %1331 = vperm.xlu0 %6651, %v7631_v55  }
 0x186   : > { %10639 = vst [vmem:[#allocation24_spill] sm:$0xff] %v7645_v33  ;;  %v7648_v57 = vmul.f32 %v6403_v18, %v10640_v27  ;;  %10643 = vst [vmem:[#allocation21_spill] sm:$0xff] %v7659_v46  ;;  %v7662_v47 = vmul.f32 %v6403_v18, %v10644_v35  ;;  %v10646_v33 = vld [vmem:[#allocation23_spill] sm:$0xff]  ;;  %v10650_v30 = vld [vmem:[#allocation28_spill] sm:$0xff]  ;;  %v916_v26 = vadd.f32 %v884_v2, %v652_v13 }
 0x187   : > { %v7665_v27 = vmul.f32 %v6403_v18, %v10646_v33  ;;  %v10649_v7 = vld [vmem:[#allocation27_spill] sm:$0xff]  ;;  %v887_v46 = vmul.f32 %v7565_v60, %v10650_v30  ;;  %v10651_v35 = vld [vmem:[#allocation29_spill] sm:$0xff]  ;;  %v7681_v33 = vld [vmem:[%s10469_s1 + $0x5] ss:$0 sm:$0xff]  ;;  %v1674_v30 = vmul.f32 %v7657_v37, %v7450_v43 }
 0x188   : > { %10641 = vst [vmem:[#allocation20_spill] sm:$0xff] %v7648_v57  ;;  %10645 = vst [vmem:[#allocation25_spill] sm:$0xff] %v7662_v47  ;;  %v885_v57 = vmul.f32 %v7565_v60, %v10648_v5  ;;  %v888_v11 = vmul.f32 %v7565_v60, %v10649_v7  ;;  %v890_v19 = vmul.f32 %v7565_v60, %v10651_v35  ;;  %v7683_v42 = vpop.permute.xlu1 %1545  ;;  %v7685_v18 = vld [vmem:[#allocation2 + $0x108] sm:$0xff]  ;;  %v10653_v5 = vld [vmem:[#allocation30_spill] sm:$0xff]  ;;  %v7707_v43 = vpop.permute.xlu0 %2059 }
 0x189   : > { %10647 = vst [vmem:[#allocation22_spill] sm:$0xff] %v7665_v27  ;;  %10652 = vst [vmem:[#allocation23_spill] sm:$0xff] %v7683_v42  ;;  %v889_v55 = vmul.f32 %v7565_v60, %v10653_v5  ;;  %v1178_v7 = vadd.f32 %v1146_v53, %v914_v25  ;;  %2617 = vperm.xlu1 %6652, %v7288_v31   ;;  %v7693_v35 = vadd.f32 %v883_v34, %v7532_v49  ;;  %v10654_v47 = vld [vmem:[#allocation31_spill] sm:$0xff]  ;;  %v10655_v20 = vld [vmem:[#allocation32_spill] sm:$0xff] }
 0x18a   : > { %v7696_v27 = vadd.f32 %v886_v28, %v7538_v14  ;;  %v892_v42 = vmul.f32 %v7565_v60, %v10654_v47  ;;  %v891_v13 = vmul.f32 %v7565_v60, %v10655_v20  ;;  %v7705_v2 = vld [vmem:[%s10469_s1 + $0x6] ss:$0 sm:$0xff]  ;;  %v1229_v31 = vld [vmem:[#allocation2 + $0xf8] sm:$0xff]  ;;  %v1148_v49 = vmul.f32 %v7596_v36, %v7412_v10  ;;  %1346 = vperm.xlu0 %6651, %v7685_v18   ;;  %v7729_v10 = vld [vmem:[%s10469_s1 + $0x7] ss:$0 sm:$0xff] }
 0x18b   : > { %v1442_v53 = vadd.f32 %v1410_v41, %v1178_v7  ;;  %v1938_v14 = vmul.f32 %v7681_v33, %v7468_v48  ;;  %v7715_v47 = vadd.f32 %v885_v57, %v7541_v32  ;;  %v7718_v20 = vadd.f32 %v888_v11, %v7544_v3  ;;  %10656 = vst [vmem:[#allocation26_spill] sm:$0xff] %v7729_v10 }
 0x18c   : > { %v7721_v34 = vadd.f32 %v887_v46, %v7547_v51  ;;  %v7724_v28 = vadd.f32 %v890_v19, %v7551_v40  ;;  %v7731_v48 = vpop.permute.xlu1 %1560  ;;  %v7734_v25 = vadd.f32 %v889_v55, %v7554_v54  ;;  %v1412_v57 = vmul.f32 %v7627_v8, %v7453_v44  ;;  %v7746_v40 = vpop.permute.xlu0 %2044  ;;  %v1232_v46 = vld [vmem:[#allocation2 + $0x120] sm:$0xff] }
 0x18d   : > { %v1706_v32 = vadd.f32 %v1674_v30, %v1442_v53  ;;  %v2203_v11 = vmul.f32 %v7705_v2, %v7488_v22  ;;  %1341 = vperm.xlu1 %6652, %v1229_v31   ;;  %v7741_v3 = vadd.f32 %v892_v42, %v7557_v56  ;;  %v7744_v51 = vadd.f32 %v891_v13, %v7560_v58 }
 0x18e   : > { %v6759_v41 = vmov 1983009808   ;;  %v2902_v55 = vlaneseq  ;;  %v1180_v19 = vadd.f32 %v1148_v49, %v916_v26  ;;  %v1676_v44 = vmul.f32 %v7657_v37, %v7459_v45  ;;  %1839 = vperm.xlu0 %6651, %v7406_v38   ;;  %v7766_v45 = vld [vmem:[%s10469_s1 + $0x8] ss:$0 sm:$0xff] }
 0x18f   : > { %v2900_v54 = vunpack.c.l.s4 %v6759_v41  ;;  %v1970_v5 = vadd.f32 %v1938_v14, %v1706_v32  ;;  %v2467_v22 = vmul.f32 %v7729_v10, %v7523_v17  ;;  %v894_v56 = vmul.f32 %v7565_v60, %v7300_v52  ;;  %10657 = vst [vmem:[#allocation27_spill] sm:$0xff] %v7766_v45 }
 0x190   : > { %v893_v58 = vmul.f32 %v7565_v60, %v7303_v6  ;;  %v896_v42 = vmul.f32 %v7565_v60, %v7306_v59  ;;  %v895_v26 = vmul.f32 %v7565_v60, %v7309_v4  ;;  %v7761_v7 = vpop.permute.xlu1 %2069  ;;  %v898_v17 = vmul.f32 %v7565_v60, %v7312_v1  ;;  %v10658_v59 = vld [vmem:[#allocation33_spill] sm:$0xff]  ;;  %v10659_v4 = vld [vmem:[#allocation34_spill] sm:$0xff]  ;;  %v2568_v14 = vpop.permute.xlu0 %2567 }
 0x191   : > { %v1444_v52 = vadd.f32 %v1412_v57, %v1180_v19  ;;  %v1940_v6 = vmul.f32 %v7681_v33, %v7477_v50  ;;  %v2235_v30 = vadd.f32 %v2203_v11, %v1970_v5  ;;  %1356 = vperm.xlu1 %6652, %v1232_v46   ;;  %v897_v13 = vmul.f32 %v7565_v60, %v10658_v59  ;;  %v10661_v5 = vld [vmem:[#allocation36_spill] sm:$0xff] }
 0x192   : > { %v900_v31 = vmul.f32 %v7565_v60, %v10659_v4  ;;  %v2901_v49 = vunpack.c.0.s8 %v2900_v54  ;;  %v2903_v53 = vshrl.u32 %v2902_v55, 7  ;;  %v2205_v1 = vmul.f32 %v7705_v2, %v7501_v12  ;;  %1854 = vperm.xlu0 %6651, %v7414_v61   ;;  %v10660_v54 = vld [vmem:[#allocation35_spill] sm:$0xff] }
 0x193   : > { %v1708_v32 = vadd.f32 %v1676_v44, %v1444_v52  ;;  %v2499_v57 = vadd.f32 %v2467_v22, %v2235_v30  ;;  %v2731_v41 = vmul.f32 %v7766_v45, %v2568_v14  ;;  %v7781_v50 = vadd.f32 %v894_v56, %v7570_v0  ;;  %v2276_v12 = vld [vmem:[#allocation2 + $0x99] sm:$0xff]  ;;  %v416_v44 = vld [vmem:[%s6983_s25 + $0xf0] sm:$0xff] }
 0x194   : > { %v7784_v11 = vadd.f32 %v893_v58, %v7573_v21  ;;  %v899_v46 = vmul.f32 %v7565_v60, %v7361_v39  ;;  %v902_v55 = vmul.f32 %v7565_v60, %v10660_v54  ;;  %v7790_v19 = vpop.permute.xlu1 %2054  ;;  %v901_v22 = vmul.f32 %v7565_v60, %v10661_v5  ;;  %v7800_v21 = vld [vmem:[%s10470_s2] ss:$0 sm:$0xff]  ;;  %449 = vst.msk [vmem:[#allocation2 + $0x181] sm:$0xff] %vm330_vm0, %v416_v44  ;;  %v7816_v30 = vpop.permute.xlu0 %1291  ;;  %v10678_v54 = vld [vmem:[#allocation41_spill] sm:$0xff] }
 0x195   : > { %v1972_v52 = vadd.f32 %v1940_v6, %v1708_v32  ;;  %v2469_v0 = vmul.f32 %v7729_v10, %v7567_v62  ;;  %10662 = vst [vmem:[#allocation28_spill] sm:$0xff] %v7800_v21  ;;  %v2763_v39 = vadd.f32 %v2731_v41, %v2499_v57  ;;  %1849 = vperm.xlu1 %6652, %v7485_v24   ;;  %v10667_v24 = vld [vmem:[#allocation37_spill] sm:$0xff]  ;;  %v10676_v57 = vld [vmem:[#allocation68_spill] sm:$0xff]  ;;  %v10680_v5 = vld [vmem:[#allocation43_spill] sm:$0xff] }
 0x196   : > { %v7805_v56 = vadd.f32 %v896_v42, %v7576_v23  ;;  %v7808_v58 = vadd.f32 %v895_v26, %v7579_v29  ;;  %v7811_v6 = vadd.f32 %v898_v17, %v7582_v63  ;;  %v7814_v62 = vadd.f32 %v897_v13, %v7585_v16  ;;  %2348 = vperm.xlu0 %6651, %v2276_v12   ;;  %v10670_v63 = vld [vmem:[#allocation11_spill] sm:$0xff]  ;;  %v10672_v16 = vld [vmem:[#allocation38_spill] sm:$0xff]  ;;  %v10677_v41 = vld [vmem:[#allocation40_spill] sm:$0xff] }
 0x197   : > { %v7819_v59 = vadd.f32 %v900_v31, %v7588_v15  ;;  %v904_v4 = vmul.f32 %v7565_v60, %v10667_v24  ;;  %v2237_v14 = vadd.f32 %v2205_v1, %v1972_v52  ;;  %v7823_v23 = vsub.s32 %v2901_v49, %v2903_v53  ;;  %v2279_v13 = vld [vmem:[#allocation2 + $0xc1] sm:$0xff]  ;;  %v10679_v12 = vld [vmem:[#allocation42_spill] sm:$0xff] }
 0x198   : > { %10663 = vst [vmem:[#allocation29_spill] sm:$0xff] %v7808_v58  ;;  %10664 = vst [vmem:[#allocation30_spill] sm:$0xff] %v7811_v6  ;;  %v7826_v29 = vadd.f32 %v899_v46, %v7591_v9  ;;  %v7829_v42 = vadd.f32 %v902_v55, %v10670_v63  ;;  %v903_v26 = vmul.f32 %v7565_v60, %v10672_v16  ;;  %v2578_v15 = vpop.permute.xlu1 %2577  ;;  %v10673_v31 = vld [vmem:[#allocation12_spill] sm:$0xff]  ;;  %v10675_v1 = vld [vmem:[#allocation39_spill] sm:$0xff]  ;;  %v7849_v52 = vpop.permute.xlu0 %1306 }
 0x199   : > { %10665 = vst [vmem:[#allocation31_spill] sm:$0xff] %v7814_v62  ;;  %10666 = vst [vmem:[#allocation32_spill] sm:$0xff] %v7819_v59  ;;  %v2802_v17 = vadd.f32 %v7800_v21, %v2763_v39  ;;  %v7835_v32 = vadd.f32 %v901_v22, %v10673_v31  ;;  %v906_v49 = vmul.f32 %v7565_v60, %v10675_v1  ;;  %1864 = vperm.xlu1 %6652, %v10676_v57   ;;  %v2278_v39 = vld [vmem:[#allocation2 + $0xb1] sm:$0xff] }
 0x19a   : > { %10668 = vst [vmem:[#allocation33_spill] sm:$0xff] %v7823_v23  ;;  %10669 = vst [vmem:[#allocation34_spill] sm:$0xff] %v7826_v29  ;;  %v2501_v53 = vadd.f32 %v2469_v0, %v2237_v14  ;;  %v2733_v9 = vmul.f32 %v7766_v45, %v2578_v15  ;;  %v905_v46 = vmul.f32 %v7565_v60, %v10677_v41  ;;  %v10681_v0 = vld [vmem:[#allocation13_spill] sm:$0xff]  ;;  %v10683_v14 = vld [vmem:[#allocation44_spill] sm:$0xff]  ;;  %2363 = vperm.xlu0 %6651, %v2279_v13  }
 0x19b   : > { %10671 = vst [vmem:[#allocation35_spill] sm:$0xff] %v7829_v42  ;;  %10674 = vst [vmem:[#allocation36_spill] sm:$0xff] %v7835_v32  ;;  %v908_v55 = vmul.f32 %v7565_v60, %v10678_v54  ;;  %v907_v44 = vmul.f32 %v7565_v60, %v10679_v12  ;;  %v910_v22 = vmul.f32 %v7565_v60, %v10680_v5  ;;  %v10684_v16 = vld [vmem:[#allocation46_spill] sm:$0xff]  ;;  %v10687_v41 = vld [vmem:[#allocation47_spill] sm:$0xff]  ;;  %v2834_v32 = vmax.f32 %v2802_v17, 0.0 }
 0x19c   : > { %v7852_v24 = vadd.f32 %v904_v4, %v10681_v0  ;;  %v909_v63 = vmul.f32 %v7565_v60, %v10683_v14  ;;  %v912_v15 = vmul.f32 %v7565_v60, %v10684_v16  ;;  %v2765_v31 = vadd.f32 %v2733_v9, %v2501_v53  ;;  %v10685_v1 = vld [vmem:[#allocation14_spill] sm:$0xff]  ;;  %v10688_v12 = vld [vmem:[#allocation49_spill] sm:$0xff]  ;;  %v7865_v4 = vpop.permute.xlu1 %1301  ;;  %v7867_v0 = vld [vmem:[#allocation2 + $0xfa] sm:$0xff] }
 0x19d   : > { %v7859_v57 = vadd.f32 %v903_v26, %v10685_v1  ;;  %v911_v54 = vmul.f32 %v7565_v60, %v10687_v41  ;;  %v913_v5 = vmul.f32 %v7565_v60, %v10688_v12  ;;  %10689 = vst [vmem:[#allocation38_spill] sm:$0xff] %v7867_v0  ;;  %v10690_v14 = vld [vmem:[#allocation15_spill] sm:$0xff]  ;;  %v10692_v16 = vld [vmem:[#allocation50_spill] sm:$0xff]  ;;  %2358 = vperm.xlu1 %6652, %v2278_v39   ;;  %v10694_v1 = vld [vmem:[#allocation16_spill] sm:$0xff] }
 0x19e   : > { %10682 = vst [vmem:[#allocation37_spill] sm:$0xff] %v7852_v24  ;;  %v7870_v24 = vadd.f32 %v906_v49, %v10690_v14  ;;  %v1147_v13 = vmul.f32 %v7596_v36, %v10692_v16  ;;  %v10693_v53 = vld [vmem:[#allocation51_spill] sm:$0xff]  ;;  %v2804_v9 = vadd.f32 %v7800_v21, %v2765_v31  ;;  %v7878_v41 = vadd.f32 %v905_v46, %v10694_v1  ;;  %v10696_v60 = vld [vmem:[#allocation17_spill] sm:$0xff]  ;;  %v10698_v12 = vld [vmem:[#allocation18_spill] sm:$0xff] }
 0x19f   : > { %10686 = vst [vmem:[#allocation11_spill] sm:$0xff] %v7859_v57  ;;  %v1150_v26 = vmul.f32 %v7596_v36, %v10693_v53  ;;  %v7881_v17 = vadd.f32 %v908_v55, %v10696_v60  ;;  %v7884_v57 = vadd.f32 %v907_v44, %v10698_v12  ;;  %v10700_v49 = vld [vmem:[#allocation19_spill] sm:$0xff]  ;;  %v10702_v42 = vld [vmem:[#allocation24_spill] sm:$0xff]  ;;  %1087 = vperm.xlu0 %6651, %v7867_v0   ;;  %v10707_v44 = vld [vmem:[#allocation25_spill] sm:$0xff] }
 0x1a0   : > { %10691 = vst [vmem:[#allocation12_spill] sm:$0xff] %v7870_v24  ;;  %10695 = vst [vmem:[#allocation39_spill] sm:$0xff] %v7878_v41  ;;  %v7887_v14 = vadd.f32 %v910_v22, %v10700_v49  ;;  %v7889_v24 = vpop.permute.xlu0 %1799  ;;  %v2281_v16 = vld [vmem:[#allocation2 + $0xd9] sm:$0xff]  ;;  %v7892_v53 = vadd.f32 %v909_v63, %v10702_v42  ;;  %v10704_v31 = vld [vmem:[#allocation20_spill] sm:$0xff]  ;;  %v2836_v55 = vmax.f32 %v2804_v9, 0.0  ;;  %v7901_v60 = vadd.f32 %v911_v54, %v10707_v44  ;;  %v7908_v63 = vpop.permute.xlu1 %1316 }
 0x1a1   : > { %10697 = vst [vmem:[#allocation68_spill] sm:$0xff] %v7881_v17  ;;  %10699 = vst [vmem:[#allocation40_spill] sm:$0xff] %v7884_v57  ;;  %v7895_v39 = vadd.f32 %v912_v15, %v10704_v31  ;;  %v10706_v46 = vld [vmem:[#allocation52_spill] sm:$0xff]  ;;  %v10709_v22 = vld [vmem:[#allocation22_spill] sm:$0xff]  ;;  %v2898_v42 = vcombine.high %v2834_v32, %v2834_v32  ;;  %v1179_v31 = vadd.f32 %v1147_v13, %v7693_v35  ;;  %2373 = vperm.xlu1 %6652, %v2281_v16  }
 0x1a2   : > { %10701 = vst [vmem:[#allocation41_spill] sm:$0xff] %v7887_v14  ;;  %10703 = vst [vmem:[#allocation42_spill] sm:$0xff] %v7892_v53  ;;  %v1149_v1 = vmul.f32 %v7596_v36, %v10706_v46  ;;  %v7904_v12 = vadd.f32 %v913_v5, %v10709_v22  ;;  %v10711_v49 = vld [vmem:[#allocation53_spill] sm:$0xff]  ;;  %v7910_v15 = vld [vmem:[#allocation2 + $0x122] sm:$0xff]  ;;  %v1182_v9 = vadd.f32 %v1150_v26, %v7696_v27 }
 0x1a3   : > { %10705 = vst [vmem:[#allocation43_spill] sm:$0xff] %v7895_v39  ;;  %10708 = vst [vmem:[#allocation13_spill] sm:$0xff] %v7901_v60  ;;  %v1152_v14 = vmul.f32 %v7596_v36, %v10711_v49  ;;  %v10714_v46 = vld [vmem:[#allocation54_spill] sm:$0xff]  ;;  %v2939_v54 = vrot.slane %v2836_v55, %v7823_v23  ;;  %v10715_v5 = vld [vmem:[#allocation55_spill] sm:$0xff]  ;;  %v2932_v60 = vcombine.high %v2836_v55, %v2836_v55  ;;  %1102 = vperm.xlu0 %6651, %v7910_v15  }
 0x1a4   : > { %10710 = vst [vmem:[#allocation44_spill] sm:$0xff] %v7904_v12  ;;  %10712 = vst [vmem:[#allocation46_spill] sm:$0xff] %v7908_v63  ;;  %v1151_v39 = vmul.f32 %v7596_v36, %v10714_v46  ;;  %v1154_v44 = vmul.f32 %v7596_v36, %v10715_v5  ;;  %v10716_v22 = vld [vmem:[#allocation56_spill] sm:$0xff]  ;;  %v2905_v12 = vrot.slane %v2834_v32, %v7823_v23  ;;  %v7922_v53 = vpop.permute.xlu0 %1814  ;;  %v7924_v35 = vld [vmem:[#allocation2 + $0x112] sm:$0xff] }
 0x1a5   : > { %10713 = vst [vmem:[#allocation14_spill] sm:$0xff] %v7910_v15  ;;  %v1153_v49 = vmul.f32 %v7596_v36, %v10716_v22  ;;  %10717 = vst [vmem:[#allocation47_spill] sm:$0xff] %v7922_v53  ;;  %v1181_v27 = vadd.f32 %v1149_v1, %v7715_v47  ;;  %v10719_v13 = vld [vmem:[#allocation57_spill] sm:$0xff]  ;;  %v10720_v46 = vld [vmem:[#allocation58_spill] sm:$0xff]  ;;  %v1184_v32 = vadd.f32 %v1152_v14, %v7718_v20  ;;  %v7938_v47 = vpop.permute.xlu1 %1809  ;;  %1097 = vperm.xlu1 %6652, %v7924_v35  }
 0x1a6   : > { %10718 = vst [vmem:[#allocation49_spill] sm:$0xff] %v7924_v35  ;;  %v1156_v26 = vmul.f32 %v7596_v36, %v10719_v13  ;;  %v1155_v16 = vmul.f32 %v7596_v36, %v10720_v46  ;;  %v10721_v57 = vld [vmem:[#allocation59_spill] sm:$0xff]  ;;  %v10722_v55 = vld [vmem:[#allocation60_spill] sm:$0xff]  ;;  %v2912_v17 = vrot.slane %v2898_v42, %v7823_v23  ;;  %v2947_v41 = vcombine.high %v2939_v54, %v2939_v54  ;;  %v10725_v46 = vld [vmem:[#allocation61_spill] sm:$0xff] }
 0x1a7   : > { %v1157_v5 = vmul.f32 %v7596_v36, %v10721_v57  ;;  %v1414_v22 = vmul.f32 %v7627_v8, %v10722_v55  ;;  %10723 = vst [vmem:[#allocation15_spill] sm:$0xff] %v7938_v47  ;;  %v7940_v1 = vld [vmem:[#allocation2 + $0xe1] sm:$0xff]  ;;  %v7943_v13 = vadd.f32 %v1151_v39, %v7721_v34  ;;  %v1411_v57 = vmul.f32 %v7627_v8, %v10725_v46  ;;  %v10726_v29 = vld [vmem:[#allocation62_spill] sm:$0xff] }
 0x1a8   : > { %10724 = vst [vmem:[#allocation50_spill] sm:$0xff] %v7940_v1  ;;  %v1416_v59 = vmul.f32 %v7627_v8, %v10726_v29  ;;  %v10727_v20 = vld [vmem:[#allocation63_spill] sm:$0xff]  ;;  %v7953_v42 = vadd.f32 %v1154_v44, %v7724_v28  ;;  %v7956_v55 = vadd.f32 %v1153_v49, %v7734_v25  ;;  %v2913_v15 = vcombine.high %v2905_v12, %v2905_v12  ;;  %v7959_v39 = vpop.permute.xlu0 %2323  ;;  %v10731_v28 = vld [vmem:[#allocation64_spill] sm:$0xff]  ;;  %v10736_v0 = vld [vmem:[#allocation66_spill] sm:$0xff] }
 0x1a9   : > { %v1413_v14 = vmul.f32 %v7627_v8, %v10727_v20  ;;  %v2946_v34 = vrot.slane %v2932_v60, %v7823_v23  ;;  %10728 = vst [vmem:[#allocation51_spill] sm:$0xff] %v7959_v39  ;;  %v7961_v46 = vld [vmem:[#allocation2 + $0x13a] sm:$0xff]  ;;  %v7964_v29 = vadd.f32 %v1156_v26, %v7741_v3  ;;  %v7967_v20 = vadd.f32 %v1155_v16, %v7744_v51  ;;  %v10732_v60 = vld [vmem:[#allocation65_spill] sm:$0xff]  ;;  %v7978_v3 = vpop.permute.xlu1 %1824  ;;  %v10743_v45 = vld [vmem:[#allocation74_spill] sm:$0xff] }
 0x1aa   : > { %10729 = vst [vmem:[#allocation16_spill] sm:$0xff] %v7961_v46  ;;  %v7970_v35 = vadd.f32 %v1157_v5, %v7784_v11  ;;  %v1678_v25 = vmul.f32 %v7657_v37, %v10731_v28  ;;  %1595 = vperm.xlu0 %6651, %v7940_v1   ;;  %v1446_v44 = vadd.f32 %v1414_v22, %v1182_v9  ;;  %v3634_v23 = vsel %vm3570_vm2, %v2947_v41, -inf  ;;  %v7980_v26 = vld [vmem:[#allocation2 + $0x109] sm:$0xff]  ;;  %v1493_v41 = vld [vmem:[#allocation2 + $0xf9] sm:$0xff] }
 0x1ab   : > { %v1675_v49 = vmul.f32 %v7657_v37, %v10732_v60  ;;  %v2914_v62 = vcombine.high %v2912_v17, %v2912_v17  ;;  %10733 = vst [vmem:[#allocation18_spill] sm:$0xff] %v7978_v3  ;;  %10734 = vst [vmem:[#allocation19_spill] sm:$0xff] %v7980_v26  ;;  %v1443_v51 = vadd.f32 %v1411_v57, %v1179_v31  ;;  %v3571_v5 = vsel %vm3570_vm2, %v2905_v12, -inf  ;;  %v10744_v53 = vld [vmem:[#allocation75_spill] sm:$0xff]  ;;  %v10745_v63 = vld [vmem:[#allocation76_spill] sm:$0xff] }
 0x1ac   : > { %10730 = vst [vmem:[#allocation17_spill] sm:$0xff] %v7970_v35  ;;  %v1448_v16 = vadd.f32 %v1416_v59, %v1184_v32  ;;  %v1445_v11 = vadd.f32 %v1413_v14, %v1181_v27  ;;  %1112 = vperm.xlu1 %6652, %v7961_v46   ;;  %v3578_v28 = vsel %vm3570_vm2, %v2913_v15, -inf  ;;  %v3585_v9 = vsel %vm3570_vm2, %v2912_v17, -inf  ;;  %v7987_v1 = vpop.permute.xlu0 %2308  ;;  %v10737_v32 = vld [vmem:[#allocation67_spill] sm:$0xff]  ;;  %v2016_v14 = vld [vmem:[#allocation2 + $0xc8] sm:$0xff] }
 0x1ad   : > { %v2948_v22 = vcombine.high %v2946_v34, %v2946_v34  ;;  %v3627_v60 = vsel %vm3570_vm2, %v2939_v54, -inf  ;;  %10735 = vst [vmem:[#allocation24_spill] sm:$0xff] %v7987_v1  ;;  %v1710_v6 = vadd.f32 %v1678_v25, %v1446_v44  ;;  %v1680_v31 = vmul.f32 %v7657_v37, %v10736_v0  ;;  %v7996_v54 = vpop.permute.xlu1 %2333  ;;  %v10739_v46 = vld [vmem:[#allocation69_spill] sm:$0xff] }
 0x1ae   : > { %v3635_v59 = vrot.slane %v3634_v23, 4  ;;  %v3641_v27 = vsel %vm3570_vm2, %v2946_v34, -inf  ;;  %1610 = vperm.xlu0 %6651, %v7980_v26   ;;  %v1707_v12 = vadd.f32 %v1675_v49, %v1443_v51  ;;  %v1677_v15 = vmul.f32 %v7657_v37, %v10737_v32  ;;  %10738 = vst [vmem:[#allocation20_spill] sm:$0xff] %v7996_v54  ;;  %v10740_v34 = vld [vmem:[#allocation71_spill] sm:$0xff]  ;;  %v10741_v49 = vld [vmem:[#allocation73_spill] sm:$0xff] }
 0x1af   : > { %v3572_v17 = vrot.slane %v3571_v5, 4  ;;  %v3592_v57 = vsel %vm3570_vm2, %v2914_v62, -inf  ;;  %v1415_v25 = vmul.f32 %v7627_v8, %v10739_v46  ;;  %v3579_v44 = vrot.slane %v3578_v28, 4  ;;  %v1496_v54 = vld [vmem:[#allocation2 + $0x121] sm:$0xff] }
 0x1b0   : > { %v3586_v0 = vrot.slane %v3585_v9, 4  ;;  %v3628_v58 = vrot.slane %v3627_v60, 4  ;;  %1605 = vperm.xlu1 %6652, %v1493_v41   ;;  %v1418_v26 = vmul.f32 %v7627_v8, %v10740_v34  ;;  %v1417_v51 = vmul.f32 %v7627_v8, %v10741_v49  ;;  %v8005_v62 = vpop.permute.xlu0 %1047 }
 0x1b1   : > { %v3642_v32 = vrot.slane %v3641_v27, 4  ;;  %v3648_v21 = vsel %vm3570_vm2, %v2948_v22, -inf  ;;  %10742 = vst [vmem:[#allocation52_spill] sm:$0xff] %v8005_v62  ;;  %v1712_v3 = vadd.f32 %v1680_v31, %v1448_v16  ;;  %v1942_v46 = vmul.f32 %v7681_v33, %v10743_v45  ;;  %v8013_v10 = vpop.permute.xlu1 %2318  ;;  %v2019_v22 = vld [vmem:[#allocation2 + $0xf0] sm:$0xff] }
 0x1b2   : > { %v3593_v1 = vrot.slane %v3592_v57, 4  ;;  %v3636_v47 = vmax.f32 %v3634_v23, %v3635_v59  ;;  %2104 = vperm.xlu0 %6651, %v2016_v14   ;;  %v1709_v41 = vadd.f32 %v1677_v15, %v1445_v11  ;;  %v1420_v34 = vmul.f32 %v7627_v8, %v10744_v53 }
 0x1b3   : > { %v1939_v49 = vmul.f32 %v7681_v33, %v10745_v63  ;;  %v3573_v35 = vmax.f32 %v3571_v5, %v3572_v17  ;;  %v3580_v62 = vmax.f32 %v3578_v28, %v3579_v44  ;;  %v3587_v39 = vmax.f32 %v3585_v9, %v3586_v0  ;;  %v10746_v63 = vld [vmem:[#allocation77_spill] sm:$0xff]  ;;  %v10747_v9 = vld [vmem:[#allocation78_spill] sm:$0xff] }
 0x1b4   : > { %v3629_v16 = vmax.f32 %v3627_v60, %v3628_v58  ;;  %v3649_v31 = vrot.slane %v3648_v21, 4  ;;  %1620 = vperm.xlu1 %6652, %v1496_v54   ;;  %v1447_v45 = vadd.f32 %v1415_v25, %v7943_v13  ;;  %v1450_v23 = vadd.f32 %v1418_v26, %v7953_v42  ;;  %v8018_v53 = vpop.permute.xlu0 %1062  ;;  %v10749_v25 = vld [vmem:[#allocation79_spill] sm:$0xff] }
 0x1b5   : > { %v1449_v11 = vadd.f32 %v1417_v51, %v7956_v55  ;;  %v3643_v59 = vmax.f32 %v3641_v27, %v3642_v32  ;;  %v1974_v15 = vadd.f32 %v1942_v46, %v1710_v6  ;;  %v1944_v5 = vmul.f32 %v7681_v33, %v10746_v63  ;;  %v8025_v42 = vpop.permute.xlu1 %1057  ;;  %v10748_v6 = vld [vmem:[#allocation81_spill] sm:$0xff]  ;;  %v10755_v63 = vld [vmem:[#allocation23_spill] sm:$0xff] }
 0x1b6   : > { %v3594_v17 = vmax.f32 %v3592_v57, %v3593_v1  ;;  %v3637_v14 = vrot.slane %v3636_v47, 2  ;;  %2119 = vperm.xlu0 %6651, %v2019_v22   ;;  %v1452_v58 = vadd.f32 %v1420_v34, %v7964_v29  ;;  %v1971_v28 = vadd.f32 %v1939_v49, %v1707_v12  ;;  %v10750_v57 = vld [vmem:[#allocation10_spill] sm:$0xff]  ;;  %v10751_v29 = vld [vmem:[#allocation80_spill] sm:$0xff]  ;;  %v10753_v46 = vld [vmem:[#allocation21_spill] sm:$0xff] }
 0x1b7   : > { %v1941_v13 = vmul.f32 %v7681_v33, %v10747_v9  ;;  %v3574_v60 = vrot.slane %v3573_v35, 2  ;;  %v3581_v55 = vrot.slane %v3580_v62, 2  ;;  %v3588_v26 = vrot.slane %v3587_v39, 2  ;;  %v10754_v22 = vld [vmem:[#allocation45_spill] sm:$0xff] }
 0x1b8   : > { %v3630_v27 = vrot.slane %v3629_v16, 2  ;;  %v3650_v54 = vmax.f32 %v3648_v21, %v3649_v31  ;;  %2114 = vperm.xlu1 %6652, %v10748_v6   ;;  %v1158_v1 = vmul.f32 %v7596_v36, %v10749_v25  ;;  %v1679_v44 = vmul.f32 %v7657_v37, %v10750_v57  ;;  %v8034_v51 = vpop.permute.xlu0 %1555 }
 0x1b9   : > { %v1160_v12 = vmul.f32 %v7596_v36, %v10751_v29  ;;  %v3644_v0 = vrot.slane %v3643_v59, 2  ;;  %10752 = vst [vmem:[#allocation25_spill] sm:$0xff] %v8034_v51  ;;  %v1976_v32 = vadd.f32 %v1944_v5, %v1712_v3  ;;  %v1682_v34 = vmul.f32 %v7657_v37, %v10753_v46  ;;  %v8043_v57 = vpop.permute.xlu1 %1072 }
 0x1ba   : > { %v3595_v49 = vrot.slane %v3594_v17, 2  ;;  %v3638_v21 = vmax.f32 %v3636_v47, %v3637_v14  ;;  %2612 = vperm.xlu0 %6651, %v10754_v22   ;;  %v1973_v31 = vadd.f32 %v1941_v13, %v1709_v41  ;;  %v1681_v9 = vmul.f32 %v7657_v37, %v10755_v63 }
 0x1bb   : > { %v2207_v6 = vmul.f32 %v7705_v2, %v7707_v43  ;;  %v3575_v25 = vmax.f32 %v3573_v35, %v3574_v60  ;;  %v3582_v29 = vmax.f32 %v3580_v62, %v3581_v55  ;;  %v3589_v51 = vmax.f32 %v3587_v39, %v3588_v26  ;;  %v10756_v62 = vld [vmem:[#allocation48_spill] sm:$0xff] }
 0x1bc   : > { %v3631_v3 = vmax.f32 %v3629_v16, %v3630_v27  ;;  %v3651_v5 = vrot.slane %v3650_v54, 2  ;;  %2129 = vperm.xlu1 %6652, %v7685_v18   ;;  %v1190_v47 = vadd.f32 %v1158_v1, %v7781_v50  ;;  %v1711_v14 = vadd.f32 %v1679_v44, %v1447_v45  ;;  %v8050_v46 = vpop.permute.xlu0 %1570 }
 0x1bd   : > { %v8048_v41 = vadd.f32 %v1160_v12, %v7805_v56  ;;  %v3645_v13 = vmax.f32 %v3643_v59, %v3644_v0  ;;  %v8052_v22 = vadd.f32 %v1682_v34, %v1450_v23  ;;  %v1684_v43 = vmul.f32 %v7657_v37, %v7731_v48  ;;  %v8063_v45 = vpop.permute.xlu1 %1565  ;;  %v8065_v59 = vld [vmem:[#allocation2 + $0x110] sm:$0xff]  ;;  %v417_v0 = vld [vmem:[%s6983_s25 + $0xf8] sm:$0xff]  ;;  %s6760_s25 = smov 16  }
 0x1be   : > { %v3596_v35 = vmax.f32 %v3594_v17, %v3595_v49  ;;  %v3639_v39 = vrot.slane %v3638_v21, 1  ;;  %2627 = vperm.xlu0 %6651, %v10756_v62   ;;  %v8057_v16 = vadd.f32 %v1681_v9, %v1449_v11  ;;  %v8059_v18 = vadd.f32 %v2207_v6, %v1974_v15  ;;  %450 = vst.msk [vmem:[#allocation2 + $0x189] sm:$0xff] %vm330_vm0, %v417_v0  ;;  %v1233_v6 = vld [vmem:[#allocation2 + $0x128] sm:$0xff] }
 0x1bf   : > { %v2204_v50 = vmul.f32 %v7705_v2, %v7746_v40  ;;  %v3576_v56 = vrot.slane %v3575_v25, 1  ;;  %v3583_v23 = vrot.slane %v3582_v29, 1  ;;  %v3590_v60 = vrot.slane %v3589_v51, 1 }
 0x1c0   : > { %v3632_v55 = vrot.slane %v3631_v3, 1  ;;  %v3652_v48 = vmax.f32 %v3650_v54, %v3651_v5  ;;  %2622 = vperm.xlu1 %6652, %v7406_v38   ;;  %v2209_v11 = vmul.f32 %v7705_v2, %v7761_v7  ;;  %v2206_v15 = vmul.f32 %v7705_v2, %v7790_v19  ;;  %v8074_v26 = vpop.permute.xlu0 %2064 }
 0x1c1   : > { %v1419_v40 = vmul.f32 %v7627_v8, %v7816_v30  ;;  %v3646_v17 = vrot.slane %v3645_v13, 1  ;;  %v8076_v27 = vadd.f32 %v1684_v43, %v1452_v58  ;;  %v3597_v1 = vrot.slane %v3596_v35, 1  ;;  %v8085_v12 = vpop.permute.xlu1 %1580  ;;  %v8087_v58 = vld [vmem:[#allocation2 + $0x138] sm:$0xff] }
 0x1c2   : > { %v3640_v54 = vmax.f32 %v3638_v21, %v3639_v39  ;;  %v1422_v38 = vmul.f32 %v7627_v8, %v7849_v52  ;;  %1351 = vperm.xlu0 %6651, %v8065_v59   ;;  %v2236_v7 = vadd.f32 %v2204_v50, %v1971_v28  ;;  %v3577_v44 = vmax.f32 %v3575_v25, %v3576_v56 }
 0x1c3   : > { %v1421_v19 = vmul.f32 %v7627_v8, %v7865_v4  ;;  %v1943_v30 = vmul.f32 %v7681_v33, %v7889_v24  ;;  %v3584_v34 = vmax.f32 %v3582_v29, %v3583_v23  ;;  %v3591_v49 = vmax.f32 %v3589_v51, %v3590_v60 }
 0x1c4   : > { %v3633_v21 = vmax.f32 %v3631_v3, %v3632_v55  ;;  %v3653_v63 = vrot.slane %v3652_v48, 1  ;;  %2637 = vperm.xlu1 %6652, %v7414_v61   ;;  %v2241_v52 = vadd.f32 %v2209_v11, %v1976_v32  ;;  %v8092_v28 = vadd.f32 %v2206_v15, %v1973_v31  ;;  %v8097_v9 = vpop.permute.xlu0 %2079  ;;  %v10757_v3 = vld [vmem:[#allocation51_spill] sm:$0xff]  ;;  %v10758_v61 = vld [vmem:[#allocation26_spill] sm:$0xff]  ;;  %v10759_v31 = vld [vmem:[#allocation17_spill] sm:$0xff] }
 0x1c5   : > { %v8095_v4 = vadd.f32 %v1419_v40, %v7967_v20  ;;  %v3647_v24 = vmax.f32 %v3645_v13, %v3646_v17  ;;  %v3598_v25 = vmax.f32 %v3596_v35, %v3597_v1  ;;  %v4472_v51 = vsel %vm4467_vm3, %v3640_v54, -inf  ;;  %v10760_v13 = vld [vmem:[#allocation46_spill] sm:$0xff]  ;;  %v8113_v35 = vpop.permute.xlu1 %2074  ;;  %v10761_v55 = vld [vmem:[#allocation47_spill] sm:$0xff] }
 0x1c6   : > { %v8100_v29 = vadd.f32 %v1422_v38, %v1190_v47  ;;  %v2471_v5 = vmul.f32 %v10758_v61, %v10757_v3  ;;  %1366 = vperm.xlu0 %6651, %v8087_v58   ;;  %v4468_v32 = vsel %vm4467_vm3, %v3577_v44, -inf  ;;  %v8107_v20 = vadd.f32 %v1421_v19, %v10759_v31  ;;  %v10762_v11 = vld [vmem:[#allocation15_spill] sm:$0xff]  ;;  %v1236_v17 = vld [vmem:[#allocation2 + $0x150] sm:$0xff] }
 0x1c7   : > { %v8109_v43 = vadd.f32 %v1943_v30, %v1711_v14  ;;  %v1424_v39 = vmul.f32 %v7627_v8, %v10760_v13  ;;  %v4471_v47 = vsel %vm4467_vm3, %v3584_v34, -inf  ;;  %v4474_v62 = vsel %vm4467_vm3, %v3591_v49, -inf  ;;  %v10764_v44 = vld [vmem:[#allocation27_spill] sm:$0xff]  ;;  %v10765_v30 = vld [vmem:[#allocation70_spill] sm:$0xff] }
 0x1c8   : > { %v3654_v50 = vmax.f32 %v3652_v48, %v3653_v63  ;;  %v4469_v56 = vsel %vm4467_vm3, %v3633_v21, -inf  ;;  %1361 = vperm.xlu1 %6652, %v1233_v6   ;;  %v4473_v23 = vmax.f32 %v4471_v47, %v4472_v51  ;;  %v4475_v60 = vsel %vm4467_vm3, %v3647_v24, -inf  ;;  %v2588_v40 = vpop.permute.xlu0 %2587  ;;  %v10763_v48 = vld [vmem:[#allocation24_spill] sm:$0xff]  ;;  %v10766_v49 = vld [vmem:[#allocation18_spill] sm:$0xff] }
 0x1c9   : > { %v1946_v14 = vmul.f32 %v7681_v33, %v10761_v55  ;;  %v1945_v15 = vmul.f32 %v7681_v33, %v10762_v11  ;;  %v4477_v1 = vsel %vm4467_vm3, %v3598_v25, -inf  ;;  %v2503_v54 = vadd.f32 %v2471_v5, %v8059_v18  ;;  %v10767_v63 = vld [vmem:[#allocation20_spill] sm:$0xff]  ;;  %v8136_v6 = vpop.permute.xlu1 %2089 }
 0x1ca   : > { %v2468_v38 = vmul.f32 %v10758_v61, %v10763_v48  ;;  %v2735_v19 = vmul.f32 %v10764_v44, %v2588_v40  ;;  %1859 = vperm.xlu0 %6651, %v10765_v30   ;;  %v4470_v0 = vmax.f32 %v4468_v32, %v4469_v56  ;;  %v8130_v34 = vadd.f32 %v1424_v39, %v8048_v41  ;;  %v10768_v51 = vld [vmem:[#allocation52_spill] sm:$0xff]  ;;  %v10772_v40 = vld [vmem:[#allocation38_spill] sm:$0xff]  ;;  %v10775_v30 = vld [vmem:[#allocation33_spill] sm:$0xff] }
 0x1cb   : > { %v1948_v21 = vmul.f32 %v7681_v33, %v10766_v49  ;;  %v2473_v24 = vmul.f32 %v10758_v61, %v10767_v63  ;;  %v4476_v18 = vmax.f32 %v4474_v62, %v4475_v60  ;;  %v4478_v25 = vsel %vm4467_vm3, %v3654_v50, -inf  ;;  %v10769_v62 = vld [vmem:[#allocation28_spill] sm:$0xff]  ;;  %v10774_v48 = vld [vmem:[#allocation30_spill] sm:$0xff] }
 0x1cc   : > { %v1159_v3 = vmul.f32 %v7596_v36, %v10768_v51  ;;  %v2767_v5 = vadd.f32 %v2735_v19, %v2503_v54  ;;  %1376 = vperm.xlu1 %6652, %v1236_v17   ;;  %v4745_v32 = vsel %vm4744_vm4, %v4473_v23, %v4470_v0  ;;  %v8143_v41 = vadd.f32 %v1946_v14, %v8052_v22  ;;  %v2573_v13 = vpop.permute.xlu0 %2572  ;;  %v10770_v60 = vld [vmem:[#allocation72_spill] sm:$0xff]  ;;  %v10771_v14 = vld [vmem:[#allocation29_spill] sm:$0xff] }
 0x1cd   : > { %v8146_v33 = vadd.f32 %v1945_v15, %v8057_v16  ;;  %v2470_v31 = vmul.f32 %v10758_v61, %v8013_v10  ;;  %v2500_v39 = vadd.f32 %v2468_v38, %v2236_v7  ;;  %v1162_v47 = vmul.f32 %v7596_v36, %v8018_v53  ;;  %v2598_v10 = vpop.permute.xlu1 %2597  ;;  %v2280_v61 = vld [vmem:[#allocation2 + $0xc9] sm:$0xff] }
 0x1ce   : > { %v2806_v50 = vadd.f32 %v10769_v62, %v2767_v5  ;;  %v2732_v56 = vmul.f32 %v10764_v44, %v2573_v13  ;;  %1874 = vperm.xlu0 %6651, %v10770_v60   ;;  %v4479_v23 = vmax.f32 %v4477_v1, %v4478_v25  ;;  %v8156_v22 = vadd.f32 %v1948_v21, %v8076_v27  ;;  %v10773_v27 = vld [vmem:[#allocation25_spill] sm:$0xff] }
 0x1cf   : > { %v2505_v16 = vadd.f32 %v2473_v24, %v2241_v52  ;;  %v1161_v55 = vmul.f32 %v7596_v36, %v8025_v42  ;;  %v4747_v7 = vsel %vm4746_vm5, %v4476_v18, %v4745_v32  ;;  %v8162_v53 = vadd.f32 %v1159_v3, %v10771_v14  ;;  %v2283_v18 = vld [vmem:[#allocation2 + $0xf1] sm:$0xff] }
 0x1d0   : > { %v2838_v11 = vmax.f32 %v2806_v50, 0.0  ;;  %v2764_v15 = vadd.f32 %v2732_v56, %v2500_v39  ;;  %1869 = vperm.xlu1 %6652, %v10772_v40   ;;  %v8166_v17 = vadd.f32 %v2470_v31, %v8092_v28  ;;  %v1683_v52 = vmul.f32 %v7657_v37, %v10773_v27  ;;  %v8173_v54 = vpop.permute.xlu0 %1311  ;;  %v10776_v28 = vld [vmem:[#allocation31_spill] sm:$0xff]  ;;  %v10777_v32 = vld [vmem:[#allocation14_spill] sm:$0xff]  ;;  %v8206_v14 = vld [vmem:[#allocation2 + $0x12a] sm:$0xff] }
 0x1d1   : > { %v1164_v42 = vmul.f32 %v7596_v36, %v8043_v57  ;;  %v2737_v1 = vmul.f32 %v10764_v44, %v2598_v10  ;;  %v8176_v38 = vadd.f32 %v1162_v47, %v10774_v48  ;;  %v8181_v21 = vadd.f32 %v1161_v55, %v10776_v28  ;;  %v2583_v24 = vpop.permute.xlu1 %2582  ;;  %10779 = vst [vmem:[#allocation22_spill] sm:$0xff] %v8206_v14  ;;  %v10780_v27 = vld [vmem:[#allocation50_spill] sm:$0xff] }
 0x1d2   : > { %v2966_v19 = vcombine.high %v2838_v11, %v2838_v11  ;;  %v2973_v0 = vrot.slane %v2838_v11, %v10775_v30  ;;  %v2803_v49 = vadd.f32 %v10769_v62, %v2764_v15  ;;  %2368 = vperm.xlu0 %6651, %v2280_v61   ;;  %v1686_v63 = vmul.f32 %v7657_v37, %v8050_v46  ;;  %v10778_v46 = vld [vmem:[#allocation32_spill] sm:$0xff] }
 0x1d3   : > { %v1685_v36 = vmul.f32 %v7657_v37, %v8063_v45  ;;  %v8188_v57 = vsel %vm4748_vm6, %v4479_v23, %v4747_v7  ;;  %v8194_v31 = vadd.f32 %v1683_v52, %v8095_v4  ;;  %v8197_v13 = vadd.f32 %v1164_v42, %v10778_v46 }
 0x1d4   : > { %v2980_v25 = vrot.slane %v2966_v19, %v10775_v30  ;;  %v2981_v51 = vcombine.high %v2973_v0, %v2973_v0  ;;  %v3683_v3 = vsel %vm3570_vm2, %v2973_v0, -inf  ;;  %v2835_v5 = vmax.f32 %v2803_v49, 0.0  ;;  %1884 = vperm.xlu1 %6652, %v10777_v32   ;;  %v8199_v47 = vpop.permute.xlu0 %1326 }
 0x1d5   : > { %v3684_v45 = vrot.slane %v3683_v3, 4  ;;  %v2769_v39 = vadd.f32 %v2737_v1, %v2505_v16  ;;  %v8204_v7 = vpop.permute.xlu1 %1321  ;;  %v8209_v16 = vadd.f32 %v1686_v63, %v8100_v29  ;;  %v8212_v11 = vadd.f32 %v1685_v36, %v8107_v20 }
 0x1d6   : > { %v2982_v50 = vcombine.high %v2980_v25, %v2980_v25  ;;  %v3690_v56 = vsel %vm3570_vm2, %v2981_v51, -inf  ;;  %v3697_v60 = vsel %vm3570_vm2, %v2980_v25, -inf  ;;  %v2915_v23 = vcombine.high %v2835_v5, %v2835_v5  ;;  %2383 = vperm.xlu0 %6651, %v2283_v18   ;;  %v8225_v51 = vld [vmem:[#allocation2 + $0x152] sm:$0xff] }
 0x1d7   : > { %v3685_v55 = vmax.f32 %v3683_v3, %v3684_v45  ;;  %v3691_v10 = vrot.slane %v3690_v56, 4  ;;  %v3698_v61 = vrot.slane %v3697_v60, 4  ;;  %v2922_v4 = vrot.slane %v2835_v5, %v10775_v30  ;;  %10781 = vst [vmem:[#allocation53_spill] sm:$0xff] %v8225_v51  ;;  %v10782_v45 = vld [vmem:[#allocation19_spill] sm:$0xff] }
 0x1d8   : > { %v3704_v15 = vsel %vm3570_vm2, %v2982_v50, -inf  ;;  %v2929_v40 = vrot.slane %v2915_v23, %v10775_v30  ;;  %2378 = vperm.xlu1 %6652, %v10780_v27   ;;  %v8217_v19 = vpop.permute.xlu0 %1819  ;;  %v2808_v18 = vadd.f32 %v10769_v62, %v2769_v39  ;;  %v2208_v50 = vmul.f32 %v7705_v2, %v8074_v26 }
 0x1d9   : > { %v3686_v52 = vrot.slane %v3685_v55, 2  ;;  %v3692_v42 = vmax.f32 %v3690_v56, %v3691_v10  ;;  %v3699_v1 = vmax.f32 %v3697_v60, %v3698_v61  ;;  %v3705_v48 = vrot.slane %v3704_v15, 4  ;;  %v8223_v25 = vpop.permute.xlu1 %1336 }
 0x1da   : > { %v2930_v0 = vcombine.high %v2922_v4, %v2922_v4  ;;  %v2931_v49 = vcombine.high %v2929_v40, %v2929_v40  ;;  %v3599_v29 = vsel %vm3570_vm2, %v2922_v4, -inf  ;;  %v3613_v28 = vsel %vm3570_vm2, %v2929_v40, -inf  ;;  %1107 = vperm.xlu0 %6651, %v8206_v14  }
 0x1db   : > { %v3687_v20 = vmax.f32 %v3685_v55, %v3686_v52  ;;  %v3693_v63 = vrot.slane %v3692_v42, 2  ;;  %v3706_v36 = vmax.f32 %v3704_v15, %v3705_v48  ;;  %v3700_v3 = vrot.slane %v3699_v1, 2  ;;  %v8236_v55 = vld [vmem:[#allocation2 + $0x142] sm:$0xff]  ;;  %v8248_v52 = vld [vmem:[#allocation2 + $0x111] sm:$0xff] }
 0x1dc   : > { %v3600_v5 = vrot.slane %v3599_v29, 4  ;;  %v3606_v32 = vsel %vm3570_vm2, %v2930_v0, -inf  ;;  %v3614_v46 = vrot.slane %v3613_v28, 4  ;;  %2393 = vperm.xlu1 %6652, %v10782_v45   ;;  %v1688_v56 = vmul.f32 %v7657_v37, %v8085_v12  ;;  %v8234_v23 = vpop.permute.xlu0 %1834  ;;  %10783 = vst [vmem:[#allocation54_spill] sm:$0xff] %v8236_v55  ;;  %10784 = vst [vmem:[#allocation55_spill] sm:$0xff] %v8248_v52 }
 0x1dd   : > { %v3694_v60 = vmax.f32 %v3692_v42, %v3693_v63  ;;  %v3620_v39 = vsel %vm3570_vm2, %v2931_v49, -inf  ;;  %v3707_v10 = vrot.slane %v3706_v36, 2  ;;  %v3607_v4 = vrot.slane %v3606_v32, 4  ;;  %v8246_v27 = vpop.permute.xlu1 %1829  ;;  %v8261_v49 = vld [vmem:[#allocation2 + $0x16a] sm:$0xff] }
 0x1de   : > { %v3601_v61 = vmax.f32 %v3599_v29, %v3600_v5  ;;  %v2734_v15 = vmul.f32 %v10764_v44, %v2583_v24  ;;  %1122 = vperm.xlu0 %6651, %v8225_v51   ;;  %v2211_v26 = vmul.f32 %v7705_v2, %v8097_v9  ;;  %v2210_v37 = vmul.f32 %v7705_v2, %v8113_v35 }
 0x1df   : > { %v2213_v12 = vmul.f32 %v7705_v2, %v8136_v6  ;;  %v2840_v40 = vmax.f32 %v2808_v18, 0.0  ;;  %v3688_v42 = vrot.slane %v3687_v20, 1  ;;  %v3701_v48 = vmax.f32 %v3699_v1, %v3700_v3  ;;  %10785 = vst [vmem:[#allocation56_spill] sm:$0xff] %v8261_v49  ;;  %v8276_v3 = vld [vmem:[#allocation2 + $0x139] sm:$0xff] }
 0x1e0   : > { %v3615_v0 = vmax.f32 %v3613_v28, %v3614_v46  ;;  %v3621_v44 = vrot.slane %v3620_v39, 4  ;;  %1117 = vperm.xlu1 %6652, %v8236_v55   ;;  %v8252_v24 = vadd.f32 %v2208_v50, %v8109_v43  ;;  %v8255_v9 = vadd.f32 %v1688_v56, %v8130_v34  ;;  %v8259_v6 = vpop.permute.xlu0 %2328  ;;  %10786 = vst [vmem:[#allocation57_spill] sm:$0xff] %v8276_v3  ;;  %v8286_v50 = vld [vmem:[#allocation2 + $0x129] sm:$0xff] }
 0x1e1   : > { %v3695_v35 = vrot.slane %v3694_v60, 1  ;;  %v1423_v2 = vmul.f32 %v7627_v8, %v8173_v54  ;;  %v3708_v29 = vmax.f32 %v3706_v36, %v3707_v10  ;;  %v3602_v1 = vrot.slane %v3601_v61, 2  ;;  %v8274_v54 = vpop.permute.xlu1 %1844  ;;  %10788 = vst [vmem:[#allocation59_spill] sm:$0xff] %v8286_v50 }
 0x1e2   : > { %v3608_v28 = vmax.f32 %v3606_v32, %v3607_v4  ;;  %v2766_v63 = vadd.f32 %v2734_v15, %v8166_v17  ;;  %1615 = vperm.xlu0 %6651, %v8248_v52   ;;  %v8266_v43 = vadd.f32 %v2211_v26, %v8143_v41  ;;  %v8269_v34 = vadd.f32 %v2210_v37, %v8146_v33 }
 0x1e3   : > { %v8272_v18 = vadd.f32 %v2213_v12, %v8156_v22  ;;  %v3000_v8 = vcombine.high %v2840_v40, %v2840_v40  ;;  %v3689_v36 = vmax.f32 %v3687_v20, %v3688_v42  ;;  %v3702_v5 = vrot.slane %v3701_v48, 1 }
 0x1e4   : > { %v3616_v32 = vrot.slane %v3615_v0, 2  ;;  %v3622_v17 = vmax.f32 %v3620_v39, %v3621_v44  ;;  %1132 = vperm.xlu1 %6652, %v8261_v49   ;;  %v3696_v46 = vmax.f32 %v3694_v60, %v3695_v35  ;;  %v3007_v41 = vrot.slane %v2840_v40, %v10775_v30  ;;  %v8284_v22 = vpop.permute.xlu0 %2343  ;;  %v2023_v49 = vld [vmem:[#allocation2 + $0x120] sm:$0xff] }
 0x1e5   : > { %v3014_v33 = vrot.slane %v3000_v8, %v10775_v30  ;;  %v8282_v45 = vadd.f32 %v1423_v2, %v8162_v53  ;;  %v3709_v56 = vrot.slane %v3708_v29, 1  ;;  %v3603_v10 = vmax.f32 %v3601_v61, %v3602_v1  ;;  %v8292_v37 = vpop.permute.xlu1 %2338  ;;  %v2020_v53 = vld [vmem:[#allocation2 + $0xf8] sm:$0xff] }
 0x1e6   : > { %v3609_v20 = vrot.slane %v3608_v28, 2  ;;  %v2805_v4 = vadd.f32 %v10769_v62, %v2766_v63  ;;  %1630 = vperm.xlu0 %6651, %v8276_v3   ;;  %v3015_v39 = vcombine.high %v3007_v41, %v3007_v41  ;;  %v3739_v15 = vsel %vm3570_vm2, %v3007_v41, -inf  ;;  %v8302_v63 = vld [vmem:[#allocation2 + $0x151] sm:$0xff] }
 0x1e7   : > { %10787 = vst [vmem:[#allocation58_spill] sm:$0xff] %v8282_v45  ;;  %v3016_v60 = vcombine.high %v3014_v33, %v3014_v33  ;;  %v3753_v26 = vsel %vm3570_vm2, %v3014_v33, -inf  ;;  %v3703_v12 = vmax.f32 %v3701_v48, %v3702_v5  ;;  %v8295_v40 = vsel %vm4467_vm3, %v3689_v36, -inf  ;;  %10789 = vst [vmem:[#allocation60_spill] sm:$0xff] %v8302_v63 }
 0x1e8   : > { %v3617_v42 = vmax.f32 %v3615_v0, %v3616_v32  ;;  %v3623_v61 = vrot.slane %v3622_v17, 2  ;;  %1625 = vperm.xlu1 %6652, %v8286_v50   ;;  %v3740_v62 = vrot.slane %v3739_v15, 4  ;;  %v3746_v44 = vsel %vm3570_vm2, %v3015_v39, -inf  ;;  %v8300_v1 = vpop.permute.xlu0 %1067 }
 0x1e9   : > { %v3754_v35 = vrot.slane %v3753_v26, 4  ;;  %v3760_v2 = vsel %vm3570_vm2, %v3016_v60, -inf  ;;  %v3710_v8 = vmax.f32 %v3708_v29, %v3709_v56  ;;  %v3610_v41 = vmax.f32 %v3608_v28, %v3609_v20  ;;  %v8304_v50 = vpop.permute.xlu1 %2353 }
 0x1ea   : > { %v3747_v48 = vrot.slane %v3746_v44, 4  ;;  %v3761_v5 = vrot.slane %v3760_v2, 4  ;;  %2124 = vperm.xlu0 %6651, %v2020_v53   ;;  %v3604_v36 = vrot.slane %v3603_v10, 1  ;;  %v3741_v0 = vmax.f32 %v3739_v15, %v3740_v62 }
 0x1eb   : > { %v3755_v32 = vmax.f32 %v3753_v26, %v3754_v35  ;;  %v2837_v33 = vmax.f32 %v2805_v4, 0.0  ;;  %v3618_v39 = vrot.slane %v3617_v42, 1  ;;  %v3624_v55 = vmax.f32 %v3622_v17, %v3623_v61  ;;  %v2544_v35 = vld [vmem:[#allocation2 + $0xca] sm:$0xff] }
 0x1ec   : > { %v3748_v3 = vmax.f32 %v3746_v44, %v3747_v48  ;;  %v3762_v60 = vmax.f32 %v3760_v2, %v3761_v5  ;;  %1640 = vperm.xlu1 %6652, %v8302_v63   ;;  %v3742_v52 = vrot.slane %v3741_v0, 2  ;;  %v8308_v56 = vpop.permute.xlu0 %1082  ;;  %v8311_v20 = vsel %vm4467_vm3, %v3696_v46, -inf }
 0x1ed   : > { %v3756_v51 = vrot.slane %v3755_v32, 2  ;;  %v2949_v29 = vcombine.high %v2837_v33, %v2837_v33  ;;  %v2956_v28 = vrot.slane %v2837_v33, %v10775_v30  ;;  %v8314_v4 = vsel %vm4467_vm3, %v3703_v12, -inf  ;;  %v8317_v44 = vpop.permute.xlu1 %1077 }
 0x1ee   : > { %v3611_v15 = vrot.slane %v3610_v41, 1  ;;  %v3749_v26 = vrot.slane %v3748_v3, 2  ;;  %2139 = vperm.xlu0 %6651, %v2023_v49   ;;  %v3743_v17 = vmax.f32 %v3741_v0, %v3742_v52  ;;  %v3763_v53 = vrot.slane %v3762_v60, 2 }
 0x1ef   : > { %v2963_v61 = vrot.slane %v2949_v29, %v10775_v30  ;;  %v2964_v62 = vcombine.high %v2956_v28, %v2956_v28  ;;  %v3625_v2 = vrot.slane %v3624_v55, 1  ;;  %v3757_v5 = vmax.f32 %v3755_v32, %v3756_v51 }
 0x1f0   : > { %v3750_v48 = vmax.f32 %v3748_v3, %v3749_v26  ;;  %v3655_v46 = vsel %vm3570_vm2, %v2956_v28, -inf  ;;  %2134 = vperm.xlu1 %6652, %v8065_v59   ;;  %v3605_v12 = vmax.f32 %v3603_v10, %v3604_v36  ;;  %v3619_v33 = vmax.f32 %v3617_v42, %v3618_v39  ;;  %v8321_v49 = vpop.permute.xlu0 %1575  ;;  %v2547_v59 = vld [vmem:[#allocation2 + $0xf2] sm:$0xff] }
 0x1f1   : > { %v2965_v63 = vcombine.high %v2963_v61, %v2963_v61  ;;  %v3656_v45 = vrot.slane %v3655_v46, 4  ;;  %v3612_v52 = vmax.f32 %v3610_v41, %v3611_v15  ;;  %v3662_v29 = vsel %vm3570_vm2, %v2964_v62, -inf  ;;  %v8325_v28 = vpop.permute.xlu1 %1092 }
 0x1f2   : > { %v3751_v0 = vrot.slane %v3750_v48, 1  ;;  %v3669_v30 = vsel %vm3570_vm2, %v2963_v61, -inf  ;;  %2632 = vperm.xlu0 %6651, %v2544_v35   ;;  %v3744_v14 = vrot.slane %v3743_v17, 1  ;;  %v3764_v3 = vmax.f32 %v3762_v60, %v3763_v53  ;;  %v2546_v53 = vld [vmem:[#allocation2 + $0xe2] sm:$0xff] }
 0x1f3   : > { %v3657_v51 = vmax.f32 %v3655_v46, %v3656_v45  ;;  %v3663_v32 = vrot.slane %v3662_v29, 4  ;;  %v8328_v10 = vsel %vm4467_vm3, %v3710_v8, -inf  ;;  %v3626_v42 = vmax.f32 %v3624_v55, %v3625_v2 }
 0x1f4   : > { %v3758_v36 = vrot.slane %v3757_v5, 1  ;;  %v3670_v39 = vrot.slane %v3669_v30, 4  ;;  %2149 = vperm.xlu1 %6652, %v8087_v58   ;;  %v8332_v41 = vsel %vm4467_vm3, %v3605_v12, -inf  ;;  %v3676_v45 = vsel %vm3570_vm2, %v2965_v63, -inf  ;;  %v8335_v60 = vpop.permute.xlu0 %1590  ;;  %v8346_v58 = vld [vmem:[%s10469_s1 + $0x3] ss:$0 sm:$0xff] }
 0x1f5   : > { %v3658_v15 = vrot.slane %v3657_v51, 2  ;;  %v3664_v26 = vmax.f32 %v3662_v29, %v3663_v32  ;;  %v8338_v61 = vsel %vm4467_vm3, %v3612_v52, -inf  ;;  %v8341_v55 = vsel %vm4467_vm3, %v3619_v33, -inf  ;;  %v8350_v12 = vpop.permute.xlu1 %1585  ;;  %v8352_v52 = vld [vmem:[#allocation2 + $0x140] sm:$0xff] }
 0x1f6   : > { %v3752_v8 = vmax.f32 %v3750_v48, %v3751_v0  ;;  %v1426_v62 = vmul.f32 %v8346_v58, %v8199_v47  ;;  %2647 = vperm.xlu0 %6651, %v2547_v59   ;;  %v3745_v63 = vmax.f32 %v3743_v17, %v3744_v14  ;;  %v3765_v35 = vrot.slane %v3764_v3, 1  ;;  %10790 = vst [vmem:[#allocation61_spill] sm:$0xff] %v8350_v12  ;;  %v8362_v17 = vld [vmem:[%s10469_s1 + $0x5] ss:$0 sm:$0xff] }
 0x1f7   : > { %v3659_v2 = vmax.f32 %v3657_v51, %v3658_v15  ;;  %v3665_v46 = vrot.slane %v3664_v26, 2  ;;  %v3759_v33 = vmax.f32 %v3757_v5, %v3758_v36  ;;  %v3671_v48 = vmax.f32 %v3669_v30, %v3670_v39  ;;  %v2549_v30 = vld [vmem:[#allocation2 + $0x10a] sm:$0xff] }
 0x1f8   : > { %v3677_v0 = vrot.slane %v3676_v45, 4  ;;  %v1425_v29 = vmul.f32 %v8346_v58, %v8204_v7  ;;  %2642 = vperm.xlu1 %6652, %v2546_v53   ;;  %v8357_v32 = vsel %vm4467_vm3, %v3626_v42, -inf  ;;  %v1947_v51 = vmul.f32 %v8362_v17, %v8217_v19  ;;  %v8366_v5 = vpop.permute.xlu0 %2084  ;;  %v8376_v19 = vld [vmem:[#allocation2 + $0x168] sm:$0xff] }
 0x1f9   : > { %v3660_v47 = vrot.slane %v3659_v2, 1  ;;  %v3666_v14 = vmax.f32 %v3664_v26, %v3665_v46  ;;  %10791 = vst [vmem:[#allocation62_spill] sm:$0xff] %v8366_v5  ;;  %v4496_v59 = vsel %vm4467_vm3, %v3752_v8, -inf  ;;  %v3672_v7 = vrot.slane %v3671_v48, 2  ;;  %v8374_v46 = vpop.permute.xlu1 %1600 }
 0x1fa   : > { %v3678_v36 = vmax.f32 %v3676_v45, %v3677_v0  ;;  %v8370_v42 = vadd.f32 %v1426_v62, %v8176_v38  ;;  %1371 = vperm.xlu0 %6651, %v8352_v52   ;;  %v3766_v39 = vmax.f32 %v3764_v3, %v3765_v35  ;;  %v4493_v15 = vsel %vm4467_vm3, %v3745_v63, -inf }
 0x1fb   : > { %v3661_v26 = vmax.f32 %v3659_v2, %v3660_v47  ;;  %v3667_v53 = vrot.slane %v3666_v14, 1  ;;  %v4499_v5 = vsel %vm4467_vm3, %v3759_v33, -inf  ;;  %v3673_v8 = vmax.f32 %v3671_v48, %v3672_v7  ;;  %v1237_v2 = vld [vmem:[#allocation2 + $0x158] sm:$0xff]  ;;  %v8416_v7 = vld [vmem:[#allocation2 + $0x180] sm:$0xff] }
 0x1fc   : > { %v3679_v12 = vrot.slane %v3678_v36, 2  ;;  %v8380_v45 = vadd.f32 %v1425_v29, %v8181_v21  ;;  %2657 = vperm.xlu1 %6652, %v2549_v30   ;;  %v4497_v38 = vmax.f32 %v8311_v20, %v4496_v59  ;;  %v8385_v63 = vadd.f32 %v1947_v51, %v8194_v31  ;;  %v8387_v35 = vpop.permute.xlu0 %2099  ;;  %10792 = vst [vmem:[#allocation63_spill] sm:$0xff] %v8416_v7 }
 0x1fd   : > { %v3668_v3 = vmax.f32 %v3666_v14, %v3667_v53  ;;  %v4481_v62 = vsel %vm4467_vm3, %v3661_v26, -inf  ;;  %v4494_v33 = vmax.f32 %v8295_v40, %v4493_v15  ;;  %v3674_v0 = vrot.slane %v3673_v8, 1  ;;  %v8399_v14 = vpop.permute.xlu1 %2094 }
 0x1fe   : > { %v3680_v48 = vmax.f32 %v3678_v36, %v3679_v12  ;;  %v4482_v47 = vmax.f32 %v8332_v41, %v4481_v62  ;;  %1386 = vperm.xlu0 %6651, %v8376_v19   ;;  %v4500_v21 = vmax.f32 %v8314_v4, %v4499_v5  ;;  %v8394_v20 = vsel %vm4467_vm3, %v3766_v39, -inf }
 0x1ff   : > { %v4484_v29 = vsel %vm4467_vm3, %v3668_v3, -inf  ;;  %v1428_v31 = vmul.f32 %v8346_v58, %v8223_v25  ;;  %v3675_v51 = vmax.f32 %v3673_v8, %v3674_v0  ;;  %v4758_v4 = vsel %vm4744_vm4, %v4497_v38, %v4494_v33  ;;  %v8412_v25 = vld [vmem:[%s10469_s1 + $0x7] ss:$0 sm:$0xff]  ;;  %v8439_v3 = vld [vmem:[%s10469_s1 + $0x2] ss:$0 sm:$0xff] }
 0x200   : > { %v3681_v40 = vrot.slane %v3680_v48, 1  ;;  %v4485_v12 = vmax.f32 %v8338_v61, %v4484_v29  ;;  %v4751_v41 = vsel %vm4750_vm7, %v4482_v47, %v8188_v57  ;;  %1381 = vperm.xlu1 %6652, %v1237_v2   ;;  %v1950_v5 = vmul.f32 %v8362_v17, %v8234_v23  ;;  %v2593_v59 = vpop.permute.xlu0 %2592 }
 0x201   : > { %v1949_v30 = vmul.f32 %v8362_v17, %v8246_v27  ;;  %v2472_v61 = vmul.f32 %v8412_v25, %v8259_v6  ;;  %v4487_v36 = vsel %vm4467_vm3, %v3675_v51, -inf  ;;  %v1952_v23 = vmul.f32 %v8362_v17, %v8274_v54  ;;  %v10793_v27 = vld [vmem:[#allocation49_spill] sm:$0xff]  ;;  %v8430_v8 = vpop.permute.xlu1 %2109  ;;  %v8471_v51 = vld [vmem:[%s10469_s1 + $0x4] ss:$0 sm:$0xff] }
 0x202   : > { %v3682_v57 = vmax.f32 %v3680_v48, %v3681_v40  ;;  %v4753_v39 = vsel %vm4752_vm8, %v4485_v12, %v4751_v41  ;;  %1879 = vperm.xlu0 %6651, %v10793_v27   ;;  %v4488_v26 = vmax.f32 %v8341_v55, %v4487_v36  ;;  %v2475_v6 = vmul.f32 %v8412_v25, %v8284_v22  ;;  %v10798_v40 = vld [vmem:[#allocation22_spill] sm:$0xff]  ;;  %v10799_v12 = vld [vmem:[#allocation35_spill] sm:$0xff] }
 0x203   : > { %v2474_v53 = vmul.f32 %v8412_v25, %v8292_v37  ;;  %v8433_v38 = vsel %vm4746_vm5, %v4500_v21, %v4758_v4  ;;  %v1163_v55 = vmul.f32 %v8439_v3, %v8300_v1  ;;  %v2477_v22 = vmul.f32 %v8412_v25, %v8304_v50  ;;  %v10794_v21 = vld [vmem:[#allocation16_spill] sm:$0xff]  ;;  %10796 = vst [vmem:[#allocation64_spill] sm:$0xff] %v8471_v51 }
 0x204   : > { %v4490_v54 = vsel %vm4467_vm3, %v3682_v57, -inf  ;;  %1396 = vperm.xlu1 %6652, %v8416_v7   ;;  %v4755_v62 = vsel %vm4754_vm9, %v4488_v26, %v4753_v39  ;;  %v1460_v2 = vadd.f32 %v1428_v31, %v8197_v13  ;;  %v1166_v33 = vmul.f32 %v8439_v3, %v8308_v56  ;;  %v2608_v0 = vpop.permute.xlu0 %2607  ;;  %v10802_v57 = vld [vmem:[#allocation62_spill] sm:$0xff] }
 0x205   : > { %v4491_v37 = vmax.f32 %v8357_v32, %v4490_v54  ;;  %v1982_v48 = vadd.f32 %v1950_v5, %v8209_v16  ;;  %v1981_v47 = vadd.f32 %v1949_v30, %v8212_v11  ;;  %v2504_v1 = vadd.f32 %v2472_v61, %v8252_v24  ;;  %v2603_v31 = vpop.permute.xlu1 %2602  ;;  %v2284_v16 = vld [vmem:[#allocation2 + $0xf9] sm:$0xff]  ;;  %v10800_v30 = vld [vmem:[#allocation61_spill] sm:$0xff]  ;;  %v10803_v54 = vld [vmem:[#allocation36_spill] sm:$0xff] }
 0x206   : > { %v8455_v50 = vadd.f32 %v1952_v23, %v8255_v9  ;;  %1894 = vperm.xlu0 %6651, %v10794_v21   ;;  %v2507_v29 = vadd.f32 %v2475_v6, %v8266_v43  ;;  %v2506_v13 = vadd.f32 %v2474_v53, %v8269_v34  ;;  %v1165_v56 = vmul.f32 %v8439_v3, %v8317_v44  ;;  %v10795_v11 = vld [vmem:[#allocation34_spill] sm:$0xff]  ;;  %v8478_v34 = vld [vmem:[%s10469_s1 + $0x8] ss:$0 sm:$0xff] }
 0x207   : > { %v4757_v32 = vsel %vm4756_vm10, %v4491_v37, %v4755_v62  ;;  %v8465_v24 = vadd.f32 %v1163_v55, %v10795_v11  ;;  %v2509_v9 = vadd.f32 %v2477_v22, %v8272_v18  ;;  %v1687_v43 = vmul.f32 %v8471_v51, %v8321_v49  ;;  %10797 = vst [vmem:[#allocation65_spill] sm:$0xff] %v8478_v34  ;;  %v2287_v53 = vld [vmem:[#allocation2 + $0x121] sm:$0xff]  ;;  %v10804_v22 = vld [vmem:[#allocation58_spill] sm:$0xff]  ;;  %v8515_v62 = vld [vmem:[%s10470_s2] ss:$0 sm:$0xff] }
 0x208   : > { %4816 = vst.msk [vmem:[#allocation3 + $0x11] sm:$0xff] %vm4467_vm3, %v4757_v32  ;;  %v2736_v44 = vmul.f32 %v8478_v34, %v2593_v59  ;;  %1889 = vperm.xlu1 %6652, %v10798_v40   ;;  %v8483_v41 = vadd.f32 %v1166_v33, %v10799_v12  ;;  %v1168_v18 = vmul.f32 %v8439_v3, %v8325_v28  ;;  %v1332_v5 = vpop.permute.xlu0 %1331  ;;  %v8495_v59 = vld [vmem:[%s10469_s1 + $0x6] ss:$0 sm:$0xff]  ;;  %10805 = vst [vmem:[#allocation67_spill] sm:$0xff] %v8515_v62  ;;  %v10806_v33 = vld [vmem:[#allocation53_spill] sm:$0xff]  ;;  %vm5126_vm0 = vcmask 917248  }
 0x209   : > { %v1690_v4 = vmul.f32 %v8471_v51, %v8335_v60  ;;  %v2739_v49 = vmul.f32 %v8478_v34, %v2608_v0  ;;  %v1689_v61 = vmul.f32 %v8471_v51, %v10800_v30  ;;  %10801 = vst [vmem:[#allocation66_spill] sm:$0xff] %v8495_v59  ;;  %v2212_v36 = vmul.f32 %v8495_v59, %v10802_v57  ;;  %v2618_v6 = vpop.permute.xlu1 %2617  ;;  %v8542_v12 = vld [vmem:[#allocation2 + $0x15a] sm:$0xff] }
 0x20a   : > { %v2768_v39 = vadd.f32 %v2736_v44, %v2504_v1  ;;  %v2738_v28 = vmul.f32 %v8478_v34, %v2603_v31  ;;  %2388 = vperm.xlu0 %6651, %v2284_v16   ;;  %v1692_v60 = vmul.f32 %v8471_v51, %v8374_v46  ;;  %v2215_v23 = vmul.f32 %v8495_v59, %v8387_v35 }
 0x20b   : > { %v2214_v27 = vmul.f32 %v8495_v59, %v8399_v14  ;;  %v2771_v26 = vadd.f32 %v2739_v49, %v2507_v29  ;;  %v8507_v55 = vadd.f32 %v1165_v56, %v10803_v54  ;;  %v8510_v37 = vadd.f32 %v1687_v43, %v10804_v22  ;;  %v10807_v14 = vld [vmem:[#allocation37_spill] sm:$0xff] }
 0x20c   : > { %v2807_v46 = vadd.f32 %v8515_v62, %v2768_v39  ;;  %v2770_v35 = vadd.f32 %v2738_v28, %v2506_v13  ;;  %1904 = vperm.xlu1 %6652, %v10806_v33   ;;  %v8520_v0 = vadd.f32 %v1168_v18, %v10807_v14  ;;  %v8523_v1 = vadd.f32 %v1690_v4, %v8370_v42  ;;  %v1347_v29 = vpop.permute.xlu0 %1346  ;;  %v10811_v18 = vld [vmem:[#allocation33_spill] sm:$0xff] }
 0x20d   : > { %v2810_v21 = vadd.f32 %v8515_v62, %v2771_v26  ;;  %v2741_v32 = vmul.f32 %v8478_v34, %v2618_v6  ;;  %v8528_v56 = vadd.f32 %v1689_v61, %v8380_v45  ;;  %v8531_v31 = vadd.f32 %v2212_v36, %v8385_v63  ;;  %v8540_v40 = vpop.permute.xlu1 %1341  ;;  %v8571_v6 = vld [vmem:[#allocation2 + $0x141] sm:$0xff] }
 0x20e   : > { %v2839_v13 = vmax.f32 %v2807_v46, 0.0  ;;  %v2809_v16 = vadd.f32 %v8515_v62, %v2770_v35  ;;  %2403 = vperm.xlu0 %6651, %v2287_v53   ;;  %v8534_v11 = vadd.f32 %v1692_v60, %v1460_v2  ;;  %v8536_v43 = vadd.f32 %v2215_v23, %v1982_v48  ;;  %v10812_v2 = vld [vmem:[#allocation55_spill] sm:$0xff]  ;;  %10813 = vst [vmem:[#allocation74_spill] sm:$0xff] %v8571_v6  ;;  %v10814_v35 = vld [vmem:[#allocation57_spill] sm:$0xff] }
 0x20f   : > { %v8538_v42 = vadd.f32 %v2214_v27, %v1981_v47  ;;  %v2842_v44 = vmax.f32 %v2810_v21, 0.0  ;;  %v8547_v63 = vmul.f32 %v8495_v59, %v8430_v8  ;;  %v8550_v49 = vmul.f32 %v8346_v58, %v1332_v5  ;;  %v4825_v48 = vld [vmem:[#allocation3 + $0x10] sm:$0xff] }
 0x210   : > { %10808 = vst [vmem:[#allocation69_spill] sm:$0xff] %v8534_v11  ;;  %10809 = vst [vmem:[#allocation71_spill] sm:$0xff] %v8536_v43  ;;  %v2983_v45 = vcombine.high %v2839_v13, %v2839_v13  ;;  %v2990_v4 = vrot.slane %v2839_v13, %v10811_v18  ;;  %2398 = vperm.xlu1 %6652, %v10812_v2   ;;  %v8554_v61 = vadd.f32 %v2741_v32, %v2509_v9  ;;  %v8559_v36 = vpop.permute.xlu0 %1839  ;;  %v8578_v13 = vld [vmem:[#allocation2 + $0x172] sm:$0xff] }
 0x211   : > { %10810 = vst [vmem:[#allocation73_spill] sm:$0xff] %v8538_v42  ;;  %v3034_v47 = vcombine.high %v2842_v44, %v2842_v44  ;;  %v3041_v30 = vrot.slane %v2842_v44, %v10811_v18  ;;  %v8557_v57 = vmul.f32 %v8346_v58, %v1347_v29  ;;  %4833 = vst.msk [vmem:[#allocation5 + $0x10] sm:$0xff] %vm4467_vm3, %v4825_v48  ;;  %v8564_v28 = vmax.f32 %v2809_v16, 0.0  ;;  %v8569_v26 = vpop.permute.xlu1 %1356 }
 0x212   : > { %v2997_v8 = vrot.slane %v2983_v45, %v10811_v18  ;;  %v2998_v39 = vcombine.high %v2990_v4, %v2990_v4  ;;  %v3711_v5 = vsel %vm3570_vm2, %v2990_v4, -inf  ;;  %1127 = vperm.xlu0 %6651, %v8542_v12   ;;  %10815 = vst [vmem:[#allocation75_spill] sm:$0xff] %v8578_v13 }
 0x213   : > { %v3712_v60 = vrot.slane %v3711_v5, 4  ;;  %v3048_v9 = vrot.slane %v3034_v47, %v10811_v18  ;;  %v3049_v23 = vcombine.high %v3041_v30, %v3041_v30  ;;  %v3795_v27 = vsel %vm3570_vm2, %v3041_v30, -inf }
 0x214   : > { %v2999_v53 = vcombine.high %v2997_v8, %v2997_v8  ;;  %v3718_v54 = vsel %vm3570_vm2, %v2998_v39, -inf  ;;  %v3725_v22 = vsel %vm3570_vm2, %v2997_v8, -inf  ;;  %v3796_v46 = vrot.slane %v3795_v27, 4  ;;  %2413 = vperm.xlu1 %6652, %v10814_v35   ;;  %v8576_v29 = vpop.permute.xlu0 %1854  ;;  %v8586_v39 = vld [vmem:[#allocation2 + $0x169] sm:$0xff] }
 0x215   : > { %v3713_v33 = vmax.f32 %v3711_v5, %v3712_v60  ;;  %v3719_v14 = vrot.slane %v3718_v54, 4  ;;  %v3726_v21 = vrot.slane %v3725_v22, 4  ;;  %v3050_v32 = vcombine.high %v3048_v9, %v3048_v9  ;;  %v8584_v8 = vpop.permute.xlu1 %1849  ;;  %10816 = vst [vmem:[#allocation76_spill] sm:$0xff] %v8586_v39 }
 0x216   : > { %v3732_v16 = vsel %vm3570_vm2, %v2999_v53, -inf  ;;  %v3797_v44 = vmax.f32 %v3795_v27, %v3796_v46  ;;  %v3802_v45 = vsel %vm3570_vm2, %v3049_v23, -inf  ;;  %v3809_v4 = vsel %vm3570_vm2, %v3048_v9, -inf  ;;  %1635 = vperm.xlu0 %6651, %v8571_v6  }
 0x217   : > { %v3714_v2 = vrot.slane %v3713_v33, 2  ;;  %v3720_v48 = vmax.f32 %v3718_v54, %v3719_v14  ;;  %v3727_v47 = vmax.f32 %v3725_v22, %v3726_v21  ;;  %v3733_v30 = vrot.slane %v3732_v16, 4  ;;  %v8592_v54 = vld [vmem:[#allocation2 + $0x159] sm:$0xff] }
 0x218   : > { %v3798_v5 = vrot.slane %v3797_v44, 2  ;;  %v3803_v60 = vrot.slane %v3802_v45, 4  ;;  %v3810_v35 = vrot.slane %v3809_v4, 4  ;;  %v3816_v53 = vsel %vm3570_vm2, %v3050_v32, -inf  ;;  %1137 = vperm.xlu1 %6652, %v8578_v13   ;;  %v8590_v15 = vpop.permute.xlu0 %2348  ;;  %10817 = vst [vmem:[#allocation77_spill] sm:$0xff] %v8592_v54 }
 0x219   : > { %v3715_v23 = vmax.f32 %v3713_v33, %v3714_v2  ;;  %v3721_v27 = vrot.slane %v3720_v48, 2  ;;  %v3728_v9 = vrot.slane %v3727_v47, 2  ;;  %v3734_v46 = vmax.f32 %v3732_v16, %v3733_v30  ;;  %v8595_v6 = vpop.permute.xlu1 %1864  ;;  %v2024_v33 = vld [vmem:[#allocation2 + $0x128] sm:$0xff] }
 0x21a   : > { %v3799_v22 = vmax.f32 %v3797_v44, %v3798_v5  ;;  %v3804_v14 = vmax.f32 %v3802_v45, %v3803_v60  ;;  %v3811_v21 = vmax.f32 %v3809_v4, %v3810_v35  ;;  %v3817_v7 = vrot.slane %v3816_v53, 4  ;;  %1650 = vperm.xlu0 %6651, %v8586_v39  }
 0x21b   : > { %v3716_v34 = vrot.slane %v3715_v23, 1  ;;  %v3722_v59 = vmax.f32 %v3720_v48, %v3721_v27  ;;  %v3729_v42 = vmax.f32 %v3727_v47, %v3728_v9  ;;  %v3735_v32 = vrot.slane %v3734_v46, 2  ;;  %v8602_v48 = vld [vmem:[#allocation2 + $0x181] sm:$0xff] }
 0x21c   : > { %v3805_v2 = vrot.slane %v3804_v14, 2  ;;  %v3812_v13 = vrot.slane %v3811_v21, 2  ;;  %v3818_v16 = vmax.f32 %v3816_v53, %v3817_v7  ;;  %v3017_v30 = vcombine.high %v8564_v28, %v8564_v28  ;;  %1645 = vperm.xlu1 %6652, %v8592_v54   ;;  %v8600_v60 = vpop.permute.xlu0 %2363  ;;  %10818 = vst [vmem:[#allocation78_spill] sm:$0xff] %v8602_v48 }
 0x21d   : > { %v3723_v44 = vrot.slane %v3722_v59, 1  ;;  %v3730_v45 = vrot.slane %v3729_v42, 1  ;;  %v3736_v4 = vmax.f32 %v3734_v46, %v3735_v32  ;;  %v3800_v5 = vrot.slane %v3799_v22, 1 }
 0x21e   : > { %v3717_v47 = vmax.f32 %v3715_v23, %v3716_v34  ;;  %v3806_v35 = vmax.f32 %v3804_v14, %v3805_v2  ;;  %v3813_v27 = vmax.f32 %v3811_v21, %v3812_v13  ;;  %v3819_v9 = vrot.slane %v3818_v16, 2  ;;  %2144 = vperm.xlu0 %6651, %v2024_v33   ;;  %v8617_v34 = vpop.permute.xlu1 %2358  ;;  %v2027_v13 = vld [vmem:[#allocation2 + $0x150] sm:$0xff] }
 0x21f   : > { %v3737_v39 = vrot.slane %v3736_v4, 1  ;;  %v8606_v7 = vadd.f32 %v8547_v63, %v8455_v50  ;;  %v10820_v53 = vmax.f32 %v8328_v10, %v8394_v20  ;;  %v2812_v32 = vadd.f32 %v8515_v62, %v8554_v61 }
 0x220   : > { %v3724_v23 = vmax.f32 %v3722_v59, %v3723_v44  ;;  %v3731_v14 = vmax.f32 %v3729_v42, %v3730_v45  ;;  %v3807_v21 = vrot.slane %v3806_v35, 1  ;;  %v8621_v50 = vadd.f32 %v8550_v49, %v8465_v24  ;;  %1660 = vperm.xlu1 %6652, %v8602_v48   ;;  %v8636_v59 = vpop.permute.xlu0 %1087 }
 0x221   : > { %10819 = vst [vmem:[#allocation81_spill] sm:$0xff] %v8606_v7  ;;  %v8613_v46 = vsel %vm4748_vm6, %v10820_v53, %v8433_v38  ;;  %v8624_v63 = vmax.f32 %v3799_v22, %v3800_v5  ;;  %v3024_v10 = vrot.slane %v8564_v28, %v10811_v18  ;;  %v8630_v20 = vadd.f32 %v8557_v57, %v8483_v41 }
 0x222   : > { %10821 = vst [vmem:[#allocation79_spill] sm:$0xff] %v8621_v50  ;;  %v8634_v38 = vmul.f32 %v8346_v58, %v8540_v40  ;;  %v8639_v24 = vsel %vm4467_vm3, %v3717_v47, -inf  ;;  %v3814_v42 = vrot.slane %v3813_v27, 1  ;;  %v8641_v49 = vmax.f32 %v3818_v16, %v3819_v9  ;;  %2159 = vperm.xlu0 %6651, %v2027_v13   ;;  %v8645_v33 = vpop.permute.xlu1 %2373  ;;  %v2548_v40 = vld [vmem:[#allocation2 + $0xfa] sm:$0xff] }
 0x223   : > { %10822 = vst [vmem:[#allocation10_spill] sm:$0xff] %v8630_v20  ;;  %v3031_v61 = vrot.slane %v3017_v30, %v10811_v18  ;;  %v3738_v28 = vmax.f32 %v3736_v4, %v3737_v39  ;;  %v3032_v22 = vcombine.high %v3024_v10, %v3024_v10  ;;  %v3767_v41 = vsel %vm3570_vm2, %v3024_v10, -inf  ;;  %v2551_v10 = vld [vmem:[#allocation2 + $0x122] sm:$0xff] }
 0x224   : > { %v2844_v57 = vmax.f32 %v2812_v32, 0.0  ;;  %v8648_v2 = vsel %vm4467_vm3, %v3724_v23, -inf  ;;  %v8651_v44 = vsel %vm4467_vm3, %v3731_v14, -inf  ;;  %v8653_v45 = vmax.f32 %v3806_v35, %v3807_v21  ;;  %2154 = vperm.xlu1 %6652, %v8352_v52   ;;  %v8658_v47 = vpop.permute.xlu0 %1102 }
 0x225   : > { %v3033_v16 = vcombine.high %v3031_v61, %v3031_v61  ;;  %v3768_v30 = vrot.slane %v3767_v41, 4  ;;  %v3774_v39 = vsel %vm3570_vm2, %v3032_v22, -inf  ;;  %v3781_v4 = vsel %vm3570_vm2, %v3031_v61, -inf }
 0x226   : > { %v3068_v5 = vcombine.high %v2844_v57, %v2844_v57  ;;  %v8660_v9 = vmax.f32 %v3813_v27, %v3814_v42  ;;  %v3775_v53 = vrot.slane %v3774_v39, 4  ;;  %v3782_v32 = vrot.slane %v3781_v4, 4  ;;  %2652 = vperm.xlu0 %6651, %v2548_v40   ;;  %v8665_v21 = vpop.permute.xlu1 %1097 }
 0x227   : > { %v3788_v13 = vsel %vm3570_vm2, %v3033_v16, -inf  ;;  %v3769_v35 = vmax.f32 %v3767_v41, %v3768_v30  ;;  %v3075_v14 = vrot.slane %v2844_v57, %v10811_v18  ;;  %v8668_v61 = vsel %vm4467_vm3, %v3738_v28, -inf  ;;  %v2550_v57 = vld [vmem:[#allocation2 + $0x112] sm:$0xff] }
 0x228   : > { %v3789_v23 = vrot.slane %v3788_v13, 4  ;;  %v3082_v52 = vrot.slane %v3068_v5, %v10811_v18  ;;  %v3776_v42 = vmax.f32 %v3774_v39, %v3775_v53  ;;  %v3783_v22 = vmax.f32 %v3781_v4, %v3782_v32  ;;  %2169 = vperm.xlu1 %6652, %v8376_v19   ;;  %v8679_v53 = vld [vmem:[#allocation2 + $0x170] sm:$0xff] }
 0x229   : > { %v3770_v16 = vrot.slane %v3769_v35, 2  ;;  %v3083_v41 = vcombine.high %v3075_v14, %v3075_v14  ;;  %v8672_v48 = vpop.permute.xlu0 %1595  ;;  %v3851_v18 = vsel %vm3570_vm2, %v3075_v14, -inf }
 0x22a   : > { %v3790_v40 = vmax.f32 %v3788_v13, %v3789_v23  ;;  %v3084_v30 = vcombine.high %v3082_v52, %v3082_v52  ;;  %v3777_v5 = vrot.slane %v3776_v42, 2  ;;  %v3784_v54 = vrot.slane %v3783_v22, 2  ;;  %2667 = vperm.xlu0 %6651, %v2551_v10  }
 0x22b   : > { %v3865_v28 = vsel %vm3570_vm2, %v3082_v52, -inf  ;;  %v3771_v62 = vmax.f32 %v3769_v35, %v3770_v16  ;;  %v3852_v39 = vrot.slane %v3851_v18, 4  ;;  %v3858_v4 = vsel %vm3570_vm2, %v3083_v41, -inf  ;;  %v8677_v19 = vpop.permute.xlu1 %1112  ;;  %v2553_v35 = vld [vmem:[#allocation2 + $0x13a] sm:$0xff] }
 0x22c   : > { %v3791_v27 = vrot.slane %v3790_v40, 2  ;;  %10823 = vst [vmem:[#allocation80_spill] sm:$0xff] %v8677_v19  ;;  %v3778_v32 = vmax.f32 %v3776_v42, %v3777_v5  ;;  %v3785_v13 = vmax.f32 %v3783_v22, %v3784_v54  ;;  %v3859_v23 = vrot.slane %v3858_v4, 4  ;;  %2662 = vperm.xlu1 %6652, %v2550_v57  }
 0x22d   : > { %v3866_v20 = vrot.slane %v3865_v28, 4  ;;  %v3772_v50 = vrot.slane %v3771_v62, 1  ;;  %v3853_v14 = vmax.f32 %v3851_v18, %v3852_v39  ;;  %v3872_v52 = vsel %vm3570_vm2, %v3084_v30, -inf  ;;  %v8682_v10 = vpop.permute.xlu0 %1610 }
 0x22e   : > { %v3792_v7 = vmax.f32 %v3790_v40, %v3791_v27  ;;  %10824 = vst [vmem:[#allocation21_spill] sm:$0xff] %v8682_v10  ;;  %v3779_v16 = vrot.slane %v3778_v32, 1  ;;  %v3786_v43 = vrot.slane %v3785_v13, 1  ;;  %v3860_v41 = vmax.f32 %v3858_v4, %v3859_v23  ;;  %1391 = vperm.xlu0 %6651, %v8679_v53  }
 0x22f   : > { %v3867_v11 = vmax.f32 %v3865_v28, %v3866_v20  ;;  %v3773_v19 = vmax.f32 %v3771_v62, %v3772_v50  ;;  %v3854_v54 = vrot.slane %v3853_v14, 2  ;;  %v3873_v22 = vrot.slane %v3872_v52, 4  ;;  %v8685_v5 = vpop.permute.xlu1 %1605  ;;  %v8690_v20 = vld [vmem:[#allocation2 + $0x188] sm:$0xff] }
 0x230   : > { %v3793_v42 = vrot.slane %v3792_v7, 1  ;;  %v3780_v57 = vmax.f32 %v3778_v32, %v3779_v16  ;;  %v3787_v27 = vmax.f32 %v3785_v13, %v3786_v43  ;;  %v3861_v18 = vrot.slane %v3860_v41, 2  ;;  %2677 = vperm.xlu1 %6652, %v2553_v35   ;;  %v10825_v43 = vld [vmem:[#allocation54_spill] sm:$0xff] }
 0x231   : > { %v3868_v40 = vrot.slane %v3867_v11, 2  ;;  %v4505_v39 = vsel %vm4467_vm3, %v3773_v19, -inf  ;;  %v3855_v10 = vmax.f32 %v3853_v14, %v3854_v54  ;;  %v3874_v51 = vmax.f32 %v3872_v52, %v3873_v22  ;;  %v8688_v4 = vpop.permute.xlu0 %2104 }
 0x232   : > { %v3794_v30 = vmax.f32 %v3792_v7, %v3793_v42  ;;  %v4506_v62 = vmax.f32 %v8639_v24, %v4505_v39  ;;  %v4508_v50 = vsel %vm4467_vm3, %v3780_v57, -inf  ;;  %v4511_v28 = vsel %vm4467_vm3, %v3787_v27, -inf  ;;  %1899 = vperm.xlu0 %6651, %v10825_v43   ;;  %v8732_v43 = vld [vmem:[#allocation2 + $0x182] sm:$0xff] }
 0x233   : > { %v3862_v32 = vmax.f32 %v3860_v41, %v3861_v18  ;;  %v4509_v13 = vmax.f32 %v8648_v2, %v4508_v50  ;;  %v4512_v7 = vmax.f32 %v8651_v44, %v4511_v28  ;;  %v3856_v23 = vrot.slane %v3855_v10, 1  ;;  %v8699_v14 = vpop.permute.xlu1 %1620 }
 0x234   : > { %v4514_v19 = vsel %vm4467_vm3, %v3794_v30, -inf  ;;  %v4761_v24 = vsel %vm4750_vm7, %v4506_v62, %v8613_v46  ;;  %v3869_v16 = vmax.f32 %v3867_v11, %v3868_v40  ;;  %1401 = vperm.xlu1 %6652, %v8690_v20   ;;  %v10826_v41 = vrot.slane %v8641_v49, 1  ;;  %v10827_v11 = vld [vmem:[#allocation56_spill] sm:$0xff] }
 0x235   : > { %v4515_v52 = vmax.f32 %v8668_v61, %v4514_v19  ;;  %v3863_v35 = vrot.slane %v3862_v32, 1  ;;  %v4762_v44 = vsel %vm4752_vm8, %v4509_v13, %v4761_v24  ;;  %v3857_v42 = vmax.f32 %v3855_v10, %v3856_v23  ;;  %v8709_v22 = vpop.permute.xlu0 %2119 }
 0x236   : > { %v3822_v2 = vmax.f32 %v8641_v49, %v10826_v41  ;;  %v3875_v54 = vrot.slane %v3874_v51, 2  ;;  %v4763_v57 = vsel %vm4754_vm9, %v4512_v7, %v4762_v44  ;;  %v3870_v27 = vrot.slane %v3869_v16, 1  ;;  %1914 = vperm.xlu0 %6651, %v10827_v11  }
 0x237   : > { %v3864_v61 = vmax.f32 %v3862_v32, %v3863_v35  ;;  %v1951_v46 = vmul.f32 %v8362_v17, %v8559_v36  ;;  %v4519_v18 = vsel %vm4467_vm3, %v8653_v45, -inf  ;;  %v4764_v49 = vsel %vm4756_vm10, %v4515_v52, %v4763_v57  ;;  %v8720_v30 = vpop.permute.xlu1 %2114 }
 0x238   : > { %v3876_v40 = vmax.f32 %v3874_v51, %v3875_v54  ;;  %v1432_v10 = vmul.f32 %v8346_v58, %v8569_v26  ;;  %4817 = vst.msk [vmem:[#allocation3 + $0x21] sm:$0xff] %vm4467_vm3, %v4764_v49  ;;  %v3871_v39 = vmax.f32 %v3869_v16, %v3870_v27  ;;  %v4517_v62 = vsel %vm4467_vm3, %v3857_v42, -inf  ;;  %1909 = vperm.xlu1 %6652, %v8542_v12   ;;  %v10829_v42 = vld [vmem:[#allocation60_spill] sm:$0xff]  ;;  %v10834_v49 = vld [vmem:[#allocation21_spill] sm:$0xff] }
 0x239   : > { %v4520_v36 = vsel %vm4467_vm3, %v3864_v61, -inf  ;;  %v1954_v50 = vmul.f32 %v8362_v17, %v8576_v29  ;;  %v4516_v51 = vsel %vm4467_vm3, %v8624_v63, -inf  ;;  %v4522_v26 = vsel %vm4467_vm3, %v8660_v9, -inf  ;;  %v2613_v32 = vpop.permute.xlu0 %2612  ;;  %v10828_v63 = vld [vmem:[#allocation59_spill] sm:$0xff]  ;;  %v10831_v61 = vld [vmem:[#allocation80_spill] sm:$0xff] }
 0x23a   : > { %v3877_v45 = vrot.slane %v3876_v40, 1  ;;  %v4521_v28 = vmax.f32 %v4519_v18, %v4520_v36  ;;  %v8735_v13 = vsel %vm4467_vm3, %v3822_v2, -inf  ;;  %v4523_v7 = vsel %vm4467_vm3, %v3871_v39, -inf  ;;  %2408 = vperm.xlu0 %6651, %v10828_v63   ;;  %v10833_v18 = vld [vmem:[#allocation71_spill] sm:$0xff]  ;;  %v10836_v39 = vld [vmem:[#allocation73_spill] sm:$0xff] }
 0x23b   : > { %v1461_v29 = vadd.f32 %v8634_v38, %v8507_v55  ;;  %v8741_v19 = vadd.f32 %v1951_v46, %v8510_v37  ;;  %v4518_v9 = vmax.f32 %v4516_v51, %v4517_v62  ;;  %v1953_v52 = vmul.f32 %v8362_v17, %v8584_v8  ;;  %v2130_v35 = vpop.permute.xlu1 %2129  ;;  %v10837_v36 = vld [vmem:[#allocation11_spill] sm:$0xff] }
 0x23c   : > { %v3878_v23 = vmax.f32 %v3876_v40, %v3877_v45  ;;  %v2476_v24 = vmul.f32 %v8412_v25, %v8590_v15  ;;  %v8749_v16 = vadd.f32 %v1432_v10, %v8520_v0  ;;  %v8752_v41 = vadd.f32 %v1954_v50, %v8523_v1  ;;  %1924 = vperm.xlu1 %6652, %v8732_v43  }
 0x23d   : > { %v1956_v55 = vmul.f32 %v8362_v17, %v8595_v6  ;;  %v2479_v37 = vmul.f32 %v8412_v25, %v8600_v60  ;;  %v4524_v38 = vmax.f32 %v4522_v26, %v4523_v7  ;;  %v4765_v8 = vsel %vm4744_vm4, %v4521_v28, %v4518_v9  ;;  %v2628_v2 = vpop.permute.xlu0 %2627  ;;  %v10838_v26 = vld [vmem:[#allocation81_spill] sm:$0xff]  ;;  %v10840_v7 = vld [vmem:[#allocation39_spill] sm:$0xff] }
 0x23e   : > { %v2478_v15 = vmul.f32 %v8412_v25, %v8617_v34  ;;  %v1167_v0 = vmul.f32 %v8439_v3, %v8636_v59  ;;  %v8765_v1 = vsel %vm4467_vm3, %v3878_v23, -inf  ;;  %v2481_v6 = vmul.f32 %v8412_v25, %v8645_v33  ;;  %2423 = vperm.xlu0 %6651, %v10829_v42   ;;  %v10830_v59 = vld [vmem:[#allocation64_spill] sm:$0xff]  ;;  %v8780_v33 = vld [vmem:[#allocation2 + $0x171] sm:$0xff]  ;;  %v10841_v23 = vld [vmem:[#allocation79_spill] sm:$0xff] }
 0x23f   : > { %v1170_v60 = vmul.f32 %v8439_v3, %v8658_v47  ;;  %v1169_v44 = vmul.f32 %v8439_v3, %v8665_v21  ;;  %v1985_v34 = vadd.f32 %v1953_v52, %v8528_v56  ;;  %v2508_v54 = vadd.f32 %v2476_v24, %v8531_v31  ;;  %v5184_v46 = vld [vmem:[#allocation3 + $0x22] sm:$0xff]  ;;  %v2623_v25 = vpop.permute.xlu1 %2622  ;;  %v10832_v47 = vld [vmem:[#allocation69_spill] sm:$0xff] }
 0x240   : > { %v1691_v57 = vmul.f32 %v10830_v59, %v8672_v48  ;;  %v1172_v27 = vmul.f32 %v8439_v3, %v10831_v61  ;;  %v1988_v11 = vadd.f32 %v1956_v55, %v10832_v47  ;;  %v2511_v21 = vadd.f32 %v2479_v37, %v10833_v18  ;;  %5192 = vst.msk [vmem:[#allocation5 + $0x8] sm:$0xff] %vm4467_vm3, %v5184_v46  ;;  %v10835_v31 = vld [vmem:[#allocation74_spill] sm:$0xff] }
 0x241   : > { %v1694_v40 = vmul.f32 %v10830_v59, %v10834_v49  ;;  %v1693_v56 = vmul.f32 %v10830_v59, %v8685_v5  ;;  %2418 = vperm.xlu1 %6652, %v10835_v31   ;;  %v4826_v48 = vld [vmem:[#allocation3 + $0x20] sm:$0xff]  ;;  %v4527_v3 = vmax.f32 %v8735_v13, %v8765_v1  ;;  %v4766_v10 = vsel %vm4746_vm5, %v4524_v38, %v4765_v8  ;;  %v1352_v51 = vpop.permute.xlu0 %1351  ;;  %v10839_v5 = vld [vmem:[#allocation12_spill] sm:$0xff] }
 0x242   : > { %v2510_v62 = vadd.f32 %v2478_v15, %v10836_v39  ;;  %v1199_v50 = vadd.f32 %v1167_v0, %v10837_v36  ;;  %4834 = vst.msk [vmem:[#allocation5 + $0x20] sm:$0xff] %vm4467_vm3, %v4826_v48  ;;  %v2513_v45 = vadd.f32 %v2481_v6, %v10838_v26  ;;  %v1202_v28 = vadd.f32 %v1170_v60, %v10839_v5  ;;  %v10842_v13 = vld [vmem:[#allocation68_spill] sm:$0xff]  ;;  %v10843_v24 = vld [vmem:[#allocation66_spill] sm:$0xff]  ;;  %v10844_v38 = vld [vmem:[#allocation65_spill] sm:$0xff] }
 0x243   : > { %v1201_v63 = vadd.f32 %v1169_v44, %v10840_v7  ;;  %v8800_v9 = vadd.f32 %v1691_v57, %v10841_v23  ;;  %1655 = vperm.xlu0 %6651, %v8780_v33   ;;  %v8804_v52 = vadd.f32 %v1172_v27, %v10842_v13  ;;  %v2216_v55 = vmul.f32 %v10843_v24, %v8688_v4  ;;  %v2638_v15 = vpop.permute.xlu1 %2637  ;;  %v2028_v0 = vld [vmem:[#allocation2 + $0x158] sm:$0xff]  ;;  %v10846_v57 = vld [vmem:[#allocation76_spill] sm:$0xff]  ;;  %v2552_v23 = vld [vmem:[#allocation2 + $0x12a] sm:$0xff] }
 0x244   : > { %v1696_v37 = vmul.f32 %v10830_v59, %v8699_v14  ;;  %v2740_v8 = vmul.f32 %v10844_v38, %v2613_v32  ;;  %v10845_v1 = vld [vmem:[#allocation10_spill] sm:$0xff]  ;;  %v8814_v60 = vadd.f32 %v1693_v56, %v1461_v29  ;;  %v2219_v44 = vmul.f32 %v10843_v24, %v8709_v22 }
 0x245   : > { %v8812_v6 = vadd.f32 %v1694_v40, %v10845_v1  ;;  %v2743_v42 = vmul.f32 %v10844_v38, %v2628_v2  ;;  %2433 = vperm.xlu1 %6652, %v10846_v57   ;;  %v2218_v4 = vmul.f32 %v10843_v24, %v8720_v30  ;;  %v2221_v32 = vmul.f32 %v10843_v24, %v2130_v35  ;;  %v1367_v61 = vpop.permute.xlu0 %1366  ;;  %v8827_v2 = vld [vmem:[#allocation2 + $0x189] sm:$0xff] }
 0x246   : > { %v2772_v14 = vadd.f32 %v2740_v8, %v2508_v54  ;;  %v2742_v59 = vmul.f32 %v10844_v38, %v2623_v25  ;;  %v1431_v29 = vmul.f32 %v8346_v58, %v1352_v51  ;;  %v2745_v46 = vmul.f32 %v10844_v38, %v2638_v15  ;;  %v10847_v54 = vld [vmem:[#allocation67_spill] sm:$0xff] }
 0x247   : > { %v2775_v27 = vadd.f32 %v2743_v42, %v2511_v21  ;;  %v1434_v22 = vmul.f32 %v8346_v58, %v1367_v61  ;;  %2164 = vperm.xlu0 %6651, %v2028_v0   ;;  %v8830_v47 = vadd.f32 %v2216_v55, %v8741_v19  ;;  %v8833_v30 = vadd.f32 %v1696_v37, %v8749_v16  ;;  %v5201_v35 = vld [vmem:[#allocation5 + $0x8] sm:$0xff]  ;;  %v1362_v21 = vpop.permute.xlu1 %1361 }
 0x248   : > { %v2811_v25 = vadd.f32 %v10847_v54, %v2772_v14  ;;  %v2774_v18 = vadd.f32 %v2742_v59, %v2510_v62  ;;  %v8837_v49 = vadd.f32 %v2219_v44, %v8752_v41  ;;  %6422 = vmatprep.mubr.msk.f32.mxu0 %vm4467_vm3, %v5201_v35  ;;  %v2777_v56 = vadd.f32 %v2745_v46, %v2513_v45  ;;  %v10850_v45 = vld [vmem:[#allocation63_spill] sm:$0xff] }
 0x249   : > { %v2814_v40 = vadd.f32 %v10847_v54, %v2775_v27  ;;  %v1433_v31 = vmul.f32 %v8346_v58, %v1362_v21  ;;  %v8842_v19 = vadd.f32 %v2218_v4, %v1985_v34  ;;  %v8845_v16 = vsel %vm4748_vm6, %v4527_v3, %v4766_v10  ;;  %1665 = vperm.xlu1 %6652, %v8827_v2   ;;  %v1860_v62 = vpop.permute.xlu0 %1859  ;;  %v10851_v34 = vld [vmem:[#allocation33_spill] sm:$0xff] }
 0x24a   : > { %v2843_v48 = vmax.f32 %v2811_v25, 0.0  ;;  %v2813_v39 = vadd.f32 %v10847_v54, %v2774_v18  ;;  %v8849_v41 = vadd.f32 %v2221_v32, %v1988_v11  ;;  %v8851_v51 = vadd.f32 %v1431_v29, %v1199_v50  ;;  %v2555_v32 = vld [vmem:[#allocation2 + $0x152] sm:$0xff] }
 0x24b   : > { %v2846_v36 = vmax.f32 %v2814_v40, 0.0  ;;  %v8853_v26 = vadd.f32 %v1434_v22, %v1202_v28  ;;  %2179 = vperm.xlu0 %6651, %v10850_v45   ;;  %v8860_v3 = vadd.f32 %v10847_v54, %v2777_v56  ;;  %v8862_v10 = vpop.permute.xlu1 %1376  ;;  %v8865_v50 = vadd.f32 %v1433_v31, %v1201_v63  ;;  %v2554_v56 = vld [vmem:[#allocation2 + $0x142] sm:$0xff] }
 0x24c   : > { %10848 = vst [vmem:[#allocation45_spill] sm:$0xff] %v8851_v51  ;;  %v3051_v58 = vcombine.high %v2843_v48, %v2843_v48  ;;  %v3058_v5 = vrot.slane %v2843_v48, %v10851_v34  ;;  %v8857_v7 = vmax.f32 %v2813_v39, 0.0  ;;  %v8868_v28 = vmul.f32 %v8362_v17, %v1860_v62  ;;  %v2033_v17 = vld [vmem:[#allocation2 + $0x198] sm:$0xff] }
 0x24d   : > { %10849 = vst [vmem:[#allocation23_spill] sm:$0xff] %v8853_v26  ;;  %v3102_v11 = vcombine.high %v2846_v36, %v2846_v36  ;;  %v3109_v13 = vrot.slane %v2846_v36, %v10851_v34  ;;  %10852 = vst [vmem:[#allocation48_spill] sm:$0xff] %v8865_v50  ;;  %2174 = vperm.xlu1 %6652, %v8679_v53   ;;  %v8875_v8 = vpop.permute.xlu0 %1874 }
 0x24e   : > { %v3065_v24 = vrot.slane %v3051_v58, %v10851_v34  ;;  %v3066_v55 = vcombine.high %v3058_v5, %v3058_v5  ;;  %v3823_v37 = vsel %vm3570_vm2, %v3058_v5, -inf  ;;  %v3085_v38 = vcombine.high %v8857_v7, %v8857_v7 }
 0x24f   : > { %v3824_v15 = vrot.slane %v3823_v37, 4  ;;  %v3116_v0 = vrot.slane %v3102_v11, %v10851_v34  ;;  %v3117_v63 = vcombine.high %v3109_v13, %v3109_v13  ;;  %v3907_v1 = vsel %vm3570_vm2, %v3109_v13, -inf  ;;  %2672 = vperm.xlu0 %6651, %v2552_v23   ;;  %v8881_v14 = vpop.permute.xlu1 %1869 }
 0x250   : > { %v3067_v44 = vcombine.high %v3065_v24, %v3065_v24  ;;  %v3830_v42 = vsel %vm3570_vm2, %v3066_v55, -inf  ;;  %v3837_v57 = vsel %vm3570_vm2, %v3065_v24, -inf  ;;  %v3908_v4 = vrot.slane %v3907_v1, 4 }
 0x251   : > { %v3825_v53 = vmax.f32 %v3823_v37, %v3824_v15  ;;  %v3831_v59 = vrot.slane %v3830_v42, 4  ;;  %v3838_v61 = vrot.slane %v3837_v57, 4  ;;  %v3118_v27 = vcombine.high %v3116_v0, %v3116_v0  ;;  %2189 = vperm.xlu1 %6652, %v2033_v17   ;;  %v8886_v54 = vpop.permute.xlu0 %2368  ;;  %v10853_v17 = vld [vmem:[#allocation75_spill] sm:$0xff] }
 0x252   : > { %v3844_v29 = vsel %vm3570_vm2, %v3067_v44, -inf  ;;  %v3909_v46 = vmax.f32 %v3907_v1, %v3908_v4  ;;  %v3914_v22 = vsel %vm3570_vm2, %v3117_v63, -inf  ;;  %v3921_v35 = vsel %vm3570_vm2, %v3116_v0, -inf  ;;  %v2557_v44 = vld [vmem:[#allocation2 + $0x16a] sm:$0xff] }
 0x253   : > { %v3826_v25 = vrot.slane %v3825_v53, 2  ;;  %v3832_v18 = vmax.f32 %v3830_v42, %v3831_v59  ;;  %v3839_v21 = vmax.f32 %v3837_v57, %v3838_v61  ;;  %v3845_v40 = vrot.slane %v3844_v29, 4  ;;  %2687 = vperm.xlu0 %6651, %v2555_v32   ;;  %v8889_v36 = vpop.permute.xlu1 %1884 }
 0x254   : > { %v3910_v31 = vrot.slane %v3909_v46, 2  ;;  %v3915_v48 = vrot.slane %v3914_v22, 4  ;;  %v3922_v39 = vrot.slane %v3921_v35, 4  ;;  %v3928_v62 = vsel %vm3570_vm2, %v3118_v27, -inf }
 0x255   : > { %v3827_v45 = vmax.f32 %v3825_v53, %v3826_v25  ;;  %v3833_v58 = vrot.slane %v3832_v18, 2  ;;  %v3840_v5 = vrot.slane %v3839_v21, 2  ;;  %v3846_v23 = vmax.f32 %v3844_v29, %v3845_v40  ;;  %2682 = vperm.xlu1 %6652, %v2554_v56   ;;  %v8891_v37 = vpop.permute.xlu0 %2383 }
 0x256   : > { %v3911_v11 = vmax.f32 %v3909_v46, %v3910_v31  ;;  %v3916_v13 = vmax.f32 %v3914_v22, %v3915_v48  ;;  %v3923_v24 = vmax.f32 %v3921_v35, %v3922_v39  ;;  %v3929_v55 = vrot.slane %v3928_v62, 4  ;;  %v10854_v48 = vld [vmem:[#allocation77_spill] sm:$0xff] }
 0x257   : > { %v3828_v15 = vrot.slane %v3827_v45, 1  ;;  %v3834_v0 = vmax.f32 %v3832_v18, %v3833_v58  ;;  %v3841_v63 = vmax.f32 %v3839_v21, %v3840_v5  ;;  %v3847_v1 = vrot.slane %v3846_v23, 2  ;;  %1919 = vperm.xlu0 %6651, %v10853_v17   ;;  %v8894_v53 = vpop.permute.xlu1 %2378  ;;  %v8900_v39 = vld [vmem:[#allocation2 + $0x18a] sm:$0xff] }
 0x258   : > { %v3912_v42 = vrot.slane %v3911_v11, 1  ;;  %v3917_v57 = vrot.slane %v3916_v13, 2  ;;  %v3924_v4 = vrot.slane %v3923_v24, 2  ;;  %v3930_v32 = vmax.f32 %v3928_v62, %v3929_v55 }
 0x259   : > { %v3829_v59 = vmax.f32 %v3827_v45, %v3828_v15  ;;  %v3835_v61 = vrot.slane %v3834_v0, 1  ;;  %v3842_v27 = vrot.slane %v3841_v63, 1  ;;  %v3848_v29 = vmax.f32 %v3846_v23, %v3847_v1  ;;  %2697 = vperm.xlu1 %6652, %v2557_v44   ;;  %v8896_v18 = vpop.permute.xlu0 %1107 }
 0x25a   : > { %v3913_v46 = vmax.f32 %v3911_v11, %v3912_v42  ;;  %v3918_v22 = vmax.f32 %v3916_v13, %v3917_v57  ;;  %v3925_v35 = vmax.f32 %v3923_v24, %v3924_v4  ;;  %v3931_v25 = vrot.slane %v3930_v32, 2  ;;  %v10856_v57 = vld [vmem:[#allocation78_spill] sm:$0xff] }
 0x25b   : > { %v3836_v21 = vmax.f32 %v3834_v0, %v3835_v61  ;;  %v3843_v40 = vmax.f32 %v3841_v63, %v3842_v27  ;;  %v3849_v56 = vrot.slane %v3848_v29, 1  ;;  %v2848_v31 = vmax.f32 %v8860_v3, 0.0  ;;  %2428 = vperm.xlu0 %6651, %v10854_v48   ;;  %v8906_v23 = vpop.permute.xlu1 %2393 }
 0x25c   : > { %v3919_v62 = vrot.slane %v3918_v22, 1  ;;  %v3926_v45 = vrot.slane %v3925_v35, 1  ;;  %v3932_v58 = vmax.f32 %v3930_v32, %v3931_v25  ;;  %v8904_v5 = vadd.f32 %v8868_v28, %v8800_v9 }
 0x25d   : > { %v3850_v11 = vmax.f32 %v3848_v29, %v3849_v56  ;;  %v8909_v13 = vsel %vm4467_vm3, %v3829_v59, -inf  ;;  %v8912_v24 = vsel %vm4467_vm3, %v3913_v46, -inf  ;;  %v3092_v3 = vrot.slane %v8857_v7, %v10851_v34  ;;  %1929 = vperm.xlu1 %6652, %v8900_v39   ;;  %v8924_v28 = vpop.permute.xlu0 %1122 }
 0x25e   : > { %10855 = vst [vmem:[#allocation51_spill] sm:$0xff] %v8904_v5  ;;  %v8917_v55 = vsel %vm4467_vm3, %v3836_v21, -inf  ;;  %v3920_v15 = vmax.f32 %v3918_v22, %v3919_v62  ;;  %v3933_v0 = vrot.slane %v3932_v58, 1  ;;  %v3099_v9 = vrot.slane %v3085_v38, %v10851_v34 }
 0x25f   : > { %v8927_v63 = vsel %vm4467_vm3, %v3843_v40, -inf  ;;  %v3100_v1 = vcombine.high %v3092_v3, %v3092_v3  ;;  %v3879_v44 = vsel %vm3570_vm2, %v3092_v3, -inf  ;;  %v3136_v42 = vcombine.high %v2848_v31, %v2848_v31  ;;  %2443 = vperm.xlu0 %6651, %v10856_v57   ;;  %v8936_v38 = vpop.permute.xlu1 %1117 }
 0x260   : > { %v8932_v4 = vsel %vm4467_vm3, %v3850_v11, -inf  ;;  %v3927_v32 = vmax.f32 %v3925_v35, %v3926_v45  ;;  %v8934_v59 = vmax.f32 %v3932_v58, %v3933_v0  ;;  %v3101_v7 = vcombine.high %v3099_v9, %v3099_v9  ;;  %v2297_v58 = vld [vmem:[#allocation2 + $0x199] sm:$0xff] }
 0x261   : > { %v3880_v61 = vrot.slane %v3879_v44, 4  ;;  %v3886_v27 = vsel %vm3570_vm2, %v3100_v1, -inf  ;;  %v3893_v29 = vsel %vm3570_vm2, %v3099_v9, -inf  ;;  %v3143_v46 = vrot.slane %v2848_v31, %v10851_v34  ;;  %2438 = vperm.xlu1 %6652, %v8780_v33   ;;  %v8946_v35 = vpop.permute.xlu0 %1615 }
 0x262   : > { %v8942_v22 = vsel %vm4467_vm3, %v3920_v15, -inf  ;;  %v3887_v25 = vrot.slane %v3886_v27, 4  ;;  %v3894_v21 = vrot.slane %v3893_v29, 4  ;;  %v3900_v40 = vsel %vm3570_vm2, %v3101_v7, -inf }
 0x263   : > { %v3881_v56 = vmax.f32 %v3879_v44, %v3880_v61  ;;  %v3901_v48 = vrot.slane %v3900_v40, 4  ;;  %v3150_v62 = vrot.slane %v3136_v42, %v10851_v34  ;;  %v3151_v45 = vcombine.high %v3143_v46, %v3143_v46  ;;  %2184 = vperm.xlu0 %6651, %v8690_v20   ;;  %v8954_v0 = vpop.permute.xlu1 %1132 }
 0x264   : > { %v8951_v31 = vsel %vm4467_vm3, %v3927_v32, -inf  ;;  %v3888_v11 = vmax.f32 %v3886_v27, %v3887_v25  ;;  %v3895_v3 = vmax.f32 %v3893_v29, %v3894_v21  ;;  %v3963_v15 = vsel %vm3570_vm2, %v3143_v46, -inf  ;;  %v2034_v46 = vld [vmem:[#allocation2 + $0x1a0] sm:$0xff] }
 0x265   : > { %v3882_v33 = vrot.slane %v3881_v56, 2  ;;  %v3902_v9 = vmax.f32 %v3900_v40, %v3901_v48  ;;  %v3152_v1 = vcombine.high %v3150_v62, %v3150_v62  ;;  %v3964_v44 = vrot.slane %v3963_v15, 4  ;;  %2453 = vperm.xlu1 %6652, %v2297_v58   ;;  %v8958_v61 = vpop.permute.xlu0 %1630 }
 0x266   : > { %v3889_v57 = vrot.slane %v3888_v11, 2  ;;  %v3896_v7 = vrot.slane %v3895_v3, 2  ;;  %v3970_v42 = vsel %vm3570_vm2, %v3151_v45, -inf  ;;  %v3977_v20 = vsel %vm3570_vm2, %v3150_v62, -inf }
 0x267   : > { %v3883_v32 = vmax.f32 %v3881_v56, %v3882_v33  ;;  %v3903_v27 = vrot.slane %v3902_v9, 2  ;;  %v3965_v29 = vmax.f32 %v3963_v15, %v3964_v44  ;;  %v3971_v25 = vrot.slane %v3970_v42, 4  ;;  %2692 = vperm.xlu0 %6651, %v8542_v12   ;;  %v8962_v5 = vpop.permute.xlu1 %1625 }
 0x268   : > { %v3890_v21 = vmax.f32 %v3888_v11, %v3889_v57  ;;  %v3897_v40 = vmax.f32 %v3895_v3, %v3896_v7  ;;  %v3978_v48 = vrot.slane %v3977_v20, 4  ;;  %v3984_v34 = vsel %vm3570_vm2, %v3152_v1, -inf  ;;  %10857 = vst [vmem:[#allocation26_spill] sm:$0xff] %v8962_v5 }
 0x269   : > { %v3884_v45 = vrot.slane %v3883_v32, 1  ;;  %v3904_v50 = vmax.f32 %v3902_v9, %v3903_v27  ;;  %v3966_v62 = vrot.slane %v3965_v29, 2  ;;  %v3972_v58 = vmax.f32 %v3970_v42, %v3971_v25  ;;  %2194 = vperm.xlu1 %6652, %v2034_v46   ;;  %v8964_v15 = vpop.permute.xlu0 %2124 }
 0x26a   : > { %v3891_v26 = vrot.slane %v3890_v21, 1  ;;  %v3898_v51 = vrot.slane %v3897_v40, 1  ;;  %v3979_v56 = vmax.f32 %v3977_v20, %v3978_v48  ;;  %v3985_v33 = vrot.slane %v3984_v34, 4 }
 0x26b   : > { %v3885_v12 = vmax.f32 %v3883_v32, %v3884_v45  ;;  %v3905_v44 = vrot.slane %v3904_v50, 1  ;;  %v3967_v11 = vmax.f32 %v3965_v29, %v3966_v62  ;;  %v3973_v3 = vrot.slane %v3972_v58, 2  ;;  %2707 = vperm.xlu0 %6651, %v8732_v43   ;;  %v8967_v9 = vpop.permute.xlu1 %1640 }
 0x26c   : > { %v3892_v1 = vmax.f32 %v3890_v21, %v3891_v26  ;;  %v3899_v57 = vmax.f32 %v3897_v40, %v3898_v51  ;;  %v3980_v7 = vrot.slane %v3979_v56, 2  ;;  %v3986_v5 = vmax.f32 %v3984_v34, %v3985_v33  ;;  %v2561_v21 = vld [vmem:[#allocation2 + $0x19a] sm:$0xff] }
 0x26d   : > { %v3906_v42 = vmax.f32 %v3904_v50, %v3905_v44  ;;  %v4529_v27 = vsel %vm4467_vm3, %v3885_v12, -inf  ;;  %v3968_v20 = vrot.slane %v3967_v11, 1  ;;  %v3974_v25 = vmax.f32 %v3972_v58, %v3973_v3  ;;  %2702 = vperm.xlu1 %6652, %v10853_v17   ;;  %v8974_v43 = vpop.permute.xlu0 %2139  ;;  %v9005_v3 = vld [vmem:[%s10469_s1 + $0x5] ss:$0 sm:$0xff] }
 0x26e   : > { %v4530_v46 = vmax.f32 %v8909_v13, %v4529_v27  ;;  %v4532_v32 = vsel %vm4467_vm3, %v3892_v1, -inf  ;;  %v4535_v29 = vsel %vm4467_vm3, %v3899_v57, -inf  ;;  %v3981_v48 = vmax.f32 %v3979_v56, %v3980_v7  ;;  %v2298_v57 = vld [vmem:[#allocation2 + $0x1a1] sm:$0xff] }
 0x26f   : > { %v4533_v51 = vmax.f32 %v8917_v55, %v4532_v32  ;;  %v4536_v26 = vmax.f32 %v8927_v63, %v4535_v29  ;;  %v4538_v34 = vsel %vm4467_vm3, %v3906_v42, -inf  ;;  %v3969_v50 = vmax.f32 %v3967_v11, %v3968_v20  ;;  %2448 = vperm.xlu0 %6651, %v8827_v2   ;;  %v8983_v17 = vpop.permute.xlu1 %2134  ;;  %v8993_v2 = vld [vmem:[%s10469_s1 + $0x3] ss:$0 sm:$0xff]  ;;  %v9018_v42 = vld [vmem:[%s10469_s1 + $0x7] ss:$0 sm:$0xff] }
 0x270   : > { %v4539_v13 = vmax.f32 %v8932_v4, %v4538_v34  ;;  %v4768_v40 = vsel %vm4750_vm7, %v4530_v46, %v8845_v16  ;;  %v3975_v45 = vrot.slane %v3974_v25, 1  ;;  %v3982_v62 = vrot.slane %v3981_v48, 1  ;;  %10858 = vst [vmem:[#allocation17_spill] sm:$0xff] %v8993_v2 }
 0x271   : > { %v8987_v55 = vsel %vm4467_vm3, %v8934_v59, -inf  ;;  %v4769_v63 = vsel %vm4752_vm8, %v4533_v51, %v4768_v40  ;;  %v3987_v58 = vrot.slane %v3986_v5, 2  ;;  %v1436_v4 = vmul.f32 %v8993_v2, %v8862_v10  ;;  %2717 = vperm.xlu1 %6652, %v2561_v21   ;;  %v8999_v59 = vpop.permute.xlu0 %2632 }
 0x272   : > { %v4770_v16 = vsel %vm4754_vm9, %v4536_v26, %v4769_v63  ;;  %v3976_v56 = vmax.f32 %v3974_v25, %v3975_v45  ;;  %v3983_v33 = vmax.f32 %v3981_v48, %v3982_v62  ;;  %v4541_v12 = vsel %vm4467_vm3, %v3969_v50, -inf  ;;  %v10859_v45 = vld [vmem:[#allocation40_spill] sm:$0xff] }
 0x273   : > { %v4771_v44 = vsel %vm4756_vm10, %v4539_v13, %v4770_v16  ;;  %v3988_v11 = vmax.f32 %v3986_v5, %v3987_v58  ;;  %v1958_v10 = vmul.f32 %v9005_v3, %v8875_v8  ;;  %v1957_v1 = vmul.f32 %v9005_v3, %v8881_v14  ;;  %2712 = vperm.xlu0 %6651, %v8900_v39   ;;  %v9024_v27 = vpop.permute.xlu1 %2149  ;;  %v4840_v39 = vld [vmem:[#allocation3 + $0x1] sm:$0xff] }
 0x274   : > { %4818 = vst.msk [vmem:[#allocation3 + $0x31] sm:$0xff] %vm4467_vm3, %v4771_v44  ;;  %v4544_v7 = vsel %vm4467_vm3, %v3976_v56, -inf  ;;  %v4547_v5 = vsel %vm4467_vm3, %v3983_v33, -inf  ;;  %v2480_v8 = vmul.f32 %v9018_v42, %v8886_v54  ;;  %v1960_v14 = vmul.f32 %v9005_v3, %v8889_v36  ;;  %v4889_v16 = vld [vmem:[#allocation3 + $0x2] sm:$0xff]  ;;  %v10861_v56 = vld [vmem:[#allocation41_spill] sm:$0xff] }
 0x275   : > { %v3989_v20 = vrot.slane %v3988_v11, 1  ;;  %v4542_v25 = vmax.f32 %v8912_v24, %v4541_v12  ;;  %v4545_v46 = vmax.f32 %v8942_v22, %v4544_v7  ;;  %v4548_v32 = vmax.f32 %v8951_v31, %v4547_v5  ;;  %2458 = vperm.xlu1 %6652, %v2298_v57   ;;  %v2648_v36 = vpop.permute.xlu0 %2647  ;;  %v9082_v33 = vld [vmem:[%s10469_s1 + $0x6] ss:$0 sm:$0xff]  ;;  %v10863_v57 = vld [vmem:[#allocation45_spill] sm:$0xff]  ;;  %v10864_v5 = vld [vmem:[#allocation43_spill] sm:$0xff] }
 0x276   : > { %v1468_v29 = vadd.f32 %v1436_v4, %v8804_v52  ;;  %v1990_v48 = vadd.f32 %v1958_v10, %v8812_v6  ;;  %v9032_v51 = vadd.f32 %v1957_v1, %v8814_v60  ;;  %v2483_v54 = vmul.f32 %v9018_v42, %v8891_v37  ;;  %v9042_v52 = vld [vmem:[%s10469_s1 + $0x2] ss:$0 sm:$0xff]  ;;  %v10862_v10 = vld [vmem:[#allocation42_spill] sm:$0xff] }
 0x277   : > { %v3990_v26 = vmax.f32 %v3988_v11, %v3989_v20  ;;  %v4772_v34 = vsel %vm4744_vm4, %v4545_v46, %v4542_v25  ;;  %v2482_v24 = vmul.f32 %v9018_v42, %v8894_v53  ;;  %v1171_v6 = vmul.f32 %v9042_v52, %v8896_v18  ;;  %4856 = vrot.lane.b32.xlu0 %v4840_v39, %s6760_s25  ;;  %v2562_v60 = vld [vmem:[#allocation2 + $0x1a2] sm:$0xff]  ;;  %v2643_v50 = vpop.permute.xlu1 %2642  ;;  %v10867_v20 = vld [vmem:[#allocation51_spill] sm:$0xff] }
 0x278   : > { %v2512_v37 = vadd.f32 %v2480_v8, %v8830_v47  ;;  %v9049_v22 = vadd.f32 %v1960_v14, %v8833_v30  ;;  %v2485_v53 = vmul.f32 %v9018_v42, %v8906_v23  ;;  %v1174_v31 = vmul.f32 %v9042_v52, %v8924_v28  ;;  %v9066_v23 = vld [vmem:[%s10469_s1 + $0x4] ss:$0 sm:$0xff]  ;;  %v9109_v46 = vld [vmem:[%s10469_s1 + $0x8] ss:$0 sm:$0xff] }
 0x279   : > { %v4550_v21 = vsel %vm4467_vm3, %v3990_v26, -inf  ;;  %v4773_v18 = vsel %vm4746_vm5, %v4548_v32, %v4772_v34  ;;  %v2515_v13 = vadd.f32 %v2483_v54, %v8837_v49  ;;  %v1173_v40 = vmul.f32 %v9042_v52, %v8936_v38  ;;  %2722 = vperm.xlu1 %6652, %v2562_v60   ;;  %v1372_v63 = vpop.permute.xlu0 %1371  ;;  %v4938_v49 = vld [vmem:[#allocation3 + $0x10] sm:$0xff]  ;;  %10868 = vst [vmem:[#allocation46_spill] sm:$0xff] %v9109_v46 }
 0x27a   : > { %v4551_v47 = vmax.f32 %v8987_v55, %v4550_v21  ;;  %v2514_v30 = vadd.f32 %v2482_v24, %v8842_v19  ;;  %v1203_v62 = vadd.f32 %v1171_v6, %v10859_v45  ;;  %v1695_v28 = vmul.f32 %v9066_v23, %v8946_v35  ;;  %v10860_v55 = vld [vmem:[#allocation26_spill] sm:$0xff]  ;;  %v4841_v54 = vld [vmem:[#allocation3 + $0x11] sm:$0xff] }
 0x27b   : > { %v2517_v58 = vadd.f32 %v2485_v53, %v8849_v41  ;;  %v1176_v38 = vmul.f32 %v9042_v52, %v8954_v0  ;;  %v1698_v19 = vmul.f32 %v9066_v23, %v8958_v61  ;;  %v1697_v4 = vmul.f32 %v9066_v23, %v10860_v55  ;;  %4954 = vrot.lane.b32.xlu0 %v4938_v49, %s6761_s26  ;;  %v2658_v12 = vpop.permute.xlu1 %2657  ;;  %v5185_v44 = vld [vmem:[#allocation3 + $0x32] sm:$0xff] }
 0x27c   : > { %v1206_v35 = vadd.f32 %v1174_v31, %v10861_v56  ;;  %v2220_v41 = vmul.f32 %v9082_v33, %v8964_v15  ;;  %v1700_v0 = vmul.f32 %v9066_v23, %v8967_v9  ;;  %v2223_v61 = vmul.f32 %v9082_v33, %v8974_v43  ;;  %v4827_v11 = vld [vmem:[#allocation3 + $0x30] sm:$0xff]  ;;  %5193 = vst.msk [vmem:[#allocation5 + $0x18] sm:$0xff] %vm4467_vm3, %v5185_v44  ;;  %v4939_v44 = vld [vmem:[#allocation3 + $0x20] sm:$0xff] }
 0x27d   : > { %v1205_v1 = vadd.f32 %v1173_v40, %v10862_v10  ;;  %v1727_v7 = vadd.f32 %v1695_v28, %v10863_v57  ;;  %v1208_v8 = vadd.f32 %v1176_v38, %v10864_v5  ;;  %v2222_v14 = vmul.f32 %v9082_v33, %v8983_v17  ;;  %4835 = vst.msk [vmem:[#allocation5 + $0x30] sm:$0xff] %vm4467_vm3, %v4827_v11  ;;  %v10865_v15 = vld [vmem:[#allocation23_spill] sm:$0xff]  ;;  %v10866_v43 = vld [vmem:[#allocation48_spill] sm:$0xff]  ;;  %v1387_v32 = vpop.permute.xlu0 %1386 }
 0x27e   : > { %v9098_v9 = vadd.f32 %v1698_v19, %v10865_v15  ;;  %v9101_v39 = vadd.f32 %v1697_v4, %v10866_v43  ;;  %v9104_v25 = vadd.f32 %v2220_v41, %v10867_v20  ;;  %v2744_v17 = vmul.f32 %v9109_v46, %v8999_v59  ;;  %4905 = vrot.lane.b32.xlu1 %v4889_v16, %s10540_s16  ;;  %v10872_v41 = vld [vmem:[#allocation33_spill] sm:$0xff] }
 0x27f   : > { %v9114_v26 = vadd.f32 %v1700_v0, %v1468_v29  ;;  %v9116_v34 = vadd.f32 %v2223_v61, %v1990_v48  ;;  %v2225_v24 = vmul.f32 %v9082_v33, %v9024_v27  ;;  %v2747_v6 = vmul.f32 %v9109_v46, %v2648_v36  ;;  %4858 = vrot.lane.b32.xlu0 %v4841_v54, %s6760_s25  ;;  %v1382_v21 = vpop.permute.xlu1 %1381  ;;  %v9133_v36 = vld [vmem:[%s10470_s2] ss:$0 sm:$0xff] }
 0x280   : > { %v2776_v60 = vadd.f32 %v2744_v17, %v2512_v37  ;;  %v2746_v53 = vmul.f32 %v9109_v46, %v2643_v50  ;;  %v1435_v59 = vmul.f32 %v8993_v2, %v1372_v63  ;;  %v2749_v31 = vmul.f32 %v9109_v46, %v2658_v12  ;;  %10869 = vst [vmem:[#allocation47_spill] sm:$0xff] %v9133_v36 }
 0x281   : > { %v9126_v29 = vadd.f32 %v2222_v14, %v9032_v51  ;;  %v2779_v48 = vadd.f32 %v2747_v6, %v2515_v13  ;;  %v1438_v40 = vmul.f32 %v8993_v2, %v1387_v32  ;;  %v1437_v27 = vmul.f32 %v8993_v2, %v1382_v21  ;;  %v1880_v51 = vpop.permute.xlu0 %1879  ;;  %v4890_v13 = vld [vmem:[#allocation3 + $0x12] sm:$0xff] }
 0x282   : > { %v2815_v37 = vadd.f32 %v9133_v36, %v2776_v60  ;;  %v9137_v50 = vsel %vm4748_vm6, %v4551_v47, %v4773_v18  ;;  %v2778_v45 = vadd.f32 %v2746_v53, %v2514_v30  ;;  %v2781_v28 = vadd.f32 %v2749_v31, %v2517_v58  ;;  %5003 = vrot.lane.b32.xlu1 %v4841_v54, %s10536_s22 }
 0x283   : > { %v9141_v63 = vadd.f32 %v2225_v24, %v9049_v22  ;;  %v2818_v49 = vadd.f32 %v9133_v36, %v2779_v48  ;;  %v9144_v38 = vadd.f32 %v1435_v59, %v1203_v62  ;;  %v1959_v19 = vmul.f32 %v9005_v3, %v1880_v51  ;;  %4907 = vrot.lane.b32.xlu0 %v4890_v13, %s10540_s16  ;;  %v1397_v55 = vpop.permute.xlu1 %1396  ;;  %v4988_v59 = vld [vmem:[#allocation3 + $0x21] sm:$0xff] }
 0x284   : > { %v2847_v18 = vmax.f32 %v2815_v37, 0.0  ;;  %v2817_v47 = vadd.f32 %v9133_v36, %v2778_v45  ;;  %v2820_v30 = vadd.f32 %v9133_v36, %v2781_v28  ;;  %v9150_v58 = vadd.f32 %v1438_v40, %v1206_v35 }
 0x285   : > { %v2850_v4 = vmax.f32 %v2818_v49, 0.0  ;;  %v9152_v16 = vadd.f32 %v1437_v27, %v1205_v1  ;;  %v9154_v22 = vadd.f32 %v1959_v19, %v1727_v7  ;;  %v1440_v62 = vmul.f32 %v8993_v2, %v1397_v55  ;;  %v1895_v35 = vpop.permute.xlu0 %1894 }
 0x286   : > { %v3119_v56 = vcombine.high %v2847_v18, %v2847_v18  ;;  %v3126_v0 = vrot.slane %v2847_v18, %v10872_v41  ;;  %v9158_v61 = vmax.f32 %v2817_v47, 0.0  ;;  %v9160_v12 = vmax.f32 %v2820_v30, 0.0  ;;  %5052 = vrot.lane.b32.xlu1 %v4890_v13, %s6764_s23 }
 0x287   : > { %10870 = vst [vmem:[#allocation15_spill] sm:$0xff] %v9152_v16  ;;  %10871 = vst [vmem:[#allocation24_spill] sm:$0xff] %v9154_v22  ;;  %v3170_v11 = vcombine.high %v2850_v4, %v2850_v4  ;;  %v3177_v10 = vrot.slane %v2850_v4, %v10872_v41  ;;  %v9164_v1 = vadd.f32 %v1440_v62, %v1208_v8  ;;  %4956 = vrot.lane.b32.xlu0 %v4939_v44, %s6761_s26  ;;  %v9174_v43 = vpop.permute.xlu1 %1889 }
 0x288   : > { %v9167_v57 = vmul.f32 %v9005_v3, %v1895_v35  ;;  %v3133_v7 = vrot.slane %v3119_v56, %v10872_v41  ;;  %v3134_v5 = vcombine.high %v3126_v0, %v3126_v0  ;;  %v3935_v14 = vsel %vm3570_vm2, %v3126_v0, -inf  ;;  %v5037_v56 = vld [vmem:[#allocation3 + $0x22] sm:$0xff] }
 0x289   : > { %10873 = vst [vmem:[#allocation27_spill] sm:$0xff] %v9164_v1  ;;  %v3153_v15 = vcombine.high %v9158_v61, %v9158_v61  ;;  %v3936_v20 = vrot.slane %v3935_v14, 4  ;;  %v3184_v17 = vrot.slane %v3170_v11, %v10872_v41  ;;  %v3185_v8 = vcombine.high %v3177_v10, %v3177_v10  ;;  %v9181_v53 = vpop.permute.xlu0 %2388 }
 0x28a   : > { %v4019_v32 = vsel %vm3570_vm2, %v3177_v10, -inf  ;;  %v3135_v54 = vcombine.high %v3133_v7, %v3133_v7  ;;  %v3942_v24 = vsel %vm3570_vm2, %v3134_v5, -inf  ;;  %v3949_v6 = vsel %vm3570_vm2, %v3133_v7, -inf  ;;  %5102 = vrot.lane.b32.xlu1 %v4939_v44, %s10538_s24 }
 0x28b   : > { %v4020_v60 = vrot.slane %v4019_v32, 4  ;;  %v3937_v31 = vmax.f32 %v3935_v14, %v3936_v20  ;;  %v3943_v21 = vrot.slane %v3942_v24, 4  ;;  %v3950_v48 = vrot.slane %v3949_v6, 4  ;;  %5005 = vrot.lane.b32.xlu0 %v4988_v59, %s10536_s22  ;;  %v9187_v51 = vpop.permute.xlu1 %1904 }
 0x28c   : > { %v3186_v40 = vcombine.high %v3184_v17, %v3184_v17  ;;  %v3956_v27 = vsel %vm3570_vm2, %v3135_v54, -inf  ;;  %v4026_v45 = vsel %vm3570_vm2, %v3185_v8, -inf  ;;  %v4033_v28 = vsel %vm3570_vm2, %v3184_v17, -inf }
 0x28d   : > { %v4021_v37 = vmax.f32 %v4019_v32, %v4020_v60  ;;  %v3938_v13 = vrot.slane %v3937_v31, 2  ;;  %v3944_v49 = vmax.f32 %v3942_v24, %v3943_v21  ;;  %v3951_v19 = vmax.f32 %v3949_v6, %v3950_v48  ;;  %v9191_v62 = vpop.permute.xlu0 %2403  ;;  %v5087_v48 = vld [vmem:[#allocation3 + $0x30] sm:$0xff] }
 0x28e   : > { %v3957_v18 = vrot.slane %v3956_v27, 4  ;;  %v4027_v30 = vrot.slane %v4026_v45, 4  ;;  %v4034_v55 = vrot.slane %v4033_v28, 4  ;;  %v4040_v4 = vsel %vm3570_vm2, %v3186_v40, -inf  ;;  %5151 = vrot.lane.b32.xlu1 %v4988_v59, %s6766_s27 }
 0x28f   : > { %v4022_v47 = vrot.slane %v4021_v37, 2  ;;  %v3939_v0 = vmax.f32 %v3937_v31, %v3938_v13  ;;  %v3945_v35 = vrot.slane %v3944_v49, 2  ;;  %v3952_v44 = vrot.slane %v3951_v19, 2  ;;  %5054 = vrot.lane.b32.xlu0 %v5037_v56, %s6764_s23  ;;  %v9194_v20 = vpop.permute.xlu1 %2398 }
 0x290   : > { %v3958_v11 = vmax.f32 %v3956_v27, %v3957_v18  ;;  %v4028_v7 = vmax.f32 %v4026_v45, %v4027_v30  ;;  %v4035_v5 = vmax.f32 %v4033_v28, %v4034_v55  ;;  %v4041_v14 = vrot.slane %v4040_v4, 4 }
 0x291   : > { %v4023_v10 = vmax.f32 %v4021_v37, %v4022_v47  ;;  %v3940_v17 = vrot.slane %v3939_v0, 1  ;;  %v3946_v8 = vmax.f32 %v3944_v49, %v3945_v35  ;;  %v3953_v32 = vmax.f32 %v3951_v19, %v3952_v44  ;;  %v9197_v31 = vpop.permute.xlu0 %1127 }
 0x292   : > { %v3959_v54 = vrot.slane %v3958_v11, 2  ;;  %v4029_v6 = vrot.slane %v4028_v7, 2  ;;  %v4036_v60 = vrot.slane %v4035_v5, 2  ;;  %v4042_v21 = vmax.f32 %v4040_v4, %v4041_v14  ;;  %4860 = vrot.lane.b32.xlu1 %v4988_v59, %s6760_s25 }
 0x293   : > { %v4024_v24 = vrot.slane %v4023_v10, 1  ;;  %v3941_v40 = vmax.f32 %v3939_v0, %v3940_v17  ;;  %v3947_v27 = vrot.slane %v3946_v8, 1  ;;  %v3954_v37 = vrot.slane %v3953_v32, 1  ;;  %5104 = vrot.lane.b32.xlu0 %v5087_v48, %s10538_s24  ;;  %v9200_v18 = vpop.permute.xlu1 %2413 }
 0x294   : > { %v3960_v45 = vmax.f32 %v3958_v11, %v3959_v54  ;;  %v4030_v13 = vmax.f32 %v4028_v7, %v4029_v6  ;;  %v4037_v49 = vmax.f32 %v4035_v5, %v4036_v60  ;;  %v4043_v19 = vrot.slane %v4042_v21, 2 }
 0x295   : > { %v4025_v28 = vmax.f32 %v4023_v10, %v4024_v24  ;;  %v3948_v47 = vmax.f32 %v3946_v8, %v3947_v27  ;;  %v3955_v30 = vmax.f32 %v3953_v32, %v3954_v37  ;;  %v9203_v59 = vsel %vm4467_vm3, %v3941_v40, -inf  ;;  %v9209_v11 = vpop.permute.xlu0 %1635  ;;  %v5136_v10 = vld [vmem:[#allocation3 + $0x31] sm:$0xff] }
 0x296   : > { %v3961_v55 = vrot.slane %v3960_v45, 1  ;;  %v4031_v4 = vrot.slane %v4030_v13, 1  ;;  %v4038_v35 = vrot.slane %v4037_v49, 1  ;;  %v4044_v0 = vmax.f32 %v4042_v21, %v4043_v19  ;;  %4909 = vrot.lane.b32.xlu1 %v5037_v56, %s10540_s16 }
 0x297   : > { %v9206_v44 = vsel %vm4467_vm3, %v4025_v28, -inf  ;;  %v9212_v5 = vsel %vm4467_vm3, %v3948_v47, -inf  ;;  %v9215_v14 = vsel %vm4467_vm3, %v3955_v30, -inf  ;;  %v3160_v17 = vrot.slane %v9158_v61, %v10872_v41  ;;  %5153 = vrot.lane.b32.xlu0 %v5136_v10, %s6766_s27  ;;  %v9224_v24 = vpop.permute.xlu1 %1137 }
 0x298   : > { %v3962_v7 = vmax.f32 %v3960_v45, %v3961_v55  ;;  %v4032_v8 = vmax.f32 %v4030_v13, %v4031_v4  ;;  %v4039_v32 = vmax.f32 %v4037_v49, %v4038_v35  ;;  %v4045_v54 = vrot.slane %v4044_v0, 1 }
 0x299   : > { %v3167_v56 = vrot.slane %v3153_v15, %v10872_v41  ;;  %v3168_v60 = vcombine.high %v3160_v17, %v3160_v17  ;;  %v3991_v21 = vsel %vm3570_vm2, %v3160_v17, -inf  ;;  %v3204_v40 = vcombine.high %v9160_v12, %v9160_v12  ;;  %v9239_v15 = vpop.permute.xlu0 %1650 }
 0x29a   : > { %v9227_v6 = vsel %vm4467_vm3, %v3962_v7, -inf  ;;  %v4046_v27 = vmax.f32 %v4044_v0, %v4045_v54  ;;  %v9233_v37 = vsel %vm4467_vm3, %v4032_v8, -inf  ;;  %v9236_v45 = vsel %vm4467_vm3, %v4039_v32, -inf  ;;  %4958 = vrot.lane.b32.xlu1 %v5087_v48, %s6761_s26 }
 0x29b   : > { %v3169_v61 = vcombine.high %v3167_v56, %v3167_v56  ;;  %v3992_v28 = vrot.slane %v3991_v21, 4  ;;  %v3998_v13 = vsel %vm3570_vm2, %v3168_v60, -inf  ;;  %v4005_v49 = vsel %vm3570_vm2, %v3167_v56, -inf  ;;  %4862 = vrot.lane.b32.xlu0 %v5136_v10, %s6760_s25  ;;  %v9250_v48 = vpop.permute.xlu1 %1645  ;;  %v4892_v60 = vld [vmem:[#allocation3 + $0x32] sm:$0xff] }
 0x29c   : > { %v3211_v19 = vrot.slane %v9160_v12, %v10872_v41  ;;  %v9247_v47 = vsel %vm4467_vm3, %v4046_v27, -inf  ;;  %v3999_v30 = vrot.slane %v3998_v13, 4  ;;  %v4006_v55 = vrot.slane %v4005_v49, 4 }
 0x29d   : > { %v4012_v4 = vsel %vm3570_vm2, %v3169_v61, -inf  ;;  %v3993_v35 = vmax.f32 %v3991_v21, %v3992_v28  ;;  %v3218_v7 = vrot.slane %v3204_v40, %v10872_v41  ;;  %v9256_v54 = vadd.f32 %v9167_v57, %v9098_v9  ;;  %v9259_v56 = vpop.permute.xlu0 %2144 }
 0x29e   : > { %v4013_v0 = vrot.slane %v4012_v4, 4  ;;  %v3219_v17 = vcombine.high %v3211_v19, %v3211_v19  ;;  %v4000_v8 = vmax.f32 %v3998_v13, %v3999_v30  ;;  %v4007_v32 = vmax.f32 %v4005_v49, %v4006_v55  ;;  %5007 = vrot.lane.b32.xlu1 %v5136_v10, %s10536_s22 }
 0x29f   : > { %v4075_v12 = vsel %vm3570_vm2, %v3211_v19, -inf  ;;  %10874 = vst [vmem:[#allocation70_spill] sm:$0xff] %v9256_v54  ;;  %v3994_v27 = vrot.slane %v3993_v35, 2  ;;  %v3220_v21 = vcombine.high %v3218_v7, %v3218_v7  ;;  %4911 = vrot.lane.b32.xlu0 %v4892_v60, %s10540_s16  ;;  %v4089_v19 = vsel %vm3570_vm2, %v3218_v7, -inf  ;;  %v9264_v30 = vpop.permute.xlu1 %1660 }
 0x2a0   : > { %v4014_v61 = vmax.f32 %v4012_v4, %v4013_v0  ;;  %v4076_v28 = vrot.slane %v4075_v12, 4  ;;  %v4001_v40 = vrot.slane %v4000_v8, 2  ;;  %v4008_v13 = vrot.slane %v4007_v32, 2  ;;  %10875 = vst [vmem:[#allocation18_spill] sm:$0xff] %v9264_v30 }
 0x2a1   : > { %v4082_v49 = vsel %vm3570_vm2, %v3219_v17, -inf  ;;  %v3995_v9 = vmax.f32 %v3993_v35, %v3994_v27  ;;  %v4090_v2 = vrot.slane %v4089_v19, 4  ;;  %v4096_v4 = vsel %vm3570_vm2, %v3220_v21, -inf  ;;  %v9268_v0 = vpop.permute.xlu0 %2159 }
 0x2a2   : > { %v4015_v57 = vrot.slane %v4014_v61, 2  ;;  %v4077_v10 = vmax.f32 %v4075_v12, %v4076_v28  ;;  %v4083_v55 = vrot.slane %v4082_v49, 4  ;;  %v4002_v41 = vmax.f32 %v4000_v8, %v4001_v40  ;;  %5056 = vrot.lane.b32.xlu1 %v4892_v60, %s6764_s23  ;;  %10876 = vst [vmem:[#allocation20_spill] sm:$0xff] %v9268_v0 }
 0x2a3   : > { %v4009_v36 = vmax.f32 %v4007_v32, %v4008_v13  ;;  %v3996_v54 = vrot.slane %v3995_v9, 1  ;;  %v4091_v16 = vmax.f32 %v4089_v19, %v4090_v2  ;;  %v4097_v35 = vrot.slane %v4096_v4, 4  ;;  %v9270_v27 = vpop.permute.xlu1 %2154 }
 0x2a4   : > { %v4016_v1 = vmax.f32 %v4014_v61, %v4015_v57  ;;  %v4078_v17 = vrot.slane %v4077_v10, 2  ;;  %v4084_v46 = vmax.f32 %v4082_v49, %v4083_v55  ;;  %v4003_v7 = vrot.slane %v4002_v41, 1 }
 0x2a5   : > { %v4010_v22 = vrot.slane %v4009_v36, 1  ;;  %v3997_v12 = vmax.f32 %v3995_v9, %v3996_v54  ;;  %v4092_v13 = vrot.slane %v4091_v16, 2  ;;  %v4098_v60 = vmax.f32 %v4096_v4, %v4097_v35  ;;  %v9272_v30 = vpop.permute.xlu0 %2652 }
 0x2a6   : > { %v4017_v8 = vrot.slane %v4016_v1, 1  ;;  %v4079_v32 = vmax.f32 %v4077_v10, %v4078_v17  ;;  %v4085_v28 = vrot.slane %v4084_v46, 2  ;;  %v4004_v40 = vmax.f32 %v4002_v41, %v4003_v7 }
 0x2a7   : > { %v4011_v21 = vmax.f32 %v4009_v36, %v4010_v22  ;;  %v4553_v61 = vsel %vm4467_vm3, %v3997_v12, -inf  ;;  %v4093_v9 = vmax.f32 %v4091_v16, %v4092_v13  ;;  %v9278_v10 = vpop.permute.xlu1 %2169  ;;  %v4099_v7 = vrot.slane %v4098_v60, 2 }
 0x2a8   : > { %v4018_v0 = vmax.f32 %v4016_v1, %v4017_v8  ;;  %v4080_v49 = vrot.slane %v4079_v32, 1  ;;  %v4086_v57 = vmax.f32 %v4084_v46, %v4085_v28  ;;  %v4554_v2 = vmax.f32 %v9203_v59, %v4553_v61 }
 0x2a9   : > { %v4556_v19 = vsel %vm4467_vm3, %v4004_v40, -inf  ;;  %v4559_v54 = vsel %vm4467_vm3, %v4011_v21, -inf  ;;  %v4094_v4 = vrot.slane %v4093_v9, 1  ;;  %v9286_v17 = vpop.permute.xlu0 %2667  ;;  %v2484_v40 = vmul.f32 %v9018_v42, %v9181_v53 }
 0x2aa   : > { %v4557_v36 = vmax.f32 %v9212_v5, %v4556_v19  ;;  %v4560_v22 = vmax.f32 %v9215_v14, %v4559_v54  ;;  %v4562_v41 = vsel %vm4467_vm3, %v4018_v0, -inf  ;;  %v4081_v1 = vmax.f32 %v4079_v32, %v4080_v49 }
 0x2ab   : > { %v4563_v55 = vmax.f32 %v9227_v6, %v4562_v41  ;;  %v4775_v46 = vsel %vm4750_vm7, %v4554_v2, %v9137_v50  ;;  %v4087_v59 = vrot.slane %v4086_v57, 1  ;;  %v1961_v5 = vmul.f32 %v9005_v3, %v9174_v43  ;;  %v2663_v8 = vpop.permute.xlu1 %2662 }
 0x2ac   : > { %v4776_v16 = vsel %vm4752_vm8, %v4557_v36, %v4775_v46  ;;  %v4565_v35 = vsel %vm4467_vm3, %v4081_v1, -inf  ;;  %v4095_v12 = vmax.f32 %v4093_v9, %v4094_v4  ;;  %v4100_v32 = vmax.f32 %v4098_v60, %v4099_v7  ;;  %v10879_v4 = vld [vmem:[#allocation18_spill] sm:$0xff]  ;;  %v10881_v7 = vld [vmem:[#allocation15_spill] sm:$0xff] }
 0x2ad   : > { %v4777_v14 = vsel %vm4754_vm9, %v4560_v22, %v4776_v16  ;;  %v4088_v0 = vmax.f32 %v4086_v57, %v4087_v59  ;;  %v4566_v6 = vmax.f32 %v9206_v44, %v4565_v35  ;;  %v1993_v28 = vadd.f32 %v1961_v5, %v9101_v39  ;;  %v1392_v61 = vpop.permute.xlu0 %1391  ;;  %v10882_v5 = vld [vmem:[#allocation24_spill] sm:$0xff] }
 0x2ae   : > { %v4778_v50 = vsel %vm4756_vm10, %v4563_v55, %v4777_v14  ;;  %v4571_v43 = vsel %vm4467_vm3, %v4095_v12, -inf  ;;  %v1964_v13 = vmul.f32 %v9005_v3, %v9187_v51  ;;  %v2487_v44 = vmul.f32 %v9018_v42, %v9191_v62  ;;  %v10878_v55 = vld [vmem:[#allocation44_spill] sm:$0xff] }
 0x2af   : > { %4819 = vst.msk [vmem:[#allocation3 + $0x41] sm:$0xff] %vm4467_vm3, %v4778_v50  ;;  %v4568_v21 = vsel %vm4467_vm3, %v4088_v0, -inf  ;;  %v4101_v49 = vrot.slane %v4100_v32, 1  ;;  %v4572_v39 = vmax.f32 %v9236_v45, %v4571_v43  ;;  %v2516_v53 = vadd.f32 %v2484_v40, %v9104_v25  ;;  %v2678_v54 = vpop.permute.xlu1 %2677  ;;  %v10877_v45 = vld [vmem:[#allocation13_spill] sm:$0xff]  ;;  %v10884_v0 = vld [vmem:[#allocation27_spill] sm:$0xff] }
 0x2b0   : > { %v4569_v60 = vmax.f32 %v9233_v37, %v4568_v21  ;;  %v1996_v57 = vadd.f32 %v1964_v13, %v9114_v26  ;;  %v2519_v2 = vadd.f32 %v2487_v44, %v9116_v34  ;;  %v2486_v19 = vmul.f32 %v9018_v42, %v9194_v20 }
 0x2b1   : > { %v1175_v51 = vmul.f32 %v9042_v52, %v9197_v31  ;;  %v4102_v62 = vmax.f32 %v4100_v32, %v4101_v49  ;;  %v2489_v37 = vmul.f32 %v9018_v42, %v9200_v18  ;;  %v1699_v25 = vmul.f32 %v9066_v23, %v9209_v11  ;;  %v1900_v31 = vpop.permute.xlu0 %1899 }
 0x2b2   : > { %v4779_v9 = vsel %vm4744_vm4, %v4569_v60, %v4566_v6  ;;  %v2518_v34 = vadd.f32 %v2486_v19, %v9126_v29  ;;  %v1177_v20 = vmul.f32 %v9042_v52, %v9224_v24  ;;  %v1702_v18 = vmul.f32 %v9066_v23, %v9239_v15  ;;  %v10885_v6 = vld [vmem:[#allocation70_spill] sm:$0xff]  ;;  %v10887_v19 = vld [vmem:[#allocation47_spill] sm:$0xff] }
 0x2b3   : > { %v4780_v26 = vsel %vm4746_vm5, %v4572_v39, %v4779_v9  ;;  %v1207_v36 = vadd.f32 %v1175_v51, %v10877_v45  ;;  %v4574_v22 = vsel %vm4467_vm3, %v4102_v62, -inf  ;;  %v2521_v41 = vadd.f32 %v2489_v37, %v9141_v63  ;;  %v1402_v24 = vpop.permute.xlu1 %1401 }
 0x2b4   : > { %v1731_v1 = vadd.f32 %v1699_v25, %v9144_v38  ;;  %v4575_v11 = vmax.f32 %v9247_v47, %v4574_v22  ;;  %v1209_v46 = vadd.f32 %v1177_v20, %v10878_v55  ;;  %v1701_v29 = vmul.f32 %v9066_v23, %v9250_v48  ;;  %v10880_v38 = vld [vmem:[#allocation20_spill] sm:$0xff] }
 0x2b5   : > { %v2224_v52 = vmul.f32 %v9082_v33, %v9259_v56  ;;  %v1734_v59 = vadd.f32 %v1702_v18, %v9150_v58  ;;  %v1704_v63 = vmul.f32 %v9066_v23, %v10879_v4  ;;  %v2227_v16 = vmul.f32 %v9082_v33, %v10880_v38  ;;  %v10883_v58 = vld [vmem:[#allocation46_spill] sm:$0xff]  ;;  %v1915_v14 = vpop.permute.xlu0 %1914 }
 0x2b6   : > { %v4941_v15 = vld [vmem:[#allocation3 + $0x40] sm:$0xff]  ;;  %v2226_v47 = vmul.f32 %v9082_v33, %v9270_v27  ;;  %v1733_v35 = vadd.f32 %v1701_v29, %v10881_v7  ;;  %v2748_v56 = vmul.f32 %v10883_v58, %v9272_v30  ;;  %v2229_v32 = vmul.f32 %v9082_v33, %v9278_v10 }
 0x2b7   : > { %v2256_v48 = vadd.f32 %v2224_v52, %v10882_v5  ;;  %4960 = vrot.lane.b32.xlu0 %v4941_v15, %s6761_s26  ;;  %5106 = vrot.lane.b32.xlu1 %v4941_v15, %s10538_s24  ;;  %v5186_v23 = vld [vmem:[#allocation3 + $0x42] sm:$0xff]  ;;  %v9349_v12 = vadd.f32 %v1704_v63, %v10884_v0  ;;  %v9352_v50 = vadd.f32 %v2227_v16, %v10885_v6  ;;  %v10534_v40 = vmov 0.0|0.0   ;;  %v10886_v10 = vld [vmem:[#allocation17_spill] sm:$0xff] }
 0x2b8   : > { %v9354_v27 = vadd.f32 %v2226_v47, %v1993_v28  ;;  %6521 = vmatprep.subr.bf16.mxu0 %v10534_v40  ;;  %5194 = vst.msk [vmem:[#allocation5 + $0x28] sm:$0xff] %vm4467_vm3, %v5186_v23  ;;  %v4828_v21 = vld [vmem:[#allocation3 + $0x40] sm:$0xff]  ;;  %v2780_v30 = vadd.f32 %v2748_v56, %v2516_v53  ;;  %v2751_v43 = vmul.f32 %v10883_v58, %v9286_v17  ;;  %v1910_v28 = vpop.permute.xlu1 %1909 }
 0x2b9   : > { %v9363_v13 = vsel %vm4748_vm6, %v4575_v11, %v4780_v26  ;;  %v2750_v44 = vmul.f32 %v10883_v58, %v2663_v8  ;;  %4836 = vst.msk [vmem:[#allocation5 + $0x40] sm:$0xff] %vm4467_vm3, %v4828_v21  ;;  %v4990_v49 = vld [vmem:[#allocation3 + $0x41] sm:$0xff]  ;;  %v9367_v33 = vadd.f32 %v2229_v32, %v1996_v57  ;;  %v1439_v60 = vmul.f32 %v10886_v10, %v1392_v61  ;;  %v2409_v62 = vpop.permute.xlu0 %2408 }
 0x2ba   : > { %v2753_v39 = vmul.f32 %v10883_v58, %v2678_v54  ;;  %v1963_v53 = vmul.f32 %v9005_v3, %v1900_v31  ;;  %v2819_v51 = vadd.f32 %v10887_v19, %v2780_v30  ;;  %v2783_v17 = vadd.f32 %v2751_v43, %v2519_v2  ;;  %v5039_v31 = vld [vmem:[#allocation3 + $0x42] sm:$0xff] }
 0x2bb   : > { %5009 = vrot.lane.b32.xlu0 %v4990_v49, %s10536_s22  ;;  %5155 = vrot.lane.b32.xlu1 %v4990_v49, %s6766_s27  ;;  %v2782_v8 = vadd.f32 %v2750_v44, %v2518_v34  ;;  %v9375_v9 = vadd.f32 %v1439_v60, %v1207_v36  ;;  %v1441_v61 = vmul.f32 %v10886_v10, %v1402_v24 }
 0x2bc   : > { %v2785_v37 = vadd.f32 %v2753_v39, %v2521_v41  ;;  %v9377_v57 = vadd.f32 %v1963_v53, %v1731_v1  ;;  %v2851_v25 = vmax.f32 %v2819_v51, 0.0  ;;  %v2822_v54 = vadd.f32 %v10887_v19, %v2783_v17  ;;  %v9383_v20 = vpop.permute.xlu1 %1924  ;;  %v10888_v1 = vld [vmem:[#allocation33_spill] sm:$0xff] }
 0x2bd   : > { %v2821_v26 = vadd.f32 %v10887_v19, %v2782_v8  ;;  %v1966_v45 = vmul.f32 %v9005_v3, %v1915_v14  ;;  %v9386_v34 = vadd.f32 %v1441_v61, %v1209_v46  ;;  %v1965_v36 = vmul.f32 %v9005_v3, %v1910_v28  ;;  %v9395_v29 = vpop.permute.xlu0 %2423 }
 0x2be   : > { %v2824_v2 = vadd.f32 %v10887_v19, %v2785_v37  ;;  %v2488_v22 = vmul.f32 %v9018_v42, %v2409_v62  ;;  %v3187_v41 = vcombine.high %v2851_v25, %v2851_v25  ;;  %v3194_v18 = vrot.slane %v2851_v25, %v10888_v1 }
 0x2bf   : > { %v2854_v11 = vmax.f32 %v2822_v54, 0.0  ;;  %5058 = vrot.lane.b32.xlu0 %v5039_v31, %s6764_s23  ;;  %v9392_v55 = vmax.f32 %v2821_v26, 0.0  ;;  %4864 = vrot.lane.b32.xlu1 %v4990_v49, %s6760_s25  ;;  %v9399_v46 = vadd.f32 %v1966_v45, %v1734_v59  ;;  %v9401_v24 = vadd.f32 %v1965_v36, %v1733_v35  ;;  %v4824_v36 = vld [vmem:[#allocation3] sm:$0xff] }
 0x2c0   : > { %v9397_v52 = vmax.f32 %v2824_v2, 0.0  ;;  %v9403_v4 = vadd.f32 %v2488_v22, %v2256_v48  ;;  %v3201_v63 = vrot.slane %v3187_v41, %v10888_v1  ;;  %v3202_v38 = vcombine.high %v3194_v18, %v3194_v18  ;;  %v9407_v47 = vpop.permute.xlu1 %2418  ;;  %4832 = vst.msk [vmem:[#allocation5] sm:$0xff] %vm4467_vm3, %v4824_v36 }
 0x2c1   : > { %v4047_v16 = vsel %vm3570_vm2, %v3194_v18, -inf  ;;  %v3238_v15 = vcombine.high %v2854_v11, %v2854_v11  ;;  %v3245_v5 = vrot.slane %v2854_v11, %v10888_v1  ;;  %v3221_v58 = vcombine.high %v9392_v55, %v9392_v55 }
 0x2c2   : > { %v4048_v7 = vrot.slane %v4047_v16, 4  ;;  %v9414_v59 = vrot.slane %v9392_v55, %v10888_v1  ;;  %v3203_v35 = vcombine.high %v3201_v63, %v3201_v63  ;;  %v4054_v48 = vsel %vm3570_vm2, %v3202_v38, -inf  ;;  %v9420_v23 = vpop.permute.xlu0 %1655 }
 0x2c3   : > { %v4061_v56 = vsel %vm3570_vm2, %v3201_v63, -inf  ;;  %v3252_v14 = vrot.slane %v3238_v15, %v10888_v1  ;;  %4913 = vrot.lane.b32.xlu1 %v5039_v31, %s10540_s16  ;;  %v4055_v6 = vrot.slane %v4054_v48, 4  ;;  %v3253_v21 = vcombine.high %v3245_v5, %v3245_v5 }
 0x2c4   : > { %v4049_v0 = vmax.f32 %v4047_v16, %v4048_v7  ;;  %v4062_v32 = vrot.slane %v4061_v56, 4  ;;  %v4068_v30 = vsel %vm3570_vm2, %v3203_v35, -inf  ;;  %v4131_v44 = vsel %vm3570_vm2, %v3245_v5, -inf  ;;  %v9425_v49 = vpop.permute.xlu1 %2433 }
 0x2c5   : > { %v3254_v43 = vcombine.high %v3252_v14, %v3252_v14  ;;  %v4145_v28 = vsel %vm3570_vm2, %v3252_v14, -inf  ;;  %v4056_v60 = vmax.f32 %v4054_v48, %v4055_v6  ;;  %v4069_v53 = vrot.slane %v4068_v30, 4 }
 0x2c6   : > { %v4050_v10 = vrot.slane %v4049_v0, 2  ;;  %v4063_v39 = vmax.f32 %v4061_v56, %v4062_v32  ;;  %v4132_v19 = vrot.slane %v4131_v44, 4  ;;  %v4138_v51 = vsel %vm3570_vm2, %v3253_v21, -inf  ;;  %v9429_v62 = vpop.permute.xlu0 %2164 }
 0x2c7   : > { %v4146_v17 = vrot.slane %v4145_v28, 4  ;;  %v4152_v8 = vsel %vm3570_vm2, %v3254_v43, -inf  ;;  %v4057_v61 = vrot.slane %v4056_v60, 2  ;;  %v4070_v54 = vmax.f32 %v4068_v30, %v4069_v53 }
 0x2c8   : > { %v4051_v37 = vmax.f32 %v4049_v0, %v4050_v10  ;;  %v4064_v25 = vrot.slane %v4063_v39, 2  ;;  %v4133_v26 = vmax.f32 %v4131_v44, %v4132_v19  ;;  %v4139_v45 = vrot.slane %v4138_v51, 4  ;;  %v9431_v63 = vpop.permute.xlu1 %1665 }
 0x2c9   : > { %v4147_v31 = vmax.f32 %v4145_v28, %v4146_v17  ;;  %v4153_v2 = vrot.slane %v4152_v8, 4  ;;  %v4058_v41 = vmax.f32 %v4056_v60, %v4057_v61  ;;  %v4071_v11 = vrot.slane %v4070_v54, 2 }
 0x2ca   : > { %v4052_v22 = vrot.slane %v4051_v37, 1  ;;  %v4065_v18 = vmax.f32 %v4063_v39, %v4064_v25  ;;  %v4134_v38 = vrot.slane %v4133_v26, 2  ;;  %v4140_v16 = vmax.f32 %v4138_v51, %v4139_v45  ;;  %v9434_v5 = vpop.permute.xlu0 %2179 }
 0x2cb   : > { %v4148_v15 = vrot.slane %v4147_v31, 2  ;;  %v4154_v7 = vmax.f32 %v4152_v8, %v4153_v2  ;;  %v4059_v48 = vrot.slane %v4058_v41, 1  ;;  %v4072_v14 = vmax.f32 %v4070_v54, %v4071_v11 }
 0x2cc   : > { %v4053_v35 = vmax.f32 %v4051_v37, %v4052_v22  ;;  %v4066_v56 = vrot.slane %v4065_v18, 1  ;;  %v4135_v0 = vmax.f32 %v4133_v26, %v4134_v38  ;;  %v4141_v6 = vrot.slane %v4140_v16, 2  ;;  %v9439_v10 = vpop.permute.xlu1 %2174 }
 0x2cd   : > { %v4149_v32 = vmax.f32 %v4147_v31, %v4148_v15  ;;  %v4155_v21 = vrot.slane %v4154_v7, 2  ;;  %v4060_v30 = vmax.f32 %v4058_v41, %v4059_v48  ;;  %v4073_v44 = vrot.slane %v4072_v14, 1 }
 0x2ce   : > { %v4067_v43 = vmax.f32 %v4065_v18, %v4066_v56  ;;  %v9437_v28 = vsel %vm4467_vm3, %v4053_v35, -inf  ;;  %v4136_v60 = vrot.slane %v4135_v0, 1  ;;  %v4142_v39 = vmax.f32 %v4140_v16, %v4141_v6  ;;  %v9441_v51 = vpop.permute.xlu0 %2672 }
 0x2cf   : > { %v4150_v53 = vrot.slane %v4149_v32, 1  ;;  %v4156_v19 = vmax.f32 %v4154_v7, %v4155_v21  ;;  %v4074_v17 = vmax.f32 %v4072_v14, %v4073_v44  ;;  %v9444_v8 = vsel %vm4467_vm3, %v4060_v30, -inf }
 0x2d0   : > { %v9447_v37 = vsel %vm4467_vm3, %v4067_v43, -inf  ;;  %v3235_v61 = vrot.slane %v3221_v58, %v10888_v1  ;;  %v4137_v25 = vmax.f32 %v4135_v0, %v4136_v60  ;;  %v4143_v54 = vrot.slane %v4142_v39, 1  ;;  %v9460_v41 = vpop.permute.xlu1 %2189 }
 0x2d1   : > { %v4151_v26 = vmax.f32 %v4149_v32, %v4150_v53  ;;  %v4157_v45 = vrot.slane %v4156_v19, 1  ;;  %v9454_v31 = vsel %vm4467_vm3, %v4074_v17, -inf  ;;  %v3236_v2 = vcombine.high %v9414_v59, %v9414_v59 }
 0x2d2   : > { %v3237_v36 = vcombine.high %v3235_v61, %v3235_v61  ;;  %v4103_v22 = vsel %vm3570_vm2, %v9414_v59, -inf  ;;  %v4144_v18 = vmax.f32 %v4142_v39, %v4143_v54  ;;  %v9463_v55 = vsel %vm4467_vm3, %v4137_v25, -inf  ;;  %v9468_v38 = vpop.permute.xlu0 %2687 }
 0x2d3   : > { %v4158_v11 = vmax.f32 %v4156_v19, %v4157_v45  ;;  %v9466_v58 = vsel %vm4467_vm3, %v4151_v26, -inf  ;;  %v4104_v16 = vrot.slane %v4103_v22, 4  ;;  %v4110_v15 = vsel %vm3570_vm2, %v3236_v2, -inf }
 0x2d4   : > { %v4117_v7 = vsel %vm3570_vm2, %v3235_v61, -inf  ;;  %v4124_v35 = vsel %vm3570_vm2, %v3237_v36, -inf  ;;  %v9474_v59 = vsel %vm4467_vm3, %v4144_v18, -inf  ;;  %v4111_v56 = vrot.slane %v4110_v15, 4  ;;  %v9483_v30 = vpop.permute.xlu1 %2682 }
 0x2d5   : > { %v9477_v48 = vsel %vm4467_vm3, %v4158_v11, -inf  ;;  %v4118_v14 = vrot.slane %v4117_v7, 4  ;;  %v4105_v0 = vmax.f32 %v4103_v22, %v4104_v16  ;;  %v4125_v6 = vrot.slane %v4124_v35, 4 }
 0x2d6   : > { %v3272_v32 = vcombine.high %v9397_v52, %v9397_v52  ;;  %v3279_v21 = vrot.slane %v9397_v52, %v10888_v1  ;;  %v4112_v43 = vmax.f32 %v4110_v15, %v4111_v56  ;;  %v1968_v60 = vmul.f32 %v9005_v3, %v9383_v20  ;;  %v9489_v53 = vpop.permute.xlu0 %1919 }
 0x2d7   : > { %v4119_v44 = vmax.f32 %v4117_v7, %v4118_v14  ;;  %v2491_v39 = vmul.f32 %v9018_v42, %v9395_v29  ;;  %v4106_v19 = vrot.slane %v4105_v0, 2  ;;  %v4126_v17 = vmax.f32 %v4124_v35, %v4125_v6 }
 0x2d8   : > { %v3286_v61 = vrot.slane %v3272_v32, %v10888_v1  ;;  %v3287_v25 = vcombine.high %v3279_v21, %v3279_v21  ;;  %v4113_v54 = vrot.slane %v4112_v43, 2  ;;  %v4187_v52 = vsel %vm3570_vm2, %v3279_v21, -inf  ;;  %v9496_v22 = vpop.permute.xlu1 %2697 }
 0x2d9   : > { %v4120_v26 = vrot.slane %v4119_v44, 2  ;;  %v9494_v45 = vadd.f32 %v1968_v60, %v9349_v12  ;;  %v4107_v2 = vmax.f32 %v4105_v0, %v4106_v19  ;;  %v4127_v36 = vrot.slane %v4126_v17, 2 }
 0x2da   : > { %v3288_v3 = vcombine.high %v3286_v61, %v3286_v61  ;;  %v4188_v20 = vrot.slane %v4187_v52, 4  ;;  %v4114_v42 = vmax.f32 %v4112_v43, %v4113_v54  ;;  %v4194_v18 = vsel %vm3570_vm2, %v3287_v25, -inf  ;;  %v9500_v16 = vpop.permute.xlu0 %2428 }
 0x2db   : > { %v4121_v29 = vmax.f32 %v4119_v44, %v4120_v26  ;;  %v4201_v11 = vsel %vm3570_vm2, %v3286_v61, -inf  ;;  %v4108_v15 = vrot.slane %v4107_v2, 1  ;;  %v4128_v7 = vmax.f32 %v4126_v17, %v4127_v36 }
 0x2dc   : > { %v4189_v35 = vmax.f32 %v4187_v52, %v4188_v20  ;;  %v4195_v56 = vrot.slane %v4194_v18, 4  ;;  %v4115_v12 = vrot.slane %v4114_v42, 1  ;;  %v4202_v0 = vrot.slane %v4201_v11, 4  ;;  %v9503_v44 = vpop.permute.xlu1 %1929 }
 0x2dd   : > { %v4122_v14 = vrot.slane %v4121_v29, 1  ;;  %v4208_v6 = vsel %vm3570_vm2, %v3288_v3, -inf  ;;  %v4109_v32 = vmax.f32 %v4107_v2, %v4108_v15  ;;  %v4129_v21 = vrot.slane %v4128_v7, 1 }
 0x2de   : > { %v4190_v60 = vrot.slane %v4189_v35, 2  ;;  %v4196_v43 = vmax.f32 %v4194_v18, %v4195_v56  ;;  %v4116_v19 = vmax.f32 %v4114_v42, %v4115_v12  ;;  %v4203_v61 = vmax.f32 %v4201_v11, %v4202_v0  ;;  %v9505_v26 = vpop.permute.xlu0 %2443 }
 0x2df   : > { %v4123_v25 = vmax.f32 %v4121_v29, %v4122_v14  ;;  %v4209_v54 = vrot.slane %v4208_v6, 4  ;;  %v4130_v17 = vmax.f32 %v4128_v7, %v4129_v21  ;;  %v4577_v52 = vsel %vm4467_vm3, %v4109_v32, -inf }
 0x2e0   : > { %v4191_v36 = vmax.f32 %v4189_v35, %v4190_v60  ;;  %v4197_v20 = vrot.slane %v4196_v43, 2  ;;  %v4578_v40 = vmax.f32 %v9437_v28, %v4577_v52  ;;  %v4580_v2 = vsel %vm4467_vm3, %v4116_v19, -inf  ;;  %v9514_v56 = vpop.permute.xlu1 %2438 }
 0x2e1   : > { %v4583_v3 = vsel %vm4467_vm3, %v4123_v25, -inf  ;;  %v4204_v18 = vrot.slane %v4203_v61, 2  ;;  %v4581_v15 = vmax.f32 %v9444_v8, %v4580_v2  ;;  %v4586_v29 = vsel %vm4467_vm3, %v4130_v17, -inf }
 0x2e2   : > { %v4584_v42 = vmax.f32 %v9447_v37, %v4583_v3  ;;  %v4192_v11 = vrot.slane %v4191_v36, 1  ;;  %v4587_v7 = vmax.f32 %v9454_v31, %v4586_v29  ;;  %v4782_v35 = vsel %vm4750_vm7, %v4578_v40, %v9363_v13  ;;  %v9519_v14 = vpop.permute.xlu0 %2184  ;;  %v9527_v31 = vld [vmem:[%s10469_s1 + $0x7] ss:$0 sm:$0xff] }
 0x2e3   : > { %v4198_v28 = vmax.f32 %v4196_v43, %v4197_v20  ;;  %v4205_v12 = vmax.f32 %v4203_v61, %v4204_v18  ;;  %v4783_v0 = vsel %vm4752_vm8, %v4581_v15, %v4782_v35  ;;  %v4210_v8 = vmax.f32 %v4208_v6, %v4209_v54 }
 0x2e4   : > { %v4193_v32 = vmax.f32 %v4191_v36, %v4192_v11  ;;  %v2523_v37 = vadd.f32 %v2491_v39, %v9352_v50  ;;  %v4784_v21 = vsel %vm4754_vm9, %v4584_v42, %v4783_v0  ;;  %v2490_v40 = vmul.f32 %v9527_v31, %v9407_v47  ;;  %v6688_v50 = vld [vmem:[%s10469_s1 + $0x4] ss:$0 sm:$0xff]  ;;  %v9537_v6 = vpop.permute.xlu1 %2453 }
 0x2e5   : > { %v4199_v60 = vrot.slane %v4198_v28, 1  ;;  %v4206_v19 = vrot.slane %v4205_v12, 1  ;;  %v4785_v13 = vsel %vm4756_vm10, %v4587_v7, %v4784_v21  ;;  %v4211_v43 = vrot.slane %v4210_v8, 2 }
 0x2e6   : > { %v4589_v25 = vsel %vm4467_vm3, %v4193_v32, -inf  ;;  %v1703_v39 = vmul.f32 %v6688_v50, %v9420_v23  ;;  %4820 = vst.msk [vmem:[#allocation3 + $0x51] sm:$0xff] %vm4467_vm3, %v4785_v13  ;;  %v2522_v47 = vadd.f32 %v2490_v40, %v9354_v27  ;;  %v9542_v52 = vpop.permute.xlu0 %2692  ;;  %v2493_v2 = vmul.f32 %v9527_v31, %v9425_v49  ;;  %v9550_v23 = vld [vmem:[%s10469_s1 + $0x6] ss:$0 sm:$0xff] }
 0x2e7   : > { %v4200_v61 = vmax.f32 %v4198_v28, %v4199_v60  ;;  %v4207_v54 = vmax.f32 %v4205_v12, %v4206_v19  ;;  %v4590_v17 = vmax.f32 %v9463_v55, %v4589_v25  ;;  %v4212_v36 = vmax.f32 %v4210_v8, %v4211_v43 }
 0x2e8   : > { %v1735_v20 = vadd.f32 %v1703_v39, %v9375_v9  ;;  %v2228_v3 = vmul.f32 %v9550_v23, %v9429_v62  ;;  %v1705_v18 = vmul.f32 %v6688_v50, %v9431_v63  ;;  %v2231_v9 = vmul.f32 %v9550_v23, %v9434_v5  ;;  %v9562_v11 = vpop.permute.xlu1 %2194 }
 0x2e9   : > { %v4592_v55 = vsel %vm4467_vm3, %v4200_v61, -inf  ;;  %v4595_v27 = vsel %vm4467_vm3, %v4207_v54, -inf  ;;  %v4213_v15 = vrot.slane %v4212_v36, 1  ;;  %v2525_v29 = vadd.f32 %v2493_v2, %v9367_v33  ;;  %v9575_v33 = vld [vmem:[%s10469_s1 + $0x8] ss:$0 sm:$0xff] }
 0x2ea   : > { %v4593_v49 = vmax.f32 %v9474_v59, %v4592_v55  ;;  %v4596_v42 = vmax.f32 %v9466_v58, %v4595_v27  ;;  %v2260_v62 = vadd.f32 %v2228_v3, %v9377_v57  ;;  %v1737_v7 = vadd.f32 %v1705_v18, %v9386_v34  ;;  %v9569_v28 = vpop.permute.xlu0 %2707 }
 0x2eb   : > { %v2263_v35 = vadd.f32 %v2231_v9, %v9399_v46  ;;  %v2230_v63 = vmul.f32 %v9550_v23, %v9439_v10  ;;  %v4214_v5 = vmax.f32 %v4212_v36, %v4213_v15  ;;  %v2752_v57 = vmul.f32 %v9575_v33, %v9441_v51 }
 0x2ec   : > { %v4786_v59 = vsel %vm4744_vm4, %v4593_v49, %v4590_v17  ;;  %v2233_v34 = vmul.f32 %v9550_v23, %v9460_v41  ;;  %v2755_v58 = vmul.f32 %v9575_v33, %v9468_v38  ;;  %v2754_v12 = vmul.f32 %v9575_v33, %v9483_v30  ;;  %v6691_v41 = vld [vmem:[%s10469_s1 + $0x5] ss:$0 sm:$0xff]  ;;  %v9600_v38 = vpop.permute.xlu1 %2702 }
 0x2ed   : > { %v4787_v46 = vsel %vm4746_vm5, %v4596_v42, %v4786_v59  ;;  %v9583_v10 = vadd.f32 %v2230_v63, %v9401_v24  ;;  %v4598_v0 = vsel %vm4467_vm3, %v4214_v5, -inf  ;;  %v2784_v32 = vadd.f32 %v2752_v57, %v9403_v4  ;;  %v5089_v8 = vld [vmem:[#allocation3 + $0x50] sm:$0xff] }
 0x2ee   : > { %v9592_v51 = vadd.f32 %v2233_v34, %v9494_v45  ;;  %v1967_v24 = vmul.f32 %v6691_v41, %v9489_v53  ;;  %v9598_v21 = vld [vmem:[#allocation3 + $0x52] sm:$0xff]  ;;  %v4599_v30 = vmax.f32 %v9477_v48, %v4598_v0  ;;  %v2787_v60 = vadd.f32 %v2755_v58, %v2523_v37  ;;  %5108 = vrot.lane.b32.xlu0 %v5089_v8, %s10538_s24  ;;  %v9605_v45 = vpop.permute.xlu0 %2448  ;;  %v9612_v53 = vld [vmem:[%s10470_s2] ss:$0 sm:$0xff] }
 0x2ef   : > { %4962 = vrot.lane.b32.xlu1 %v5089_v8, %s6761_s26  ;;  %v2786_v4 = vadd.f32 %v2754_v12, %v2522_v47  ;;  %5195 = vst.msk [vmem:[#allocation5 + $0x38] sm:$0xff] %vm4467_vm3, %v9598_v21  ;;  %v4829_v19 = vld [vmem:[#allocation3 + $0x50] sm:$0xff]  ;;  %v2823_v48 = vadd.f32 %v9612_v53, %v2784_v32  ;;  %v2757_v40 = vmul.f32 %v9575_v33, %v9496_v22 }
 0x2f0   : > { %v9615_v37 = vadd.f32 %v1967_v24, %v1735_v20  ;;  %v2492_v13 = vmul.f32 %v9527_v31, %v9500_v16  ;;  %4837 = vst.msk [vmem:[#allocation5 + $0x50] sm:$0xff] %vm4467_vm3, %v4829_v19  ;;  %v2826_v43 = vadd.f32 %v9612_v53, %v2787_v60  ;;  %v9624_v25 = vsel %vm4748_vm6, %v4599_v30, %v4787_v46  ;;  %v5138_v54 = vld [vmem:[#allocation3 + $0x51] sm:$0xff]  ;;  %v9632_v16 = vpop.permute.xlu1 %2717 }
 0x2f1   : > { %v2825_v50 = vadd.f32 %v9612_v53, %v2786_v4  ;;  %v1969_v39 = vmul.f32 %v6691_v41, %v9503_v44  ;;  %v2855_v61 = vmax.f32 %v2823_v48, 0.0  ;;  %v2789_v17 = vadd.f32 %v2757_v40, %v2525_v29 }
 0x2f2   : > { %v9628_v47 = vadd.f32 %v2492_v13, %v2260_v62  ;;  %v2495_v22 = vmul.f32 %v9527_v31, %v9505_v26  ;;  %v2858_v36 = vmax.f32 %v2826_v43, 0.0  ;;  %5157 = vrot.lane.b32.xlu0 %v5138_v54, %s6766_s27  ;;  %v9642_v44 = vmul.f32 %v9527_v31, %v9514_v56  ;;  %v9644_v3 = vpop.permute.xlu0 %2712 }
 0x2f3   : > { %v9634_v20 = vmax.f32 %v2825_v50, 0.0  ;;  %5011 = vrot.lane.b32.xlu1 %v5138_v54, %s10536_s22  ;;  %v9638_v2 = vadd.f32 %v1969_v39, %v1737_v7  ;;  %v3255_v55 = vcombine.high %v2855_v61, %v2855_v61  ;;  %v3262_v26 = vrot.slane %v2855_v61, %v10888_v1 }
 0x2f4   : > { %v2828_v27 = vadd.f32 %v9612_v53, %v2789_v17  ;;  %v9648_v18 = vadd.f32 %v2495_v22, %v2263_v35  ;;  %v3306_v9 = vcombine.high %v2858_v36, %v2858_v36  ;;  %v3313_v15 = vrot.slane %v2858_v36, %v10888_v1  ;;  %v9661_v63 = vpop.permute.xlu1 %2458 }
 0x2f5   : > { %v3289_v49 = vcombine.high %v9634_v20, %v9634_v20  ;;  %v9655_v42 = vrot.slane %v9634_v20, %v10888_v1  ;;  %v3269_v56 = vrot.slane %v3255_v55, %v10888_v1  ;;  %v3270_v29 = vcombine.high %v3262_v26, %v3262_v26 }
 0x2f6   : > { %v4159_v62 = vsel %vm3570_vm2, %v3262_v26, -inf  ;;  %v9659_v7 = vmax.f32 %v2828_v27, 0.0  ;;  %v3320_v5 = vrot.slane %v3306_v9, %v10888_v1  ;;  %v3321_v59 = vcombine.high %v3313_v15, %v3313_v15  ;;  %4866 = vrot.lane.b32.xlu0 %v5138_v54, %s6760_s25  ;;  %v4857_v34 = vpop.permute.xlu0 %4856 }
 0x2f7   : > { %v4160_v35 = vrot.slane %v4159_v62, 4  ;;  %v4243_v57 = vsel %vm3570_vm2, %v3313_v15, -inf  ;;  %5060 = vrot.lane.b32.xlu1 %v9598_v21, %s6764_s23  ;;  %v3271_v46 = vcombine.high %v3269_v56, %v3269_v56  ;;  %v4166_v58 = vsel %vm3570_vm2, %v3270_v29, -inf  ;;  %4881 = vst.msk [vmem:[#allocation5] sm:$0xff] %vm4880_vm11, %v4857_v34 }
 0x2f8   : > { %v4173_v12 = vsel %vm3570_vm2, %v3269_v56, -inf  ;;  %v4244_v0 = vrot.slane %v4243_v57, 4  ;;  %v4167_v8 = vrot.slane %v4166_v58, 4  ;;  %v3322_v24 = vcombine.high %v3320_v5, %v3320_v5  ;;  %v9674_v48 = vpop.permute.xlu1 %2722 }
 0x2f9   : > { %v4161_v32 = vmax.f32 %v4159_v62, %v4160_v35  ;;  %v4174_v41 = vrot.slane %v4173_v12, 4  ;;  %v4180_v30 = vsel %vm3570_vm2, %v3271_v46, -inf  ;;  %v4250_v4 = vsel %vm3570_vm2, %v3321_v59, -inf }
 0x2fa   : > { %v4245_v60 = vmax.f32 %v4243_v57, %v4244_v0  ;;  %v4257_v19 = vsel %vm3570_vm2, %v3320_v5, -inf  ;;  %v4168_v13 = vmax.f32 %v4166_v58, %v4167_v8  ;;  %v4181_v50 = vrot.slane %v4180_v30, 4  ;;  %4915 = vrot.lane.b32.xlu0 %v9598_v21, %s10540_s16  ;;  %v9678_v39 = vpop.permute.xlu0 %4954 }
 0x2fb   : > { %v4162_v40 = vrot.slane %v4161_v32, 2  ;;  %v4175_v43 = vmax.f32 %v4173_v12, %v4174_v41  ;;  %v4251_v54 = vrot.slane %v4250_v4, 4  ;;  %v4258_v17 = vrot.slane %v4257_v19, 4 }
 0x2fc   : > { %v4246_v61 = vrot.slane %v4245_v60, 2  ;;  %v4264_v22 = vsel %vm3570_vm2, %v3322_v24, -inf  ;;  %v4169_v55 = vrot.slane %v4168_v13, 2  ;;  %v4182_v27 = vmax.f32 %v4180_v30, %v4181_v50  ;;  %v9681_v62 = vpop.permute.xlu1 %4905 }
 0x2fd   : > { %v4163_v36 = vmax.f32 %v4161_v32, %v4162_v40  ;;  %v4176_v26 = vrot.slane %v4175_v43, 2  ;;  %v4252_v15 = vmax.f32 %v4250_v4, %v4251_v54  ;;  %v4259_v56 = vmax.f32 %v4257_v19, %v4258_v17  ;;  %4930 = vst.msk [vmem:[#allocation5] sm:$0xff] %vm4929_vm12, %v9681_v62  ;;  %v5224_v62 = vld [vmem:[%s10471_s3 + $0x40] sm:$0xff] }
 0x2fe   : > { %v4247_v9 = vmax.f32 %v4245_v60, %v4246_v61  ;;  %v4265_v29 = vrot.slane %v4264_v22, 4  ;;  %v4170_v5 = vmax.f32 %v4168_v13, %v4169_v55  ;;  %v4183_v59 = vrot.slane %v4182_v27, 2  ;;  %v4859_v57 = vpop.permute.xlu0 %4858  ;;  %4979 = vst.msk [vmem:[#allocation5] sm:$0xff] %vm4978_vm13, %v9678_v39 }
 0x2ff   : > { %v4164_v35 = vrot.slane %v4163_v36, 1  ;;  %v4177_v21 = vmax.f32 %v4175_v43, %v4176_v26  ;;  %v4253_v46 = vrot.slane %v4252_v15, 2  ;;  %v4260_v58 = vrot.slane %v4259_v56, 2  ;;  %4882 = vst.msk [vmem:[#allocation5 + $0x10] sm:$0xff] %vm4880_vm11, %v4859_v57 }
 0x300   : > { %v4248_v34 = vrot.slane %v4247_v9, 1  ;;  %v4266_v12 = vmax.f32 %v4264_v22, %v4265_v29  ;;  %v4171_v32 = vrot.slane %v4170_v5, 1  ;;  %v4184_v41 = vmax.f32 %v4182_v27, %v4183_v59  ;;  %v9684_v19 = vpop.permute.xlu1 %5003 }
 0x301   : > { %v4165_v0 = vmax.f32 %v4163_v36, %v4164_v35  ;;  %v4178_v8 = vrot.slane %v4177_v21, 1  ;;  %v4254_v30 = vmax.f32 %v4252_v15, %v4253_v46  ;;  %v4261_v60 = vmax.f32 %v4259_v56, %v4260_v58  ;;  %10889 = vst [vmem:[#allocation52_spill] sm:$0xff] %v9684_v19 }
 0x302   : > { %v4249_v24 = vmax.f32 %v4247_v9, %v4248_v34  ;;  %v4267_v4 = vrot.slane %v4266_v12, 2  ;;  %v4172_v40 = vmax.f32 %v4170_v5, %v4171_v32  ;;  %v4185_v43 = vrot.slane %v4184_v41, 1  ;;  %v9689_v61 = vpop.permute.xlu0 %4907 }
 0x303   : > { %v4179_v13 = vmax.f32 %v4177_v21, %v4178_v8  ;;  %v9687_v50 = vsel %vm4467_vm3, %v4165_v0, -inf  ;;  %v4255_v54 = vrot.slane %v4254_v30, 1  ;;  %v4262_v17 = vrot.slane %v4261_v60, 1  ;;  %4931 = vst.msk [vmem:[#allocation5 + $0x10] sm:$0xff] %vm4929_vm12, %v9689_v61  ;;  %v5225_v61 = vld [vmem:[%s10471_s3 + $0x48] sm:$0xff] }
 0x304   : > { %v4268_v22 = vmax.f32 %v4266_v12, %v4267_v4  ;;  %v9692_v36 = vsel %vm4467_vm3, %v4249_v24, -inf  ;;  %v4186_v55 = vmax.f32 %v4184_v41, %v4185_v43  ;;  %v9695_v26 = vsel %vm4467_vm3, %v4172_v40, -inf  ;;  %v9706_v5 = vpop.permute.xlu1 %5052 }
 0x305   : > { %v9698_v27 = vsel %vm4467_vm3, %v4179_v13, -inf  ;;  %v3303_v9 = vrot.slane %v3289_v49, %v10888_v1  ;;  %v4256_v15 = vmax.f32 %v4254_v30, %v4255_v54  ;;  %v4263_v56 = vmax.f32 %v4261_v60, %v4262_v17  ;;  %10890 = vst [vmem:[#allocation28_spill] sm:$0xff] %v9706_v5 }
 0x306   : > { %v4269_v29 = vrot.slane %v4268_v22, 1  ;;  %v3304_v35 = vcombine.high %v9655_v42, %v9655_v42  ;;  %v9709_v21 = vsel %vm4467_vm3, %v4186_v55, -inf  ;;  %v4215_v57 = vsel %vm3570_vm2, %v9655_v42, -inf  ;;  %v9714_v46 = vpop.permute.xlu0 %4956 }
 0x307   : > { %v3305_v59 = vcombine.high %v3303_v9, %v3303_v9  ;;  %v4229_v34 = vsel %vm3570_vm2, %v3303_v9, -inf  ;;  %10891 = vst [vmem:[#allocation72_spill] sm:$0xff] %v9714_v46  ;;  %v9717_v49 = vsel %vm4467_vm3, %v4256_v15, -inf  ;;  %v9720_v58 = vsel %vm4467_vm3, %v4263_v56, -inf }
 0x308   : > { %v4270_v20 = vmax.f32 %v4268_v22, %v4269_v29  ;;  %v4216_v12 = vrot.slane %v4215_v57, 4  ;;  %v4222_v0 = vsel %vm3570_vm2, %v3304_v35, -inf  ;;  %v4230_v32 = vrot.slane %v4229_v34, 4  ;;  %v9729_v4 = vpop.permute.xlu1 %5102 }
 0x309   : > { %v4236_v8 = vsel %vm3570_vm2, %v3305_v59, -inf  ;;  %v3340_v42 = vcombine.high %v9659_v7, %v9659_v7  ;;  %v4223_v30 = vrot.slane %v4222_v0, 4  ;;  %10892 = vst [vmem:[#allocation29_spill] sm:$0xff] %v9729_v4  ;;  %v3347_v13 = vrot.slane %v9659_v7, %v10888_v1 }
 0x30a   : > { %v9727_v41 = vsel %vm4467_vm3, %v4270_v20, -inf  ;;  %v4217_v24 = vmax.f32 %v4215_v57, %v4216_v12  ;;  %v4237_v60 = vrot.slane %v4236_v8, 4  ;;  %v4231_v40 = vmax.f32 %v4229_v34, %v4230_v32  ;;  %v9738_v17 = vpop.permute.xlu0 %5005 }
 0x30b   : > { %v3354_v43 = vrot.slane %v3340_v42, %v10888_v1  ;;  %v9736_v54 = vadd.f32 %v9642_v44, %v9583_v10  ;;  %10893 = vst [vmem:[#allocation38_spill] sm:$0xff] %v9738_v17  ;;  %v4224_v55 = vmax.f32 %v4222_v0, %v4223_v30  ;;  %v2232_v15 = vmul.f32 %v9550_v23, %v9519_v14 }
 0x30c   : > { %v4218_v22 = vrot.slane %v4217_v24, 2  ;;  %v4238_v9 = vmax.f32 %v4236_v8, %v4237_v60  ;;  %v4232_v56 = vrot.slane %v4231_v40, 2  ;;  %v3355_v29 = vcombine.high %v3347_v13, %v3347_v13  ;;  %v9743_v12 = vpop.permute.xlu1 %5151 }
 0x30d   : > { %v3356_v35 = vcombine.high %v3354_v43, %v3354_v43  ;;  %v4299_v59 = vsel %vm3570_vm2, %v3347_v13, -inf  ;;  %v4225_v57 = vrot.slane %v4224_v55, 2  ;;  %10894 = vst [vmem:[#allocation25_spill] sm:$0xff] %v9743_v12  ;;  %v4313_v0 = vsel %vm3570_vm2, %v3354_v43, -inf }
 0x30e   : > { %v4219_v7 = vmax.f32 %v4217_v24, %v4218_v22  ;;  %v4239_v34 = vrot.slane %v4238_v9, 2  ;;  %v4300_v20 = vrot.slane %v4299_v59, 4  ;;  %v4233_v10 = vmax.f32 %v4231_v40, %v4232_v56  ;;  %v9748_v8 = vpop.permute.xlu0 %5054 }
 0x30f   : > { %v4306_v44 = vsel %vm3570_vm2, %v3355_v29, -inf  ;;  %v4320_v32 = vsel %vm3570_vm2, %v3356_v35, -inf  ;;  %v4226_v42 = vmax.f32 %v4224_v55, %v4225_v57  ;;  %v4314_v22 = vrot.slane %v4313_v0, 4 }
 0x310   : > { %v4220_v14 = vrot.slane %v4219_v7, 1  ;;  %v4240_v30 = vmax.f32 %v4238_v9, %v4239_v34  ;;  %v4301_v60 = vmax.f32 %v4299_v59, %v4300_v20  ;;  %v4234_v13 = vrot.slane %v4233_v10, 1  ;;  %v4861_v56 = vpop.permute.xlu1 %4860 }
 0x311   : > { %v4307_v24 = vrot.slane %v4306_v44, 4  ;;  %v4321_v4 = vrot.slane %v4320_v32, 4  ;;  %v4227_v17 = vrot.slane %v4226_v42, 1  ;;  %v4315_v43 = vmax.f32 %v4313_v0, %v4314_v22  ;;  %4883 = vst.msk [vmem:[#allocation5 + $0x20] sm:$0xff] %vm4880_vm11, %v4861_v56 }
 0x312   : > { %v4221_v5 = vmax.f32 %v4219_v7, %v4220_v14  ;;  %v4241_v12 = vrot.slane %v4240_v30, 1  ;;  %v4302_v40 = vrot.slane %v4301_v60, 2  ;;  %v4235_v29 = vmax.f32 %v4233_v10, %v4234_v13  ;;  %v9751_v35 = vpop.permute.xlu0 %5104 }
 0x313   : > { %v4308_v19 = vmax.f32 %v4306_v44, %v4307_v24  ;;  %v4322_v46 = vmax.f32 %v4320_v32, %v4321_v4  ;;  %v4228_v55 = vmax.f32 %v4226_v42, %v4227_v17  ;;  %v4316_v14 = vrot.slane %v4315_v43, 2 }
 0x314   : > { %v4242_v9 = vmax.f32 %v4240_v30, %v4241_v12  ;;  %v4601_v59 = vsel %vm4467_vm3, %v4221_v5, -inf  ;;  %v4303_v57 = vmax.f32 %v4301_v60, %v4302_v40  ;;  %v4607_v7 = vsel %vm4467_vm3, %v4235_v29, -inf  ;;  %v9759_v32 = vpop.permute.xlu1 %4909 }
 0x315   : > { %v4602_v34 = vmax.f32 %v9687_v50, %v4601_v59  ;;  %v4309_v20 = vrot.slane %v4308_v19, 2  ;;  %v4604_v10 = vsel %vm4467_vm3, %v4228_v55, -inf  ;;  %v4608_v44 = vmax.f32 %v9698_v27, %v4607_v7  ;;  %4932 = vst.msk [vmem:[#allocation5 + $0x20] sm:$0xff] %vm4929_vm12, %v9759_v32 }
 0x316   : > { %v4610_v4 = vsel %vm4467_vm3, %v4242_v9, -inf  ;;  %v4304_v0 = vrot.slane %v4303_v57, 1  ;;  %v4605_v17 = vmax.f32 %v9695_v26, %v4604_v10  ;;  %v9765_v42 = vpop.permute.xlu0 %5153  ;;  %v4317_v60 = vmax.f32 %v4315_v43, %v4316_v14 }
 0x317   : > { %v4611_v5 = vmax.f32 %v9709_v21, %v4610_v4  ;;  %v4789_v50 = vsel %vm4750_vm7, %v4602_v34, %v9624_v25  ;;  %v4310_v12 = vmax.f32 %v4308_v19, %v4309_v20  ;;  %v4323_v13 = vrot.slane %v4322_v46, 2 }
 0x318   : > { %v4305_v30 = vmax.f32 %v4303_v57, %v4304_v0  ;;  %v2264_v27 = vadd.f32 %v2232_v15, %v9615_v37  ;;  %v4790_v24 = vsel %vm4752_vm8, %v4605_v17, %v4789_v50  ;;  %v2497_v40 = vmul.f32 %v9527_v31, %v9537_v6  ;;  %v9775_v29 = vpop.permute.xlu1 %4958 }
 0x319   : > { %v4311_v22 = vrot.slane %v4310_v12, 1  ;;  %v2756_v26 = vmul.f32 %v9575_v33, %v9542_v52  ;;  %v4791_v21 = vsel %vm4754_vm9, %v4608_v44, %v4790_v24  ;;  %v4318_v25 = vrot.slane %v4317_v60, 1  ;;  %4981 = vst.msk [vmem:[#allocation5 + $0x20] sm:$0xff] %vm4978_vm13, %v9775_v29  ;;  %v10897_v29 = vld [vmem:[#allocation52_spill] sm:$0xff] }
 0x31a   : > { %v4324_v19 = vmax.f32 %v4322_v46, %v4323_v13  ;;  %v4613_v56 = vsel %vm4467_vm3, %v4305_v30, -inf  ;;  %v4792_v43 = vsel %vm4756_vm10, %v4611_v5, %v4791_v21  ;;  %v2529_v55 = vadd.f32 %v2497_v40, %v9592_v51  ;;  %v4863_v9 = vpop.permute.xlu0 %4862  ;;  %5028 = vst.msk [vmem:[#allocation5] sm:$0xff] %vm5027_vm14, %v10897_v29 }
 0x31b   : > { %v4312_v37 = vmax.f32 %v4310_v12, %v4311_v22  ;;  %v4614_v15 = vmax.f32 %v9692_v36, %v4613_v56  ;;  %4821 = vst.msk [vmem:[#allocation3 + $0x61] sm:$0xff] %vm4467_vm3, %v4792_v43  ;;  %v4319_v6 = vmax.f32 %v4317_v60, %v4318_v25  ;;  %v2788_v59 = vadd.f32 %v2756_v26, %v9628_v47 }
 0x31c   : > { %v4325_v52 = vrot.slane %v4324_v19, 1  ;;  %v2234_v46 = vmul.f32 %v9550_v23, %v9562_v11  ;;  %4884 = vst.msk [vmem:[#allocation5 + $0x30] sm:$0xff] %vm4880_vm11, %v4863_v9  ;;  %v2759_v34 = vmul.f32 %v9575_v33, %v9569_v28  ;;  %v2758_v51 = vmul.f32 %v9575_v33, %v9600_v38  ;;  %v9795_v11 = vpop.permute.xlu1 %5007 }
 0x31d   : > { %v4616_v57 = vsel %vm4467_vm3, %v4312_v37, -inf  ;;  %v2496_v36 = vmul.f32 %v9527_v31, %v9605_v45  ;;  %v4619_v47 = vsel %vm4467_vm3, %v4319_v6, -inf  ;;  %v2827_v23 = vadd.f32 %v9612_v53, %v2788_v59  ;;  %v5216_v45 = vld [vmem:[%s10471_s3] sm:$0xff]  ;;  %5030 = vst.msk [vmem:[#allocation5 + $0x20] sm:$0xff] %vm5027_vm14, %v9795_v11 }
 0x31e   : > { %v4326_v7 = vmax.f32 %v4324_v19, %v4325_v52  ;;  %v4617_v20 = vmax.f32 %v9717_v49, %v4616_v57  ;;  %v4620_v14 = vmax.f32 %v9720_v58, %v4619_v47  ;;  %v9799_v10 = vadd.f32 %v2234_v46, %v9638_v2  ;;  %v5217_v49 = vld [vmem:[%s10471_s3 + $0x8] sm:$0xff] }
 0x31f   : > { %v2791_v28 = vadd.f32 %v2759_v34, %v9648_v18  ;;  %v2790_v38 = vadd.f32 %v2758_v51, %v9736_v54  ;;  %v2859_v58 = vmax.f32 %v2827_v23, 0.0  ;;  %v9811_v0 = vadd.f32 %v2496_v36, %v2264_v27 }
 0x320   : > { %v4622_v44 = vsel %vm4467_vm3, %v4326_v7, -inf  ;;  %v4793_v4 = vsel %vm4744_vm4, %v4617_v20, %v4614_v15  ;;  %v2761_v12 = vmul.f32 %v9575_v33, %v9632_v16  ;;  %v6522_v30 = vpack.c.bf16 %v5217_v49, %v5216_v45  ;;  %v9827_v22 = vpop.permute.xlu1 %5056 }
 0x321   : > { %v4623_v2 = vmax.f32 %v9727_v41, %v4622_v44  ;;  %v4794_v18 = vsel %vm4746_vm5, %v4620_v14, %v4793_v4  ;;  %v2830_v54 = vadd.f32 %v9612_v53, %v2791_v28  ;;  %v2829_v17 = vadd.f32 %v9612_v53, %v2790_v38  ;;  %5079 = vst.msk [vmem:[#allocation5 + $0x20] sm:$0xff] %vm5076_vm15, %v9827_v22 }
 0x322   : > { %v3323_v5 = vcombine.high %v2859_v58, %v2859_v58  ;;  %v3330_v50 = vrot.slane %v2859_v58, %v10888_v1  ;;  %v5090_v41 = vld [vmem:[#allocation3 + $0x60] sm:$0xff]  ;;  %v9831_v25 = vadd.f32 %v2761_v12, %v2529_v55  ;;  %6523 = vmatpush1.bf16.msra.mxu0 %v6522_v30  ;;  %v10895_v43 = vmov 0.0|0.0  }
 0x323   : > { %v2862_v60 = vmax.f32 %v2830_v54, 0.0  ;;  %v9821_v13 = vsel %vm4748_vm6, %v4623_v2, %v4794_v18  ;;  %v9823_v27 = vmax.f32 %v2829_v17, 0.0  ;;  %v9825_v24 = vld [vmem:[#allocation3 + $0x62] sm:$0xff]  ;;  %5110 = vrot.lane.b32.xlu1 %v5090_v41, %s10538_s24  ;;  %4838 = vst.msk [vmem:[#allocation5 + $0x60] sm:$0xff] %vm4467_vm3, %v5090_v41  ;;  %6524 = vmatprep.subr.bf16.mxu0 %v10895_v43 }
 0x324   : > { %v3337_v40 = vrot.slane %v3323_v5, %v10888_v1  ;;  %v3338_v26 = vcombine.high %v3330_v50, %v3330_v50  ;;  %v4271_v21 = vsel %vm3570_vm2, %v3330_v50, -inf  ;;  %5196 = vst.msk [vmem:[#allocation5 + $0x48] sm:$0xff] %vm4467_vm3, %v9825_v24  ;;  %4964 = vrot.lane.b32.xlu0 %v5090_v41, %s6761_s26  ;;  %v5139_v57 = vld [vmem:[#allocation3 + $0x61] sm:$0xff] }
 0x325   : > { %v4272_v16 = vrot.slane %v4271_v21, 4  ;;  %v3374_v19 = vcombine.high %v2862_v60, %v2862_v60  ;;  %v3381_v56 = vrot.slane %v2862_v60, %v10888_v1  ;;  %v3357_v9 = vcombine.high %v9823_v27, %v9823_v27 }
 0x326   : > { %v3339_v37 = vcombine.high %v3337_v40, %v3337_v40  ;;  %v4278_v15 = vsel %vm3570_vm2, %v3338_v26, -inf  ;;  %v4285_v55 = vsel %vm3570_vm2, %v3337_v40, -inf  ;;  %v3364_v7 = vrot.slane %v9823_v27, %v10888_v1 }
 0x327   : > { %v4273_v6 = vmax.f32 %v4271_v21, %v4272_v16  ;;  %v4279_v52 = vrot.slane %v4278_v15, 4  ;;  %v4286_v59 = vrot.slane %v4285_v55, 4  ;;  %v3388_v46 = vrot.slane %v3374_v19, %v10888_v1  ;;  %5159 = vrot.lane.b32.xlu1 %v5139_v57, %s6766_s27 }
 0x328   : > { %v4292_v34 = vsel %vm3570_vm2, %v3339_v37, -inf  ;;  %v3389_v51 = vcombine.high %v3381_v56, %v3381_v56  ;;  %v4355_v36 = vsel %vm3570_vm2, %v3381_v56, -inf  ;;  %5013 = vrot.lane.b32.xlu0 %v5139_v57, %s10536_s22 }
 0x329   : > { %v4274_v20 = vrot.slane %v4273_v6, 2  ;;  %v4280_v47 = vmax.f32 %v4278_v15, %v4279_v52  ;;  %v4287_v23 = vmax.f32 %v4285_v55, %v4286_v59  ;;  %v4293_v14 = vrot.slane %v4292_v34, 4  ;;  %v9851_v28 = vpop.permute.xlu1 %5106 }
 0x32a   : > { %v3390_v38 = vcombine.high %v3388_v46, %v3388_v46  ;;  %v4356_v45 = vrot.slane %v4355_v36, 4  ;;  %v4362_v49 = vsel %vm3570_vm2, %v3389_v51, -inf  ;;  %v4369_v44 = vsel %vm3570_vm2, %v3388_v46, -inf  ;;  %5129 = vst.msk [vmem:[#allocation5 + $0x20] sm:$0xff] %vm5126_vm0, %v9851_v28 }
 0x32b   : > { %v4275_v4 = vmax.f32 %v4273_v6, %v4274_v20  ;;  %v4281_v58 = vrot.slane %v4280_v47, 2  ;;  %v4288_v2 = vrot.slane %v4287_v23, 2  ;;  %v4294_v18 = vmax.f32 %v4292_v34, %v4293_v14  ;;  %4868 = vrot.lane.b32.xlu1 %v5139_v57, %s6760_s25 }
 0x32c   : > { %v4357_v54 = vmax.f32 %v4355_v36, %v4356_v45  ;;  %v4363_v17 = vrot.slane %v4362_v49, 4  ;;  %v4370_v5 = vrot.slane %v4369_v44, 4  ;;  %v4376_v50 = vsel %vm3570_vm2, %v3390_v38, -inf  ;;  %5062 = vrot.lane.b32.xlu0 %v9825_v24, %s6764_s23 }
 0x32d   : > { %v4276_v12 = vrot.slane %v4275_v4, 1  ;;  %v4282_v30 = vmax.f32 %v4280_v47, %v4281_v58  ;;  %v4289_v60 = vmax.f32 %v4287_v23, %v4288_v2  ;;  %v4295_v27 = vrot.slane %v4294_v18, 2  ;;  %v9859_v41 = vpop.permute.xlu1 %5155 }
 0x32e   : > { %v4358_v40 = vrot.slane %v4357_v54, 2  ;;  %v4364_v26 = vmax.f32 %v4362_v49, %v4363_v17  ;;  %v4371_v21 = vmax.f32 %v4369_v44, %v4370_v5  ;;  %v4377_v16 = vrot.slane %v4376_v50, 4  ;;  %5178 = vst.msk [vmem:[#allocation5 + $0x20] sm:$0xff] %vm5175_vm1, %v9859_v41 }
 0x32f   : > { %v4283_v19 = vrot.slane %v4282_v30, 1  ;;  %v4290_v56 = vrot.slane %v4289_v60, 1  ;;  %v4296_v37 = vmax.f32 %v4294_v18, %v4295_v27  ;;  %v3371_v15 = vrot.slane %v3357_v9, %v10888_v1  ;;  %4917 = vrot.lane.b32.xlu1 %v9825_v24, %s10540_s16 }
 0x330   : > { %v4359_v55 = vmax.f32 %v4357_v54, %v4358_v40  ;;  %v4365_v6 = vrot.slane %v4364_v26, 2  ;;  %v4372_v52 = vrot.slane %v4371_v21, 2  ;;  %v4378_v59 = vmax.f32 %v4376_v50, %v4377_v16 }
 0x331   : > { %v4277_v46 = vmax.f32 %v4275_v4, %v4276_v12  ;;  %v4284_v57 = vmax.f32 %v4282_v30, %v4283_v19  ;;  %v4291_v34 = vmax.f32 %v4289_v60, %v4290_v56  ;;  %v4297_v51 = vrot.slane %v4296_v37, 1  ;;  %v4865_v36 = vpop.permute.xlu1 %4864 }
 0x332   : > { %v4360_v20 = vrot.slane %v4359_v55, 1  ;;  %v4366_v47 = vmax.f32 %v4364_v26, %v4365_v6  ;;  %v4373_v23 = vmax.f32 %v4371_v21, %v4372_v52  ;;  %v4379_v14 = vrot.slane %v4378_v59, 2  ;;  %4885 = vst.msk [vmem:[#allocation5 + $0x40] sm:$0xff] %vm4880_vm11, %v4865_v36 }
 0x333   : > { %v4298_v38 = vmax.f32 %v4296_v37, %v4297_v51  ;;  %v3372_v9 = vcombine.high %v3364_v7, %v3364_v7  ;;  %v2760_v58 = vmul.f32 %v9575_v33, %v9644_v3  ;;  %v9868_v24 = vsel %vm4467_vm3, %v4277_v46, -inf  ;;  %v5218_v37 = vld [vmem:[%s10471_s3 + $0x10] sm:$0xff] }
 0x334   : > { %v4367_v45 = vrot.slane %v4366_v47, 1  ;;  %v4374_v49 = vrot.slane %v4373_v23, 1  ;;  %v4380_v44 = vmax.f32 %v4378_v59, %v4379_v14  ;;  %v3373_v4 = vcombine.high %v3371_v15, %v3371_v15 }
 0x335   : > { %v4327_v2 = vsel %vm3570_vm2, %v3364_v7, -inf  ;;  %v4334_v18 = vsel %vm3570_vm2, %v3372_v9, -inf  ;;  %v9873_v54 = vsel %vm4467_vm3, %v4284_v57, -inf  ;;  %v9876_v17 = vsel %vm4467_vm3, %v4291_v34, -inf }
 0x336   : > { %v9879_v5 = vsel %vm4467_vm3, %v4298_v38, -inf  ;;  %v4361_v50 = vmax.f32 %v4359_v55, %v4360_v20  ;;  %v4328_v12 = vrot.slane %v4327_v2, 4  ;;  %v4335_v3 = vrot.slane %v4334_v18, 4 }
 0x337   : > { %v4341_v30 = vsel %vm3570_vm2, %v3371_v15, -inf  ;;  %v4348_v60 = vsel %vm3570_vm2, %v3373_v4, -inf  ;;  %v9883_v27 = vmax.f32 %v4366_v47, %v4367_v45  ;;  %v9885_v7 = vmax.f32 %v4373_v23, %v4374_v49  ;;  %v5219_v15 = vld [vmem:[%s10471_s3 + $0x18] sm:$0xff] }
 0x338   : > { %v4381_v40 = vrot.slane %v4380_v44, 1  ;;  %v4342_v26 = vrot.slane %v4341_v30, 4  ;;  %v4329_v21 = vmax.f32 %v4327_v2, %v4328_v12  ;;  %v4336_v16 = vmax.f32 %v4334_v18, %v4335_v3 }
 0x339   : > { %v4349_v19 = vrot.slane %v4348_v60, 4  ;;  %v2832_v56 = vadd.f32 %v9612_v53, %v9831_v25  ;;  %v9896_v55 = vsel %vm4467_vm3, %v4361_v50, -inf  ;;  %v2792_v52 = vadd.f32 %v2760_v58, %v9811_v0 }
 0x33a   : > { %v4343_v6 = vmax.f32 %v4341_v30, %v4342_v26  ;;  %v2498_v59 = vmul.f32 %v9527_v31, %v9661_v63  ;;  %v4330_v46 = vrot.slane %v4329_v21, 2  ;;  %v4337_v57 = vrot.slane %v4336_v16, 2 }
 0x33b   : > { %v4350_v25 = vmax.f32 %v4348_v60, %v4349_v19  ;;  %v2864_v34 = vmax.f32 %v2832_v56, 0.0  ;;  %v2831_v36 = vadd.f32 %v9612_v53, %v2792_v52  ;;  %v6525_v47 = vpack.c.bf16 %v5219_v15, %v5218_v37 }
 0x33c   : > { %v4344_v51 = vrot.slane %v4343_v6, 2  ;;  %v9903_v20 = vadd.f32 %v2498_v59, %v9799_v10  ;;  %v4331_v23 = vmax.f32 %v4329_v21, %v4330_v46  ;;  %v4338_v14 = vmax.f32 %v4336_v16, %v4337_v57 }
 0x33d   : > { %v4351_v38 = vrot.slane %v4350_v25, 2  ;;  %v3408_v9 = vcombine.high %v2864_v34, %v2864_v34  ;;  %v9905_v45 = vmax.f32 %v4380_v44, %v4381_v40  ;;  %v3415_v31 = vrot.slane %v2864_v34, %v10888_v1  ;;  %6526 = vmatpush1.bf16.msra.mxu0 %v6525_v47 }
 0x33e   : > { %v4345_v0 = vmax.f32 %v4343_v6, %v4344_v51  ;;  %v2863_v63 = vmax.f32 %v2831_v36, 0.0  ;;  %v4332_v49 = vrot.slane %v4331_v23, 1  ;;  %v4339_v58 = vrot.slane %v4338_v14, 1  ;;  %6527 = vmatprep.subr.bf16.mxu0 %v10895_v43 }
 0x33f   : > { %v4352_v4 = vmax.f32 %v4350_v25, %v4351_v38  ;;  %v3422_v2 = vrot.slane %v3408_v9, %v10888_v1  ;;  %v3423_v18 = vcombine.high %v3415_v31, %v3415_v31  ;;  %v4411_v50 = vsel %vm3570_vm2, %v3415_v31, -inf }
 0x340   : > { %v4346_v10 = vrot.slane %v4345_v0, 1  ;;  %v3391_v12 = vcombine.high %v2863_v63, %v2863_v63  ;;  %v4333_v3 = vmax.f32 %v4331_v23, %v4332_v49  ;;  %v4340_v44 = vmax.f32 %v4338_v14, %v4339_v58  ;;  %v9928_v58 = vpop.permute.xlu0 %4911 }
 0x341   : > { %v4353_v30 = vrot.slane %v4352_v4, 1  ;;  %v3424_v60 = vcombine.high %v3422_v2, %v3422_v2  ;;  %v4412_v26 = vrot.slane %v4411_v50, 4  ;;  %v4418_v21 = vsel %vm3570_vm2, %v3423_v18, -inf  ;;  %4933 = vst.msk [vmem:[#allocation5 + $0x30] sm:$0xff] %vm4929_vm12, %v9928_v58  ;;  %v10896_v58 = vld [vmem:[#allocation72_spill] sm:$0xff] }
 0x342   : > { %v4347_v40 = vmax.f32 %v4345_v0, %v4346_v10  ;;  %v4425_v16 = vsel %vm3570_vm2, %v3422_v2, -inf  ;;  %v4625_v56 = vsel %vm4467_vm3, %v4333_v3, -inf  ;;  %v4628_v37 = vsel %vm4467_vm3, %v4340_v44, -inf  ;;  %4980 = vst.msk [vmem:[#allocation5 + $0x10] sm:$0xff] %vm4978_vm13, %v10896_v58 }
 0x343   : > { %v4354_v19 = vmax.f32 %v4352_v4, %v4353_v30  ;;  %v4419_v15 = vrot.slane %v4418_v21, 4  ;;  %v4626_v6 = vmax.f32 %v9868_v24, %v4625_v56  ;;  %v4629_v52 = vmax.f32 %v9873_v54, %v4628_v37 }
 0x344   : > { %v4631_v59 = vsel %vm4467_vm3, %v4347_v40, -inf  ;;  %v4413_v46 = vmax.f32 %v4411_v50, %v4412_v26  ;;  %v4426_v51 = vrot.slane %v4425_v16, 4  ;;  %v4432_v14 = vsel %vm3570_vm2, %v3424_v60, -inf }
 0x345   : > { %v4632_v57 = vmax.f32 %v9876_v17, %v4631_v59  ;;  %v4634_v25 = vsel %vm4467_vm3, %v4354_v19, -inf  ;;  %v4420_v34 = vmax.f32 %v4418_v21, %v4419_v15  ;;  %v4796_v47 = vsel %vm4750_vm7, %v4626_v6, %v9821_v13 }
 0x346   : > { %v4635_v36 = vmax.f32 %v9879_v5, %v4634_v25  ;;  %v4414_v23 = vrot.slane %v4413_v46, 2  ;;  %v4797_v24 = vsel %vm4752_vm8, %v4629_v52, %v4796_v47  ;;  %v4427_v38 = vmax.f32 %v4425_v16, %v4426_v51 }
 0x347   : > { %v4421_v54 = vrot.slane %v4420_v34, 2  ;;  %v4433_v9 = vrot.slane %v4432_v14, 4  ;;  %v4798_v0 = vsel %vm4754_vm9, %v4632_v57, %v4797_v24  ;;  %v3398_v31 = vrot.slane %v2863_v63, %v10888_v1 }
 0x348   : > { %v4415_v17 = vmax.f32 %v4413_v46, %v4414_v23  ;;  %v3405_v49 = vrot.slane %v3391_v12, %v10888_v1  ;;  %v4799_v5 = vsel %vm4756_vm10, %v4635_v36, %v4798_v0  ;;  %v4428_v4 = vrot.slane %v4427_v38, 2  ;;  %v9941_v46 = vpop.permute.xlu0 %4960  ;;  %v5220_v0 = vld [vmem:[%s10471_s3 + $0x20] sm:$0xff] }
 0x349   : > { %v4422_v13 = vmax.f32 %v4420_v34, %v4421_v54  ;;  %v4434_v2 = vmax.f32 %v4432_v14, %v4433_v9  ;;  %4822 = vst.msk [vmem:[#allocation3 + $0x71] sm:$0xff] %vm4467_vm3, %v4799_v5  ;;  %v3406_v18 = vcombine.high %v3398_v31, %v3398_v31  ;;  %v4383_v3 = vsel %vm3570_vm2, %v3398_v31, -inf }
 0x34a   : > { %v4416_v10 = vrot.slane %v4415_v17, 1  ;;  %v3407_v50 = vcombine.high %v3405_v49, %v3405_v49  ;;  %v4429_v30 = vmax.f32 %v4427_v38, %v4428_v4  ;;  %v2762_v63 = vmul.f32 %v9575_v33, %v9674_v48  ;;  %4982 = vst.msk [vmem:[#allocation5 + $0x30] sm:$0xff] %vm4978_vm13, %v9941_v46  ;;  %v10898_v46 = vld [vmem:[#allocation38_spill] sm:$0xff] }
 0x34b   : > { %v4423_v44 = vrot.slane %v4422_v13, 1  ;;  %v4435_v60 = vrot.slane %v4434_v2, 2  ;;  %v4384_v40 = vrot.slane %v4383_v3, 4  ;;  %v4390_v26 = vsel %vm3570_vm2, %v3406_v18, -inf  ;;  %5029 = vst.msk [vmem:[#allocation5 + $0x10] sm:$0xff] %vm5027_vm14, %v10898_v46 }
 0x34c   : > { %v4417_v12 = vmax.f32 %v4415_v17, %v4416_v10  ;;  %v4397_v21 = vsel %vm3570_vm2, %v3405_v49, -inf  ;;  %v4430_v19 = vrot.slane %v4429_v30, 1  ;;  %v4404_v37 = vsel %vm3570_vm2, %v3407_v50, -inf  ;;  %v4914_v10 = vpop.permute.xlu1 %4913  ;;  %5078 = vst.msk [vmem:[#allocation5 + $0x10] sm:$0xff] %vm5076_vm15, %v9748_v8 }
 0x34d   : > { %v4424_v16 = vmax.f32 %v4422_v13, %v4423_v44  ;;  %v4436_v56 = vmax.f32 %v4434_v2, %v4435_v60  ;;  %v4639_v15 = vsel %vm4467_vm3, %v9883_v27, -inf  ;;  %v4391_v52 = vrot.slane %v4390_v26, 4  ;;  %v5010_v2 = vpop.permute.xlu0 %5009  ;;  %4934 = vst.msk [vmem:[#allocation5 + $0x40] sm:$0xff] %vm4929_vm12, %v4914_v10 }
 0x34e   : > { %v4637_v6 = vsel %vm4467_vm3, %v4417_v12, -inf  ;;  %v4398_v59 = vrot.slane %v4397_v21, 4  ;;  %v4431_v33 = vmax.f32 %v4429_v30, %v4430_v19  ;;  %v4642_v34 = vsel %vm4467_vm3, %v9885_v7, -inf  ;;  %v5221_v7 = vld [vmem:[%s10471_s3 + $0x28] sm:$0xff]  ;;  %5031 = vst.msk [vmem:[#allocation5 + $0x30] sm:$0xff] %vm5027_vm14, %v5010_v2 }
 0x34f   : > { %v4437_v48 = vrot.slane %v4436_v56, 1  ;;  %v4638_v57 = vmax.f32 %v9896_v55, %v4637_v6  ;;  %v4640_v25 = vsel %vm4467_vm3, %v4424_v16, -inf  ;;  %v4405_v36 = vrot.slane %v4404_v37, 4  ;;  %5128 = vst.msk [vmem:[#allocation5 + $0x10] sm:$0xff] %vm5126_vm0, %v9751_v35 }
 0x350   : > { %v4641_v51 = vmax.f32 %v4639_v15, %v4640_v25  ;;  %v4643_v27 = vsel %vm4467_vm3, %v4431_v33, -inf  ;;  %v4385_v23 = vmax.f32 %v4383_v3, %v4384_v40  ;;  %v2794_v14 = vadd.f32 %v2762_v63, %v9903_v20  ;;  %v5091_v24 = vld [vmem:[#allocation3 + $0x70] sm:$0xff]  ;;  %v5222_v3 = vld [vmem:[%s10471_s3 + $0x30] sm:$0xff]  ;;  %5177 = vst.msk [vmem:[#allocation5 + $0x10] sm:$0xff] %vm5175_vm1, %v9765_v42 }
 0x351   : > { %v4438_v47 = vmax.f32 %v4436_v56, %v4437_v48  ;;  %v9949_v54 = vld [vmem:[#allocation3 + $0x72] sm:$0xff]  ;;  %v4644_v38 = vmax.f32 %v4642_v34, %v4643_v27  ;;  %v4392_v55 = vmax.f32 %v4390_v26, %v4391_v52  ;;  %5112 = vrot.lane.b32.xlu0 %v5091_v24, %s10538_s24  ;;  %4966 = vrot.lane.b32.xlu1 %v5091_v24, %s6761_s26  ;;  %v4645_v20 = vsel %vm4467_vm3, %v9905_v45, -inf  ;;  %v5223_v45 = vld [vmem:[%s10471_s3 + $0x38] sm:$0xff]  ;;  %v5059_v39 = vpop.permute.xlu0 %5058  ;;  %v5226_v25 = vld [vmem:[%s10471_s3 + $0x50] sm:$0xff] }
 0x352   : > { %v4800_v9 = vsel %vm4744_vm4, %v4641_v51, %v4638_v57  ;;  %5197 = vst.msk [vmem:[#allocation5 + $0x58] sm:$0xff] %vm4467_vm3, %v9949_v54  ;;  %4839 = vst.msk [vmem:[#allocation5 + $0x70] sm:$0xff] %vm4467_vm3, %v5091_v24  ;;  %v4399_v31 = vmax.f32 %v4397_v21, %v4398_v59  ;;  %v2833_v49 = vadd.f32 %v9612_v53, %v2794_v14  ;;  %v5140_v44 = vld [vmem:[#allocation3 + $0x71] sm:$0xff]  ;;  %v4386_v30 = vrot.slane %v4385_v23, 2  ;;  %v5227_v34 = vld [vmem:[%s10471_s3 + $0x58] sm:$0xff] }
 0x353   : > { %v4646_v17 = vsel %vm4467_vm3, %v4438_v47, -inf  ;;  %v4801_v13 = vsel %vm4746_vm5, %v4644_v38, %v4800_v9  ;;  %v4406_v4 = vmax.f32 %v4404_v37, %v4405_v36  ;;  %v6528_v50 = vpack.c.bf16 %v5221_v7, %v5220_v0  ;;  %v10899_v27 = vld [vmem:[#allocation28_spill] sm:$0xff]  ;;  %5080 = vst.msk [vmem:[#allocation5 + $0x30] sm:$0xff] %vm5076_vm15, %v5059_v39  ;;  %v10900_v0 = vld [vmem:[#allocation29_spill] sm:$0xff] }
 0x354   : > { %v4647_v5 = vmax.f32 %v4645_v20, %v4646_v17  ;;  %v2865_v18 = vmax.f32 %v2833_v49, 0.0  ;;  %v4393_v60 = vrot.slane %v4392_v55, 2  ;;  %v4400_v63 = vrot.slane %v4399_v31, 2  ;;  %5077 = vst.msk [vmem:[#allocation5] sm:$0xff] %vm5076_vm15, %v10899_v27  ;;  %v5229_v20 = vld [vmem:[%s10471_s3 + $0x68] sm:$0xff] }
 0x355   : > { %5161 = vrot.lane.b32.xlu0 %v5140_v44, %s6766_s27  ;;  %5015 = vrot.lane.b32.xlu1 %v5140_v44, %s10536_s22  ;;  %v4407_v26 = vrot.slane %v4406_v4, 2  ;;  %v6531_v21 = vpack.c.bf16 %v5223_v45, %v5222_v3  ;;  %v4387_v19 = vmax.f32 %v4385_v23, %v4386_v30  ;;  %v6534_v59 = vpack.c.bf16 %v5225_v61, %v5224_v62  ;;  %v10901_v17 = vld [vmem:[#allocation25_spill] sm:$0xff]  ;;  %v5231_v30 = vld [vmem:[%s10471_s3 + $0x78] sm:$0xff] }
 0x356   : > { %v9975_v53 = vsel %vm4748_vm6, %v4647_v5, %v4801_v13  ;;  %v3425_v12 = vcombine.high %v2865_v18, %v2865_v18  ;;  %v3432_v40 = vrot.slane %v2865_v18, %v10888_v1  ;;  %6529 = vmatpush1.bf16.msra.mxu0 %v6528_v50  ;;  %v10005_v56 = vmax.f32 %v4392_v55, %v4393_v60 }
 0x357   : > { %6530 = vmatprep.subr.bf16.mxu0 %v10895_v43  ;;  %v4401_v15 = vmax.f32 %v4399_v31, %v4400_v63  ;;  %v4408_v33 = vmax.f32 %v4406_v4, %v4407_v26  ;;  %v4388_v23 = vrot.slane %v4387_v19, 1  ;;  %v6537_v55 = vpack.c.bf16 %v5227_v34, %v5226_v25  ;;  %5127 = vst.msk [vmem:[#allocation5] sm:$0xff] %vm5126_vm0, %v10900_v0 }
 0x358   : > { %v3439_v32 = vrot.slane %v3425_v12, %v10888_v1  ;;  %v3440_v16 = vcombine.high %v3432_v40, %v3432_v40  ;;  %v4439_v37 = vsel %vm3570_vm2, %v3432_v40, -inf  ;;  %v4395_v8 = vrot.slane %v10005_v56, 1  ;;  %5176 = vst.msk [vmem:[#allocation5] sm:$0xff] %vm5175_vm1, %v10901_v17  ;;  %v5093_v17 = vld [vmem:[#allocation3 + $0x90] sm:$0xff] }
 0x359   : > { %5064 = vrot.lane.b32.xlu1 %v9949_v54, %s6764_s23  ;;  %4870 = vrot.lane.b32.xlu0 %v5140_v44, %s6760_s25  ;;  %v4440_v52 = vrot.slane %v4439_v37, 4  ;;  %v4402_v22 = vrot.slane %v4401_v15, 1  ;;  %v4409_v35 = vrot.slane %v4408_v33, 1  ;;  %v4389_v4 = vmax.f32 %v4387_v19, %v4388_v23  ;;  %v5230_v44 = vld [vmem:[%s10471_s3 + $0x70] sm:$0xff] }
 0x35a   : > { %v3441_v6 = vcombine.high %v3439_v32, %v3439_v32  ;;  %6532 = vmatpush1.bf16.msra.mxu0 %v6531_v21  ;;  %v4446_v48 = vsel %vm3570_vm2, %v3440_v16, -inf  ;;  %v4453_v57 = vsel %vm3570_vm2, %v3439_v32, -inf  ;;  %v4396_v3 = vmax.f32 %v10005_v56, %v4395_v8  ;;  %v5204_v8 = vld [vmem:[#allocation5 + $0x20] sm:$0xff] }
 0x35b   : > { %6533 = vmatprep.subr.bf16.mxu0 %v10895_v43  ;;  %v4441_v51 = vmax.f32 %v4439_v37, %v4440_v52  ;;  %v4447_v11 = vrot.slane %v4446_v48, 4  ;;  %v4454_v36 = vrot.slane %v4453_v57, 4  ;;  %v4403_v41 = vmax.f32 %v4401_v15, %v4402_v22  ;;  %v5232_v15 = vld [vmem:[%s10471_s3 + $0x80] sm:$0xff] }
 0x35c   : > { %v4460_v47 = vsel %vm3570_vm2, %v3441_v6, -inf  ;;  %v4410_v60 = vmax.f32 %v4408_v33, %v4409_v35  ;;  %v4648_v62 = vsel %vm4467_vm3, %v4389_v4, -inf  ;;  %v6543_v19 = vpack.c.bf16 %v5231_v30, %v5230_v44  ;;  %v5233_v6 = vld [vmem:[%s10471_s3 + $0x88] sm:$0xff] }
 0x35d   : > { %v4461_v14 = vrot.slane %v4460_v47, 4  ;;  %4919 = vrot.lane.b32.xlu0 %v9949_v54, %s10540_s16  ;;  %v4442_v24 = vrot.slane %v4441_v51, 2  ;;  %v4448_v38 = vmax.f32 %v4446_v48, %v4447_v11  ;;  %v4455_v9 = vmax.f32 %v4453_v57, %v4454_v36  ;;  %v5228_v54 = vld [vmem:[%s10471_s3 + $0x60] sm:$0xff]  ;;  %v5209_v35 = vld [vmem:[#allocation5 + $0x48] sm:$0xff] }
 0x35e   : > { %6535 = vmatpush1.bf16.msra.mxu0 %v6534_v59  ;;  %v6540_v42 = vpack.c.bf16 %v5229_v20, %v5228_v54  ;;  %v4651_v56 = vsel %vm4467_vm3, %v4396_v3, -inf  ;;  %v4654_v52 = vsel %vm4467_vm3, %v4403_v41, -inf  ;;  %v4657_v29 = vsel %vm4467_vm3, %v4410_v60, -inf  ;;  %v5191_v22 = vld [vmem:[#allocation3 + $0x92] sm:$0xff]  ;;  %v5207_v54 = vld [vmem:[#allocation5 + $0x38] sm:$0xff] }
 0x35f   : > { %v4462_v7 = vmax.f32 %v4460_v47, %v4461_v14  ;;  %6536 = vmatprep.subr.bf16.mxu0 %v10895_v43  ;;  %v4443_v28 = vmax.f32 %v4441_v51, %v4442_v24  ;;  %v4449_v31 = vrot.slane %v4448_v38, 2  ;;  %v4456_v49 = vrot.slane %v4455_v9, 2  ;;  %v5203_v24 = vld [vmem:[#allocation5 + $0x18] sm:$0xff]  ;;  %5199 = vst.msk [vmem:[#allocation5 + $0x78] sm:$0xff] %vm4467_vm3, %v5191_v22 }
 0x360   : > { %v5109_v5 = vpop.permute.xlu0 %5108  ;;  %v6546_v36 = vpack.c.bf16 %v5233_v6, %v5232_v15  ;;  %vm5828_vm2 = vcmask 259072  }
 0x361   : > { %v4963_v13 = vpop.permute.xlu1 %4962  ;;  %v4463_v2 = vrot.slane %v4462_v7, 2  ;;  %5130 = vst.msk [vmem:[#allocation5 + $0x30] sm:$0xff] %vm5126_vm0, %v5109_v5  ;;  %v4444_v10 = vrot.slane %v4443_v28, 1  ;;  %v4450_v18 = vmax.f32 %v4448_v38, %v4449_v31  ;;  %v4457_v50 = vmax.f32 %v4455_v9, %v4456_v49  ;;  %v5202_v38 = vld [vmem:[#allocation5 + $0x10] sm:$0xff] }
 0x362   : > { %4983 = vst.msk [vmem:[#allocation5 + $0x40] sm:$0xff] %vm4978_vm13, %v4963_v13  ;;  %6538 = vmatpush1.bf16.msra.mxu0 %v6537_v55  ;;  %v5205_v55 = vld [vmem:[#allocation5 + $0x28] sm:$0xff] }
 0x363   : > { %v4464_v45 = vmax.f32 %v4462_v7, %v4463_v2  ;;  %6539 = vmatprep.subr.bf16.mxu0 %v10895_v43  ;;  %v4445_v63 = vmax.f32 %v4443_v28, %v4444_v10  ;;  %v4451_v12 = vrot.slane %v4450_v18, 1  ;;  %v4458_v40 = vrot.slane %v4457_v50, 1  ;;  %v5142_v28 = vld [vmem:[#allocation3 + $0x91] sm:$0xff] }
 0x364   : > { %v5158_v26 = vpop.permute.xlu0 %5157 }
 0x365   : > { %v5012_v21 = vpop.permute.xlu1 %5011  ;;  %v4465_v61 = vrot.slane %v4464_v45, 1  ;;  %5179 = vst.msk [vmem:[#allocation5 + $0x30] sm:$0xff] %vm5175_vm1, %v5158_v26  ;;  %v4452_v32 = vmax.f32 %v4450_v18, %v4451_v12  ;;  %v4459_v16 = vmax.f32 %v4457_v50, %v4458_v40  ;;  %v4649_v58 = vsel %vm4467_vm3, %v4445_v63, -inf  ;;  %v5211_v50 = vld [vmem:[#allocation5 + $0x58] sm:$0xff] }
 0x366   : > { %5032 = vst.msk [vmem:[#allocation5 + $0x40] sm:$0xff] %vm5027_vm14, %v5012_v21  ;;  %6541 = vmatpush1.bf16.msra.mxu0 %v6540_v42  ;;  %v4650_v39 = vmax.f32 %v4648_v62, %v4649_v58  ;;  %v10902_v40 = vmov 0.0   ;;  %v5215_v58 = vld [vmem:[#allocation5 + $0x78] sm:$0xff] }
 0x367   : > { %v4466_v37 = vmax.f32 %v4464_v45, %v4465_v61  ;;  %6542 = vmatprep.subr.bf16.mxu0 %v10895_v43  ;;  %v4652_v59 = vsel %vm4467_vm3, %v4452_v32, -inf  ;;  %v4655_v46 = vsel %vm4467_vm3, %v4459_v16, -inf  ;;  %5830 = vst.msk [vmem:[#allocation4 + $0x8] sm:$0x3f] %vm5828_vm2, %v10902_v40  ;;  %5829 = vst.msk [vmem:[#allocation4] sm:$0x3f] %vm5828_vm2, %v10902_v40 }
 0x368   : > { %v4867_v33 = vpop.permute.xlu0 %4866  ;;  %v4653_v57 = vmax.f32 %v4651_v56, %v4652_v59  ;;  %v4656_v25 = vmax.f32 %v4654_v52, %v4655_v46  ;;  %v4803_v51 = vsel %vm4750_vm7, %v4650_v39, %v9975_v53  ;;  %v5200_v53 = vld [vmem:[#allocation5] sm:$0xff]  ;;  %5831 = vst.msk [vmem:[#allocation4 + $0x10] sm:$0x3f] %vm5828_vm2, %v10902_v40  ;;  %5832 = vst.msk [vmem:[#allocation4 + $0x18] sm:$0x3f] %vm5828_vm2, %v10902_v40  ;;  %vm5554_vm7 = vcmask 254976  }
 0x369   : > { %v5061_v48 = vpop.permute.xlu1 %5060  ;;  %v4658_v34 = vsel %vm4467_vm3, %v4466_v37, -inf  ;;  %4886 = vst.msk [vmem:[#allocation5 + $0x50] sm:$0xff] %vm4880_vm11, %v4867_v33  ;;  %v10140_v39 = vld [vmem:[%s10472_s4] ss:$0 sm:$0xff] }
 0x36a   : > { %5081 = vst.msk [vmem:[#allocation5 + $0x40] sm:$0xff] %vm5076_vm15, %v5061_v48  ;;  %v4659_v11 = vmax.f32 %v4657_v29, %v4658_v34  ;;  %6544 = vmatpush1.bf16.msra.mxu0 %v6543_v19  ;;  %v4804_v47 = vsel %vm4752_vm8, %v4653_v57, %v4803_v51  ;;  %vm5868_vm8 = vcmask 257024  }
 0x36b   : > { %6545 = vmatprep.subr.bf16.mxu0 %v10895_v43  ;;  %v4805_v27 = vsel %vm4754_vm9, %v4656_v25, %v4804_v47  ;;  %5833 = vst.msk [vmem:[#allocation4 + $0x20] sm:$0x3f] %vm5828_vm2, %v10902_v40  ;;  %5834 = vst.msk [vmem:[#allocation4 + $0x28] sm:$0x3f] %vm5828_vm2, %v10902_v40  ;;  %vm5903_vm9 = vcmask 523520  }
 0x36c   : > { %v4916_v23 = vpop.permute.xlu0 %4915  ;;  %v4806_v14 = vsel %vm4756_vm10, %v4659_v11, %v4805_v27  ;;  %v5206_v20 = vld [vmem:[#allocation5 + $0x30] sm:$0xff]  ;;  %vm5922_vm10 = vcmask 785920  }
 0x36d   : > { %4935 = vst.msk [vmem:[#allocation5 + $0x50] sm:$0xff] %vm4929_vm12, %v4916_v23 }
 0x36e   : > { %4823 = vst.msk [vmem:[#allocation3 + $0x81] sm:$0xff] %vm4467_vm3, %v4806_v14  ;;  %6547 = vmatpush1.bf16.msra.mxu0 %v6546_v36 }
 0x371   : > { %5330 = vmatmul.mubr.f32.vlgmr.msra.gmra.mrb[0].mxu0 %v5200_v53 }
 0x372   : > { %6423 = vmatprep.mubr.msk.f32.mxu0 %vm4467_vm3, %v5203_v24 }
 0x375   : > { %5335 = vmatmul.mubr.f32.gmra.mrb[2].mxu0 %v5202_v38  ;;  %v5092_v9 = vld [vmem:[#allocation3 + $0x80] sm:$0xff] }
 0x376   : > { %v5043_v0 = vld [vmem:[#allocation3 + $0x82] sm:$0xff]  ;;  %5114 = vrot.lane.b32.xlu1 %v5092_v9, %s10538_s24  ;;  %6424 = vmatprep.mubr.msk.f32.mxu0 %vm4467_vm3, %v5205_v55 }
 0x377   : > { %5198 = vst.msk [vmem:[#allocation5 + $0x68] sm:$0xff] %vm4467_vm3, %v5043_v0  ;;  %4968 = vrot.lane.b32.xlu0 %v5092_v9, %s6761_s26  ;;  %v5141_v7 = vld [vmem:[#allocation3 + $0x81] sm:$0xff]  ;;  %s6434_s26 = sshll.u32 %s6841_s13, 4  ;;  %s6769_s13 = smov [#allocation7]  }
 0x378   : > { %s6697_s25 = sshll.u32 %s6769_s13, 4  ;;  %s6698_s25 = int_to_ptr.vmem [resolvable:$false] %s6697_s25 }
 0x379   : > { %5340 = vmatmul.mubr.f32.gmra.mrb[4].mxu0 %v5204_v8  ;;  %s6699_s17 = scalar_lea.vmem %s6698_s25, 32 }
 0x37a   : > { %5163 = vrot.lane.b32.xlu1 %v5141_v7, %s6766_s27  ;;  %6425 = vmatprep.mubr.msk.f32.mxu0 %vm4467_vm3, %v5207_v54 }
 0x37b   : > { %5017 = vrot.lane.b32.xlu0 %v5141_v7, %s10536_s22 }
 0x37d   : > { %5345 = vmatmul.mubr.f32.gmra.mrb[6].mxu0 %v5206_v20 }
 0x37e   : > { %5066 = vrot.lane.b32.xlu1 %v5043_v0, %s6764_s23  ;;  %6426 = vmatprep.mubr.msk.f32.mxu0 %vm4467_vm3, %v5209_v35  ;;  %v5213_v12 = vld [vmem:[#allocation5 + $0x68] sm:$0xff] }
 0x37f   : > { %5116 = vrot.lane.b32.xlu0 %v5093_v17, %s10538_s24  ;;  %s324_s24 = scalar_lea.vmem [#allocation7], %s323_s14 }
 0x380   : > { %s6342_s23 = sshll.u32 %s324_s24, 4  ;;  %s10428_s23 = int_to_ptr.vmem [resolvable:$true] %s6342_s23 }
 0x381   : > { %s6693_s29 = scalar_lea.vmem %s10428_s23, 16  ;;  %p6700_p0 = scmp.lt.s32.totalorder %s10428_s23, %s6698_s25 }
 0x382   : > { %5165 = vrot.lane.b32.xlu1 %v5142_v28, %s6766_s27  ;;  %p6694_p11 = scmp.ne.s32.totalorder %s10428_s23, %s6693_s29  ;;  %p6701_p1 = scmp.lt.s32.totalorder %s6699_s17, %s6693_s29 }
 0x384   : > { %p6695_p12 = pnand %p6694_p11, %p6858_p5  ;;  %p6702_p2 = por %p6701_p1, %p6700_p0 }
 0x386   : > { %p6696_p13 = pneg %p6695_p12 }
 0x388   : > { %p6703_p3 = pnand %p6702_p2, %p6696_p13 }
 0x395   : > { %v5111_v31 = vpop.permute.xlu1 %5110 }
 0x396   : > { %v4965_v49 = vpop.permute.xlu0 %4964  ;;  %5131 = vst.msk [vmem:[#allocation5 + $0x40] sm:$0xff] %vm5126_vm0, %v5111_v31 }
 0x397   : > { %4984 = vst.msk [vmem:[#allocation5 + $0x50] sm:$0xff] %vm4978_vm13, %v4965_v49 }
 0x399   : > { %v5160_v5 = vpop.permute.xlu1 %5159 }
 0x39a   : > { %v5014_v13 = vpop.permute.xlu0 %5013  ;;  %5180 = vst.msk [vmem:[#allocation5 + $0x40] sm:$0xff] %vm5175_vm1, %v5160_v5 }
 0x39b   : > { %5033 = vst.msk [vmem:[#allocation5 + $0x50] sm:$0xff] %vm5027_vm14, %v5014_v13 }
 0x39d   : > { %v4869_v4 = vpop.permute.xlu1 %4868 }
 0x39e   : > { %v5063_v2 = vpop.permute.xlu0 %5062  ;;  %4887 = vst.msk [vmem:[#allocation5 + $0x60] sm:$0xff] %vm4880_vm11, %v4869_v4 }
 0x39f   : > { %5082 = vst.msk [vmem:[#allocation5 + $0x50] sm:$0xff] %vm5076_vm15, %v5063_v2 }
 0x3a1   : > { %v4918_v10 = vpop.permute.xlu1 %4917  ;;  %v5208_v18 = vld [vmem:[#allocation5 + $0x40] sm:$0xff] }
 0x3a2   : > { %4936 = vst.msk [vmem:[#allocation5 + $0x60] sm:$0xff] %vm4929_vm12, %v4918_v10  ;;  %5350 = vmatmul.mubr.f32.gmra.mrb[8].mxu0 %v5208_v18 }
 0x3a3   : > { %6427 = vmatprep.mubr.msk.f32.mxu0 %vm4467_vm3, %v5211_v50 }
 0x3c3   : > { %v5113_v42 = vpop.permute.xlu0 %5112  ;;  %v4967_v3 = vpop.permute.xlu1 %4966 }
 0x3c4   : > { %5132 = vst.msk [vmem:[#allocation5 + $0x50] sm:$0xff] %vm5126_vm0, %v5113_v42 }
 0x3c5   : > { %4985 = vst.msk [vmem:[#allocation5 + $0x60] sm:$0xff] %vm4978_vm13, %v4967_v3 }
 0x3c7   : > { %v5162_v41 = vpop.permute.xlu0 %5161  ;;  %v5016_v45 = vpop.permute.xlu1 %5015 }
 0x3c8   : > { %5181 = vst.msk [vmem:[#allocation5 + $0x50] sm:$0xff] %vm5175_vm1, %v5162_v41 }
 0x3c9   : > { %5034 = vst.msk [vmem:[#allocation5 + $0x60] sm:$0xff] %vm5027_vm14, %v5016_v45 }
 0x3cb   : > { %v4871_v44 = vpop.permute.xlu0 %4870  ;;  %v5065_v30 = vpop.permute.xlu1 %5064 }
 0x3cc   : > { %4888 = vst.msk [vmem:[#allocation5 + $0x70] sm:$0xff] %vm4880_vm11, %v4871_v44  ;;  %vm6327_vm11 = vcmask 8192  }
 0x3cd   : > { %5083 = vst.msk [vmem:[#allocation5 + $0x60] sm:$0xff] %vm5076_vm15, %v5065_v30 }
 0x3cf   : > { %v4920_v60 = vpop.permute.xlu0 %4919  ;;  %v5210_v63 = vld [vmem:[#allocation5 + $0x50] sm:$0xff] }
 0x3d0   : > { %4937 = vst.msk [vmem:[#allocation5 + $0x70] sm:$0xff] %vm4929_vm12, %v4920_v60  ;;  %5355 = vmatmul.mubr.f32.gmra.mrb[10].mxu0 %v5210_v63 }
 0x3d1   : > { %6428 = vmatprep.mubr.msk.f32.mxu0 %vm4467_vm3, %v5213_v12 }
 0x3e8   : > { %v5115_v26 = vpop.permute.xlu1 %5114 }
 0x3e9   : > { %5133 = vst.msk [vmem:[#allocation5 + $0x60] sm:$0xff] %vm5126_vm0, %v5115_v26  ;;  %v4969_v21 = vpop.permute.xlu0 %4968 }
 0x3ea   : > { %4986 = vst.msk [vmem:[#allocation5 + $0x70] sm:$0xff] %vm4978_vm13, %v4969_v21 }
 0x3ec   : > { %v5164_v62 = vpop.permute.xlu1 %5163 }
 0x3ed   : > { %5182 = vst.msk [vmem:[#allocation5 + $0x60] sm:$0xff] %vm5175_vm1, %v5164_v62  ;;  %v5018_v61 = vpop.permute.xlu0 %5017 }
 0x3ee   : > { %5035 = vst.msk [vmem:[#allocation5 + $0x70] sm:$0xff] %vm5027_vm14, %v5018_v61 }
 0x3f0   : > { %v5067_v32 = vpop.permute.xlu1 %5066 }
 0x3f1   : > { %5084 = vst.msk [vmem:[#allocation5 + $0x70] sm:$0xff] %vm5076_vm15, %v5067_v32  ;;  %v5117_v16 = vpop.permute.xlu0 %5116 }
 0x3f2   : > { %5134 = vst.msk [vmem:[#allocation5 + $0x70] sm:$0xff] %vm5126_vm0, %v5117_v16 }
 0x3f4   : > { %v5212_v19 = vld [vmem:[#allocation5 + $0x60] sm:$0xff]  ;;  %v5166_v56 = vpop.permute.xlu1 %5165 }
 0x3f5   : > { %5360 = vmatmul.mubr.f32.gmra.mrb[12].mxu0 %v5212_v19  ;;  %5183 = vst.msk [vmem:[#allocation5 + $0x70] sm:$0xff] %vm5175_vm1, %v5166_v56 }
 0x3f6   : > { %6429 = vmatprep.mubr.msk.f32.mxu0 %vm4467_vm3, %v5215_v58  ;;  %vm5779_vm3 = vcmask 261120  }
 0x3fc   : > { %v5214_v37 = vld [vmem:[#allocation5 + $0x70] sm:$0xff] }
 0x3fd   : > { %5365 = vmatmul.mubr.f32.gmra.mrb[14].mxu0 %v5214_v37 }
 0x444   : > { %v5331_v15 = vpop.f32.mrb[0].mxu0 }
 0x445   : > { %v5332_v6 = vadd.f32 %v10140_v39, %v5331_v15  ;;  %v5333_v52 = vpop.f32.mrb[1].mxu0 }
 0x447   : > { %v5370_v29 = vmax.f32 %v5332_v6, 0.0 }
 0x448   : > { %v5336_v59 = vpop.f32.mrb[2].mxu0 }
 0x449   : > { %v5386_v46 = vcombine.high %v5370_v29, %v5370_v29  ;;  %v5393_v33 = vrot.slane %v5370_v29, %v10888_v1  ;;  %v5337_v48 = vadd.f32 %v10140_v39, %v5336_v59  ;;  %v5338_v57 = vpop.f32.mrb[3].mxu0 }
 0x44b   : > { %v5400_v25 = vrot.slane %v5386_v46, %v10888_v1  ;;  %v5401_v34 = vcombine.high %v5393_v33, %v5393_v33  ;;  %v5555_v51 = vsel %vm5554_vm7, %v5393_v33, -inf  ;;  %v5371_v11 = vmax.f32 %v5337_v48, 0.0 }
 0x44c   : > { %v5556_v36 = vrot.slane %v5555_v51, 4  ;;  %v5341_v47 = vpop.f32.mrb[4].mxu0 }
 0x44d   : > { %v5402_v27 = vcombine.high %v5400_v25, %v5400_v25  ;;  %v5562_v23 = vsel %vm5554_vm7, %v5401_v34, -inf  ;;  %v5569_v14 = vsel %vm5554_vm7, %v5400_v25, -inf  ;;  %v5403_v53 = vcombine.high %v5371_v11, %v5371_v11  ;;  %v5343_v24 = vpop.f32.mrb[5].mxu0 }
 0x44e   : > { %v5557_v38 = vmax.f32 %v5555_v51, %v5556_v36  ;;  %v5563_v9 = vrot.slane %v5562_v23, 4  ;;  %v5570_v55 = vrot.slane %v5569_v14, 4  ;;  %v5410_v0 = vrot.slane %v5371_v11, %v10888_v1 }
 0x44f   : > { %v5576_v8 = vsel %vm5554_vm7, %v5402_v27, -inf  ;;  %v5417_v22 = vrot.slane %v5403_v53, %v10888_v1  ;;  %v5342_v7 = vadd.f32 %v10140_v39, %v5341_v47 }
 0x450   : > { %v5558_v54 = vrot.slane %v5557_v38, 2  ;;  %v5564_v20 = vmax.f32 %v5562_v23, %v5563_v9  ;;  %v5571_v17 = vmax.f32 %v5569_v14, %v5570_v55  ;;  %v5577_v35 = vrot.slane %v5576_v8, 4  ;;  %v5346_v28 = vpop.f32.mrb[6].mxu0 }
 0x451   : > { %v5418_v31 = vcombine.high %v5410_v0, %v5410_v0  ;;  %v5419_v49 = vcombine.high %v5417_v22, %v5417_v22  ;;  %v5583_v5 = vsel %vm5554_vm7, %v5410_v0, -inf  ;;  %v5597_v13 = vsel %vm5554_vm7, %v5417_v22, -inf  ;;  %v5348_v4 = vpop.f32.mrb[7].mxu0 }
 0x452   : > { %v5559_v2 = vmax.f32 %v5557_v38, %v5558_v54  ;;  %v5565_v10 = vrot.slane %v5564_v20, 2  ;;  %v5572_v18 = vrot.slane %v5571_v17, 2  ;;  %v5578_v50 = vmax.f32 %v5576_v8, %v5577_v35 }
 0x453   : > { %v5584_v42 = vrot.slane %v5583_v5, 4  ;;  %v5590_v3 = vsel %vm5554_vm7, %v5418_v31, -inf  ;;  %v5598_v41 = vrot.slane %v5597_v13, 4  ;;  %v5604_v45 = vsel %vm5554_vm7, %v5419_v49, -inf }
 0x454   : > { %v5560_v44 = vrot.slane %v5559_v2, 1  ;;  %v5566_v30 = vmax.f32 %v5564_v20, %v5565_v10  ;;  %v5573_v60 = vmax.f32 %v5571_v17, %v5572_v18  ;;  %v5579_v63 = vrot.slane %v5578_v50, 2 }
 0x455   : > { %v5585_v12 = vmax.f32 %v5583_v5, %v5584_v42  ;;  %v5591_v26 = vrot.slane %v5590_v3, 4  ;;  %v5599_v21 = vmax.f32 %v5597_v13, %v5598_v41  ;;  %v5605_v62 = vrot.slane %v5604_v45, 4 }
 0x456   : > { %v5561_v61 = vmax.f32 %v5559_v2, %v5560_v44  ;;  %v5567_v32 = vrot.slane %v5566_v30, 1  ;;  %v5574_v16 = vrot.slane %v5573_v60, 1  ;;  %v5580_v58 = vmax.f32 %v5578_v50, %v5579_v63 }
 0x457   : > { %v5586_v19 = vrot.slane %v5585_v12, 2  ;;  %v5592_v56 = vmax.f32 %v5590_v3, %v5591_v26  ;;  %v5600_v37 = vrot.slane %v5599_v21, 2  ;;  %v5606_v15 = vmax.f32 %v5604_v45, %v5605_v62 }
 0x458   : > { %v5568_v6 = vmax.f32 %v5566_v30, %v5567_v32  ;;  %v5575_v52 = vmax.f32 %v5573_v60, %v5574_v16  ;;  %v5581_v29 = vrot.slane %v5580_v58, 1  ;;  %v5780_v59 = vsel %vm5779_vm3, %v5561_v61, -inf }
 0x459   : > { %v5587_v46 = vmax.f32 %v5585_v12, %v5586_v19  ;;  %v5593_v33 = vrot.slane %v5592_v56, 2  ;;  %v5601_v48 = vmax.f32 %v5599_v21, %v5600_v37  ;;  %v5607_v57 = vrot.slane %v5606_v15, 2 }
 0x45a   : > { %v5582_v25 = vmax.f32 %v5580_v58, %v5581_v29  ;;  %v5783_v34 = vsel %vm5779_vm3, %v5568_v6, -inf  ;;  %v5786_v51 = vsel %vm5779_vm3, %v5575_v52, -inf  ;;  %v5372_v11 = vmax.f32 %v5342_v7, 0.0 }
 0x45b   : > { %v5588_v36 = vrot.slane %v5587_v46, 1  ;;  %v5594_v47 = vmax.f32 %v5592_v56, %v5593_v33  ;;  %v5602_v27 = vrot.slane %v5601_v48, 1  ;;  %v5608_v23 = vmax.f32 %v5606_v15, %v5607_v57 }
 0x45c   : > { %v5789_v14 = vsel %vm5779_vm3, %v5582_v25, -inf  ;;  %v5420_v53 = vcombine.high %v5372_v11, %v5372_v11  ;;  %v5427_v24 = vrot.slane %v5372_v11, %v10888_v1  ;;  %v5347_v38 = vadd.f32 %v10140_v39, %v5346_v28 }
 0x45d   : > { %v5589_v9 = vmax.f32 %v5587_v46, %v5588_v36  ;;  %v5595_v55 = vrot.slane %v5594_v47, 1  ;;  %v5603_v0 = vmax.f32 %v5601_v48, %v5602_v27  ;;  %v5609_v8 = vrot.slane %v5608_v23, 1 }
 0x45e   : > { %v5434_v22 = vrot.slane %v5420_v53, %v10888_v1  ;;  %v5435_v54 = vcombine.high %v5427_v24, %v5427_v24  ;;  %v5611_v7 = vsel %vm5554_vm7, %v5427_v24, -inf  ;;  %v5373_v20 = vmax.f32 %v5347_v38, 0.0 }
 0x45f   : > { %v5596_v17 = vmax.f32 %v5594_v47, %v5595_v55  ;;  %v5610_v35 = vmax.f32 %v5608_v23, %v5609_v8  ;;  %v5781_v31 = vsel %vm5779_vm3, %v5589_v9, -inf  ;;  %v5787_v49 = vsel %vm5779_vm3, %v5603_v0, -inf }
 0x460   : > { %v5782_v5 = vmax.f32 %v5780_v59, %v5781_v31  ;;  %v5788_v13 = vmax.f32 %v5786_v51, %v5787_v49  ;;  %v5436_v4 = vcombine.high %v5434_v22, %v5434_v22  ;;  %v5612_v28 = vrot.slane %v5611_v7, 4 }
 0x461   : > { %v5784_v2 = vsel %vm5779_vm3, %v5596_v17, -inf  ;;  %v5790_v10 = vsel %vm5779_vm3, %v5610_v35, -inf  ;;  %v5618_v18 = vsel %vm5554_vm7, %v5435_v54, -inf  ;;  %v5625_v50 = vsel %vm5554_vm7, %v5434_v22, -inf }
 0x462   : > { %v5785_v42 = vmax.f32 %v5783_v34, %v5784_v2  ;;  %v5791_v3 = vmax.f32 %v5789_v14, %v5790_v10  ;;  %v5613_v41 = vmax.f32 %v5611_v7, %v5612_v28  ;;  %v5619_v45 = vrot.slane %v5618_v18, 4 }
 0x463   : > { %v5626_v44 = vrot.slane %v5625_v50, 4  ;;  %v5632_v30 = vsel %vm5554_vm7, %v5436_v4, -inf  ;;  %v5437_v60 = vcombine.high %v5373_v20, %v5373_v20  ;;  %v5444_v63 = vrot.slane %v5373_v20, %v10888_v1 }
 0x464   : > { %v5851_v12 = vsel %vm4744_vm4, %v5785_v42, %v5782_v5  ;;  %v5614_v26 = vrot.slane %v5613_v41, 2  ;;  %v5620_v21 = vmax.f32 %v5618_v18, %v5619_v45  ;;  %v5633_v62 = vrot.slane %v5632_v30, 4 }
 0x465   : > { %v5852_v61 = vsel %vm4746_vm5, %v5788_v13, %v5851_v12  ;;  %v5627_v32 = vmax.f32 %v5625_v50, %v5626_v44  ;;  %v5451_v16 = vrot.slane %v5437_v60, %v10888_v1  ;;  %v5452_v58 = vcombine.high %v5444_v63, %v5444_v63 }
 0x466   : > { %v5853_v19 = vsel %vm4748_vm6, %v5791_v3, %v5852_v61  ;;  %v5621_v56 = vrot.slane %v5620_v21, 2  ;;  %v5634_v37 = vmax.f32 %v5632_v30, %v5633_v62  ;;  %v5639_v52 = vsel %vm5554_vm7, %v5444_v63, -inf }
 0x467   : > { %5869 = vst.msk [vmem:[#allocation4 + $0x9] sm:$0xf] %vm5868_vm8, %v5853_v19  ;;  %v5628_v15 = vrot.slane %v5627_v32, 2  ;;  %v5453_v6 = vcombine.high %v5451_v16, %v5451_v16  ;;  %v5646_v29 = vsel %vm5554_vm7, %v5452_v58, -inf  ;;  %v5615_v59 = vmax.f32 %v5613_v41, %v5614_v26 }
 0x468   : > { %v5635_v46 = vrot.slane %v5634_v37, 2  ;;  %v5640_v33 = vrot.slane %v5639_v52, 4  ;;  %v5622_v48 = vmax.f32 %v5620_v21, %v5621_v56  ;;  %v5647_v57 = vrot.slane %v5646_v29, 4 }
 0x469   : > { %v5653_v25 = vsel %vm5554_vm7, %v5451_v16, -inf  ;;  %v5660_v34 = vsel %vm5554_vm7, %v5453_v6, -inf  ;;  %v5629_v11 = vmax.f32 %v5627_v32, %v5628_v15  ;;  %v5616_v23 = vrot.slane %v5615_v59, 1 }
 0x46a   : > { %v5641_v51 = vmax.f32 %v5639_v52, %v5640_v33  ;;  %v5648_v36 = vmax.f32 %v5646_v29, %v5647_v57  ;;  %v5654_v47 = vrot.slane %v5653_v25, 4  ;;  %v5661_v27 = vrot.slane %v5660_v34, 4  ;;  %v6049_v29 = vld [vmem:[%s10473_s5 + $0x80] sm:$0xff]  ;;  %v6051_v57 = vld [vmem:[%s10473_s5 + $0x90] sm:$0xff] }
 0x46b   : > { %v5636_v14 = vmax.f32 %v5634_v37, %v5635_v46  ;;  %v5623_v24 = vrot.slane %v5622_v48, 1  ;;  %v5630_v22 = vrot.slane %v5629_v11, 1  ;;  %v5617_v20 = vmax.f32 %v5615_v59, %v5616_v23  ;;  %v6050_v59 = vld [vmem:[%s10473_s5 + $0x88] sm:$0xff]  ;;  %v6033_v46 = vld [vmem:[%s10473_s5] sm:$0xff] }
 0x46c   : > { %v5642_v53 = vrot.slane %v5641_v51, 2  ;;  %v5649_v38 = vrot.slane %v5648_v36, 2  ;;  %v5655_v9 = vmax.f32 %v5653_v25, %v5654_v47  ;;  %v5662_v55 = vmax.f32 %v5660_v34, %v5661_v27  ;;  %v6052_v25 = vld [vmem:[%s10473_s5 + $0x98] sm:$0xff]  ;;  %v6053_v47 = vld [vmem:[%s10473_s5 + $0xa0] sm:$0xff]  ;;  %v6054_v27 = vld [vmem:[%s10473_s5 + $0xa8] sm:$0xff] }
 0x46d   : > { %v5637_v17 = vrot.slane %v5636_v14, 1  ;;  %v5624_v49 = vmax.f32 %v5622_v48, %v5623_v24  ;;  %v5631_v18 = vmax.f32 %v5629_v11, %v5630_v22  ;;  %v5792_v41 = vsel %vm5779_vm3, %v5617_v20, -inf  ;;  %v6034_v48 = vld [vmem:[%s10473_s5 + $0x8] sm:$0xff]  ;;  %v6035_v11 = vld [vmem:[%s10473_s5 + $0x10] sm:$0xff]  ;;  %v6040_v20 = vld [vmem:[%s10473_s5 + $0x38] sm:$0xff] }
 0x46e   : > { %v6653_v0 = vld [vmem:[#allocation4 + $0x1] ss:$8 sps:$4 sm:$0xff]   ;;  %v5643_v8 = vmax.f32 %v5641_v51, %v5642_v53  ;;  %v5650_v54 = vmax.f32 %v5648_v36, %v5649_v38  ;;  %v5656_v7 = vrot.slane %v5655_v9, 2  ;;  %v5663_v31 = vrot.slane %v5662_v55, 2  ;;  %v6038_v53 = vld [vmem:[%s10473_s5 + $0x28] sm:$0xff] }
 0x46f   : > { %5897 = vrot.lane.b32.xlu1 %v6653_v0, %s10540_s16  ;;  %v6654_v4 = vld [vmem:[#allocation4 + $0x2] ss:$8 sps:$4 sm:$0xff]   ;;  %v5638_v3 = vmax.f32 %v5636_v14, %v5637_v17  ;;  %v5795_v30 = vsel %vm5779_vm3, %v5624_v49, -inf  ;;  %v5798_v32 = vsel %vm5779_vm3, %v5631_v18, -inf  ;;  %v6548_v33 = vpack.c.bf16 %v6050_v59, %v6049_v29  ;;  %v6037_v14 = vld [vmem:[%s10473_s5 + $0x20] sm:$0xff] }
 0x470   : > { %v5644_v35 = vrot.slane %v5643_v8, 1  ;;  %v5651_v5 = vrot.slane %v5650_v54, 1  ;;  %v5657_v13 = vmax.f32 %v5655_v9, %v5656_v7  ;;  %v5664_v2 = vmax.f32 %v5662_v55, %v5663_v31  ;;  %v6657_v10 = vld [vmem:[#allocation4] ss:$8 sps:$4 sm:$0xff]   ;;  %v6057_v17 = vld [vmem:[%s10473_s5 + $0xc0] sm:$0xff] }
 0x471   : > { %5885 = vst.msk [vmem:[#allocation6] sm:$0xff] %vm5779_vm3, %v6657_v10  ;;  %v5801_v58 = vsel %vm5779_vm3, %v5638_v3, -inf  ;;  %v6550_v34 = vpack.c.bf16 %v6034_v48, %v6033_v46  ;;  %v6552_v51 = vpack.c.bf16 %v6052_v25, %v6051_v57  ;;  %v6036_v36 = vld [vmem:[%s10473_s5 + $0x18] sm:$0xff]  ;;  %6549 = vmatprep.subr.bf16.mxu1 %v6548_v33  ;;  %v6055_v24 = vld [vmem:[%s10473_s5 + $0xb0] sm:$0xff]  ;;  %v6556_v9 = vpack.c.bf16 %v6054_v27, %v6053_v47 }
 0x472   : > { %v5645_v28 = vmax.f32 %v5643_v8, %v5644_v35  ;;  %v5652_v50 = vmax.f32 %v5650_v54, %v5651_v5  ;;  %v5658_v42 = vrot.slane %v5657_v13, 1  ;;  %v5665_v45 = vrot.slane %v5664_v2, 1  ;;  %v6056_v0 = vld [vmem:[%s10473_s5 + $0xb8] sm:$0xff]  ;;  %v6039_v7 = vld [vmem:[%s10473_s5 + $0x30] sm:$0xff]  ;;  %v6058_v35 = vld [vmem:[%s10473_s5 + $0xc8] sm:$0xff] }
 0x473   : > { %5916 = vrot.lane.b32.xlu1 %v6654_v4, %s10536_s22  ;;  %6551 = vmatpush3.bf16.msra.mxu1 %v6550_v34  ;;  %v6554_v23 = vpack.c.bf16 %v6036_v36, %v6035_v11  ;;  %v6558_v22 = vpack.c.bf16 %v6038_v53, %v6037_v14  ;;  %v6560_v54 = vpack.c.bf16 %v6056_v0, %v6055_v24  ;;  %v6042_v4 = vld [vmem:[%s10473_s5 + $0x48] sm:$0xff] }
 0x474   : > { %v5793_v44 = vsel %vm5779_vm3, %v5645_v28, -inf  ;;  %v5659_v60 = vmax.f32 %v5657_v13, %v5658_v42  ;;  %v5796_v12 = vsel %vm5779_vm3, %v5652_v50, -inf  ;;  %v5666_v21 = vmax.f32 %v5664_v2, %v5665_v45  ;;  %6553 = vmatprep.subr.bf16.mxu1 %v6552_v51  ;;  %v6041_v13 = vld [vmem:[%s10473_s5 + $0x40] sm:$0xff] }
 0x475   : > { %v5794_v63 = vmax.f32 %v5792_v41, %v5793_v44  ;;  %v5351_v26 = vpop.f32.mrb[8].mxu0  ;;  %v5797_v62 = vmax.f32 %v5795_v30, %v5796_v12  ;;  %v6562_v31 = vpack.c.bf16 %v6040_v20, %v6039_v7  ;;  %v6564_v5 = vpack.c.bf16 %v6058_v35, %v6057_v17 }
 0x476   : > { %v5353_v61 = vpop.f32.mrb[9].mxu0  ;;  %v5799_v16 = vsel %vm5779_vm3, %v5659_v60, -inf  ;;  %v5802_v56 = vsel %vm5779_vm3, %v5666_v21, -inf  ;;  %v5352_v49 = vadd.f32 %v10140_v39, %v5351_v26  ;;  %v6566_v28 = vpack.c.bf16 %v6042_v4, %v6041_v13 }
 0x477   : > { %v5800_v19 = vmax.f32 %v5798_v32, %v5799_v16  ;;  %v5854_v37 = vsel %vm4744_vm4, %v5797_v62, %v5794_v63  ;;  %v5803_v15 = vmax.f32 %v5801_v58, %v5802_v56  ;;  %6555 = vmatpush3.bf16.msra.mxu1 %v6554_v23 }
 0x478   : > { %6557 = vmatprep.subr.bf16.mxu1 %v6556_v9  ;;  %v5374_v2 = vmax.f32 %v5352_v49, 0.0 }
 0x479   : > { %v5855_v6 = vsel %vm4746_vm5, %v5800_v19, %v5854_v37 }
 0x47a   : > { %v5856_v52 = vsel %vm4748_vm6, %v5803_v15, %v5855_v6  ;;  %v5454_v10 = vcombine.high %v5374_v2, %v5374_v2  ;;  %v5461_v18 = vrot.slane %v5374_v2, %v10888_v1 }
 0x47b   : > { %5870 = vst.msk [vmem:[#allocation4 + $0x11] sm:$0xf] %vm5868_vm8, %v5856_v52  ;;  %6559 = vmatpush3.bf16.msra.mxu1 %v6558_v22 }
 0x47c   : > { %6561 = vmatprep.subr.bf16.mxu1 %v6560_v54  ;;  %v5468_v50 = vrot.slane %v5454_v10, %v10888_v1  ;;  %v5469_v42 = vcombine.high %v5461_v18, %v5461_v18  ;;  %v5667_v3 = vsel %vm5554_vm7, %v5461_v18, -inf }
 0x47d   : > { %v5668_v44 = vrot.slane %v5667_v3, 4 }
 0x47e   : > { %v5470_v41 = vcombine.high %v5468_v50, %v5468_v50  ;;  %v5674_v45 = vsel %vm5554_vm7, %v5469_v42, -inf  ;;  %v5681_v30 = vsel %vm5554_vm7, %v5468_v50, -inf }
 0x47f   : > { %6563 = vmatpush3.bf16.msra.mxu1 %v6562_v31  ;;  %v5675_v60 = vrot.slane %v5674_v45, 4  ;;  %v5682_v12 = vrot.slane %v5681_v30, 4  ;;  %v5669_v26 = vmax.f32 %v5667_v3, %v5668_v44 }
 0x480   : > { %6565 = vmatprep.subr.bf16.mxu1 %v6564_v5  ;;  %v5688_v63 = vsel %vm5554_vm7, %v5470_v41, -inf }
 0x481   : > { %v5689_v21 = vrot.slane %v5688_v63, 4  ;;  %v5676_v62 = vmax.f32 %v5674_v45, %v5675_v60  ;;  %v5683_v32 = vmax.f32 %v5681_v30, %v5682_v12  ;;  %v5670_v19 = vrot.slane %v5669_v26, 2 }
 0x482   : > { %v6655_v38 = vld [vmem:[#allocation4 + $0xa] ss:$8 sps:$4 sm:$0xff]  }
 0x483   : > { %v6656_v55 = vld [vmem:[#allocation4 + $0x8] ss:$8 sps:$4 sm:$0xff]   ;;  %5968 = vrot.lane.b32.xlu0 %v6655_v38, %s10540_s16  ;;  %6567 = vmatpush3.bf16.msra.mxu1 %v6566_v28  ;;  %v5690_v56 = vmax.f32 %v5688_v63, %v5689_v21  ;;  %v5677_v15 = vrot.slane %v5676_v62, 2  ;;  %v5684_v6 = vrot.slane %v5683_v32, 2  ;;  %v5671_v59 = vmax.f32 %v5669_v26, %v5670_v19  ;;  %s10905_s16 = smov 32  }
 0x484   : > { %5935 = vrot.lane.b32.xlu1 %v6656_v55, %s10903_s21  ;;  %v6666_v8 = vld [vmem:[#allocation4 + $0x9] ss:$8 sps:$4 sm:$0xff]  }
 0x485   : > { %5956 = vst.msk [vmem:[#allocation6 + $0x8] sm:$0xff] %vm5779_vm3, %v6666_v8  ;;  %v5691_v46 = vrot.slane %v5690_v56, 2  ;;  %v5678_v25 = vmax.f32 %v5676_v62, %v5677_v15  ;;  %v5685_v51 = vmax.f32 %v5683_v32, %v5684_v6  ;;  %v5672_v53 = vrot.slane %v5671_v59, 1  ;;  %v6059_v6 = vld [vmem:[%s10473_s5 + $0xd0] sm:$0xff] }
 0x487   : > { %v5692_v24 = vmax.f32 %v5690_v56, %v5691_v46  ;;  %v5679_v22 = vrot.slane %v5678_v25, 1  ;;  %v5686_v54 = vrot.slane %v5685_v51, 1  ;;  %v5673_v31 = vmax.f32 %v5671_v59, %v5672_v53  ;;  %v6047_v53 = vld [vmem:[%s10473_s5 + $0x70] sm:$0xff] }
 0x489   : > { %v5693_v49 = vrot.slane %v5692_v24, 1  ;;  %v5680_v2 = vmax.f32 %v5678_v25, %v5679_v22  ;;  %v5687_v10 = vmax.f32 %v5685_v51, %v5686_v54  ;;  %v5804_v45 = vsel %vm5779_vm3, %v5673_v31, -inf  ;;  %v6061_v25 = vld [vmem:[%s10473_s5 + $0xe0] sm:$0xff] }
 0x48a   : > { %v6045_v51 = vld [vmem:[%s10473_s5 + $0x60] sm:$0xff] }
 0x48b   : > { %v5694_v41 = vmax.f32 %v5692_v24, %v5693_v49  ;;  %v5807_v12 = vsel %vm5779_vm3, %v5680_v2, -inf  ;;  %v5810_v21 = vsel %vm5779_vm3, %v5687_v10, -inf  ;;  %v6048_v24 = vld [vmem:[%s10473_s5 + $0x78] sm:$0xff] }
 0x48d   : > { %v5813_v19 = vsel %vm5779_vm3, %v5694_v41, -inf }
 0x4a3   : > { %v5356_v61 = vpop.f32.mrb[10].mxu0 }
 0x4a4   : > { %v5357_v16 = vadd.f32 %v10140_v39, %v5356_v61  ;;  %v5358_v58 = vpop.f32.mrb[11].mxu0 }
 0x4a6   : > { %v5375_v37 = vmax.f32 %v5357_v16, 0.0 }
 0x4a8   : > { %v5471_v52 = vcombine.high %v5375_v37, %v5375_v37  ;;  %v5478_v29 = vrot.slane %v5375_v37, %v10888_v1 }
 0x4aa   : > { %v5485_v33 = vrot.slane %v5471_v52, %v10888_v1  ;;  %v5486_v48 = vcombine.high %v5478_v29, %v5478_v29  ;;  %v5695_v57 = vsel %vm5554_vm7, %v5478_v29, -inf  ;;  %v6060_v52 = vld [vmem:[%s10473_s5 + $0xd8] sm:$0xff]  ;;  %v6043_v29 = vld [vmem:[%s10473_s5 + $0x50] sm:$0xff] }
 0x4ab   : > { %v5696_v34 = vrot.slane %v5695_v57, 4  ;;  %v6568_v46 = vpack.c.bf16 %v6060_v52, %v6059_v6 }
 0x4ac   : > { %v5487_v11 = vcombine.high %v5485_v33, %v5485_v33  ;;  %v5702_v36 = vsel %vm5554_vm7, %v5486_v48, -inf  ;;  %v5709_v47 = vsel %vm5554_vm7, %v5485_v33, -inf  ;;  %v6044_v33 = vld [vmem:[%s10473_s5 + $0x58] sm:$0xff] }
 0x4ad   : > { %v5697_v27 = vmax.f32 %v5695_v57, %v5696_v34  ;;  %v5703_v23 = vrot.slane %v5702_v36, 4  ;;  %v5710_v14 = vrot.slane %v5709_v47, 4  ;;  %v6570_v57 = vpack.c.bf16 %v6044_v33, %v6043_v29  ;;  %6569 = vmatprep.subr.bf16.mxu1 %v6568_v46  ;;  %v6062_v34 = vld [vmem:[%s10473_s5 + $0xe8] sm:$0xff] }
 0x4ae   : > { %v5716_v38 = vsel %vm5554_vm7, %v5487_v11, -inf  ;;  %v6572_v11 = vpack.c.bf16 %v6062_v34, %v6061_v25 }
 0x4af   : > { %v5698_v9 = vrot.slane %v5697_v27, 2  ;;  %v5704_v55 = vmax.f32 %v5702_v36, %v5703_v23  ;;  %v5711_v0 = vmax.f32 %v5709_v47, %v5710_v14  ;;  %v5717_v8 = vrot.slane %v5716_v38, 4  ;;  %6571 = vmatpush3.bf16.msra.mxu1 %v6570_v57  ;;  %v6046_v36 = vld [vmem:[%s10473_s5 + $0x68] sm:$0xff]  ;;  %v6063_v47 = vld [vmem:[%s10473_s5 + $0xf0] sm:$0xff] }
 0x4b0   : > { %v6574_v23 = vpack.c.bf16 %v6046_v36, %v6045_v51  ;;  %6573 = vmatprep.subr.bf16.mxu1 %v6572_v11 }
 0x4b1   : > { %v5699_v7 = vmax.f32 %v5697_v27, %v5698_v9  ;;  %v5705_v20 = vrot.slane %v5704_v55, 2  ;;  %v5712_v17 = vrot.slane %v5711_v0, 2  ;;  %v5718_v35 = vmax.f32 %v5716_v38, %v5717_v8  ;;  %v6064_v27 = vld [vmem:[%s10473_s5 + $0xf8] sm:$0xff] }
 0x4b2   : > { %v6576_v14 = vpack.c.bf16 %v6064_v27, %v6063_v47  ;;  %v6578_v38 = vpack.c.bf16 %v6048_v24, %v6047_v53 }
 0x4b3   : > { %v5700_v5 = vrot.slane %v5699_v7, 1  ;;  %v5706_v13 = vmax.f32 %v5704_v55, %v5705_v20  ;;  %v5713_v4 = vmax.f32 %v5711_v0, %v5712_v17  ;;  %v5719_v28 = vrot.slane %v5718_v35, 2  ;;  %6575 = vmatpush3.bf16.msra.mxu1 %v6574_v23 }
 0x4b4   : > { %6577 = vmatprep.subr.bf16.mxu1 %v6576_v14 }
 0x4b5   : > { %v5701_v18 = vmax.f32 %v5699_v7, %v5700_v5  ;;  %v5707_v50 = vrot.slane %v5706_v13, 1  ;;  %v5714_v42 = vrot.slane %v5713_v4, 1  ;;  %v5720_v3 = vmax.f32 %v5718_v35, %v5719_v28 }
 0x4b7   : > { %v5708_v44 = vmax.f32 %v5706_v13, %v5707_v50  ;;  %v5715_v30 = vmax.f32 %v5713_v4, %v5714_v42  ;;  %v5721_v60 = vrot.slane %v5720_v3, 1  ;;  %v5805_v63 = vsel %vm5779_vm3, %v5701_v18, -inf  ;;  %6579 = vmatpush3.bf16.msra.mxu1 %v6578_v38 }
 0x4b8   : > { %v5806_v26 = vmax.f32 %v5804_v45, %v5805_v63 }
 0x4b9   : > { %v5722_v62 = vmax.f32 %v5720_v3, %v5721_v60  ;;  %v5808_v61 = vsel %vm5779_vm3, %v5708_v44, -inf  ;;  %v5811_v32 = vsel %vm5779_vm3, %v5715_v30, -inf }
 0x4ba   : > { %v5809_v16 = vmax.f32 %v5807_v12, %v5808_v61  ;;  %v5812_v58 = vmax.f32 %v5810_v21, %v5811_v32 }
 0x4bb   : > { %v5814_v56 = vsel %vm5779_vm3, %v5722_v62, -inf }
 0x4bc   : > { %v5815_v37 = vmax.f32 %v5813_v19, %v5814_v56  ;;  %v5857_v15 = vsel %vm4744_vm4, %v5809_v16, %v5806_v26 }
 0x4bd   : > { %v5858_v59 = vsel %vm4746_vm5, %v5812_v58, %v5857_v15 }
 0x4be   : > { %v5859_v48 = vsel %vm4748_vm6, %v5815_v37, %v5858_v59 }
 0x4bf   : > { %5871 = vst.msk [vmem:[#allocation4 + $0x19] sm:$0xf] %vm5868_vm8, %v5859_v48 }
 0x4c6   : > { %v6658_v9 = vld [vmem:[#allocation4 + $0x10] ss:$8 sps:$4 sm:$0xff]  }
 0x4c7   : > { %v6659_v55 = vld [vmem:[#allocation4 + $0x11] ss:$8 sps:$4 sm:$0xff]   ;;  %5987 = vrot.lane.b32.xlu0 %v6658_v9, %s10904_s28 }
 0x4c8   : > { %v5361_v0 = vpop.f32.mrb[12].mxu0  ;;  %v6660_v8 = vld [vmem:[#allocation4 + $0x11] ss:$8 sps:$4 sm:$0xff]   ;;  %5899 = vrot.lane.b32.xlu1 %v6659_v55, %s10905_s16 }
 0x4c9   : > { %v5362_v22 = vadd.f32 %v10140_v39, %v5361_v0  ;;  %v5363_v54 = vpop.f32.mrb[13].mxu0  ;;  %v6661_v7 = vld [vmem:[#allocation4 + $0x12] ss:$8 sps:$4 sm:$0xff]  }
 0x4ca   : > { %v6667_v20 = vld [vmem:[#allocation4 + $0x10] ss:$8 sps:$4 sm:$0xff]  }
 0x4cb   : > { %v5376_v17 = vmax.f32 %v5362_v22, 0.0  ;;  %v6669_v35 = vld [vmem:[#allocation4 + $0x12] ss:$8 sps:$4 sm:$0xff]   ;;  %6005 = vrot.lane.b32.xlu0 %v6660_v8, %s10903_s21  ;;  %5886 = vst.msk [vmem:[#allocation6 + $0x18] sm:$0xff] %vm5779_vm3, %v6667_v20 }
 0x4cc   : > { %5918 = vrot.lane.b32.xlu1 %v6661_v7, %s10904_s28  ;;  %6025 = vst.msk [vmem:[#allocation6 + $0x10] sm:$0xff] %vm5779_vm3, %v6669_v35 }
 0x4cd   : > { %v5488_v31 = vcombine.high %v5376_v17, %v5376_v17  ;;  %v5495_v49 = vrot.slane %v5376_v17, %v10888_v1 }
 0x4cf   : > { %v5502_v5 = vrot.slane %v5488_v31, %v10888_v1  ;;  %v5503_v13 = vcombine.high %v5495_v49, %v5495_v49  ;;  %v5723_v4 = vsel %vm5554_vm7, %v5495_v49, -inf }
 0x4d0   : > { %v5724_v28 = vrot.slane %v5723_v4, 4  ;;  %v5366_v2 = vpop.f32.mrb[14].mxu0 }
 0x4d1   : > { %v5504_v10 = vcombine.high %v5502_v5, %v5502_v5  ;;  %v5730_v18 = vsel %vm5554_vm7, %v5503_v13, -inf  ;;  %v5737_v50 = vsel %vm5554_vm7, %v5502_v5, -inf  ;;  %v5367_v42 = vadd.f32 %v10140_v39, %v5366_v2  ;;  %v5368_v3 = vpop.f32.mrb[15].mxu0 }
 0x4d2   : > { %v5725_v41 = vmax.f32 %v5723_v4, %v5724_v28  ;;  %v5731_v45 = vrot.slane %v5730_v18, 4  ;;  %v5738_v44 = vrot.slane %v5737_v50, 4 }
 0x4d3   : > { %v5744_v30 = vsel %vm5554_vm7, %v5504_v10, -inf  ;;  %v5377_v60 = vmax.f32 %v5367_v42, 0.0 }
 0x4d4   : > { %v5726_v63 = vrot.slane %v5725_v41, 2  ;;  %v5732_v12 = vmax.f32 %v5730_v18, %v5731_v45  ;;  %v5739_v26 = vmax.f32 %v5737_v50, %v5738_v44  ;;  %v5745_v21 = vrot.slane %v5744_v30, 4 }
 0x4d5   : > { %v5505_v62 = vcombine.high %v5377_v60, %v5377_v60  ;;  %v5512_v61 = vrot.slane %v5377_v60, %v10888_v1 }
 0x4d6   : > { %v5733_v32 = vrot.slane %v5732_v12, 2  ;;  %v5740_v16 = vrot.slane %v5739_v26, 2  ;;  %v5746_v58 = vmax.f32 %v5744_v30, %v5745_v21  ;;  %v5727_v37 = vmax.f32 %v5725_v41, %v5726_v63 }
 0x4d7   : > { %v5519_v19 = vrot.slane %v5505_v62, %v10888_v1  ;;  %v5520_v39 = vcombine.high %v5512_v61, %v5512_v61  ;;  %v5751_v56 = vsel %vm5554_vm7, %v5512_v61, -inf }
 0x4d8   : > { %v5747_v15 = vrot.slane %v5746_v58, 2  ;;  %v5752_v52 = vrot.slane %v5751_v56, 4  ;;  %v5734_v46 = vmax.f32 %v5732_v12, %v5733_v32  ;;  %v5741_v33 = vmax.f32 %v5739_v26, %v5740_v16 }
 0x4d9   : > { %v5521_v6 = vcombine.high %v5519_v19, %v5519_v19  ;;  %v5758_v29 = vsel %vm5554_vm7, %v5520_v39, -inf  ;;  %v5765_v59 = vsel %vm5554_vm7, %v5519_v19, -inf  ;;  %v5728_v51 = vrot.slane %v5727_v37, 1  ;;  %v6066_v19 = vld [vmem:[%s10473_s5 + $0x108] sm:$0xff] }
 0x4da   : > { %v5753_v48 = vmax.f32 %v5751_v56, %v5752_v52  ;;  %v5759_v57 = vrot.slane %v5758_v29, 4  ;;  %v5766_v25 = vrot.slane %v5765_v59, 4  ;;  %v5748_v1 = vmax.f32 %v5746_v58, %v5747_v15  ;;  %v6065_v58 = vld [vmem:[%s10473_s5 + $0x100] sm:$0xff] }
 0x4db   : > { %v5772_v34 = vsel %vm5554_vm7, %v5521_v6, -inf  ;;  %v5735_v23 = vrot.slane %v5734_v46, 1  ;;  %v5742_v14 = vrot.slane %v5741_v33, 1  ;;  %v5729_v55 = vmax.f32 %v5727_v37, %v5728_v51  ;;  %v6068_v51 = vld [vmem:[%s10473_s5 + $0x118] sm:$0xff] }
 0x4dc   : > { %v5754_v11 = vrot.slane %v5753_v48, 2  ;;  %v5760_v36 = vmax.f32 %v5758_v29, %v5759_v57  ;;  %v5767_v47 = vmax.f32 %v5765_v59, %v5766_v25  ;;  %v5773_v27 = vrot.slane %v5772_v34, 4 }
 0x4dd   : > { %v5749_v0 = vrot.slane %v5748_v1, 1  ;;  %v5736_v20 = vmax.f32 %v5734_v46, %v5735_v23  ;;  %v5743_v17 = vmax.f32 %v5741_v33, %v5742_v14  ;;  %v5816_v28 = vsel %vm5779_vm3, %v5729_v55, -inf  ;;  %v6245_v55 = vld [vmem:[%s10475_s7] sm:$0xff] }
 0x4de   : > { %v5755_v53 = vmax.f32 %v5753_v48, %v5754_v11  ;;  %v5761_v24 = vrot.slane %v5760_v36, 2  ;;  %v5768_v38 = vrot.slane %v5767_v47, 2  ;;  %v5774_v9 = vmax.f32 %v5772_v34, %v5773_v27  ;;  %v6067_v34 = vld [vmem:[%s10473_s5 + $0x110] sm:$0xff] }
 0x4df   : > { %v5750_v4 = vmax.f32 %v5748_v1, %v5749_v0  ;;  %v5819_v42 = vsel %vm5779_vm3, %v5736_v20, -inf  ;;  %v5822_v45 = vsel %vm5779_vm3, %v5743_v17, -inf  ;;  %v6580_v39 = vpack.c.bf16 %v6066_v19, %v6065_v58  ;;  %v6246_v0 = vld [vmem:[%s10475_s7 + $0x8] sm:$0xff]  ;;  %v6249_v20 = vld [vmem:[%s10475_s7 + $0x20] sm:$0xff] }
 0x4e0   : > { %v5756_v8 = vrot.slane %v5755_v53, 1  ;;  %v5762_v22 = vmax.f32 %v5760_v36, %v5761_v24  ;;  %v5769_v54 = vmax.f32 %v5767_v47, %v5768_v38  ;;  %v5775_v7 = vrot.slane %v5774_v9, 2  ;;  %v6029_v38 = vld [vmem:[#allocation6 + $0x10] sm:$0xff]  ;;  %v6250_v17 = vld [vmem:[%s10475_s7 + $0x28] sm:$0xff]  ;;  %v6253_v19 = vld [vmem:[%s10476_s8] sm:$0x1] }
 0x4e1   : > { %v5898_v35 = vpop.permute.xlu1 %5897  ;;  %v5825_v26 = vsel %vm5779_vm3, %v5750_v4, -inf  ;;  %6581 = vmatprep.subr.bf16.mxu1 %v6580_v39  ;;  %v6584_v11 = vpack.c.bf16 %v6068_v51, %v6067_v34 }
 0x4e2   : > { %v5757_v31 = vmax.f32 %v5755_v53, %v5756_v8  ;;  %v5763_v49 = vrot.slane %v5762_v22, 1  ;;  %v5770_v5 = vrot.slane %v5769_v54, 1  ;;  %v5776_v13 = vmax.f32 %v5774_v9, %v5775_v7  ;;  %5904 = vst.msk [vmem:[#allocation6] sm:$0xff] %vm5903_vm9, %v5898_v35 }
 0x4e3   : > { %v6589_v8 = vpack.c.bf16 %v6246_v0, %v6245_v55  ;;  %v6595_v35 = vpack.c.bf16 %v6250_v17, %v6249_v20 }
 0x4e4   : > { %v5764_v2 = vmax.f32 %v5762_v22, %v5763_v49  ;;  %v5771_v10 = vmax.f32 %v5769_v54, %v5770_v5  ;;  %v5777_v18 = vrot.slane %v5776_v13, 1  ;;  %v5817_v50 = vsel %vm5779_vm3, %v5757_v31, -inf  ;;  %v6247_v22 = vld [vmem:[%s10475_s7 + $0x10] sm:$0xff]  ;;  %v6248_v54 = vld [vmem:[%s10475_s7 + $0x18] sm:$0xff] }
 0x4e5   : > { %v5818_v3 = vmax.f32 %v5816_v28, %v5817_v50  ;;  %v5917_v41 = vpop.permute.xlu1 %5916  ;;  %v6592_v7 = vpack.c.bf16 %v6248_v54, %v6247_v22  ;;  %v6251_v31 = vld [vmem:[%s10475_s7 + $0x30] sm:$0xff]  ;;  %v6252_v49 = vld [vmem:[%s10475_s7 + $0x38] sm:$0xff] }
 0x4e6   : > { %v5778_v44 = vmax.f32 %v5776_v13, %v5777_v18  ;;  %v5820_v30 = vsel %vm5779_vm3, %v5764_v2, -inf  ;;  %v5823_v60 = vsel %vm5779_vm3, %v5771_v10, -inf  ;;  %5923 = vst.msk [vmem:[#allocation6] sm:$0xff] %vm5922_vm10, %v5917_v41  ;;  %v6598_v5 = vpack.c.bf16 %v6252_v49, %v6251_v31  ;;  %v6430_v18 = vld [vmem:[%s10474_s6] ss:$0 sm:$0xff] }
 0x4e7   : > { %v5821_v63 = vmax.f32 %v5819_v42, %v5820_v30  ;;  %v5824_v12 = vmax.f32 %v5822_v45, %v5823_v60 }
 0x4e8   : > { %v5826_v21 = vsel %vm5779_vm3, %v5778_v44, -inf }
 0x4e9   : > { %v5827_v62 = vmax.f32 %v5825_v26, %v5826_v21  ;;  %v5860_v61 = vsel %vm4744_vm4, %v5821_v63, %v5818_v3  ;;  %vm5941_vm4 = vcmask 1048320  }
 0x4ea   : > { %v5861_v32 = vsel %vm4746_vm5, %v5824_v12, %v5860_v61  ;;  %vm6768_vm5 = vmmov 0  }
 0x4eb   : > { %v5862_v16 = vsel %vm4748_vm6, %v5827_v62, %v5861_v32  ;;  %vm6234_vm6 = vcmask 523264  }
 0x4ec   : > { %5872 = vst.msk [vmem:[#allocation4 + $0x21] sm:$0xf] %vm5868_vm8, %v5862_v16 }
 0x4f3   : > { %v6662_v56 = vld [vmem:[#allocation4 + $0x1a] ss:$8 sps:$4 sm:$0xff]  }
 0x4f4   : > { %v6663_v37 = vld [vmem:[#allocation4 + $0x18] ss:$8 sps:$4 sm:$0xff]   ;;  %5970 = vrot.lane.b32.xlu0 %v6662_v56, %s10905_s16  ;;  %s6330_s16 = scalar_lea.sflag [#allocation8], %s323_s14 }
 0x4f5   : > { %5937 = vrot.lane.b32.xlu1 %v6663_v37, %s10903_s21  ;;  %v5969_v15 = vpop.permute.xlu0 %5968  ;;  %v6668_v6 = vld [vmem:[#allocation4 + $0x19] ss:$8 sps:$4 sm:$0xff]  }
 0x4f6   : > { %v6670_v52 = vld [vmem:[#allocation4 + $0x22] ss:$8 sps:$4 sm:$0xff]   ;;  %5974 = vst.msk [vmem:[#allocation6 + $0x8] sm:$0xff] %vm5903_vm9, %v5969_v15  ;;  %v5936_v59 = vpop.permute.xlu1 %5935 }
 0x4f7   : > { %v6664_v29 = vld [vmem:[#allocation4 + $0x20] ss:$8 sps:$4 sm:$0xff]   ;;  %5942 = vst.msk [vmem:[#allocation6] sm:$0xff] %vm5941_vm4, %v5936_v59 }
 0x4f8   : > { %5957 = vst.msk [vmem:[#allocation6 + $0x20] sm:$0xff] %vm5779_vm3, %v6668_v6  ;;  %6026 = vst.msk [vmem:[#allocation6 + $0x28] sm:$0xff] %vm5779_vm3, %v6670_v52  ;;  %5989 = vrot.lane.b32.xlu0 %v6664_v29, %s10904_s28  ;;  %v6665_v46 = vld [vmem:[#allocation4 + $0x21] ss:$8 sps:$4 sm:$0xff]   ;;  %s10426_s28 = scalar_lea.hbm %s10477_s9, %s6434_s26 }
 0x4fc   : > { %6007 = vrot.lane.b32.xlu0 %v6665_v46, %s10903_s21 }
 0x4fe   : > { %v6027_v36 = vld [vmem:[#allocation6] sm:$0xff] }
 0x4ff   : > { %v6032_v9 = vld [vmem:[#allocation6 + $0x28] sm:$0xff] }
 0x539   : > { %v5988_v33 = vpop.permute.xlu0 %5987 }
 0x53a   : > { %5993 = vst.msk [vmem:[#allocation6 + $0x8] sm:$0xff] %vm5922_vm10, %v5988_v33  ;;  %v5900_v48 = vpop.permute.xlu1 %5899 }
 0x53b   : > { %5905 = vst.msk [vmem:[#allocation6 + $0x18] sm:$0xff] %vm5903_vm9, %v5900_v48 }
 0x53d   : > { %v6006_v57 = vpop.permute.xlu0 %6005 }
 0x53e   : > { %6011 = vst.msk [vmem:[#allocation6 + $0x8] sm:$0xff] %vm5941_vm4, %v6006_v57  ;;  %v5919_v25 = vpop.permute.xlu1 %5918 }
 0x53f   : > { %5924 = vst.msk [vmem:[#allocation6 + $0x18] sm:$0xff] %vm5922_vm10, %v5919_v25 }
 0x545   : > { %v6028_v1 = vld [vmem:[#allocation6 + $0x8] sm:$0xff] }
 0x546   : > { %6146 = vmatprep.mubr.f32.mxu1 %v6028_v1 }
 0x547   : > { %6147 = vmatmul.mubr.f32.vlgmr.msra.gmra.mrb[0].mxu1 %v6027_v36 }
 0x548   : > { %6583 = vmatpush3.bf16.msra.mxu1 %v6580_v39 }
 0x549   : > { %6585 = vmatprep.subr.bf16.mxu1 %v6584_v11 }
 0x54c   : > { %6587 = vmatpush3.bf16.msra.mxu1 %v6584_v11 }
 0x54d   : > { %6588 = vmatprep.subr.bf16.mxu1 %v10895_v43 }
 0x566   : > { %v5971_v47 = vpop.permute.xlu0 %5970 }
 0x567   : > { %5975 = vst.msk [vmem:[#allocation6 + $0x20] sm:$0xff] %vm5903_vm9, %v5971_v47  ;;  %v5938_v27 = vpop.permute.xlu1 %5937 }
 0x568   : > { %5943 = vst.msk [vmem:[#allocation6 + $0x18] sm:$0xff] %vm5941_vm4, %v5938_v27 }
 0x56a   : > { %v5990_v23 = vpop.permute.xlu0 %5989 }
 0x56b   : > { %5994 = vst.msk [vmem:[#allocation6 + $0x20] sm:$0xff] %vm5922_vm10, %v5990_v23 }
 0x56e   : > { %v6008_v14 = vpop.permute.xlu0 %6007 }
 0x56f   : > { %6012 = vst.msk [vmem:[#allocation6 + $0x20] sm:$0xff] %vm5941_vm4, %v6008_v14  ;;  %v6030_v24 = vld [vmem:[#allocation6 + $0x18] sm:$0xff] }
 0x576   : > { %v6031_v53 = vld [vmem:[#allocation6 + $0x20] sm:$0xff] }
 0x577   : > { %6151 = vmatprep.mubr.f32.mxu1 %v6031_v53 }
 0x578   : > { %6152 = vmatmul.mubr.f32.gmra.mrb[2].mxu1 %v6030_v24 }
 0x579   : > { %6499 = vmatprep.mubr.msk.f32.mxu1 %vm5779_vm3, %v6029_v38 }
 0x57c   : > { %6500 = vmatmul.mubr.msk.f32.vlgmr.msra.gmra.mrb[4].mxu1 %vm5779_vm3, %v6032_v9 }
 0x57d   : > { %6590 = vmatpush3.bf16.msra.mxu1 %v6589_v8  ;;  %6518 = vmatprep.mubr.msk.f32.mxu1 %vm6768_vm5, %v10902_v40 }
 0x57e   : > { %6591 = vmatprep.subr.bf16.mxu1 %v10895_v43 }
 0x581   : > { %6593 = vmatpush3.bf16.msra.mxu1 %v6592_v7 }
 0x582   : > { %6594 = vmatprep.subr.bf16.mxu1 %v10895_v43 }
 0x585   : > { %6596 = vmatpush3.bf16.msra.mxu1 %v6595_v35 }
 0x586   : > { %6597 = vmatprep.subr.bf16.mxu1 %v10895_v43 }
 0x589   : > { %6599 = vmatpush3.bf16.msra.mxu1 %v6598_v5 }
 0x61a   : > { %v6470_v13 = vpop.f32.mrb[0].mxu1 }
 0x61b   : > { %v6471_v4 = vpop.f32.mrb[1].mxu1 }
 0x61c   : > { %v6472_v28 = vadd.f32 %v6471_v4, %v6470_v13 }
 0x61e   : > { %v6149_v41 = vadd.f32 %v6472_v28, %v6430_v18 }
 0x64b   : > { %v6473_v2 = vpop.f32.mrb[2].mxu1 }
 0x64c   : > { %v6474_v10 = vpop.f32.mrb[3].mxu1 }
 0x64d   : > { %v6475_v50 = vadd.f32 %v6474_v10, %v6473_v2 }
 0x64f   : > { %v6154_v42 = vadd.f32 %v6475_v50, %v6430_v18  ;;  %v6501_v3 = vpop.f32.mrb[4].mxu1 }
 0x650   : > { %v6223_v45 = vpop.f32.mrb[5].mxu1 }
 0x651   : > { %v6229_v40 = vadd.f32 %v6501_v3, %v6154_v42  ;;  %v6224_v44 = vadd.f32 %v6223_v45, %v6149_v41 }
 0x653   : > { %v6233_v43 = vmax.f32 %v6229_v40, 0.0  ;;  %v6232_v30 = vmax.f32 %v6224_v44, 0.0 }
 0x655   : > { %v6236_v60 = vsel %vm6234_vm6, %v6233_v43, 0.0  ;;  %v6235_v63 = vsel %vm6234_vm6, %v6232_v30, 0.0 }
 0x656   : > { %v6237_v12 = vadd.f32 %v6236_v60, %v6235_v63 }
 0x658   : > { %v6238_v26 = vrot.slane %v6237_v12, 4 }
 0x65a   : > { %v6239_v21 = vadd.f32 %v6238_v26, %v6237_v12 }
 0x65c   : > { %v6240_v62 = vrot.slane %v6239_v21, 2 }
 0x65e   : > { %v6241_v61 = vadd.f32 %v6240_v62, %v6239_v21 }
 0x660   : > { %v6242_v32 = vrot.slane %v6241_v61, 1 }
 0x662   : > { %v6243_v16 = vadd.f32 %v6242_v32, %v6241_v61 }
 0x664   : > { %v6244_v58 = vmul.f32 0.0625, %v6243_v16 }
 0x666   : > { %6519 = vmatmul.mubr.msk.f32.vlgmr.msra.gmra.mrb[6].mxu1 %vm6234_vm6, %v6244_v58 }
 0x739   : > { %v6323_v39 = vpop.f32.mrb[6].mxu1 }
 0x73a   : > { %v6324_v56 = vadd.f32 %v6323_v39, %v6253_v19  ;;  %v6520_v37 = vpop.f32.mrb[7].mxu1 }
 0x73c   : > { %6328 = vst.msk [vmem:[%s324_s24] sm:$0x1] %vm6327_vm11, %v6324_v56 }
 0x73d   : > { %6706 = shalt.err (!%p6703_p3)
}
 0x73e   : > { %s6707_s14 = scalar_lea.hbm %s10426_s28, 16  ;;  %s6711_s24 = scalar_lea.hbm %s10477_s9, 32 }
 0x73f   : > { %p6708_p4 = scmp.ne.s32.totalorder %s10426_s28, %s6707_s14  ;;  %p6712_p9 = scmp.lt.u32.totalorder %s10426_s28, %s10477_s9 }
 0x740   : > { %p6713_p10 = scmp.lt.u32.totalorder %s6711_s24, %s6707_s14  ;;  %p6715_p12 = scmp.lt.u32.totalorder %s6707_s14, %s10426_s28 }
 0x741   : > { %p6709_p7 = pnand %p6708_p4, %p6858_p5 }
 0x742   : > { %p6714_p11 = por %p6713_p10, %p6712_p9 }
 0x743   : > { %p6710_p8 = pneg %p6709_p7 }
 0x744   : > { %p6716_p13 = por %p6715_p12, %p6714_p11 }
 0x746   : > { %p6717_p0 = pnand %p6716_p13, %p6710_p8 }
 0x748   : > { %6720 = shalt.err (!%p6717_p0)
}
 0x749   : > { %6600 = dma.vmem_to_hbm [thread:$0]  (%p6858_p5), %s10428_s23, 16, %s10426_s28, %s6330_s16  }
 0x74a PF: > { %p6606_p1 = scmp.ge.s32.totalorder %s6755_s12, 2  ;;  %s6354_s29 = sand.u32 1, %s6743_s30  }
 0x74b   : > { %s6355_s13 = scalar_lea.sflag [#allocation8], %s6354_s29 }
 0x74c   : > { %p6603_p2 = pnand %p6606_p1, %p6862_p6 }
 0x74e   : > { %6738 = dma.done.wait (!%p6603_p2), %s6355_s13, 16  }
 0x74f   : > { %6740 = vsyncadd (!%p6603_p2), %s6355_s13, 4294967280  ;;  %p19_p3 = scmp.ge.s32.totalorder %s6845_s15, 4   ;;  %s10906_s30 = smov %s6747_s10 }
 0x750   : > { %s10907_s10 = smov %s6751_s11  ;;  %s10908_s11 = smov %s6856_s18 }
 0x751   : > { %s10909_s12 = smov %s6845_s15  ;;  %21 = sbr.rel (!%p19_p3) target bundleno = 3 (0x3), region = 105 }
 0x758   :  { %6359 = vsyncpa [#allocation8], 1 }
 0x759   :  { %6361 = vsyncpa [#allocation8 + $0x1], 1 }

</bundles_post_ra>
